<compile_context>
chip_gen: v7x
topology: tpu7x:2x2x1
jax: 0.10.0
libtpu: 0.0.40
codegen_flags: <defaults>
</compile_context>

<pallas_src>
import jax
import jax.numpy as jnp
import numpy as np
from jax.experimental import pallas as pl
from jax.experimental.pallas import tpu as pltpu

# ---------------- static configuration (matches the PyTorch module defaults) ----------------
EMBED = 8                      # embed_dims (must be divisible by sum(channel_split)=8)
H = W = 16                     # spatial size
N = 2                          # batch
HW = H * W
NP = N * HW                    # fused lane dimension = 512

CH_SPLIT = (1, 3, 4)           # attn_channel_split
DIL = (1, 2, 3)                # attn_dw_dilation
D1 = (CH_SPLIT[1] * EMBED) // sum(CH_SPLIT)     # 3
D2 = (CH_SPLIT[2] * EMBED) // sum(CH_SPLIT)     # 4
D0 = EMBED - D1 - D2                            # 1
K0, K1, K2 = 5, 5, 7
P0 = (1 + 4 * DIL[0]) // 2     # 2
P1 = (1 + 4 * DIL[1]) // 2     # 4
P2 = (1 + 6 * DIL[2]) // 2     # 9

CN = EMBED * N                 # 16  (batch fused into row axis of DW slabs: row = c*N + n)
C1N = D1 * N                   # 6
C2N = D2 * N                   # 8
NTAP = K2 * K2                 # 49 (max taps)
WDW_COLS = NTAP + 1            # +1 column carries the DW_conv0 per-row bias


def _silu(t):
    return t * jax.nn.sigmoid(t)


# ---------------------------------- depthwise branch ----------------------------------
def _dw_branch(x_flat, wtaps, K, dil, P, bias_col=None):
    """Depthwise KxK conv (dilation `dil`, 'same' padding `P`) on a lane-dense slab.

    x_flat : (rows, H*W) f32, row = channel*N + batch, lane = h*W + w.
    wtaps  : (rows, K*K) channel-major tap weights, column index kh*K + kw.
    bias_col: optional (rows, 1) per-row bias (folded into accumulator init).
    """
    rows = x_flat.shape[0]
    halo = P * W + P                       # zero rows (P*W) plus P extra end guards
    L = HW + 2 * halo
    zpad = jnp.zeros((rows, halo), jnp.float32)
    p = jnp.concatenate([zpad, x_flat, zpad], axis=1)          # (rows, L), lane-dense

    # column-within-row index of every padded lane position: (i - P) mod W  (W is pow2)
    ii = jax.lax.broadcasted_iota(jnp.int32, (1, L), 1)
    col = (ii + (W - P)) & (W - 1)

    if bias_col is None:
        acc = [jnp.zeros((rows, HW), jnp.float32),
               jnp.zeros((rows, HW), jnp.float32)]
    else:
        acc = [jnp.broadcast_to(bias_col, (rows, HW)),
               jnp.zeros((rows, HW), jnp.float32)]

    for kw in range(K):                    # kw outer: one mask multiply reused over kh
        dw = kw * dil - P
        valid = jnp.logical_and(col >= dw, col < W + dw)       # kill row wrap-around reads
        pm = p * valid.astype(jnp.float32)                     # (rows, L)
        for kh in range(K):
            start = kh * dil * W + kw * dil                    # static lane offset (shift)
            sl = pm[:, start:start + HW]                       # (rows, HW)
            wtap = wtaps[:, kh * K + kw:kh * K + kw + 1]       # (rows, 1), sublane-resident
            acc[kh & 1] = acc[kh & 1] + sl * wtap              # two independent partials
    return acc[0] + acc[1]


# ---------------------------------- Pallas kernel ----------------------------------
def moga_kernel(x_ref, w_ref, b_ref, wdw_ref, out_ref):
    C = EMBED

    x = x_ref[...]                                   # (C, N*HW), lane-dense, fp32

    # ---- unpack packed parameters ----
    w = w_ref[...]                                   # (4C, C)
    w_p1, w_g = w[0:C], w[C:2 * C]
    w_pw, w_p2 = w[2 * C:3 * C], w[3 * C:4 * C]
    b = b_ref[...]                                   # (C, 8)
    b_p1, sigma, b_g = b[:, 0:1], b[:, 1:2], b[:, 2:3]
    b_pw, b_p2 = b[:, 3:4], b[:, 4:5]                # b_pw already has DW1/2 bias folded in
    wdw = wdw_ref[...]                               # (30, 50) channel-major DW weights

    # ---- feat_decompose: proj_1 -> x + sigma*(x - avgpool(x)) -> SiLU ----
    xp = jnp.dot(w_p1, x, preferred_element_type=jnp.float32) + b_p1        # (C, NP)
    x3 = xp.reshape(C, N, HW)
    x_d = jnp.mean(x3, axis=2, keepdims=True)        # per-(c, n) adaptive_avg_pool2d(x, 1)
    xv = _silu(x3 + sigma[:, :, None] * (x3 - x_d)).reshape(C, NP)

    # ---- gate branch (1x1 conv on MXU) ----
    g = jnp.dot(w_g, xv, preferred_element_type=jnp.float32) + b_g          # (C, NP)

    # ---- value branch: MultiOrderDWConv, lane-dense (c*N+n rows, HW lanes) ----
    xs = xv.reshape(CN, HW)                                                 # (16, 256)

    x0 = _dw_branch(xs, wdw[0:CN, 0:K0 * K0], K0, DIL[0], P0,
                    bias_col=wdw[0:CN, NTAP:NTAP + 1])                      # (16, 256)
    x1c = _dw_branch(x0[D0 * N:(D0 + D1) * N], wdw[CN:CN + C1N, 0:K1 * K1],
                     K1, DIL[1], P1)                                        # (6, 256)
    x2c = _dw_branch(x0[(D0 + D1) * N:CN], wdw[CN + C1N:CN + C1N + C2N, 0:K2 * K2],
                     K2, DIL[2], P2)                                        # (8, 256)

    # concat channel splits in registers, fold batch back into lanes, PW_conv on MXU
    v_cn = jnp.concatenate([x0[0:D0 * N], x1c, x2c], axis=0)                # (CN, HW)
    v_pre = v_cn.reshape(C, NP)                                             # (C, NP)
    v = jnp.dot(w_pw, v_pre, preferred_element_type=jnp.float32) + b_pw

    # ---- gating: proj_2(SiLU(g) * SiLU(v)) + shortcut ----
    gated = _silu(g) * _silu(v)
    out = jnp.dot(w_p2, gated, preferred_element_type=jnp.float32) + b_p2
    out_ref[...] = out + x                                                  # lane-dense store


# ---------------------------------- wrapper ----------------------------------
def pack_params(p):
    (w_p1, b_p1, sigma, w_g, b_g, w_d0, b_d0, w_d1, b_d1,
     w_d2, b_d2, w_pw, b_pw, w_p2, b_p2) = p
    hi = jax.lax.Precision.HIGHEST

    # four 1x1 conv weights -> one (4C, C) slab
    w1x1 = jnp.concatenate([w_p1, w_g, w_pw, w_p2], axis=0)

    # fold the DW_conv1/DW_conv2 biases (per-channel constants added after their conv)
    # into the PW_conv bias: exact linear-algebra identity.
    b_pw_eff = (b_pw
                + jnp.dot(w_pw[:, D0:D0 + D1], b_d1, precision=hi)
                + jnp.dot(w_pw[:, D0 + D1:], b_d2, precision=hi))

    zeros = jnp.zeros_like(b_p1)
    bmat = jnp.stack([b_p1, sigma, b_g, b_pw_eff, b_p2, zeros, zeros, zeros], axis=1)  # (C, 8)

    # depthwise weights: channel-major, repeated per batch element (row = c*N + n),
    # tap columns kh*K + kw, padded to 49 columns; column 49 = DW_conv0 bias per row.
    def cm(wk, K):
        flat = jnp.repeat(wk.reshape(-1, K * K), N, axis=0)      # (ch*N, K*K)
        pad = NTAP - K * K
        if pad:
            flat = jnp.concatenate([flat, jnp.zeros((flat.shape[0], pad), flat.dtype)], axis=1)
        return flat

    w0 = cm(w_d0, K0)                                            # (16, 49)
    w1 = cm(w_d1, K1)                                            # (6, 49)
    w2 = cm(w_d2, K2)                                            # (8, 49)
    biascol = jnp.concatenate(
        [jnp.repeat(b_d0, N), jnp.zeros((C1N + C2N,), jnp.float32)])[:, None]   # (30, 1)
    wdw = jnp.concatenate([jnp.concatenate([w0, w1, w2], axis=0), biascol], axis=1)  # (30, 50)
    return w1x1, bmat, wdw


def moga_forward(x, params):
    n, c, hh, ww = x.shape
    assert (n, c, hh, ww) == (N, EMBED, H, W)
    w1x1, bmat, wdw = pack_params(params)

    # lane-dense fused layout: (N,C,H,W) -> (C, N*H*W)
    x2 = x.transpose(1, 0, 2, 3).reshape(c, n * hh * ww)

    def full(shape):
        return pl.BlockSpec(shape, lambda i: (0, 0))

    out2 = pl.pallas_call(
        moga_kernel,
        out_shape=jax.ShapeDtypeStruct((c, n * hh * ww), jnp.float32),
        grid_spec=pltpu.PrefetchScalarGridSpec(
            num_scalar_prefetch=0,
            grid=(1,),                                   # whole problem in one step (1 TC)
            in_specs=[
                full((c, n * hh * ww)),                  # x  (8, 512)
                full((4 * c, c)),                        # packed 1x1 weights
                full((c, 8)),                            # packed biases + sigma
                full((CN + C1N + C2N, WDW_COLS)),        # packed channel-major DW weights
            ],
            out_specs=full((c, n * hh * ww)),
        ),
        compiler_params=pltpu.CompilerParams(dimension_semantics=("arbitrary",)),
    )(x2, w1x1, bmat, wdw)

    return out2.reshape(c, n, hh, ww).transpose(1, 0, 2, 3)


# ---------------------------------- pure-JAX reference ----------------------------------
def reference(x, p):
    (w_p1, b_p1, sigma, w_g, b_g, w_d0, b_d0, w_d1, b_d1,
     w_d2, b_d2, w_pw, b_pw, w_p2, b_p2) = p

    hi = jax.lax.Precision.HIGHEST

    def conv1x1(t, w, b):
        return jnp.einsum('oc,nchw->nohw', w, t, precision=hi) + b[None, :, None, None]

    def dwconv(t, w, b, dil, pad):
        cg = t.shape[1]
        return jax.lax.conv_general_dilated(
            t, w[:, None, :, :], window_strides=(1, 1),
            padding=[(pad, pad), (pad, pad)], rhs_dilation=(dil, dil),
            dimension_numbers=('NCHW', 'OIHW', 'NCHW'),
            feature_group_count=cg, precision=hi) + b[None, :, None, None]

    shortcut = x
    xp = conv1x1(x, w_p1, b_p1)
    x_d = jnp.mean(xp, axis=(2, 3), keepdims=True)
    xv = xp + sigma[None, :, None, None] * (xp - x_d)
    xv = _silu(xv)
    g = conv1x1(xv, w_g, b_g)
    x0 = dwconv(xv, w_d0, b_d0, DIL[0], P0)
    x1 = dwconv(x0[:, D0:D0 + D1], w_d1, b_d1, DIL[1], P1)
    x2 = dwconv(x0[:, D0 + D1:], w_d2, b_d2, DIL[2], P2)
    vcat = jnp.concatenate([x0[:, :D0], x1, x2], axis=1)
    v = conv1x1(vcat, w_pw, b_pw)
    out = conv1x1(_silu(g) * _silu(v), w_p2, b_p2)
    return out + shortcut


# ---------------------------------- main ----------------------------------
if __name__ == "__main__":
    key = jax.random.PRNGKey(0)
    ks = jax.random.split(key, 16)

    def nrm(k, shape, scale=0.1):
        return scale * jax.random.normal(k, shape, jnp.float32)

    # parameters (deterministic, in-script init; torch layouts noted in comments)
    w_p1 = nrm(ks[0], (EMBED, EMBED));  b_p1 = nrm(ks[1], (EMBED,))       # proj_1 1x1
    sigma = nrm(ks[2], (EMBED,))                                          # ElementScale (1,C,1,1)
    w_g = nrm(ks[3], (EMBED, EMBED));   b_g = nrm(ks[4], (EMBED,))        # gate 1x1
    w_d0 = nrm(ks[5], (EMBED, K0, K0)); b_d0 = nrm(ks[6], (EMBED,))       # DW_conv0 (C,1,5,5)
    w_d1 = nrm(ks[7], (D1, K1, K1));    b_d1 = nrm(ks[8], (D1,))          # DW_conv1 (d1,1,5,5)
    w_d2 = nrm(ks[9], (D2, K2, K2));    b_d2 = nrm(ks[10], (D2,))         # DW_conv2 (d2,1,7,7)
    w_pw = nrm(ks[11], (EMBED, EMBED)); b_pw = nrm(ks[12], (EMBED,))      # PW_conv 1x1
    w_p2 = nrm(ks[13], (EMBED, EMBED)); b_p2 = nrm(ks[14], (EMBED,))      # proj_2 1x1

    x = jax.random.normal(ks[15], (N, EMBED, H, W), jnp.float32)

    params = (w_p1, b_p1, sigma, w_g, b_g, w_d0, b_d0, w_d1, b_d1,
              w_d2, b_d2, w_pw, b_pw, w_p2, b_p2)

    out = moga_forward(x, params)
    out = jax.block_until_ready(out)

    ref = reference(x, params)
    np.testing.assert_allclose(np.asarray(out), np.asarray(ref), rtol=1e-3, atol=1e-4)

    print("KERNEL_OK")
</pallas_src>

<mosaic_0001>
module attributes {stable_mosaic.version = 11 : i64} {
  func.func @moga_kernel(%arg0: i32, %arg1: memref<8x512xf32, #tpu.memory_space<vmem>>, %arg2: memref<32x8xf32, #tpu.memory_space<vmem>>, %arg3: memref<8x8xf32, #tpu.memory_space<vmem>>, %arg4: memref<30x50xf32, #tpu.memory_space<vmem>>, %arg5: memref<8x512xf32, #tpu.memory_space<vmem>>) attributes {dimension_semantics = [#tpu.dimension_semantics<arbitrary>], iteration_bounds = array<i64: 1>, scalar_prefetch = 0 : i64, scratch_operands = 0 : i64, tpu.core_type = #tpu.core_type<tc>, window_params = [{pipeline_mode = #tpu.pipeline_mode<synchronous>, transform_indices = @transform_0, window_bounds = array<i64: 8, 512>}, {pipeline_mode = #tpu.pipeline_mode<synchronous>, transform_indices = @transform_1, window_bounds = array<i64: 32, 8>}, {pipeline_mode = #tpu.pipeline_mode<synchronous>, transform_indices = @transform_2, window_bounds = array<i64: 8, 8>}, {pipeline_mode = #tpu.pipeline_mode<synchronous>, transform_indices = @transform_3, window_bounds = array<i64: 30, 50>}, {pipeline_mode = #tpu.pipeline_mode<synchronous>, transform_indices = @transform_4, window_bounds = array<i64: 8, 512>}]} {
    %c0 = arith.constant 0 : index
    %c0_0 = arith.constant 0 : index
    %0 = vector.load %arg1[%c0, %c0_0] : memref<8x512xf32, #tpu.memory_space<vmem>>, vector<8x512xf32>
    %c0_1 = arith.constant 0 : index
    %c0_2 = arith.constant 0 : index
    %1 = vector.load %arg2[%c0_1, %c0_2] : memref<32x8xf32, #tpu.memory_space<vmem>>, vector<32x8xf32>
    %2 = vector.extract_strided_slice %1 {offsets = [0, 0], sizes = [8, 8], strides = [1, 1]} : vector<32x8xf32> to vector<8x8xf32>
    %3 = vector.extract_strided_slice %1 {offsets = [8, 0], sizes = [8, 8], strides = [1, 1]} : vector<32x8xf32> to vector<8x8xf32>
    %4 = vector.extract_strided_slice %1 {offsets = [16, 0], sizes = [8, 8], strides = [1, 1]} : vector<32x8xf32> to vector<8x8xf32>
    %5 = vector.extract_strided_slice %1 {offsets = [24, 0], sizes = [8, 8], strides = [1, 1]} : vector<32x8xf32> to vector<8x8xf32>
    %c0_3 = arith.constant 0 : index
    %c0_4 = arith.constant 0 : index
    %6 = vector.load %arg3[%c0_3, %c0_4] : memref<8x8xf32, #tpu.memory_space<vmem>>, vector<8x8xf32>
    %7 = vector.extract_strided_slice %6 {offsets = [0, 0], sizes = [8, 1], strides = [1, 1]} : vector<8x8xf32> to vector<8x1xf32>
    %8 = vector.extract_strided_slice %6 {offsets = [0, 1], sizes = [8, 1], strides = [1, 1]} : vector<8x8xf32> to vector<8x1xf32>
    %9 = vector.extract_strided_slice %6 {offsets = [0, 2], sizes = [8, 1], strides = [1, 1]} : vector<8x8xf32> to vector<8x1xf32>
    %10 = vector.extract_strided_slice %6 {offsets = [0, 3], sizes = [8, 1], strides = [1, 1]} : vector<8x8xf32> to vector<8x1xf32>
    %11 = vector.extract_strided_slice %6 {offsets = [0, 4], sizes = [8, 1], strides = [1, 1]} : vector<8x8xf32> to vector<8x1xf32>
    %c0_5 = arith.constant 0 : index
    %c0_6 = arith.constant 0 : index
    %12 = vector.load %arg4[%c0_5, %c0_6] : memref<30x50xf32, #tpu.memory_space<vmem>>, vector<30x50xf32>
    %cst = arith.constant dense<0.000000e+00> : vector<8x512xf32>
    %13 = tpu.matmul %2, %0, %cst {dimension_numbers = #tpu.dot_dimension_numbers<[1], [0], [0], [1], [0, 0, 1, 1], [], []>} : vector<8x8xf32>, vector<8x512xf32>, vector<8x512xf32> -> vector<8x512xf32>
    %14 = vector.broadcast %7 : vector<8x1xf32> to vector<8x512xf32>
    %15 = arith.addf %13, %14 : vector<8x512xf32>
    %16 = vector.shape_cast %15 : vector<8x512xf32> to vector<8x2x256xf32>
    %cst_7 = arith.constant dense<0.000000e+00> : vector<8x2xf32>
    %17 = vector.multi_reduction <add>, %16, %cst_7 [2] : vector<8x2x256xf32> to vector<8x2xf32>
    %18 = vector.shape_cast %17 : vector<8x2xf32> to vector<8x2x1xf32>
    %cst_8 = arith.constant 2.560000e+02 : f32
    %19 = vector.broadcast %cst_8 : f32 to vector<8x2x1xf32>
    %20 = arith.divf %18, %19 : vector<8x2x1xf32>
    %21 = vector.shape_cast %8 : vector<8x1xf32> to vector<8x1x1xf32>
    %22 = vector.broadcast %20 : vector<8x2x1xf32> to vector<8x2x256xf32>
    %23 = arith.subf %16, %22 : vector<8x2x256xf32>
    %24 = vector.broadcast %21 : vector<8x1x1xf32> to vector<8x2x256xf32>
    %25 = arith.mulf %24, %23 : vector<8x2x256xf32>
    %26 = arith.addf %16, %25 : vector<8x2x256xf32>
    %27 = arith.negf %26 : vector<8x2x256xf32>
    %28 = math.exp %27 : vector<8x2x256xf32>
    %cst_9 = arith.constant 1.000000e+00 : f32
    %29 = vector.broadcast %cst_9 : f32 to vector<8x2x256xf32>
    %30 = arith.addf %29, %28 : vector<8x2x256xf32>
    %31 = arith.divf %29, %30 : vector<8x2x256xf32>
    %32 = arith.mulf %26, %31 : vector<8x2x256xf32>
    %33 = vector.shape_cast %32 : vector<8x2x256xf32> to vector<8x512xf32>
    %cst_10 = arith.constant dense<0.000000e+00> : vector<8x512xf32>
    %34 = tpu.matmul %3, %33, %cst_10 {dimension_numbers = #tpu.dot_dimension_numbers<[1], [0], [0], [1], [0, 0, 1, 1], [], []>} : vector<8x8xf32>, vector<8x512xf32>, vector<8x512xf32> -> vector<8x512xf32>
    %35 = vector.broadcast %9 : vector<8x1xf32> to vector<8x512xf32>
    %36 = arith.addf %34, %35 : vector<8x512xf32>
    %37 = vector.shape_cast %33 : vector<8x512xf32> to vector<16x256xf32>
    %38 = vector.extract_strided_slice %12 {offsets = [0, 0], sizes = [16, 25], strides = [1, 1]} : vector<30x50xf32> to vector<16x25xf32>
    %39 = vector.extract_strided_slice %12 {offsets = [0, 49], sizes = [16, 1], strides = [1, 1]} : vector<30x50xf32> to vector<16x1xf32>
    %cst_11 = arith.constant 0.000000e+00 : f32
    %40 = vector.broadcast %cst_11 : f32 to vector<16x34xf32>
    %41 = tpu.concatenate %40, %37, %40 in 1 : vector<16x34xf32>, vector<16x256xf32>, vector<16x34xf32> -> vector<16x324xf32>
    %42 = tpu.iota {dimensions = array<i32: 1>} : vector<1x324xi32>
    %c14_i32 = arith.constant 14 : i32
    %43 = vector.broadcast %c14_i32 : i32 to vector<1x324xi32>
    %44 = arith.addi %42, %43 : vector<1x324xi32>
    %c15_i32 = arith.constant 15 : i32
    %45 = vector.broadcast %c15_i32 : i32 to vector<1x324xi32>
    %46 = arith.andi %44, %45 : vector<1x324xi32>
    %47 = vector.shape_cast %39 : vector<16x1xf32> to vector<16x1xf32>
    %48 = vector.broadcast %47 : vector<16x1xf32> to vector<16x256xf32>
    %cst_12 = arith.constant 0.000000e+00 : f32
    %49 = vector.broadcast %cst_12 : f32 to vector<16x256xf32>
    %c-2_i32 = arith.constant -2 : i32
    %50 = vector.broadcast %c-2_i32 : i32 to vector<1x324xi32>
    %51 = arith.cmpi sge, %46, %50 : vector<1x324xi32>
    %c14_i32_13 = arith.constant 14 : i32
    %52 = vector.broadcast %c14_i32_13 : i32 to vector<1x324xi32>
    %53 = arith.cmpi slt, %46, %52 : vector<1x324xi32>
    %54 = arith.andi %51, %53 : vector<1x324xi1>
    %55 = arith.extui %54 : vector<1x324xi1> to vector<1x324xi32>
    %56 = arith.sitofp %55 : vector<1x324xi32> to vector<1x324xf32>
    %57 = vector.broadcast %56 : vector<1x324xf32> to vector<16x324xf32>
    %58 = arith.mulf %41, %57 : vector<16x324xf32>
    %59 = vector.extract_strided_slice %58 {offsets = [0, 0], sizes = [16, 256], strides = [1, 1]} : vector<16x324xf32> to vector<16x256xf32>
    %60 = vector.extract_strided_slice %38 {offsets = [0, 0], sizes = [16, 1], strides = [1, 1]} : vector<16x25xf32> to vector<16x1xf32>
    %61 = vector.broadcast %60 : vector<16x1xf32> to vector<16x256xf32>
    %62 = arith.mulf %59, %61 : vector<16x256xf32>
    %63 = arith.addf %48, %62 : vector<16x256xf32>
    %64 = vector.extract_strided_slice %58 {offsets = [0, 16], sizes = [16, 256], strides = [1, 1]} : vector<16x324xf32> to vector<16x256xf32>
    %65 = vector.extract_strided_slice %38 {offsets = [0, 5], sizes = [16, 1], strides = [1, 1]} : vector<16x25xf32> to vector<16x1xf32>
    %66 = vector.broadcast %65 : vector<16x1xf32> to vector<16x256xf32>
    %67 = arith.mulf %64, %66 : vector<16x256xf32>
    %68 = arith.addf %49, %67 : vector<16x256xf32>
    %69 = vector.extract_strided_slice %58 {offsets = [0, 32], sizes = [16, 256], strides = [1, 1]} : vector<16x324xf32> to vector<16x256xf32>
    %70 = vector.extract_strided_slice %38 {offsets = [0, 10], sizes = [16, 1], strides = [1, 1]} : vector<16x25xf32> to vector<16x1xf32>
    %71 = vector.broadcast %70 : vector<16x1xf32> to vector<16x256xf32>
    %72 = arith.mulf %69, %71 : vector<16x256xf32>
    %73 = arith.addf %63, %72 : vector<16x256xf32>
    %74 = vector.extract_strided_slice %58 {offsets = [0, 48], sizes = [16, 256], strides = [1, 1]} : vector<16x324xf32> to vector<16x256xf32>
    %75 = vector.extract_strided_slice %38 {offsets = [0, 15], sizes = [16, 1], strides = [1, 1]} : vector<16x25xf32> to vector<16x1xf32>
    %76 = vector.broadcast %75 : vector<16x1xf32> to vector<16x256xf32>
    %77 = arith.mulf %74, %76 : vector<16x256xf32>
    %78 = arith.addf %68, %77 : vector<16x256xf32>
    %79 = vector.extract_strided_slice %58 {offsets = [0, 64], sizes = [16, 256], strides = [1, 1]} : vector<16x324xf32> to vector<16x256xf32>
    %80 = vector.extract_strided_slice %38 {offsets = [0, 20], sizes = [16, 1], strides = [1, 1]} : vector<16x25xf32> to vector<16x1xf32>
    %81 = vector.broadcast %80 : vector<16x1xf32> to vector<16x256xf32>
    %82 = arith.mulf %79, %81 : vector<16x256xf32>
    %83 = arith.addf %73, %82 : vector<16x256xf32>
    %c-1_i32 = arith.constant -1 : i32
    %84 = vector.broadcast %c-1_i32 : i32 to vector<1x324xi32>
    %85 = arith.cmpi sge, %46, %84 : vector<1x324xi32>
    %c15_i32_14 = arith.constant 15 : i32
    %86 = vector.broadcast %c15_i32_14 : i32 to vector<1x324xi32>
    %87 = arith.cmpi slt, %46, %86 : vector<1x324xi32>
    %88 = arith.andi %85, %87 : vector<1x324xi1>
    %89 = arith.extui %88 : vector<1x324xi1> to vector<1x324xi32>
    %90 = arith.sitofp %89 : vector<1x324xi32> to vector<1x324xf32>
    %91 = vector.broadcast %90 : vector<1x324xf32> to vector<16x324xf32>
    %92 = arith.mulf %41, %91 : vector<16x324xf32>
    %93 = vector.extract_strided_slice %92 {offsets = [0, 1], sizes = [16, 256], strides = [1, 1]} : vector<16x324xf32> to vector<16x256xf32>
    %94 = vector.extract_strided_slice %38 {offsets = [0, 1], sizes = [16, 1], strides = [1, 1]} : vector<16x25xf32> to vector<16x1xf32>
    %95 = vector.broadcast %94 : vector<16x1xf32> to vector<16x256xf32>
    %96 = arith.mulf %93, %95 : vector<16x256xf32>
    %97 = arith.addf %83, %96 : vector<16x256xf32>
    %98 = vector.extract_strided_slice %92 {offsets = [0, 17], sizes = [16, 256], strides = [1, 1]} : vector<16x324xf32> to vector<16x256xf32>
    %99 = vector.extract_strided_slice %38 {offsets = [0, 6], sizes = [16, 1], strides = [1, 1]} : vector<16x25xf32> to vector<16x1xf32>
    %100 = vector.broadcast %99 : vector<16x1xf32> to vector<16x256xf32>
    %101 = arith.mulf %98, %100 : vector<16x256xf32>
    %102 = arith.addf %78, %101 : vector<16x256xf32>
    %103 = vector.extract_strided_slice %92 {offsets = [0, 33], sizes = [16, 256], strides = [1, 1]} : vector<16x324xf32> to vector<16x256xf32>
    %104 = vector.extract_strided_slice %38 {offsets = [0, 11], sizes = [16, 1], strides = [1, 1]} : vector<16x25xf32> to vector<16x1xf32>
    %105 = vector.broadcast %104 : vector<16x1xf32> to vector<16x256xf32>
    %106 = arith.mulf %103, %105 : vector<16x256xf32>
    %107 = arith.addf %97, %106 : vector<16x256xf32>
    %108 = vector.extract_strided_slice %92 {offsets = [0, 49], sizes = [16, 256], strides = [1, 1]} : vector<16x324xf32> to vector<16x256xf32>
    %109 = vector.extract_strided_slice %38 {offsets = [0, 16], sizes = [16, 1], strides = [1, 1]} : vector<16x25xf32> to vector<16x1xf32>
    %110 = vector.broadcast %109 : vector<16x1xf32> to vector<16x256xf32>
    %111 = arith.mulf %108, %110 : vector<16x256xf32>
    %112 = arith.addf %102, %111 : vector<16x256xf32>
    %113 = vector.extract_strided_slice %92 {offsets = [0, 65], sizes = [16, 256], strides = [1, 1]} : vector<16x324xf32> to vector<16x256xf32>
    %114 = vector.extract_strided_slice %38 {offsets = [0, 21], sizes = [16, 1], strides = [1, 1]} : vector<16x25xf32> to vector<16x1xf32>
    %115 = vector.broadcast %114 : vector<16x1xf32> to vector<16x256xf32>
    %116 = arith.mulf %113, %115 : vector<16x256xf32>
    %117 = arith.addf %107, %116 : vector<16x256xf32>
    %c0_i32 = arith.constant 0 : i32
    %118 = vector.broadcast %c0_i32 : i32 to vector<1x324xi32>
    %119 = arith.cmpi sge, %46, %118 : vector<1x324xi32>
    %c16_i32 = arith.constant 16 : i32
    %120 = vector.broadcast %c16_i32 : i32 to vector<1x324xi32>
    %121 = arith.cmpi slt, %46, %120 : vector<1x324xi32>
    %122 = arith.andi %119, %121 : vector<1x324xi1>
    %123 = arith.extui %122 : vector<1x324xi1> to vector<1x324xi32>
    %124 = arith.sitofp %123 : vector<1x324xi32> to vector<1x324xf32>
    %125 = vector.broadcast %124 : vector<1x324xf32> to vector<16x324xf32>
    %126 = arith.mulf %41, %125 : vector<16x324xf32>
    %127 = vector.extract_strided_slice %126 {offsets = [0, 2], sizes = [16, 256], strides = [1, 1]} : vector<16x324xf32> to vector<16x256xf32>
    %128 = vector.extract_strided_slice %38 {offsets = [0, 2], sizes = [16, 1], strides = [1, 1]} : vector<16x25xf32> to vector<16x1xf32>
    %129 = vector.broadcast %128 : vector<16x1xf32> to vector<16x256xf32>
    %130 = arith.mulf %127, %129 : vector<16x256xf32>
    %131 = arith.addf %117, %130 : vector<16x256xf32>
    %132 = vector.extract_strided_slice %126 {offsets = [0, 18], sizes = [16, 256], strides = [1, 1]} : vector<16x324xf32> to vector<16x256xf32>
    %133 = vector.extract_strided_slice %38 {offsets = [0, 7], sizes = [16, 1], strides = [1, 1]} : vector<16x25xf32> to vector<16x1xf32>
    %134 = vector.broadcast %133 : vector<16x1xf32> to vector<16x256xf32>
    %135 = arith.mulf %132, %134 : vector<16x256xf32>
    %136 = arith.addf %112, %135 : vector<16x256xf32>
    %137 = vector.extract_strided_slice %126 {offsets = [0, 34], sizes = [16, 256], strides = [1, 1]} : vector<16x324xf32> to vector<16x256xf32>
    %138 = vector.extract_strided_slice %38 {offsets = [0, 12], sizes = [16, 1], strides = [1, 1]} : vector<16x25xf32> to vector<16x1xf32>
    %139 = vector.broadcast %138 : vector<16x1xf32> to vector<16x256xf32>
    %140 = arith.mulf %137, %139 : vector<16x256xf32>
    %141 = arith.addf %131, %140 : vector<16x256xf32>
    %142 = vector.extract_strided_slice %126 {offsets = [0, 50], sizes = [16, 256], strides = [1, 1]} : vector<16x324xf32> to vector<16x256xf32>
    %143 = vector.extract_strided_slice %38 {offsets = [0, 17], sizes = [16, 1], strides = [1, 1]} : vector<16x25xf32> to vector<16x1xf32>
    %144 = vector.broadcast %143 : vector<16x1xf32> to vector<16x256xf32>
    %145 = arith.mulf %142, %144 : vector<16x256xf32>
    %146 = arith.addf %136, %145 : vector<16x256xf32>
    %147 = vector.extract_strided_slice %126 {offsets = [0, 66], sizes = [16, 256], strides = [1, 1]} : vector<16x324xf32> to vector<16x256xf32>
    %148 = vector.extract_strided_slice %38 {offsets = [0, 22], sizes = [16, 1], strides = [1, 1]} : vector<16x25xf32> to vector<16x1xf32>
    %149 = vector.broadcast %148 : vector<16x1xf32> to vector<16x256xf32>
    %150 = arith.mulf %147, %149 : vector<16x256xf32>
    %151 = arith.addf %141, %150 : vector<16x256xf32>
    %c1_i32 = arith.constant 1 : i32
    %152 = vector.broadcast %c1_i32 : i32 to vector<1x324xi32>
    %153 = arith.cmpi sge, %46, %152 : vector<1x324xi32>
    %c17_i32 = arith.constant 17 : i32
    %154 = vector.broadcast %c17_i32 : i32 to vector<1x324xi32>
    %155 = arith.cmpi slt, %46, %154 : vector<1x324xi32>
    %156 = arith.andi %153, %155 : vector<1x324xi1>
    %157 = arith.extui %156 : vector<1x324xi1> to vector<1x324xi32>
    %158 = arith.sitofp %157 : vector<1x324xi32> to vector<1x324xf32>
    %159 = vector.broadcast %158 : vector<1x324xf32> to vector<16x324xf32>
    %160 = arith.mulf %41, %159 : vector<16x324xf32>
    %161 = vector.extract_strided_slice %160 {offsets = [0, 3], sizes = [16, 256], strides = [1, 1]} : vector<16x324xf32> to vector<16x256xf32>
    %162 = vector.extract_strided_slice %38 {offsets = [0, 3], sizes = [16, 1], strides = [1, 1]} : vector<16x25xf32> to vector<16x1xf32>
    %163 = vector.broadcast %162 : vector<16x1xf32> to vector<16x256xf32>
    %164 = arith.mulf %161, %163 : vector<16x256xf32>
    %165 = arith.addf %151, %164 : vector<16x256xf32>
    %166 = vector.extract_strided_slice %160 {offsets = [0, 19], sizes = [16, 256], strides = [1, 1]} : vector<16x324xf32> to vector<16x256xf32>
    %167 = vector.extract_strided_slice %38 {offsets = [0, 8], sizes = [16, 1], strides = [1, 1]} : vector<16x25xf32> to vector<16x1xf32>
    %168 = vector.broadcast %167 : vector<16x1xf32> to vector<16x256xf32>
    %169 = arith.mulf %166, %168 : vector<16x256xf32>
    %170 = arith.addf %146, %169 : vector<16x256xf32>
    %171 = vector.extract_strided_slice %160 {offsets = [0, 35], sizes = [16, 256], strides = [1, 1]} : vector<16x324xf32> to vector<16x256xf32>
    %172 = vector.extract_strided_slice %38 {offsets = [0, 13], sizes = [16, 1], strides = [1, 1]} : vector<16x25xf32> to vector<16x1xf32>
    %173 = vector.broadcast %172 : vector<16x1xf32> to vector<16x256xf32>
    %174 = arith.mulf %171, %173 : vector<16x256xf32>
    %175 = arith.addf %165, %174 : vector<16x256xf32>
    %176 = vector.extract_strided_slice %160 {offsets = [0, 51], sizes = [16, 256], strides = [1, 1]} : vector<16x324xf32> to vector<16x256xf32>
    %177 = vector.extract_strided_slice %38 {offsets = [0, 18], sizes = [16, 1], strides = [1, 1]} : vector<16x25xf32> to vector<16x1xf32>
    %178 = vector.broadcast %177 : vector<16x1xf32> to vector<16x256xf32>
    %179 = arith.mulf %176, %178 : vector<16x256xf32>
    %180 = arith.addf %170, %179 : vector<16x256xf32>
    %181 = vector.extract_strided_slice %160 {offsets = [0, 67], sizes = [16, 256], strides = [1, 1]} : vector<16x324xf32> to vector<16x256xf32>
    %182 = vector.extract_strided_slice %38 {offsets = [0, 23], sizes = [16, 1], strides = [1, 1]} : vector<16x25xf32> to vector<16x1xf32>
    %183 = vector.broadcast %182 : vector<16x1xf32> to vector<16x256xf32>
    %184 = arith.mulf %181, %183 : vector<16x256xf32>
    %185 = arith.addf %175, %184 : vector<16x256xf32>
    %c2_i32 = arith.constant 2 : i32
    %186 = vector.broadcast %c2_i32 : i32 to vector<1x324xi32>
    %187 = arith.cmpi sge, %46, %186 : vector<1x324xi32>
    %c18_i32 = arith.constant 18 : i32
    %188 = vector.broadcast %c18_i32 : i32 to vector<1x324xi32>
    %189 = arith.cmpi slt, %46, %188 : vector<1x324xi32>
    %190 = arith.andi %187, %189 : vector<1x324xi1>
    %191 = arith.extui %190 : vector<1x324xi1> to vector<1x324xi32>
    %192 = arith.sitofp %191 : vector<1x324xi32> to vector<1x324xf32>
    %193 = vector.broadcast %192 : vector<1x324xf32> to vector<16x324xf32>
    %194 = arith.mulf %41, %193 : vector<16x324xf32>
    %195 = vector.extract_strided_slice %194 {offsets = [0, 4], sizes = [16, 256], strides = [1, 1]} : vector<16x324xf32> to vector<16x256xf32>
    %196 = vector.extract_strided_slice %38 {offsets = [0, 4], sizes = [16, 1], strides = [1, 1]} : vector<16x25xf32> to vector<16x1xf32>
    %197 = vector.broadcast %196 : vector<16x1xf32> to vector<16x256xf32>
    %198 = arith.mulf %195, %197 : vector<16x256xf32>
    %199 = arith.addf %185, %198 : vector<16x256xf32>
    %200 = vector.extract_strided_slice %194 {offsets = [0, 20], sizes = [16, 256], strides = [1, 1]} : vector<16x324xf32> to vector<16x256xf32>
    %201 = vector.extract_strided_slice %38 {offsets = [0, 9], sizes = [16, 1], strides = [1, 1]} : vector<16x25xf32> to vector<16x1xf32>
    %202 = vector.broadcast %201 : vector<16x1xf32> to vector<16x256xf32>
    %203 = arith.mulf %200, %202 : vector<16x256xf32>
    %204 = arith.addf %180, %203 : vector<16x256xf32>
    %205 = vector.extract_strided_slice %194 {offsets = [0, 36], sizes = [16, 256], strides = [1, 1]} : vector<16x324xf32> to vector<16x256xf32>
    %206 = vector.extract_strided_slice %38 {offsets = [0, 14], sizes = [16, 1], strides = [1, 1]} : vector<16x25xf32> to vector<16x1xf32>
    %207 = vector.broadcast %206 : vector<16x1xf32> to vector<16x256xf32>
    %208 = arith.mulf %205, %207 : vector<16x256xf32>
    %209 = arith.addf %199, %208 : vector<16x256xf32>
    %210 = vector.extract_strided_slice %194 {offsets = [0, 52], sizes = [16, 256], strides = [1, 1]} : vector<16x324xf32> to vector<16x256xf32>
    %211 = vector.extract_strided_slice %38 {offsets = [0, 19], sizes = [16, 1], strides = [1, 1]} : vector<16x25xf32> to vector<16x1xf32>
    %212 = vector.broadcast %211 : vector<16x1xf32> to vector<16x256xf32>
    %213 = arith.mulf %210, %212 : vector<16x256xf32>
    %214 = arith.addf %204, %213 : vector<16x256xf32>
    %215 = vector.extract_strided_slice %194 {offsets = [0, 68], sizes = [16, 256], strides = [1, 1]} : vector<16x324xf32> to vector<16x256xf32>
    %216 = vector.extract_strided_slice %38 {offsets = [0, 24], sizes = [16, 1], strides = [1, 1]} : vector<16x25xf32> to vector<16x1xf32>
    %217 = vector.broadcast %216 : vector<16x1xf32> to vector<16x256xf32>
    %218 = arith.mulf %215, %217 : vector<16x256xf32>
    %219 = arith.addf %209, %218 : vector<16x256xf32>
    %220 = arith.addf %219, %214 : vector<16x256xf32>
    %221 = vector.extract_strided_slice %220 {offsets = [2, 0], sizes = [6, 256], strides = [1, 1]} : vector<16x256xf32> to vector<6x256xf32>
    %222 = vector.extract_strided_slice %12 {offsets = [16, 0], sizes = [6, 25], strides = [1, 1]} : vector<30x50xf32> to vector<6x25xf32>
    %cst_15 = arith.constant 0.000000e+00 : f32
    %223 = vector.broadcast %cst_15 : f32 to vector<6x68xf32>
    %224 = tpu.concatenate %223, %221, %223 in 1 : vector<6x68xf32>, vector<6x256xf32>, vector<6x68xf32> -> vector<6x392xf32>
    %225 = tpu.iota {dimensions = array<i32: 1>} : vector<1x392xi32>
    %c12_i32 = arith.constant 12 : i32
    %226 = vector.broadcast %c12_i32 : i32 to vector<1x392xi32>
    %227 = arith.addi %225, %226 : vector<1x392xi32>
    %c15_i32_16 = arith.constant 15 : i32
    %228 = vector.broadcast %c15_i32_16 : i32 to vector<1x392xi32>
    %229 = arith.andi %227, %228 : vector<1x392xi32>
    %cst_17 = arith.constant 0.000000e+00 : f32
    %230 = vector.broadcast %cst_17 : f32 to vector<6x256xf32>
    %cst_18 = arith.constant 0.000000e+00 : f32
    %231 = vector.broadcast %cst_18 : f32 to vector<6x256xf32>
    %c-4_i32 = arith.constant -4 : i32
    %232 = vector.broadcast %c-4_i32 : i32 to vector<1x392xi32>
    %233 = arith.cmpi sge, %229, %232 : vector<1x392xi32>
    %c12_i32_19 = arith.constant 12 : i32
    %234 = vector.broadcast %c12_i32_19 : i32 to vector<1x392xi32>
    %235 = arith.cmpi slt, %229, %234 : vector<1x392xi32>
    %236 = arith.andi %233, %235 : vector<1x392xi1>
    %237 = arith.extui %236 : vector<1x392xi1> to vector<1x392xi32>
    %238 = arith.sitofp %237 : vector<1x392xi32> to vector<1x392xf32>
    %239 = vector.broadcast %238 : vector<1x392xf32> to vector<6x392xf32>
    %240 = arith.mulf %224, %239 : vector<6x392xf32>
    %241 = vector.extract_strided_slice %240 {offsets = [0, 0], sizes = [6, 256], strides = [1, 1]} : vector<6x392xf32> to vector<6x256xf32>
    %242 = vector.extract_strided_slice %222 {offsets = [0, 0], sizes = [6, 1], strides = [1, 1]} : vector<6x25xf32> to vector<6x1xf32>
    %243 = vector.broadcast %242 : vector<6x1xf32> to vector<6x256xf32>
    %244 = arith.mulf %241, %243 : vector<6x256xf32>
    %245 = arith.addf %230, %244 : vector<6x256xf32>
    %246 = vector.extract_strided_slice %240 {offsets = [0, 32], sizes = [6, 256], strides = [1, 1]} : vector<6x392xf32> to vector<6x256xf32>
    %247 = vector.extract_strided_slice %222 {offsets = [0, 5], sizes = [6, 1], strides = [1, 1]} : vector<6x25xf32> to vector<6x1xf32>
    %248 = vector.broadcast %247 : vector<6x1xf32> to vector<6x256xf32>
    %249 = arith.mulf %246, %248 : vector<6x256xf32>
    %250 = arith.addf %231, %249 : vector<6x256xf32>
    %251 = vector.extract_strided_slice %240 {offsets = [0, 64], sizes = [6, 256], strides = [1, 1]} : vector<6x392xf32> to vector<6x256xf32>
    %252 = vector.extract_strided_slice %222 {offsets = [0, 10], sizes = [6, 1], strides = [1, 1]} : vector<6x25xf32> to vector<6x1xf32>
    %253 = vector.broadcast %252 : vector<6x1xf32> to vector<6x256xf32>
    %254 = arith.mulf %251, %253 : vector<6x256xf32>
    %255 = arith.addf %245, %254 : vector<6x256xf32>
    %256 = vector.extract_strided_slice %240 {offsets = [0, 96], sizes = [6, 256], strides = [1, 1]} : vector<6x392xf32> to vector<6x256xf32>
    %257 = vector.extract_strided_slice %222 {offsets = [0, 15], sizes = [6, 1], strides = [1, 1]} : vector<6x25xf32> to vector<6x1xf32>
    %258 = vector.broadcast %257 : vector<6x1xf32> to vector<6x256xf32>
    %259 = arith.mulf %256, %258 : vector<6x256xf32>
    %260 = arith.addf %250, %259 : vector<6x256xf32>
    %261 = vector.extract_strided_slice %240 {offsets = [0, 128], sizes = [6, 256], strides = [1, 1]} : vector<6x392xf32> to vector<6x256xf32>
    %262 = vector.extract_strided_slice %222 {offsets = [0, 20], sizes = [6, 1], strides = [1, 1]} : vector<6x25xf32> to vector<6x1xf32>
    %263 = vector.broadcast %262 : vector<6x1xf32> to vector<6x256xf32>
    %264 = arith.mulf %261, %263 : vector<6x256xf32>
    %265 = arith.addf %255, %264 : vector<6x256xf32>
    %c-2_i32_20 = arith.constant -2 : i32
    %266 = vector.broadcast %c-2_i32_20 : i32 to vector<1x392xi32>
    %267 = arith.cmpi sge, %229, %266 : vector<1x392xi32>
    %c14_i32_21 = arith.constant 14 : i32
    %268 = vector.broadcast %c14_i32_21 : i32 to vector<1x392xi32>
    %269 = arith.cmpi slt, %229, %268 : vector<1x392xi32>
    %270 = arith.andi %267, %269 : vector<1x392xi1>
    %271 = arith.extui %270 : vector<1x392xi1> to vector<1x392xi32>
    %272 = arith.sitofp %271 : vector<1x392xi32> to vector<1x392xf32>
    %273 = vector.broadcast %272 : vector<1x392xf32> to vector<6x392xf32>
    %274 = arith.mulf %224, %273 : vector<6x392xf32>
    %275 = vector.extract_strided_slice %274 {offsets = [0, 2], sizes = [6, 256], strides = [1, 1]} : vector<6x392xf32> to vector<6x256xf32>
    %276 = vector.extract_strided_slice %222 {offsets = [0, 1], sizes = [6, 1], strides = [1, 1]} : vector<6x25xf32> to vector<6x1xf32>
    %277 = vector.broadcast %276 : vector<6x1xf32> to vector<6x256xf32>
    %278 = arith.mulf %275, %277 : vector<6x256xf32>
    %279 = arith.addf %265, %278 : vector<6x256xf32>
    %280 = vector.extract_strided_slice %274 {offsets = [0, 34], sizes = [6, 256], strides = [1, 1]} : vector<6x392xf32> to vector<6x256xf32>
    %281 = vector.extract_strided_slice %222 {offsets = [0, 6], sizes = [6, 1], strides = [1, 1]} : vector<6x25xf32> to vector<6x1xf32>
    %282 = vector.broadcast %281 : vector<6x1xf32> to vector<6x256xf32>
    %283 = arith.mulf %280, %282 : vector<6x256xf32>
    %284 = arith.addf %260, %283 : vector<6x256xf32>
    %285 = vector.extract_strided_slice %274 {offsets = [0, 66], sizes = [6, 256], strides = [1, 1]} : vector<6x392xf32> to vector<6x256xf32>
    %286 = vector.extract_strided_slice %222 {offsets = [0, 11], sizes = [6, 1], strides = [1, 1]} : vector<6x25xf32> to vector<6x1xf32>
    %287 = vector.broadcast %286 : vector<6x1xf32> to vector<6x256xf32>
    %288 = arith.mulf %285, %287 : vector<6x256xf32>
    %289 = arith.addf %279, %288 : vector<6x256xf32>
    %290 = vector.extract_strided_slice %274 {offsets = [0, 98], sizes = [6, 256], strides = [1, 1]} : vector<6x392xf32> to vector<6x256xf32>
    %291 = vector.extract_strided_slice %222 {offsets = [0, 16], sizes = [6, 1], strides = [1, 1]} : vector<6x25xf32> to vector<6x1xf32>
    %292 = vector.broadcast %291 : vector<6x1xf32> to vector<6x256xf32>
    %293 = arith.mulf %290, %292 : vector<6x256xf32>
    %294 = arith.addf %284, %293 : vector<6x256xf32>
    %295 = vector.extract_strided_slice %274 {offsets = [0, 130], sizes = [6, 256], strides = [1, 1]} : vector<6x392xf32> to vector<6x256xf32>
    %296 = vector.extract_strided_slice %222 {offsets = [0, 21], sizes = [6, 1], strides = [1, 1]} : vector<6x25xf32> to vector<6x1xf32>
    %297 = vector.broadcast %296 : vector<6x1xf32> to vector<6x256xf32>
    %298 = arith.mulf %295, %297 : vector<6x256xf32>
    %299 = arith.addf %289, %298 : vector<6x256xf32>
    %c0_i32_22 = arith.constant 0 : i32
    %300 = vector.broadcast %c0_i32_22 : i32 to vector<1x392xi32>
    %301 = arith.cmpi sge, %229, %300 : vector<1x392xi32>
    %c16_i32_23 = arith.constant 16 : i32
    %302 = vector.broadcast %c16_i32_23 : i32 to vector<1x392xi32>
    %303 = arith.cmpi slt, %229, %302 : vector<1x392xi32>
    %304 = arith.andi %301, %303 : vector<1x392xi1>
    %305 = arith.extui %304 : vector<1x392xi1> to vector<1x392xi32>
    %306 = arith.sitofp %305 : vector<1x392xi32> to vector<1x392xf32>
    %307 = vector.broadcast %306 : vector<1x392xf32> to vector<6x392xf32>
    %308 = arith.mulf %224, %307 : vector<6x392xf32>
    %309 = vector.extract_strided_slice %308 {offsets = [0, 4], sizes = [6, 256], strides = [1, 1]} : vector<6x392xf32> to vector<6x256xf32>
    %310 = vector.extract_strided_slice %222 {offsets = [0, 2], sizes = [6, 1], strides = [1, 1]} : vector<6x25xf32> to vector<6x1xf32>
    %311 = vector.broadcast %310 : vector<6x1xf32> to vector<6x256xf32>
    %312 = arith.mulf %309, %311 : vector<6x256xf32>
    %313 = arith.addf %299, %312 : vector<6x256xf32>
    %314 = vector.extract_strided_slice %308 {offsets = [0, 36], sizes = [6, 256], strides = [1, 1]} : vector<6x392xf32> to vector<6x256xf32>
    %315 = vector.extract_strided_slice %222 {offsets = [0, 7], sizes = [6, 1], strides = [1, 1]} : vector<6x25xf32> to vector<6x1xf32>
    %316 = vector.broadcast %315 : vector<6x1xf32> to vector<6x256xf32>
    %317 = arith.mulf %314, %316 : vector<6x256xf32>
    %318 = arith.addf %294, %317 : vector<6x256xf32>
    %319 = vector.extract_strided_slice %308 {offsets = [0, 68], sizes = [6, 256], strides = [1, 1]} : vector<6x392xf32> to vector<6x256xf32>
    %320 = vector.extract_strided_slice %222 {offsets = [0, 12], sizes = [6, 1], strides = [1, 1]} : vector<6x25xf32> to vector<6x1xf32>
    %321 = vector.broadcast %320 : vector<6x1xf32> to vector<6x256xf32>
    %322 = arith.mulf %319, %321 : vector<6x256xf32>
    %323 = arith.addf %313, %322 : vector<6x256xf32>
    %324 = vector.extract_strided_slice %308 {offsets = [0, 100], sizes = [6, 256], strides = [1, 1]} : vector<6x392xf32> to vector<6x256xf32>
    %325 = vector.extract_strided_slice %222 {offsets = [0, 17], sizes = [6, 1], strides = [1, 1]} : vector<6x25xf32> to vector<6x1xf32>
    %326 = vector.broadcast %325 : vector<6x1xf32> to vector<6x256xf32>
    %327 = arith.mulf %324, %326 : vector<6x256xf32>
    %328 = arith.addf %318, %327 : vector<6x256xf32>
    %329 = vector.extract_strided_slice %308 {offsets = [0, 132], sizes = [6, 256], strides = [1, 1]} : vector<6x392xf32> to vector<6x256xf32>
    %330 = vector.extract_strided_slice %222 {offsets = [0, 22], sizes = [6, 1], strides = [1, 1]} : vector<6x25xf32> to vector<6x1xf32>
    %331 = vector.broadcast %330 : vector<6x1xf32> to vector<6x256xf32>
    %332 = arith.mulf %329, %331 : vector<6x256xf32>
    %333 = arith.addf %323, %332 : vector<6x256xf32>
    %c2_i32_24 = arith.constant 2 : i32
    %334 = vector.broadcast %c2_i32_24 : i32 to vector<1x392xi32>
    %335 = arith.cmpi sge, %229, %334 : vector<1x392xi32>
    %c18_i32_25 = arith.constant 18 : i32
    %336 = vector.broadcast %c18_i32_25 : i32 to vector<1x392xi32>
    %337 = arith.cmpi slt, %229, %336 : vector<1x392xi32>
    %338 = arith.andi %335, %337 : vector<1x392xi1>
    %339 = arith.extui %338 : vector<1x392xi1> to vector<1x392xi32>
    %340 = arith.sitofp %339 : vector<1x392xi32> to vector<1x392xf32>
    %341 = vector.broadcast %340 : vector<1x392xf32> to vector<6x392xf32>
    %342 = arith.mulf %224, %341 : vector<6x392xf32>
    %343 = vector.extract_strided_slice %342 {offsets = [0, 6], sizes = [6, 256], strides = [1, 1]} : vector<6x392xf32> to vector<6x256xf32>
    %344 = vector.extract_strided_slice %222 {offsets = [0, 3], sizes = [6, 1], strides = [1, 1]} : vector<6x25xf32> to vector<6x1xf32>
    %345 = vector.broadcast %344 : vector<6x1xf32> to vector<6x256xf32>
    %346 = arith.mulf %343, %345 : vector<6x256xf32>
    %347 = arith.addf %333, %346 : vector<6x256xf32>
    %348 = vector.extract_strided_slice %342 {offsets = [0, 38], sizes = [6, 256], strides = [1, 1]} : vector<6x392xf32> to vector<6x256xf32>
    %349 = vector.extract_strided_slice %222 {offsets = [0, 8], sizes = [6, 1], strides = [1, 1]} : vector<6x25xf32> to vector<6x1xf32>
    %350 = vector.broadcast %349 : vector<6x1xf32> to vector<6x256xf32>
    %351 = arith.mulf %348, %350 : vector<6x256xf32>
    %352 = arith.addf %328, %351 : vector<6x256xf32>
    %353 = vector.extract_strided_slice %342 {offsets = [0, 70], sizes = [6, 256], strides = [1, 1]} : vector<6x392xf32> to vector<6x256xf32>
    %354 = vector.extract_strided_slice %222 {offsets = [0, 13], sizes = [6, 1], strides = [1, 1]} : vector<6x25xf32> to vector<6x1xf32>
    %355 = vector.broadcast %354 : vector<6x1xf32> to vector<6x256xf32>
    %356 = arith.mulf %353, %355 : vector<6x256xf32>
    %357 = arith.addf %347, %356 : vector<6x256xf32>
    %358 = vector.extract_strided_slice %342 {offsets = [0, 102], sizes = [6, 256], strides = [1, 1]} : vector<6x392xf32> to vector<6x256xf32>
    %359 = vector.extract_strided_slice %222 {offsets = [0, 18], sizes = [6, 1], strides = [1, 1]} : vector<6x25xf32> to vector<6x1xf32>
    %360 = vector.broadcast %359 : vector<6x1xf32> to vector<6x256xf32>
    %361 = arith.mulf %358, %360 : vector<6x256xf32>
    %362 = arith.addf %352, %361 : vector<6x256xf32>
    %363 = vector.extract_strided_slice %342 {offsets = [0, 134], sizes = [6, 256], strides = [1, 1]} : vector<6x392xf32> to vector<6x256xf32>
    %364 = vector.extract_strided_slice %222 {offsets = [0, 23], sizes = [6, 1], strides = [1, 1]} : vector<6x25xf32> to vector<6x1xf32>
    %365 = vector.broadcast %364 : vector<6x1xf32> to vector<6x256xf32>
    %366 = arith.mulf %363, %365 : vector<6x256xf32>
    %367 = arith.addf %357, %366 : vector<6x256xf32>
    %c4_i32 = arith.constant 4 : i32
    %368 = vector.broadcast %c4_i32 : i32 to vector<1x392xi32>
    %369 = arith.cmpi sge, %229, %368 : vector<1x392xi32>
    %c20_i32 = arith.constant 20 : i32
    %370 = vector.broadcast %c20_i32 : i32 to vector<1x392xi32>
    %371 = arith.cmpi slt, %229, %370 : vector<1x392xi32>
    %372 = arith.andi %369, %371 : vector<1x392xi1>
    %373 = arith.extui %372 : vector<1x392xi1> to vector<1x392xi32>
    %374 = arith.sitofp %373 : vector<1x392xi32> to vector<1x392xf32>
    %375 = vector.broadcast %374 : vector<1x392xf32> to vector<6x392xf32>
    %376 = arith.mulf %224, %375 : vector<6x392xf32>
    %377 = vector.extract_strided_slice %376 {offsets = [0, 8], sizes = [6, 256], strides = [1, 1]} : vector<6x392xf32> to vector<6x256xf32>
    %378 = vector.extract_strided_slice %222 {offsets = [0, 4], sizes = [6, 1], strides = [1, 1]} : vector<6x25xf32> to vector<6x1xf32>
    %379 = vector.broadcast %378 : vector<6x1xf32> to vector<6x256xf32>
    %380 = arith.mulf %377, %379 : vector<6x256xf32>
    %381 = arith.addf %367, %380 : vector<6x256xf32>
    %382 = vector.extract_strided_slice %376 {offsets = [0, 40], sizes = [6, 256], strides = [1, 1]} : vector<6x392xf32> to vector<6x256xf32>
    %383 = vector.extract_strided_slice %222 {offsets = [0, 9], sizes = [6, 1], strides = [1, 1]} : vector<6x25xf32> to vector<6x1xf32>
    %384 = vector.broadcast %383 : vector<6x1xf32> to vector<6x256xf32>
    %385 = arith.mulf %382, %384 : vector<6x256xf32>
    %386 = arith.addf %362, %385 : vector<6x256xf32>
    %387 = vector.extract_strided_slice %376 {offsets = [0, 72], sizes = [6, 256], strides = [1, 1]} : vector<6x392xf32> to vector<6x256xf32>
    %388 = vector.extract_strided_slice %222 {offsets = [0, 14], sizes = [6, 1], strides = [1, 1]} : vector<6x25xf32> to vector<6x1xf32>
    %389 = vector.broadcast %388 : vector<6x1xf32> to vector<6x256xf32>
    %390 = arith.mulf %387, %389 : vector<6x256xf32>
    %391 = arith.addf %381, %390 : vector<6x256xf32>
    %392 = vector.extract_strided_slice %376 {offsets = [0, 104], sizes = [6, 256], strides = [1, 1]} : vector<6x392xf32> to vector<6x256xf32>
    %393 = vector.extract_strided_slice %222 {offsets = [0, 19], sizes = [6, 1], strides = [1, 1]} : vector<6x25xf32> to vector<6x1xf32>
    %394 = vector.broadcast %393 : vector<6x1xf32> to vector<6x256xf32>
    %395 = arith.mulf %392, %394 : vector<6x256xf32>
    %396 = arith.addf %386, %395 : vector<6x256xf32>
    %397 = vector.extract_strided_slice %376 {offsets = [0, 136], sizes = [6, 256], strides = [1, 1]} : vector<6x392xf32> to vector<6x256xf32>
    %398 = vector.extract_strided_slice %222 {offsets = [0, 24], sizes = [6, 1], strides = [1, 1]} : vector<6x25xf32> to vector<6x1xf32>
    %399 = vector.broadcast %398 : vector<6x1xf32> to vector<6x256xf32>
    %400 = arith.mulf %397, %399 : vector<6x256xf32>
    %401 = arith.addf %391, %400 : vector<6x256xf32>
    %402 = arith.addf %401, %396 : vector<6x256xf32>
    %403 = vector.extract_strided_slice %220 {offsets = [8, 0], sizes = [8, 256], strides = [1, 1]} : vector<16x256xf32> to vector<8x256xf32>
    %404 = vector.extract_strided_slice %12 {offsets = [22, 0], sizes = [8, 49], strides = [1, 1]} : vector<30x50xf32> to vector<8x49xf32>
    %cst_26 = arith.constant 0.000000e+00 : f32
    %405 = vector.broadcast %cst_26 : f32 to vector<8x153xf32>
    %406 = tpu.concatenate %405, %403, %405 in 1 : vector<8x153xf32>, vector<8x256xf32>, vector<8x153xf32> -> vector<8x562xf32>
    %407 = tpu.iota {dimensions = array<i32: 1>} : vector<1x562xi32>
    %c7_i32 = arith.constant 7 : i32
    %408 = vector.broadcast %c7_i32 : i32 to vector<1x562xi32>
    %409 = arith.addi %407, %408 : vector<1x562xi32>
    %c15_i32_27 = arith.constant 15 : i32
    %410 = vector.broadcast %c15_i32_27 : i32 to vector<1x562xi32>
    %411 = arith.andi %409, %410 : vector<1x562xi32>
    %cst_28 = arith.constant 0.000000e+00 : f32
    %412 = vector.broadcast %cst_28 : f32 to vector<8x256xf32>
    %cst_29 = arith.constant 0.000000e+00 : f32
    %413 = vector.broadcast %cst_29 : f32 to vector<8x256xf32>
    %c-9_i32 = arith.constant -9 : i32
    %414 = vector.broadcast %c-9_i32 : i32 to vector<1x562xi32>
    %415 = arith.cmpi sge, %411, %414 : vector<1x562xi32>
    %c7_i32_30 = arith.constant 7 : i32
    %416 = vector.broadcast %c7_i32_30 : i32 to vector<1x562xi32>
    %417 = arith.cmpi slt, %411, %416 : vector<1x562xi32>
    %418 = arith.andi %415, %417 : vector<1x562xi1>
    %419 = arith.extui %418 : vector<1x562xi1> to vector<1x562xi32>
    %420 = arith.sitofp %419 : vector<1x562xi32> to vector<1x562xf32>
    %421 = vector.broadcast %420 : vector<1x562xf32> to vector<8x562xf32>
    %422 = arith.mulf %406, %421 : vector<8x562xf32>
    %423 = vector.extract_strided_slice %422 {offsets = [0, 0], sizes = [8, 256], strides = [1, 1]} : vector<8x562xf32> to vector<8x256xf32>
    %424 = vector.extract_strided_slice %404 {offsets = [0, 0], sizes = [8, 1], strides = [1, 1]} : vector<8x49xf32> to vector<8x1xf32>
    %425 = vector.broadcast %424 : vector<8x1xf32> to vector<8x256xf32>
    %426 = arith.mulf %423, %425 : vector<8x256xf32>
    %427 = arith.addf %412, %426 : vector<8x256xf32>
    %428 = vector.extract_strided_slice %422 {offsets = [0, 48], sizes = [8, 256], strides = [1, 1]} : vector<8x562xf32> to vector<8x256xf32>
    %429 = vector.extract_strided_slice %404 {offsets = [0, 7], sizes = [8, 1], strides = [1, 1]} : vector<8x49xf32> to vector<8x1xf32>
    %430 = vector.broadcast %429 : vector<8x1xf32> to vector<8x256xf32>
    %431 = arith.mulf %428, %430 : vector<8x256xf32>
    %432 = arith.addf %413, %431 : vector<8x256xf32>
    %433 = vector.extract_strided_slice %422 {offsets = [0, 96], sizes = [8, 256], strides = [1, 1]} : vector<8x562xf32> to vector<8x256xf32>
    %434 = vector.extract_strided_slice %404 {offsets = [0, 14], sizes = [8, 1], strides = [1, 1]} : vector<8x49xf32> to vector<8x1xf32>
    %435 = vector.broadcast %434 : vector<8x1xf32> to vector<8x256xf32>
    %436 = arith.mulf %433, %435 : vector<8x256xf32>
    %437 = arith.addf %427, %436 : vector<8x256xf32>
    %438 = vector.extract_strided_slice %422 {offsets = [0, 144], sizes = [8, 256], strides = [1, 1]} : vector<8x562xf32> to vector<8x256xf32>
    %439 = vector.extract_strided_slice %404 {offsets = [0, 21], sizes = [8, 1], strides = [1, 1]} : vector<8x49xf32> to vector<8x1xf32>
    %440 = vector.broadcast %439 : vector<8x1xf32> to vector<8x256xf32>
    %441 = arith.mulf %438, %440 : vector<8x256xf32>
    %442 = arith.addf %432, %441 : vector<8x256xf32>
    %443 = vector.extract_strided_slice %422 {offsets = [0, 192], sizes = [8, 256], strides = [1, 1]} : vector<8x562xf32> to vector<8x256xf32>
    %444 = vector.extract_strided_slice %404 {offsets = [0, 28], sizes = [8, 1], strides = [1, 1]} : vector<8x49xf32> to vector<8x1xf32>
    %445 = vector.broadcast %444 : vector<8x1xf32> to vector<8x256xf32>
    %446 = arith.mulf %443, %445 : vector<8x256xf32>
    %447 = arith.addf %437, %446 : vector<8x256xf32>
    %448 = vector.extract_strided_slice %422 {offsets = [0, 240], sizes = [8, 256], strides = [1, 1]} : vector<8x562xf32> to vector<8x256xf32>
    %449 = vector.extract_strided_slice %404 {offsets = [0, 35], sizes = [8, 1], strides = [1, 1]} : vector<8x49xf32> to vector<8x1xf32>
    %450 = vector.broadcast %449 : vector<8x1xf32> to vector<8x256xf32>
    %451 = arith.mulf %448, %450 : vector<8x256xf32>
    %452 = arith.addf %442, %451 : vector<8x256xf32>
    %453 = vector.extract_strided_slice %422 {offsets = [0, 288], sizes = [8, 256], strides = [1, 1]} : vector<8x562xf32> to vector<8x256xf32>
    %454 = vector.extract_strided_slice %404 {offsets = [0, 42], sizes = [8, 1], strides = [1, 1]} : vector<8x49xf32> to vector<8x1xf32>
    %455 = vector.broadcast %454 : vector<8x1xf32> to vector<8x256xf32>
    %456 = arith.mulf %453, %455 : vector<8x256xf32>
    %457 = arith.addf %447, %456 : vector<8x256xf32>
    %c-6_i32 = arith.constant -6 : i32
    %458 = vector.broadcast %c-6_i32 : i32 to vector<1x562xi32>
    %459 = arith.cmpi sge, %411, %458 : vector<1x562xi32>
    %c10_i32 = arith.constant 10 : i32
    %460 = vector.broadcast %c10_i32 : i32 to vector<1x562xi32>
    %461 = arith.cmpi slt, %411, %460 : vector<1x562xi32>
    %462 = arith.andi %459, %461 : vector<1x562xi1>
    %463 = arith.extui %462 : vector<1x562xi1> to vector<1x562xi32>
    %464 = arith.sitofp %463 : vector<1x562xi32> to vector<1x562xf32>
    %465 = vector.broadcast %464 : vector<1x562xf32> to vector<8x562xf32>
    %466 = arith.mulf %406, %465 : vector<8x562xf32>
    %467 = vector.extract_strided_slice %466 {offsets = [0, 3], sizes = [8, 256], strides = [1, 1]} : vector<8x562xf32> to vector<8x256xf32>
    %468 = vector.extract_strided_slice %404 {offsets = [0, 1], sizes = [8, 1], strides = [1, 1]} : vector<8x49xf32> to vector<8x1xf32>
    %469 = vector.broadcast %468 : vector<8x1xf32> to vector<8x256xf32>
    %470 = arith.mulf %467, %469 : vector<8x256xf32>
    %471 = arith.addf %457, %470 : vector<8x256xf32>
    %472 = vector.extract_strided_slice %466 {offsets = [0, 51], sizes = [8, 256], strides = [1, 1]} : vector<8x562xf32> to vector<8x256xf32>
    %473 = vector.extract_strided_slice %404 {offsets = [0, 8], sizes = [8, 1], strides = [1, 1]} : vector<8x49xf32> to vector<8x1xf32>
    %474 = vector.broadcast %473 : vector<8x1xf32> to vector<8x256xf32>
    %475 = arith.mulf %472, %474 : vector<8x256xf32>
    %476 = arith.addf %452, %475 : vector<8x256xf32>
    %477 = vector.extract_strided_slice %466 {offsets = [0, 99], sizes = [8, 256], strides = [1, 1]} : vector<8x562xf32> to vector<8x256xf32>
    %478 = vector.extract_strided_slice %404 {offsets = [0, 15], sizes = [8, 1], strides = [1, 1]} : vector<8x49xf32> to vector<8x1xf32>
    %479 = vector.broadcast %478 : vector<8x1xf32> to vector<8x256xf32>
    %480 = arith.mulf %477, %479 : vector<8x256xf32>
    %481 = arith.addf %471, %480 : vector<8x256xf32>
    %482 = vector.extract_strided_slice %466 {offsets = [0, 147], sizes = [8, 256], strides = [1, 1]} : vector<8x562xf32> to vector<8x256xf32>
    %483 = vector.extract_strided_slice %404 {offsets = [0, 22], sizes = [8, 1], strides = [1, 1]} : vector<8x49xf32> to vector<8x1xf32>
    %484 = vector.broadcast %483 : vector<8x1xf32> to vector<8x256xf32>
    %485 = arith.mulf %482, %484 : vector<8x256xf32>
    %486 = arith.addf %476, %485 : vector<8x256xf32>
    %487 = vector.extract_strided_slice %466 {offsets = [0, 195], sizes = [8, 256], strides = [1, 1]} : vector<8x562xf32> to vector<8x256xf32>
    %488 = vector.extract_strided_slice %404 {offsets = [0, 29], sizes = [8, 1], strides = [1, 1]} : vector<8x49xf32> to vector<8x1xf32>
    %489 = vector.broadcast %488 : vector<8x1xf32> to vector<8x256xf32>
    %490 = arith.mulf %487, %489 : vector<8x256xf32>
    %491 = arith.addf %481, %490 : vector<8x256xf32>
    %492 = vector.extract_strided_slice %466 {offsets = [0, 243], sizes = [8, 256], strides = [1, 1]} : vector<8x562xf32> to vector<8x256xf32>
    %493 = vector.extract_strided_slice %404 {offsets = [0, 36], sizes = [8, 1], strides = [1, 1]} : vector<8x49xf32> to vector<8x1xf32>
    %494 = vector.broadcast %493 : vector<8x1xf32> to vector<8x256xf32>
    %495 = arith.mulf %492, %494 : vector<8x256xf32>
    %496 = arith.addf %486, %495 : vector<8x256xf32>
    %497 = vector.extract_strided_slice %466 {offsets = [0, 291], sizes = [8, 256], strides = [1, 1]} : vector<8x562xf32> to vector<8x256xf32>
    %498 = vector.extract_strided_slice %404 {offsets = [0, 43], sizes = [8, 1], strides = [1, 1]} : vector<8x49xf32> to vector<8x1xf32>
    %499 = vector.broadcast %498 : vector<8x1xf32> to vector<8x256xf32>
    %500 = arith.mulf %497, %499 : vector<8x256xf32>
    %501 = arith.addf %491, %500 : vector<8x256xf32>
    %c-3_i32 = arith.constant -3 : i32
    %502 = vector.broadcast %c-3_i32 : i32 to vector<1x562xi32>
    %503 = arith.cmpi sge, %411, %502 : vector<1x562xi32>
    %c13_i32 = arith.constant 13 : i32
    %504 = vector.broadcast %c13_i32 : i32 to vector<1x562xi32>
    %505 = arith.cmpi slt, %411, %504 : vector<1x562xi32>
    %506 = arith.andi %503, %505 : vector<1x562xi1>
    %507 = arith.extui %506 : vector<1x562xi1> to vector<1x562xi32>
    %508 = arith.sitofp %507 : vector<1x562xi32> to vector<1x562xf32>
    %509 = vector.broadcast %508 : vector<1x562xf32> to vector<8x562xf32>
    %510 = arith.mulf %406, %509 : vector<8x562xf32>
    %511 = vector.extract_strided_slice %510 {offsets = [0, 6], sizes = [8, 256], strides = [1, 1]} : vector<8x562xf32> to vector<8x256xf32>
    %512 = vector.extract_strided_slice %404 {offsets = [0, 2], sizes = [8, 1], strides = [1, 1]} : vector<8x49xf32> to vector<8x1xf32>
    %513 = vector.broadcast %512 : vector<8x1xf32> to vector<8x256xf32>
    %514 = arith.mulf %511, %513 : vector<8x256xf32>
    %515 = arith.addf %501, %514 : vector<8x256xf32>
    %516 = vector.extract_strided_slice %510 {offsets = [0, 54], sizes = [8, 256], strides = [1, 1]} : vector<8x562xf32> to vector<8x256xf32>
    %517 = vector.extract_strided_slice %404 {offsets = [0, 9], sizes = [8, 1], strides = [1, 1]} : vector<8x49xf32> to vector<8x1xf32>
    %518 = vector.broadcast %517 : vector<8x1xf32> to vector<8x256xf32>
    %519 = arith.mulf %516, %518 : vector<8x256xf32>
    %520 = arith.addf %496, %519 : vector<8x256xf32>
    %521 = vector.extract_strided_slice %510 {offsets = [0, 102], sizes = [8, 256], strides = [1, 1]} : vector<8x562xf32> to vector<8x256xf32>
    %522 = vector.extract_strided_slice %404 {offsets = [0, 16], sizes = [8, 1], strides = [1, 1]} : vector<8x49xf32> to vector<8x1xf32>
    %523 = vector.broadcast %522 : vector<8x1xf32> to vector<8x256xf32>
    %524 = arith.mulf %521, %523 : vector<8x256xf32>
    %525 = arith.addf %515, %524 : vector<8x256xf32>
    %526 = vector.extract_strided_slice %510 {offsets = [0, 150], sizes = [8, 256], strides = [1, 1]} : vector<8x562xf32> to vector<8x256xf32>
    %527 = vector.extract_strided_slice %404 {offsets = [0, 23], sizes = [8, 1], strides = [1, 1]} : vector<8x49xf32> to vector<8x1xf32>
    %528 = vector.broadcast %527 : vector<8x1xf32> to vector<8x256xf32>
    %529 = arith.mulf %526, %528 : vector<8x256xf32>
    %530 = arith.addf %520, %529 : vector<8x256xf32>
    %531 = vector.extract_strided_slice %510 {offsets = [0, 198], sizes = [8, 256], strides = [1, 1]} : vector<8x562xf32> to vector<8x256xf32>
    %532 = vector.extract_strided_slice %404 {offsets = [0, 30], sizes = [8, 1], strides = [1, 1]} : vector<8x49xf32> to vector<8x1xf32>
    %533 = vector.broadcast %532 : vector<8x1xf32> to vector<8x256xf32>
    %534 = arith.mulf %531, %533 : vector<8x256xf32>
    %535 = arith.addf %525, %534 : vector<8x256xf32>
    %536 = vector.extract_strided_slice %510 {offsets = [0, 246], sizes = [8, 256], strides = [1, 1]} : vector<8x562xf32> to vector<8x256xf32>
    %537 = vector.extract_strided_slice %404 {offsets = [0, 37], sizes = [8, 1], strides = [1, 1]} : vector<8x49xf32> to vector<8x1xf32>
    %538 = vector.broadcast %537 : vector<8x1xf32> to vector<8x256xf32>
    %539 = arith.mulf %536, %538 : vector<8x256xf32>
    %540 = arith.addf %530, %539 : vector<8x256xf32>
    %541 = vector.extract_strided_slice %510 {offsets = [0, 294], sizes = [8, 256], strides = [1, 1]} : vector<8x562xf32> to vector<8x256xf32>
    %542 = vector.extract_strided_slice %404 {offsets = [0, 44], sizes = [8, 1], strides = [1, 1]} : vector<8x49xf32> to vector<8x1xf32>
    %543 = vector.broadcast %542 : vector<8x1xf32> to vector<8x256xf32>
    %544 = arith.mulf %541, %543 : vector<8x256xf32>
    %545 = arith.addf %535, %544 : vector<8x256xf32>
    %c0_i32_31 = arith.constant 0 : i32
    %546 = vector.broadcast %c0_i32_31 : i32 to vector<1x562xi32>
    %547 = arith.cmpi sge, %411, %546 : vector<1x562xi32>
    %c16_i32_32 = arith.constant 16 : i32
    %548 = vector.broadcast %c16_i32_32 : i32 to vector<1x562xi32>
    %549 = arith.cmpi slt, %411, %548 : vector<1x562xi32>
    %550 = arith.andi %547, %549 : vector<1x562xi1>
    %551 = arith.extui %550 : vector<1x562xi1> to vector<1x562xi32>
    %552 = arith.sitofp %551 : vector<1x562xi32> to vector<1x562xf32>
    %553 = vector.broadcast %552 : vector<1x562xf32> to vector<8x562xf32>
    %554 = arith.mulf %406, %553 : vector<8x562xf32>
    %555 = vector.extract_strided_slice %554 {offsets = [0, 9], sizes = [8, 256], strides = [1, 1]} : vector<8x562xf32> to vector<8x256xf32>
    %556 = vector.extract_strided_slice %404 {offsets = [0, 3], sizes = [8, 1], strides = [1, 1]} : vector<8x49xf32> to vector<8x1xf32>
    %557 = vector.broadcast %556 : vector<8x1xf32> to vector<8x256xf32>
    %558 = arith.mulf %555, %557 : vector<8x256xf32>
    %559 = arith.addf %545, %558 : vector<8x256xf32>
    %560 = vector.extract_strided_slice %554 {offsets = [0, 57], sizes = [8, 256], strides = [1, 1]} : vector<8x562xf32> to vector<8x256xf32>
    %561 = vector.extract_strided_slice %404 {offsets = [0, 10], sizes = [8, 1], strides = [1, 1]} : vector<8x49xf32> to vector<8x1xf32>
    %562 = vector.broadcast %561 : vector<8x1xf32> to vector<8x256xf32>
    %563 = arith.mulf %560, %562 : vector<8x256xf32>
    %564 = arith.addf %540, %563 : vector<8x256xf32>
    %565 = vector.extract_strided_slice %554 {offsets = [0, 105], sizes = [8, 256], strides = [1, 1]} : vector<8x562xf32> to vector<8x256xf32>
    %566 = vector.extract_strided_slice %404 {offsets = [0, 17], sizes = [8, 1], strides = [1, 1]} : vector<8x49xf32> to vector<8x1xf32>
    %567 = vector.broadcast %566 : vector<8x1xf32> to vector<8x256xf32>
    %568 = arith.mulf %565, %567 : vector<8x256xf32>
    %569 = arith.addf %559, %568 : vector<8x256xf32>
    %570 = vector.extract_strided_slice %554 {offsets = [0, 153], sizes = [8, 256], strides = [1, 1]} : vector<8x562xf32> to vector<8x256xf32>
    %571 = vector.extract_strided_slice %404 {offsets = [0, 24], sizes = [8, 1], strides = [1, 1]} : vector<8x49xf32> to vector<8x1xf32>
    %572 = vector.broadcast %571 : vector<8x1xf32> to vector<8x256xf32>
    %573 = arith.mulf %570, %572 : vector<8x256xf32>
    %574 = arith.addf %564, %573 : vector<8x256xf32>
    %575 = vector.extract_strided_slice %554 {offsets = [0, 201], sizes = [8, 256], strides = [1, 1]} : vector<8x562xf32> to vector<8x256xf32>
    %576 = vector.extract_strided_slice %404 {offsets = [0, 31], sizes = [8, 1], strides = [1, 1]} : vector<8x49xf32> to vector<8x1xf32>
    %577 = vector.broadcast %576 : vector<8x1xf32> to vector<8x256xf32>
    %578 = arith.mulf %575, %577 : vector<8x256xf32>
    %579 = arith.addf %569, %578 : vector<8x256xf32>
    %580 = vector.extract_strided_slice %554 {offsets = [0, 249], sizes = [8, 256], strides = [1, 1]} : vector<8x562xf32> to vector<8x256xf32>
    %581 = vector.extract_strided_slice %404 {offsets = [0, 38], sizes = [8, 1], strides = [1, 1]} : vector<8x49xf32> to vector<8x1xf32>
    %582 = vector.broadcast %581 : vector<8x1xf32> to vector<8x256xf32>
    %583 = arith.mulf %580, %582 : vector<8x256xf32>
    %584 = arith.addf %574, %583 : vector<8x256xf32>
    %585 = vector.extract_strided_slice %554 {offsets = [0, 297], sizes = [8, 256], strides = [1, 1]} : vector<8x562xf32> to vector<8x256xf32>
    %586 = vector.extract_strided_slice %404 {offsets = [0, 45], sizes = [8, 1], strides = [1, 1]} : vector<8x49xf32> to vector<8x1xf32>
    %587 = vector.broadcast %586 : vector<8x1xf32> to vector<8x256xf32>
    %588 = arith.mulf %585, %587 : vector<8x256xf32>
    %589 = arith.addf %579, %588 : vector<8x256xf32>
    %c3_i32 = arith.constant 3 : i32
    %590 = vector.broadcast %c3_i32 : i32 to vector<1x562xi32>
    %591 = arith.cmpi sge, %411, %590 : vector<1x562xi32>
    %c19_i32 = arith.constant 19 : i32
    %592 = vector.broadcast %c19_i32 : i32 to vector<1x562xi32>
    %593 = arith.cmpi slt, %411, %592 : vector<1x562xi32>
    %594 = arith.andi %591, %593 : vector<1x562xi1>
    %595 = arith.extui %594 : vector<1x562xi1> to vector<1x562xi32>
    %596 = arith.sitofp %595 : vector<1x562xi32> to vector<1x562xf32>
    %597 = vector.broadcast %596 : vector<1x562xf32> to vector<8x562xf32>
    %598 = arith.mulf %406, %597 : vector<8x562xf32>
    %599 = vector.extract_strided_slice %598 {offsets = [0, 12], sizes = [8, 256], strides = [1, 1]} : vector<8x562xf32> to vector<8x256xf32>
    %600 = vector.extract_strided_slice %404 {offsets = [0, 4], sizes = [8, 1], strides = [1, 1]} : vector<8x49xf32> to vector<8x1xf32>
    %601 = vector.broadcast %600 : vector<8x1xf32> to vector<8x256xf32>
    %602 = arith.mulf %599, %601 : vector<8x256xf32>
    %603 = arith.addf %589, %602 : vector<8x256xf32>
    %604 = vector.extract_strided_slice %598 {offsets = [0, 60], sizes = [8, 256], strides = [1, 1]} : vector<8x562xf32> to vector<8x256xf32>
    %605 = vector.extract_strided_slice %404 {offsets = [0, 11], sizes = [8, 1], strides = [1, 1]} : vector<8x49xf32> to vector<8x1xf32>
    %606 = vector.broadcast %605 : vector<8x1xf32> to vector<8x256xf32>
    %607 = arith.mulf %604, %606 : vector<8x256xf32>
    %608 = arith.addf %584, %607 : vector<8x256xf32>
    %609 = vector.extract_strided_slice %598 {offsets = [0, 108], sizes = [8, 256], strides = [1, 1]} : vector<8x562xf32> to vector<8x256xf32>
    %610 = vector.extract_strided_slice %404 {offsets = [0, 18], sizes = [8, 1], strides = [1, 1]} : vector<8x49xf32> to vector<8x1xf32>
    %611 = vector.broadcast %610 : vector<8x1xf32> to vector<8x256xf32>
    %612 = arith.mulf %609, %611 : vector<8x256xf32>
    %613 = arith.addf %603, %612 : vector<8x256xf32>
    %614 = vector.extract_strided_slice %598 {offsets = [0, 156], sizes = [8, 256], strides = [1, 1]} : vector<8x562xf32> to vector<8x256xf32>
    %615 = vector.extract_strided_slice %404 {offsets = [0, 25], sizes = [8, 1], strides = [1, 1]} : vector<8x49xf32> to vector<8x1xf32>
    %616 = vector.broadcast %615 : vector<8x1xf32> to vector<8x256xf32>
    %617 = arith.mulf %614, %616 : vector<8x256xf32>
    %618 = arith.addf %608, %617 : vector<8x256xf32>
    %619 = vector.extract_strided_slice %598 {offsets = [0, 204], sizes = [8, 256], strides = [1, 1]} : vector<8x562xf32> to vector<8x256xf32>
    %620 = vector.extract_strided_slice %404 {offsets = [0, 32], sizes = [8, 1], strides = [1, 1]} : vector<8x49xf32> to vector<8x1xf32>
    %621 = vector.broadcast %620 : vector<8x1xf32> to vector<8x256xf32>
    %622 = arith.mulf %619, %621 : vector<8x256xf32>
    %623 = arith.addf %613, %622 : vector<8x256xf32>
    %624 = vector.extract_strided_slice %598 {offsets = [0, 252], sizes = [8, 256], strides = [1, 1]} : vector<8x562xf32> to vector<8x256xf32>
    %625 = vector.extract_strided_slice %404 {offsets = [0, 39], sizes = [8, 1], strides = [1, 1]} : vector<8x49xf32> to vector<8x1xf32>
    %626 = vector.broadcast %625 : vector<8x1xf32> to vector<8x256xf32>
    %627 = arith.mulf %624, %626 : vector<8x256xf32>
    %628 = arith.addf %618, %627 : vector<8x256xf32>
    %629 = vector.extract_strided_slice %598 {offsets = [0, 300], sizes = [8, 256], strides = [1, 1]} : vector<8x562xf32> to vector<8x256xf32>
    %630 = vector.extract_strided_slice %404 {offsets = [0, 46], sizes = [8, 1], strides = [1, 1]} : vector<8x49xf32> to vector<8x1xf32>
    %631 = vector.broadcast %630 : vector<8x1xf32> to vector<8x256xf32>
    %632 = arith.mulf %629, %631 : vector<8x256xf32>
    %633 = arith.addf %623, %632 : vector<8x256xf32>
    %c6_i32 = arith.constant 6 : i32
    %634 = vector.broadcast %c6_i32 : i32 to vector<1x562xi32>
    %635 = arith.cmpi sge, %411, %634 : vector<1x562xi32>
    %c22_i32 = arith.constant 22 : i32
    %636 = vector.broadcast %c22_i32 : i32 to vector<1x562xi32>
    %637 = arith.cmpi slt, %411, %636 : vector<1x562xi32>
    %638 = arith.andi %635, %637 : vector<1x562xi1>
    %639 = arith.extui %638 : vector<1x562xi1> to vector<1x562xi32>
    %640 = arith.sitofp %639 : vector<1x562xi32> to vector<1x562xf32>
    %641 = vector.broadcast %640 : vector<1x562xf32> to vector<8x562xf32>
    %642 = arith.mulf %406, %641 : vector<8x562xf32>
    %643 = vector.extract_strided_slice %642 {offsets = [0, 15], sizes = [8, 256], strides = [1, 1]} : vector<8x562xf32> to vector<8x256xf32>
    %644 = vector.extract_strided_slice %404 {offsets = [0, 5], sizes = [8, 1], strides = [1, 1]} : vector<8x49xf32> to vector<8x1xf32>
    %645 = vector.broadcast %644 : vector<8x1xf32> to vector<8x256xf32>
    %646 = arith.mulf %643, %645 : vector<8x256xf32>
    %647 = arith.addf %633, %646 : vector<8x256xf32>
    %648 = vector.extract_strided_slice %642 {offsets = [0, 63], sizes = [8, 256], strides = [1, 1]} : vector<8x562xf32> to vector<8x256xf32>
    %649 = vector.extract_strided_slice %404 {offsets = [0, 12], sizes = [8, 1], strides = [1, 1]} : vector<8x49xf32> to vector<8x1xf32>
    %650 = vector.broadcast %649 : vector<8x1xf32> to vector<8x256xf32>
    %651 = arith.mulf %648, %650 : vector<8x256xf32>
    %652 = arith.addf %628, %651 : vector<8x256xf32>
    %653 = vector.extract_strided_slice %642 {offsets = [0, 111], sizes = [8, 256], strides = [1, 1]} : vector<8x562xf32> to vector<8x256xf32>
    %654 = vector.extract_strided_slice %404 {offsets = [0, 19], sizes = [8, 1], strides = [1, 1]} : vector<8x49xf32> to vector<8x1xf32>
    %655 = vector.broadcast %654 : vector<8x1xf32> to vector<8x256xf32>
    %656 = arith.mulf %653, %655 : vector<8x256xf32>
    %657 = arith.addf %647, %656 : vector<8x256xf32>
    %658 = vector.extract_strided_slice %642 {offsets = [0, 159], sizes = [8, 256], strides = [1, 1]} : vector<8x562xf32> to vector<8x256xf32>
    %659 = vector.extract_strided_slice %404 {offsets = [0, 26], sizes = [8, 1], strides = [1, 1]} : vector<8x49xf32> to vector<8x1xf32>
    %660 = vector.broadcast %659 : vector<8x1xf32> to vector<8x256xf32>
    %661 = arith.mulf %658, %660 : vector<8x256xf32>
    %662 = arith.addf %652, %661 : vector<8x256xf32>
    %663 = vector.extract_strided_slice %642 {offsets = [0, 207], sizes = [8, 256], strides = [1, 1]} : vector<8x562xf32> to vector<8x256xf32>
    %664 = vector.extract_strided_slice %404 {offsets = [0, 33], sizes = [8, 1], strides = [1, 1]} : vector<8x49xf32> to vector<8x1xf32>
    %665 = vector.broadcast %664 : vector<8x1xf32> to vector<8x256xf32>
    %666 = arith.mulf %663, %665 : vector<8x256xf32>
    %667 = arith.addf %657, %666 : vector<8x256xf32>
    %668 = vector.extract_strided_slice %642 {offsets = [0, 255], sizes = [8, 256], strides = [1, 1]} : vector<8x562xf32> to vector<8x256xf32>
    %669 = vector.extract_strided_slice %404 {offsets = [0, 40], sizes = [8, 1], strides = [1, 1]} : vector<8x49xf32> to vector<8x1xf32>
    %670 = vector.broadcast %669 : vector<8x1xf32> to vector<8x256xf32>
    %671 = arith.mulf %668, %670 : vector<8x256xf32>
    %672 = arith.addf %662, %671 : vector<8x256xf32>
    %673 = vector.extract_strided_slice %642 {offsets = [0, 303], sizes = [8, 256], strides = [1, 1]} : vector<8x562xf32> to vector<8x256xf32>
    %674 = vector.extract_strided_slice %404 {offsets = [0, 47], sizes = [8, 1], strides = [1, 1]} : vector<8x49xf32> to vector<8x1xf32>
    %675 = vector.broadcast %674 : vector<8x1xf32> to vector<8x256xf32>
    %676 = arith.mulf %673, %675 : vector<8x256xf32>
    %677 = arith.addf %667, %676 : vector<8x256xf32>
    %c9_i32 = arith.constant 9 : i32
    %678 = vector.broadcast %c9_i32 : i32 to vector<1x562xi32>
    %679 = arith.cmpi sge, %411, %678 : vector<1x562xi32>
    %c25_i32 = arith.constant 25 : i32
    %680 = vector.broadcast %c25_i32 : i32 to vector<1x562xi32>
    %681 = arith.cmpi slt, %411, %680 : vector<1x562xi32>
    %682 = arith.andi %679, %681 : vector<1x562xi1>
    %683 = arith.extui %682 : vector<1x562xi1> to vector<1x562xi32>
    %684 = arith.sitofp %683 : vector<1x562xi32> to vector<1x562xf32>
    %685 = vector.broadcast %684 : vector<1x562xf32> to vector<8x562xf32>
    %686 = arith.mulf %406, %685 : vector<8x562xf32>
    %687 = vector.extract_strided_slice %686 {offsets = [0, 18], sizes = [8, 256], strides = [1, 1]} : vector<8x562xf32> to vector<8x256xf32>
    %688 = vector.extract_strided_slice %404 {offsets = [0, 6], sizes = [8, 1], strides = [1, 1]} : vector<8x49xf32> to vector<8x1xf32>
    %689 = vector.broadcast %688 : vector<8x1xf32> to vector<8x256xf32>
    %690 = arith.mulf %687, %689 : vector<8x256xf32>
    %691 = arith.addf %677, %690 : vector<8x256xf32>
    %692 = vector.extract_strided_slice %686 {offsets = [0, 66], sizes = [8, 256], strides = [1, 1]} : vector<8x562xf32> to vector<8x256xf32>
    %693 = vector.extract_strided_slice %404 {offsets = [0, 13], sizes = [8, 1], strides = [1, 1]} : vector<8x49xf32> to vector<8x1xf32>
    %694 = vector.broadcast %693 : vector<8x1xf32> to vector<8x256xf32>
    %695 = arith.mulf %692, %694 : vector<8x256xf32>
    %696 = arith.addf %672, %695 : vector<8x256xf32>
    %697 = vector.extract_strided_slice %686 {offsets = [0, 114], sizes = [8, 256], strides = [1, 1]} : vector<8x562xf32> to vector<8x256xf32>
    %698 = vector.extract_strided_slice %404 {offsets = [0, 20], sizes = [8, 1], strides = [1, 1]} : vector<8x49xf32> to vector<8x1xf32>
    %699 = vector.broadcast %698 : vector<8x1xf32> to vector<8x256xf32>
    %700 = arith.mulf %697, %699 : vector<8x256xf32>
    %701 = arith.addf %691, %700 : vector<8x256xf32>
    %702 = vector.extract_strided_slice %686 {offsets = [0, 162], sizes = [8, 256], strides = [1, 1]} : vector<8x562xf32> to vector<8x256xf32>
    %703 = vector.extract_strided_slice %404 {offsets = [0, 27], sizes = [8, 1], strides = [1, 1]} : vector<8x49xf32> to vector<8x1xf32>
    %704 = vector.broadcast %703 : vector<8x1xf32> to vector<8x256xf32>
    %705 = arith.mulf %702, %704 : vector<8x256xf32>
    %706 = arith.addf %696, %705 : vector<8x256xf32>
    %707 = vector.extract_strided_slice %686 {offsets = [0, 210], sizes = [8, 256], strides = [1, 1]} : vector<8x562xf32> to vector<8x256xf32>
    %708 = vector.extract_strided_slice %404 {offsets = [0, 34], sizes = [8, 1], strides = [1, 1]} : vector<8x49xf32> to vector<8x1xf32>
    %709 = vector.broadcast %708 : vector<8x1xf32> to vector<8x256xf32>
    %710 = arith.mulf %707, %709 : vector<8x256xf32>
    %711 = arith.addf %701, %710 : vector<8x256xf32>
    %712 = vector.extract_strided_slice %686 {offsets = [0, 258], sizes = [8, 256], strides = [1, 1]} : vector<8x562xf32> to vector<8x256xf32>
    %713 = vector.extract_strided_slice %404 {offsets = [0, 41], sizes = [8, 1], strides = [1, 1]} : vector<8x49xf32> to vector<8x1xf32>
    %714 = vector.broadcast %713 : vector<8x1xf32> to vector<8x256xf32>
    %715 = arith.mulf %712, %714 : vector<8x256xf32>
    %716 = arith.addf %706, %715 : vector<8x256xf32>
    %717 = vector.extract_strided_slice %686 {offsets = [0, 306], sizes = [8, 256], strides = [1, 1]} : vector<8x562xf32> to vector<8x256xf32>
    %718 = vector.extract_strided_slice %404 {offsets = [0, 48], sizes = [8, 1], strides = [1, 1]} : vector<8x49xf32> to vector<8x1xf32>
    %719 = vector.broadcast %718 : vector<8x1xf32> to vector<8x256xf32>
    %720 = arith.mulf %717, %719 : vector<8x256xf32>
    %721 = arith.addf %711, %720 : vector<8x256xf32>
    %722 = arith.addf %721, %716 : vector<8x256xf32>
    %723 = vector.extract_strided_slice %220 {offsets = [0, 0], sizes = [2, 256], strides = [1, 1]} : vector<16x256xf32> to vector<2x256xf32>
    %724 = tpu.concatenate %723, %402, %722 in 0 : vector<2x256xf32>, vector<6x256xf32>, vector<8x256xf32> -> vector<16x256xf32>
    %725 = vector.shape_cast %724 : vector<16x256xf32> to vector<8x512xf32>
    %cst_33 = arith.constant dense<0.000000e+00> : vector<8x512xf32>
    %726 = tpu.matmul %4, %725, %cst_33 {dimension_numbers = #tpu.dot_dimension_numbers<[1], [0], [0], [1], [0, 0, 1, 1], [], []>} : vector<8x8xf32>, vector<8x512xf32>, vector<8x512xf32> -> vector<8x512xf32>
    %727 = vector.broadcast %10 : vector<8x1xf32> to vector<8x512xf32>
    %728 = arith.addf %726, %727 : vector<8x512xf32>
    %729 = arith.negf %36 : vector<8x512xf32>
    %730 = math.exp %729 : vector<8x512xf32>
    %cst_34 = arith.constant 1.000000e+00 : f32
    %731 = vector.broadcast %cst_34 : f32 to vector<8x512xf32>
    %732 = arith.addf %731, %730 : vector<8x512xf32>
    %733 = arith.divf %731, %732 : vector<8x512xf32>
    %734 = arith.mulf %36, %733 : vector<8x512xf32>
    %735 = arith.negf %728 : vector<8x512xf32>
    %736 = math.exp %735 : vector<8x512xf32>
    %cst_35 = arith.constant 1.000000e+00 : f32
    %737 = vector.broadcast %cst_35 : f32 to vector<8x512xf32>
    %738 = arith.addf %737, %736 : vector<8x512xf32>
    %739 = arith.divf %737, %738 : vector<8x512xf32>
    %740 = arith.mulf %728, %739 : vector<8x512xf32>
    %741 = arith.mulf %734, %740 : vector<8x512xf32>
    %cst_36 = arith.constant dense<0.000000e+00> : vector<8x512xf32>
    %742 = tpu.matmul %5, %741, %cst_36 {dimension_numbers = #tpu.dot_dimension_numbers<[1], [0], [0], [1], [0, 0, 1, 1], [], []>} : vector<8x8xf32>, vector<8x512xf32>, vector<8x512xf32> -> vector<8x512xf32>
    %743 = vector.broadcast %11 : vector<8x1xf32> to vector<8x512xf32>
    %744 = arith.addf %742, %743 : vector<8x512xf32>
    %745 = arith.addf %744, %0 : vector<8x512xf32>
    %c0_37 = arith.constant 0 : index
    %c0_38 = arith.constant 0 : index
    %746 = vector.load %arg5[%c0_37, %c0_38] : memref<8x512xf32, #tpu.memory_space<vmem>>, vector<8x512xf32>
    tpu.vector_store %arg5[%c0_37, %c0_38], %745 {strides = array<i32>} : memref<8x512xf32, #tpu.memory_space<vmem>>, vector<8x512xf32>,
    return
  }
  func.func @transform_0(%arg0: i32) -> (i32, i32) {
    %c0_i32 = arith.constant 0 : i32
    %c0_i32_0 = arith.constant 0 : i32
    %c0_i32_1 = arith.constant 0 : i32
    return %c0_i32, %c0_i32_0 : i32, i32
  }
  func.func @transform_1(%arg0: i32) -> (i32, i32) {
    %c0_i32 = arith.constant 0 : i32
    %c0_i32_0 = arith.constant 0 : i32
    %c0_i32_1 = arith.constant 0 : i32
    return %c0_i32, %c0_i32_0 : i32, i32
  }
  func.func @transform_2(%arg0: i32) -> (i32, i32) {
    %c0_i32 = arith.constant 0 : i32
    %c0_i32_0 = arith.constant 0 : i32
    %c0_i32_1 = arith.constant 0 : i32
    return %c0_i32, %c0_i32_0 : i32, i32
  }
  func.func @transform_3(%arg0: i32) -> (i32, i32) {
    %c0_i32 = arith.constant 0 : i32
    %c0_i32_0 = arith.constant 0 : i32
    %c0_i32_1 = arith.constant 0 : i32
    return %c0_i32, %c0_i32_0 : i32, i32
  }
  func.func @transform_4(%arg0: i32) -> (i32, i32) {
    %c0_i32 = arith.constant 0 : i32
    %c0_i32_0 = arith.constant 0 : i32
    %c0_i32_1 = arith.constant 0 : i32
    return %c0_i32, %c0_i32_0 : i32, i32
  }
}

</mosaic_0001>

<bundles_post_ra>
// kernel: tpu_custom_call.1
= control target key start
LH: loop header
LB: loop body
LE: loop exit
PB: predicated region body
PF: predicated region fallthrough
CT: control target
= control target key end

     0   :  { %9 = vsyncpa [#allocation3], 0  ;;  %s9214_s0 = inlined_call_operand.vmem [shape: f32[8,512], index: 0, kind: input, shape index: {}]   ;;  %s9215_s1 = inlined_call_operand.vmem [shape: f32[32,8], index: 1, kind: input, shape index: {}]   ;;  %s9216_s2 = inlined_call_operand.vmem [shape: f32[8,8], index: 2, kind: input, shape index: {}]   ;;  %s9217_s3 = inlined_call_operand.hbm [shape: f32[30,50], index: 3, kind: input, shape index: {}]   ;;  %s9218_s4 = inlined_call_operand.hbm [shape: f32[8,512], index: 4, kind: output, shape index: {}]  }
   0x1   :  { %10 = vsyncpa [#allocation4], 0  ;;  %s5518_s15 = smov [#allocation2]   ;;  %s5470_s19 = scalar_lea.hbm %s9217_s3, 512 }
   0x2   :  { %s22_s16 = sshll.u32 %s5518_s15, 4  ;;  %p5471_p0 = scmp.ne.s32.totalorder %s9217_s3, %s5470_s19  ;;  %s23_s16 = int_to_ptr.vmem [resolvable:$true] %s22_s16 }
   0x3   :  { %p5474_p1 = scmp.lt.u32.totalorder %s5470_s19, %s9217_s3 }
   0x5   :  { %p5476_p2 = pnand %p5474_p1, %p5471_p0 }
   0x7   :  { %5479 = shalt.err (!%p5476_p2)
}
   0x8   :  { %s5480_s24 = scalar_lea.vmem %s23_s16, 512  ;;  %p5485_p4 = scmp.lt.s32.totalorder %s23_s16, %s23_s16 }
   0x9   :  { %p5481_p3 = scmp.ne.s32.totalorder %s23_s16, %s5480_s24  ;;  %p5486_p5 = scmp.lt.s32.totalorder %s5480_s24, %s5480_s24 }
   0xb   :  { %p5487_p6 = por %p5486_p5, %p5485_p4 }
   0xd   :  { %p5488_p7 = pnand %p5487_p6, %p5481_p3 }
   0xf   :  { %5491 = shalt.err (!%p5488_p7)
}
  0x10   :  { %s5519_s25 = smov 128   ;;  %s5520_s26 = smov 8  }
  0x11   :  { %28 = dma.hbm_to_vmem [thread:$0]  %s9217_s3, 512, %s23_s16, [#allocation3], %s5519_s25, %s5519_s25, %s5520_s26  }
  0x12   :  { %5514 = dma.done.wait [#allocation3], 512  }
  0x13   :  { %5515 = vsyncadd [#allocation3], 4294966784  ;;  %v9251_v0 = vlaneseq  ;;  %v9256_v1 = vmov 0.0   ;;  %v9228_v2 = vmov 1   ;;  %v5523_v4 = vmov 1966171168  }
  0x14   :  { %118 = vmatprep.mubr.f32.mxu0 %v9256_v1  ;;  %189 = vmatprep.mubr.f32.mxu1 %v9256_v1  ;;  %v380_v5 = vunpack.c.l.s4 %v5523_v4  ;;  %v5524_v7 = vmov 49   ;;  %v33_v9 = vld [vmem:[%s9214_s0 + $0x8] sm:$0xff]  ;;  %vm9449_vm0 = vcmask 64512   ;;  %v35_v10 = vld [vmem:[%s9214_s0 + $0x18] sm:$0xff]  ;;  %v32_v11 = vld [vmem:[%s9214_s0] sm:$0xff]  ;;  %v9219_v24 = vmov 0  }
  0x15   :  { %5222 = vset.pattern.permute.xlu1 %v9228_v2  ;;  %v5660_v3 = vshrl.u32 %v9251_v0, 7  ;;  %5224 = vset.pattern.permute.xlu0 %v5524_v7  ;;  %v34_v12 = vld [vmem:[%s9214_s0 + $0x10] sm:$0xff]  ;;  %v36_v13 = vld [vmem:[%s9215_s1] sm:$0xff]  ;;  %v5707_v31 = vld [vmem:[#allocation2 + $0x8] sm:$0xff]  ;;  %v9238_v34 = vmov 10   ;;  %v9220_v37 = vmov 20  }
  0x16   :  { %v381_v6 = vunpack.c.0.s8 %v380_v5  ;;  %54 = vmatprep.subr.mxu0 %v33_v9  ;;  %125 = vmatprep.subr.mxu1 %v35_v10  ;;  %v40_v14 = vld [vmem:[%s9216_s2] sm:$0xff]  ;;  %v9221_v40 = vmov 6   ;;  %v9237_v42 = vmov 11   ;;  %v9225_v43 = vmov 2   ;;  %v5787_v62 = vld [vmem:[#allocation2 + $0x10] sm:$0xff]  ;;  %s5551_s14 = smov 126  }
  0x17   :  { %55 = vmatpush1.msra.mxu0 %v32_v11  ;;  %126 = vmatpush1.msra.mxu1 %v34_v12  ;;  %v5687_v16 = vsub.s32 0, %v5660_v3  ;;  %v5689_v17 = vld [vmem:[#allocation2] sm:$0xff]  ;;  %v378_v20 = vcombine.high %v40_v14, %v40_v14  ;;  %v9232_v44 = vmov 16   ;;  %v9226_v45 = vmov 7   ;;  %s5552_s15 = smov 34   ;;  %s5553_s18 = smov 94  }
  0x18   :  { %v5664_v8 = vsub.s32 %v381_v6, %v5660_v3  ;;  %5032 = vmatmul.mubr.msk.f32.vlgmr.msra.gmra.mrb[0].mxu0 %vm9449_vm0, %v36_v13  ;;  %5033 = vmatmul.mubr.msk.f32.vlgmr.msra.gmra.mrb[0].mxu1 %vm9449_vm0, %v36_v13  ;;  %v9222_v46 = vmov 5   ;;  %v9244_v47 = vmov 12   ;;  %v9242_v48 = vmov 17   ;;  %s5554_s19 = smov 62   ;;  %s5555_s20 = smov 96  }
  0x19   :  { %1049 = vperm.xlu0 %5224, %v5689_v17   ;;  %822 = vmatprep.mubr.f32.mxu0 %v9256_v1  ;;  %v9240_v49 = vmov 22   ;;  %v9227_v50 = vmov 15   ;;  %v9223_v51 = vmov 3   ;;  %v9249_v52 = vmov 8   ;;  %s5556_s21 = smov 64   ;;  %s5557_s22 = smov 127  }
  0x1a   :  { %9454 = vst [vmem:[#allocation8_spill] sm:$0xff] %v5664_v8  ;;  %v385_v15 = vrot.slane %v40_v14, %v5664_v8  ;;  %893 = vmatprep.mubr.f32.mxu1 %v9256_v1  ;;  %v392_v27 = vrot.slane %v378_v20, %v5664_v8  ;;  %v9236_v53 = vmov 13   ;;  %v9229_v54 = vmov 18   ;;  %s5558_s23 = smov 95   ;;  %s5559_s24 = smov 63  }
  0x1b   :  { %v9239_v55 = vmov 23   ;;  %v9230_v56 = vmov 4   ;;  %v5544_v57 = vmov 21   ;;  %v9247_v58 = vmov 9   ;;  %s5560_s25 = smov 125   ;;  %s5561_s26 = smov 93  }
  0x1c   :  { %v401_v18 = vrot.slane %v385_v15, %v5664_v8  ;;  %v393_v19 = vcombine.high %v385_v15, %v385_v15  ;;  %v408_v29 = vrot.slane %v392_v27, %v5664_v8  ;;  %v394_v30 = vcombine.high %v392_v27, %v392_v27  ;;  %s5562_s27 = smov 61   ;;  %s5563_s28 = smov 124  }
  0x1d   :  { %5225 = vset.pattern.permute.xlu0 %v9219_v24  ;;  %v9233_v59 = vmov 14   ;;  %v9234_v60 = vmov 19   ;;  %v9245_v61 = vmov 24   ;;  %v5550_v27 = vmov 1934713408   ;;  %s5564_s3 = smov 92  }
  0x1e   :  { %v446_v21 = vrot.slane %v401_v18, %v5687_v16  ;;  %v423_v22 = vcombine.high %v401_v18, %v401_v18  ;;  %v5698_v23 = vrot.slane %v393_v19, %v5664_v8  ;;  %47 = vperm.xlu0 %5225, %v40_v14   ;;  %v462_v32 = vrot.slane %v408_v29, %v5687_v16  ;;  %s5565_s29 = smov 60   ;;  %s5575_s30 = smov 112  }
  0x1f   :  { %v422_v33 = vrot.slane %v394_v30, %v5664_v8  ;;  %v424_v36 = vcombine.high %v408_v29, %v408_v29  ;;  %vm9452_vm1 = vcmask 1041408   ;;  %vm1024_vm4 = vcmask 277504   ;;  %s5588_s5 = smov 119   ;;  %s5590_s6 = smov 116  }
  0x20   :  { %476 = vperm.xlu1 %5222, %v446_v21   ;;  %v454_v25 = vrot.slane %v423_v22, %v5687_v16  ;;  %v425_v26 = vcombine.high %v5698_v23, %v5698_v23  ;;  %v5549_v21 = vmov 1983009808   ;;  %s5591_s7 = smov 122   ;;  %s5592_s8 = smov 68  }
  0x21   :  { %v466_v35 = vrot.slane %v422_v33, %v5687_v16  ;;  %v470_v38 = vrot.slane %v424_v36, %v5687_v16  ;;  %v426_v39 = vcombine.high %v422_v33, %v422_v33  ;;  %v198_v22 = vunpack.c.l.s4 %v5549_v21  ;;  %s5593_s9 = smov 25   ;;  %s5595_s10 = smov 23  }
  0x22   :  { %v458_v28 = vrot.slane %v425_v26, %v5687_v16  ;;  %1083 = vperm.xlu0 %5225, %v5707_v31   ;;  %s5596_s11 = smov 55   ;;  %s5597_s12 = smov 32  }
  0x23   :  { %v474_v41 = vrot.slane %v426_v39, %v5687_v16  ;;  %v199_v26 = vunpack.c.0.s8 %v198_v22  ;;  %s5598_s13 = smov 29   ;;  %s5601_s16 = smov 20  }
  0x24   :  { %484 = vperm.xlu1 %5222, %v454_v25   ;;  %s5602_s17 = smov 52  }
  0x26   :  { %5229 = vset.pattern.permute.xlu0 %v9238_v34 }
  0x27   :  { %1115 = vperm.xlu0 %5229, %v5689_v17  }
  0x28   :  { %488 = vperm.xlu1 %5222, %v458_v28   ;;  %v229_v28 = vunpack.c.l.s4 %v5550_v27 }
  0x2a   :  { %v230_v33 = vunpack.c.0.s8 %v229_v28 }
  0x2b   :  { %5232 = vset.pattern.permute.xlu0 %v9220_v37 }
  0x2c   :  { %492 = vperm.xlu1 %5222, %v462_v32   ;;  %1208 = vperm.xlu0 %5232, %v5689_v17   ;;  %v5870_v32 = vsub.s32 %v199_v26, %v5660_v3 }
  0x2e   :  { %9464 = vst [vmem:[#allocation18_spill] sm:$0xff] %v5870_v32 }
  0x30   :  { %496 = vperm.xlu1 %5222, %v466_v35   ;;  %5235 = vset.pattern.permute.xlu0 %v9221_v40 }
  0x31   :  { %1319 = vperm.xlu0 %5235, %v5689_v17  }
  0x34   :  { %500 = vperm.xlu1 %5222, %v470_v38  }
  0x35   :  { %5238 = vset.pattern.permute.xlu0 %v9237_v42 }
  0x36   :  { %1371 = vperm.xlu0 %5238, %v5707_v31  }
  0x38   :  { %504 = vperm.xlu1 %5222, %v474_v41  }
  0x3a   :  { %5239 = vset.pattern.permute.xlu0 %v9232_v44 }
  0x3b   :  { %1412 = vperm.xlu0 %5239, %v5689_v17  }
  0x3c   :  { %5223 = vset.pattern.permute.xlu1 %v9225_v43 }
  0x3d   :  { %752 = vperm.xlu1 %5223, %v40_v14  }
  0x3f   :  { %5242 = vset.pattern.permute.xlu0 %v9225_v43 }
  0x40   :  { %1526 = vperm.xlu0 %5242, %v5689_v17  }
  0x41   :  { %5226 = vset.pattern.permute.xlu1 %v5524_v7 }
  0x42   :  { %1054 = vperm.xlu1 %5226, %v5707_v31  }
  0x44   :  { %5245 = vset.pattern.permute.xlu0 %v9226_v45 }
  0x45   :  { %1575 = vperm.xlu0 %5245, %v5707_v31  }
  0x46   :  { %5227 = vset.pattern.permute.xlu1 %v9219_v24 }
  0x47   :  { %1079 = vperm.xlu1 %5227, %v5689_v17  }
  0x49   :  { %5246 = vset.pattern.permute.xlu0 %v9244_v47 }
  0x4a   :  { %1619 = vperm.xlu0 %5246, %v5689_v17  }
  0x4b   :  { %5228 = vset.pattern.permute.xlu1 %v9222_v46 }
  0x4c   :  { %1095 = vperm.xlu1 %5228, %v5689_v17  }
  0x4e   :  { %5249 = vset.pattern.permute.xlu0 %v9242_v48 }
  0x4f   :  { %1668 = vperm.xlu0 %5249, %v5707_v31  }
  0x50   :  { %1099 = vperm.xlu1 %5228, %v5707_v31  }
  0x53   :  { %5250 = vset.pattern.permute.xlu0 %v9240_v49 }
  0x54   :  { %5230 = vset.pattern.permute.xlu1 %v9238_v34  ;;  %1712 = vperm.xlu0 %5250, %v5689_v17  }
  0x55   :  { %1119 = vperm.xlu1 %5230, %v5707_v31  }
  0x58   :  { %5253 = vset.pattern.permute.xlu0 %v9223_v51 }
  0x59   :  { %5231 = vset.pattern.permute.xlu1 %v9227_v50  ;;  %1782 = vperm.xlu0 %5253, %v5707_v31  }
  0x5a   :  { %1160 = vperm.xlu1 %5231, %v5689_v17  }
  0x5d   :  { %5254 = vset.pattern.permute.xlu0 %v9249_v52 }
  0x5e   :  { %5233 = vset.pattern.permute.xlu1 %v9220_v37  ;;  %1823 = vperm.xlu0 %5254, %v5689_v17  }
  0x5f   :  { %1212 = vperm.xlu1 %5233, %v5707_v31  }
  0x62   :  { %5257 = vset.pattern.permute.xlu0 %v9236_v53 }
  0x63   :  { %5234 = vset.pattern.permute.xlu1 %v9228_v2  ;;  %1875 = vperm.xlu0 %5257, %v5707_v31  }
  0x64   :  { %1274 = vperm.xlu1 %5234, %v5689_v17  }
  0x67   :  { %5258 = vset.pattern.permute.xlu0 %v9229_v54 }
  0x68   :  { %5236 = vset.pattern.permute.xlu1 %v9221_v40  ;;  %1916 = vperm.xlu0 %5258, %v5689_v17  }
  0x69   :  { %1323 = vperm.xlu1 %5236, %v5707_v31  }
  0x6c   :  { %5261 = vset.pattern.permute.xlu0 %v9239_v55 }
  0x6d   :  { %5237 = vset.pattern.permute.xlu1 %v9237_v42  ;;  %1968 = vperm.xlu0 %5261, %v5707_v31  }
  0x6e   :  { %1367 = vperm.xlu1 %5237, %v5689_v17  }
  0x71   :  { %5262 = vset.pattern.permute.xlu0 %v9230_v56 }
  0x72   :  { %5240 = vset.pattern.permute.xlu1 %v9232_v44  ;;  %2030 = vperm.xlu0 %5262, %v5689_v17  }
  0x73   :  { %1416 = vperm.xlu1 %5240, %v5707_v31  }
  0x76   :  { %5265 = vset.pattern.permute.xlu0 %v9247_v58 }
  0x77   :  { %5241 = vset.pattern.permute.xlu1 %v5544_v57  ;;  %2079 = vperm.xlu0 %5265, %v5707_v31  }
  0x78   :  { %1460 = vperm.xlu1 %5241, %v5689_v17  }
  0x7b   :  { %5266 = vset.pattern.permute.xlu0 %v9233_v59 }
  0x7c   :  { %5243 = vset.pattern.permute.xlu1 %v9225_v43  ;;  %2123 = vperm.xlu0 %5266, %v5689_v17  }
  0x7d   :  { %1530 = vperm.xlu1 %5243, %v5707_v31  }
  0x80   :  { %5268 = vset.pattern.permute.xlu0 %v9234_v60 }
  0x81   :  { %5244 = vset.pattern.permute.xlu1 %v9226_v45  ;;  %2172 = vperm.xlu0 %5268, %v5707_v31  }
  0x82   :  { %1571 = vperm.xlu1 %5244, %v5689_v17  }
  0x85   :  { %5270 = vset.pattern.permute.xlu0 %v9245_v61 }
  0x86   :  { %5247 = vset.pattern.permute.xlu1 %v9244_v47  ;;  %2216 = vperm.xlu0 %5270, %v5689_v17  }
  0x87   :  { %1623 = vperm.xlu1 %5247, %v5707_v31  }
  0x8a   :  { %5273 = vset.pattern.permute.xlu0 %v9222_v46 }
  0x8b   :  { %5248 = vset.pattern.permute.xlu1 %v9242_v48  ;;  %2343 = vperm.xlu0 %5273, %v5787_v62  }
  0x8c   :  { %1664 = vperm.xlu1 %5248, %v5689_v17  }
  0x8f   :  { %5274 = vset.pattern.permute.xlu0 %v9227_v50 }
  0x90   :  { %5251 = vset.pattern.permute.xlu1 %v9240_v49  ;;  %1164 = vperm.xlu0 %5274, %v5707_v31  }
  0x91   :  { %1716 = vperm.xlu1 %5251, %v5707_v31  }
  0x94   :  { %2375 = vperm.xlu0 %5274, %v5787_v62  }
  0x95   :  { %5252 = vset.pattern.permute.xlu1 %v9223_v51 }
  0x96   :  { %1778 = vperm.xlu1 %5252, %v5689_v17  }
  0x98   :  { %5276 = vset.pattern.permute.xlu0 %v9228_v2  ;;  %v5862_v25 = vpop.permute.xlu0 %1049 }
  0x99   :  { %9462 = vst [vmem:[#allocation16_spill] sm:$0xff] %v5862_v25 }
  0x9a   :  { %5255 = vset.pattern.permute.xlu1 %v9249_v52 }
  0x9b   :  { %1827 = vperm.xlu1 %5255, %v5707_v31  }
  0x9d   :  { %v48_v30 = vpop.permute.xlu0 %47 }
  0x9f   :  { %v5801_v63 = vpop.permute.xlu1 %476  ;;  %5256 = vset.pattern.permute.xlu1 %v9236_v53 }
  0xa0   :  { %1871 = vperm.xlu1 %5256, %v5689_v17  }
  0xa3   :  { %v5805_v4 = vpop.permute.xlu1 %484 }
  0xa4   :  { %5259 = vset.pattern.permute.xlu1 %v9229_v54 }
  0xa5   :  { %1920 = vperm.xlu1 %5259, %v5707_v31  }
  0xa7   :  { %v5809_v5 = vpop.permute.xlu1 %488 }
  0xa9   :  { %5260 = vset.pattern.permute.xlu1 %v9239_v55 }
  0xaa   :  { %1964 = vperm.xlu1 %5260, %v5689_v17  }
  0xab   :  { %v5813_v6 = vpop.permute.xlu1 %492 }
  0xae   :  { %5263 = vset.pattern.permute.xlu1 %v9230_v56 }
  0xaf   :  { %v5816_v7 = vpop.permute.xlu1 %496  ;;  %2034 = vperm.xlu1 %5263, %v5707_v31  }
  0xb3   :  { %v5819_v9 = vpop.permute.xlu1 %500  ;;  %5264 = vset.pattern.permute.xlu1 %v9247_v58 }
  0xb4   :  { %2075 = vperm.xlu1 %5264, %v5689_v17  }
  0xb7   :  { %v5823_v10 = vpop.permute.xlu1 %504 }
  0xb8   :  { %5267 = vset.pattern.permute.xlu1 %v9233_v59 }
  0xb9   :  { %2127 = vperm.xlu1 %5267, %v5707_v31  }
  0xbc   :  { %v5827_v11 = vpop.permute.xlu1 %752 }
  0xbd   :  { %9455 = vst [vmem:[#allocation9_spill] sm:$0xff] %v5827_v11  ;;  %5269 = vset.pattern.permute.xlu1 %v9234_v60 }
  0xbe   :  { %2168 = vperm.xlu1 %5269, %v5689_v17  }
  0xc1   :  { %v5831_v12 = vpop.permute.xlu1 %1054 }
  0xc2   :  { %9456 = vst [vmem:[#allocation10_spill] sm:$0xff] %v5831_v12  ;;  %5271 = vset.pattern.permute.xlu1 %v9245_v61 }
  0xc3   :  { %2220 = vperm.xlu1 %5271, %v5707_v31  }
  0xc6   :  { %v5835_v13 = vpop.permute.xlu1 %1079 }
  0xc7   :  { %9457 = vst [vmem:[#allocation11_spill] sm:$0xff] %v5835_v13  ;;  %5272 = vset.pattern.permute.xlu1 %v9219_v24  ;;  %v5876_v24 = vsub.s32 %v230_v33, %v5660_v3 }
  0xc8   :  { %2335 = vperm.xlu1 %5272, %v5787_v62  }
  0xcb   :  { %v5839_v14 = vpop.permute.xlu1 %1095 }
  0xcc   :  { %9458 = vst [vmem:[#allocation12_spill] sm:$0xff] %v5839_v14  ;;  %5275 = vset.pattern.permute.xlu1 %v9238_v34  ;;  %v9480_v14 = vlaneseq }
  0xcd   :  { %2353 = vperm.xlu1 %5275, %v5787_v62  }
  0xcf   :  { %v5843_v15 = vpop.permute.xlu1 %1099 }
  0xd0   :  { %9459 = vst [vmem:[#allocation13_spill] sm:$0xff] %v5843_v15 }
  0xd1   :  { %5277 = vset.pattern.permute.xlu1 %v9220_v37 }
  0xd2   :  { %2399 = vperm.xlu1 %5277, %v5787_v62  }
  0xd4   :  { %v5847_v17 = vpop.permute.xlu1 %1119 }
  0xd5   :  { %9460 = vst [vmem:[#allocation14_spill] sm:$0xff] %v5847_v17 }
  0xd6   :  { %5279 = vset.pattern.permute.xlu1 %v9221_v40 }
  0xd7   :  { %2453 = vperm.xlu1 %5279, %v5787_v62  }
  0xd9   :  { %v5851_v18 = vpop.permute.xlu1 %1160 }
  0xdb   :  { %5280 = vset.pattern.permute.xlu1 %v9237_v42 }
  0xdc   :  { %2477 = vperm.xlu1 %5280, %v5787_v62  }
  0xde   :  { %v5855_v19 = vpop.permute.xlu1 %1212 }
  0xdf   :  { %9461 = vst [vmem:[#allocation15_spill] sm:$0xff] %v5855_v19 }
  0xe0   :  { %5281 = vset.pattern.permute.xlu1 %v9232_v44 }
  0xe1   :  { %2499 = vperm.xlu1 %5281, %v5787_v62  }
  0xe3   :  { %v5859_v20 = vpop.permute.xlu1 %1274 }
  0xe5   :  { %5282 = vset.pattern.permute.xlu1 %v5544_v57 }
  0xe6   :  { %2523 = vperm.xlu1 %5282, %v5787_v62  }
  0xe8   :  { %v5865_v29 = vpop.permute.xlu1 %1323 }
  0xe9   :  { %9463 = vst [vmem:[#allocation17_spill] sm:$0xff] %v5865_v29 }
  0xea   :  { %5283 = vset.pattern.permute.xlu1 %v9225_v43 }
  0xeb   :  { %2569 = vperm.xlu1 %5283, %v5787_v62   ;;  %v120_v36 = vpop.f32.mrb[0].mxu0  ;;  %v191_v38 = vpop.f32.mrb[0].mxu1 }
  0xec   :  { %v121_v39 = vadd.f32 %v120_v36, %v48_v30  ;;  %v122_v41 = vpop.f32.mrb[1].mxu0  ;;  %v192_v21 = vadd.f32 %v191_v38, %v48_v30  ;;  %v193_v27 = vpop.f32.mrb[1].mxu1 }
  0xed   :  { %v5872_v35 = vpop.permute.xlu1 %1367  ;;  %v123_v22 = vadd.f32 %v122_v41, %v48_v30  ;;  %v194_v28 = vadd.f32 %v193_v27, %v48_v30 }
  0xee   :  { %v196_v37 = vcombine.high %v121_v39, %v9256_v1  ;;  %v203_v26 = vrot.slane %v121_v39, %v5870_v32  ;;  %v211_v40 = vcombine.high %v192_v21, %v9256_v1  ;;  %v218_v36 = vrot.slane %v192_v21, %v5870_v32 }
  0xef   :  { %5284 = vset.pattern.permute.xlu1 %v9226_v45  ;;  %v262_v46 = vcombine.high %v123_v22, %v9256_v1  ;;  %v269_v38 = vrot.slane %v123_v22, %v5870_v32  ;;  %v277_v3 = vcombine.high %v194_v28, %v9256_v1  ;;  %v284_v33 = vrot.slane %v194_v28, %v5870_v32 }
  0xf0   :  { %2591 = vperm.xlu1 %5284, %v5787_v62   ;;  %v5886_v41 = vrot.slane %v196_v37, %v5870_v32  ;;  %v225_v39 = vrot.slane %v211_v40, %v5870_v32  ;;  %v226_v27 = vcombine.low %v203_v26, %v218_v36  ;;  %v227_v43 = vcombine.high %v203_v26, %v218_v36 }
  0xf1   :  { %v276_v30 = vrot.slane %v262_v46, %v5870_v32  ;;  %v291_v21 = vrot.slane %v277_v3, %v5870_v32  ;;  %v292_v45 = vcombine.low %v269_v38, %v284_v33  ;;  %v293_v50 = vcombine.high %v269_v38, %v284_v33 }
  0xf2   :  { %v5890_v51 = vpop.permute.xlu1 %1416  ;;  %v5897_v37 = vrot.slane %v226_v27, %v5876_v24  ;;  %v242_v22 = vcombine.low %v5886_v41, %v225_v39  ;;  %v243_v28 = vcombine.high %v5886_v41, %v225_v39  ;;  %v5912_v27 = vpop.permute.xlu0 %1083 }
  0xf3   :  { %9465 = vst [vmem:[#allocation19_spill] sm:$0xff] %v5890_v51  ;;  %v5902_v40 = vrot.slane %v292_v45, %v5876_v24  ;;  %v308_v46 = vcombine.low %v276_v30, %v291_v21  ;;  %v309_v2 = vcombine.high %v276_v30, %v291_v21  ;;  %9466 = vst [vmem:[#allocation20_spill] sm:$0xff] %v5912_v27 }
  0xf4   :  { %5285 = vset.pattern.permute.xlu1 %v9244_v47  ;;  %v329_v36 = vsel %vm9452_vm1, %v5897_v37, 0.0  ;;  %v5923_v21 = vrot.slane %v293_v50, %v5876_v24  ;;  %v5940_v50 = vcombine.high %v5897_v37, %v9256_v1  ;;  %v5973_v48 = vrot.slane %v242_v22, %v5876_v24 }
  0xf5   :  { %v330_v38 = vsel %vm9452_vm1, %v5902_v40, 0.0  ;;  %v5944_v59 = vcombine.high %v5902_v40, %v9256_v1  ;;  %v5988_v22 = vrot.slane %v243_v28, %v5876_v24 }
  0xf6   :  { %v331_v3 = vadd.f32 %v330_v38, %v329_v36  ;;  %v5916_v45 = vpop.permute.xlu0 %1115  ;;  %v5928_v36 = vrot.slane %v227_v43, %v5876_v24  ;;  %v450_v38 = vrot.slane %v5698_v23, %v5687_v16  ;;  %v340_v44 = vsel %vm9452_vm1, %v5923_v21, 0.0 }
  0xf7   :  { %v5904_v26 = vpop.permute.xlu1 %1460  ;;  %v334_v23 = vsel %vm9452_vm1, %v5940_v50, 0.0  ;;  %v335_v60 = vsel %vm9452_vm1, %v5944_v59, 0.0  ;;  %v5958_v42 = vcombine.high %v5923_v21, %v9256_v1 }
  0xf8   :  { %332 = vadd.xlane.f32.xlu0 %v331_v3  ;;  %v339_v56 = vsel %vm9452_vm1, %v5928_v36, 0.0  ;;  %v5954_v53 = vcombine.high %v5928_v36, %v9256_v1 }
  0xf9   :  { %v341_v16 = vadd.f32 %v340_v44, %v339_v56  ;;  %v336_v44 = vadd.f32 %v335_v60, %v334_v23  ;;  %v5966_v56 = vrot.slane %v308_v46, %v5876_v24  ;;  %v345_v49 = vsel %vm9452_vm1, %v5958_v42, 0.0 }
  0xfa   :  { %v5920_v30 = vpop.permute.xlu0 %1208  ;;  %v5981_v60 = vrot.slane %v309_v2, %v5876_v24  ;;  %v349_v46 = vsel %vm9452_vm1, %v5973_v48, 0.0  ;;  %v359_v2 = vsel %vm9452_vm1, %v5988_v22, 0.0 }
  0xfb   :  { %v350_v23 = vsel %vm9452_vm1, %v5966_v56, 0.0 }
  0xfc   :  { %v5910_v33 = vpop.permute.xlu1 %1530  ;;  %v6018_v58 = vcombine.high %v5981_v60, %v9256_v1 }
  0xfe   :  { %v5932_v3 = vpop.permute.xlu0 %1319 }
 0x101   :  { %v5914_v41 = vpop.permute.xlu1 %1571 }
 0x102   :  { %v5960_v34 = vpop.permute.xlu0 %1371 }
 0x103   :  { %9467 = vst [vmem:[#allocation21_spill] sm:$0xff] %v5960_v34 }
 0x106   :  { %v5918_v39 = vpop.permute.xlu1 %1623  ;;  %v5978_v61 = vpop.permute.xlu0 %1412 }
 0x10b   :  { %v5925_v54 = vpop.permute.xlu1 %1664 }
 0x10e   :  { %480 = vperm.xlu0 %5276, %v450_v38   ;;  %v344_v38 = vsel %vm9452_vm1, %v5954_v53, 0.0 }
 0x10f   :  { %v346_v47 = vadd.f32 %v345_v49, %v344_v38  ;;  %v6000_v38 = vcombine.high %v5973_v48, %v9256_v1 }
 0x110   :  { %v5946_v43 = vpop.permute.xlu1 %1716 }
 0x111   :  { %v354_v28 = vsel %vm9452_vm1, %v6000_v38, 0.0 }
 0x112   :  { %1278 = vperm.xlu0 %5276, %v5707_v31  }
 0x114   :  { %342 = vadd.xlane.f32.xlu1 %v341_v16 }
 0x115   :  { %v5962_v55 = vpop.permute.xlu1 %1778 }
 0x116   :  { %2431 = vperm.xlu0 %5276, %v5787_v62   ;;  %v351_v62 = vadd.f32 %v350_v23, %v349_v46  ;;  %v6014_v23 = vcombine.high %v5988_v22, %v9256_v1 }
 0x118   :  { %337 = vadd.xlane.f32.xlu1 %v336_v44  ;;  %v360_v44 = vsel %vm9452_vm1, %v5981_v60, 0.0 }
 0x11a   :  { %v5976_v16 = vpop.permute.xlu1 %1827  ;;  %5278 = vset.pattern.permute.xlu0 %v5544_v57  ;;  %v6006_v57 = vpop.permute.xlu0 %1526 }
 0x11b   :  { %9468 = vst [vmem:[#allocation22_spill] sm:$0xff] %v5976_v16  ;;  %1464 = vperm.xlu0 %5278, %v5707_v31   ;;  %v361_v31 = vadd.f32 %v360_v44, %v359_v2  ;;  %v364_v2 = vsel %vm9452_vm1, %v6014_v23, 0.0  ;;  %v365_v44 = vsel %vm9452_vm1, %v6018_v58, 0.0 }
 0x11c   :  { %347 = vadd.xlane.f32.xlu1 %v346_v47  ;;  %v6004_v47 = vcombine.high %v5966_v56, %v9256_v1  ;;  %v366_v8 = vadd.f32 %v365_v44, %v364_v2 }
 0x11e   :  { %v355_v46 = vsel %vm9452_vm1, %v6004_v47, 0.0  ;;  %v6022_v0 = vpop.permute.xlu0 %1575 }
 0x11f   :  { %v5992_v49 = vpop.permute.xlu1 %1871 }
 0x120   :  { %352 = vadd.xlane.f32.xlu1 %v351_v62  ;;  %v356_v62 = vadd.f32 %v355_v46, %v354_v28 }
 0x122   :  { %v6030_v12 = vpop.permute.xlu0 %1619 }
 0x124   :  { %v6020_v52 = vpop.permute.xlu1 %1920  ;;  %362 = vadd.xlane.f32.xlu1 %v361_v31 }
 0x125   :  { %9469 = vst [vmem:[#allocation23_spill] sm:$0xff] %v6020_v52 }
 0x126   :  { %v6034_v27 = vpop.permute.xlu0 %1668 }
 0x128   :  { %357 = vadd.xlane.f32.xlu1 %v356_v62 }
 0x129   :  { %v6028_v11 = vpop.permute.xlu1 %1964 }
 0x12a   :  { %9470 = vst [vmem:[#allocation24_spill] sm:$0xff] %v6028_v11  ;;  %v6038_v28 = vpop.permute.xlu0 %1712 }
 0x12c   :  { %367 = vadd.xlane.f32.xlu1 %v366_v8 }
 0x12e   :  { %v6032_v1 = vpop.permute.xlu1 %2034  ;;  %v6044_v13 = vpop.permute.xlu0 %1782 }
 0x12f   :  { %9471 = vst [vmem:[#allocation25_spill] sm:$0xff] %v6032_v1  ;;  %9475 = vst [vmem:[#allocation29_spill] sm:$0xff] %v6044_v13  ;;  %v6057_v1 = vand.u32 127, %v9480_v14  ;;  %v9489_v14 = vmov 0.0  }
 0x131   :  { %9481 = vst [vmem:[#allocation34_spill] sm:$0xff] %v6057_v1 }
 0x132   :  { %v6048_v2 = vpop.permute.xlu0 %1823 }
 0x133   :  { %v6036_v31 = vpop.permute.xlu1 %2075 }
 0x134   :  { %9472 = vst [vmem:[#allocation26_spill] sm:$0xff] %v6036_v31 }
 0x136   :  { %v6052_v44 = vpop.permute.xlu0 %1875 }
 0x137   :  { %9478 = vst [vmem:[#allocation32_spill] sm:$0xff] %v6052_v44 }
 0x138   :  { %v6040_v46 = vpop.permute.xlu1 %2127 }
 0x139   :  { %9473 = vst [vmem:[#allocation27_spill] sm:$0xff] %v6040_v46  ;;  %v6062_v46 = vadd.s32 384, %v6057_v1 }
 0x13a   :  { %v6059_v52 = vpop.permute.xlu0 %1916 }
 0x13b   :  { %9482 = vst [vmem:[#allocation35_spill] sm:$0xff] %v6062_v46 }
 0x13d   :  { %v6042_v25 = vpop.permute.xlu1 %2168 }
 0x13e   :  { %9474 = vst [vmem:[#allocation28_spill] sm:$0xff] %v6042_v25  ;;  %v6067_v13 = vpop.permute.xlu0 %1968 }
 0x13f   :  { %9484 = vst [vmem:[#allocation37_spill] sm:$0xff] %v6067_v13 }
 0x142   :  { %v6046_v62 = vpop.permute.xlu1 %2220 }
 0x143   :  { %9476 = vst [vmem:[#allocation30_spill] sm:$0xff] %v6046_v62  ;;  %v2310_v62 = vadd.s32 12, %v6062_v46 }
 0x147   :  { %v6050_v8 = vpop.permute.xlu1 %2335 }
 0x148   :  { %9477 = vst [vmem:[#allocation31_spill] sm:$0xff] %v6050_v8  ;;  %v6071_v8 = vand.u32 15, %v2310_v62 }
 0x14a   :  { %9486 = vst [vmem:[#allocation39_spill] sm:$0xff] %v6071_v8  ;;  %vm2413_vm2 = vcmp.lt.s32.totalorder %v6071_v8, 14 }
 0x14b   :  { %v5070_v34 = vsel %vm2413_vm2, 1.0, %v9489_v14  ;;  %vm9450_vm2 = vcmask 785408  }
 0x14c   :  { %v6054_v15 = vpop.permute.xlu1 %2353 }
 0x14d   :  { %9479 = vst [vmem:[#allocation33_spill] sm:$0xff] %v6054_v15  ;;  %v6075_v15 = vpop.permute.xlu0 %2030 }
 0x14e   :  { %9488 = vst [vmem:[#allocation41_spill] sm:$0xff] %v6075_v15 }
 0x151   :  { %v6064_v16 = vpop.permute.xlu1 %2399  ;;  %v6081_v19 = vpop.permute.xlu0 %2079 }
 0x152   :  { %9483 = vst [vmem:[#allocation36_spill] sm:$0xff] %v6064_v16  ;;  %9491 = vst [vmem:[#allocation43_spill] sm:$0xff] %v6081_v19  ;;  %v2429_v16 = vmul.f32 0.0, %v5070_v34 }
 0x156   :  { %v6069_v51 = vpop.permute.xlu1 %2453 }
 0x157   :  { %9485 = vst [vmem:[#allocation38_spill] sm:$0xff] %v6069_v51  ;;  %v6086_v51 = vpop.permute.xlu0 %2123 }
 0x158   :  { %9493 = vst [vmem:[#allocation45_spill] sm:$0xff] %v6086_v51 }
 0x15b   :  { %v6073_v44 = vpop.permute.xlu1 %2477  ;;  %v6089_v62 = vpop.permute.xlu0 %2172 }
 0x15c   :  { %9487 = vst [vmem:[#allocation40_spill] sm:$0xff] %v6073_v44  ;;  %9494 = vst [vmem:[#allocation46_spill] sm:$0xff] %v6089_v62 }
 0x15f   :  { %v6091_v44 = vpop.permute.xlu0 %2216 }
 0x160   :  { %v6079_v29 = vpop.permute.xlu1 %2499  ;;  %9495 = vst [vmem:[#allocation47_spill] sm:$0xff] %v6091_v44 }
 0x161   :  { %9490 = vst [vmem:[#allocation42_spill] sm:$0xff] %v6079_v29 }
 0x163   :  { %v6093_v8 = vpop.permute.xlu0 %2343 }
 0x164   :  { %9496 = vst [vmem:[#allocation48_spill] sm:$0xff] %v6093_v8 }
 0x165   :  { %v6083_v46 = vpop.permute.xlu1 %2523 }
 0x166   :  { %9492 = vst [vmem:[#allocation44_spill] sm:$0xff] %v6083_v46  ;;  %v2528_v13 = vmul.f32 %v6083_v46, %v2429_v16 }
 0x167   :  { %v6095_v17 = vpop.permute.xlu0 %1164 }
 0x168   :  { %2536 = vrot.lane.b32.xlu0 %v2528_v13, %s5551_s14  ;;  %9497 = vst [vmem:[#allocation49_spill] sm:$0xff] %v6095_v17 }
 0x16a   :  { %v6103_v51 = vpop.permute.xlu1 %2569 }
 0x16b   :  { %v6097_v29 = vpop.permute.xlu0 %2375  ;;  %9499 = vst [vmem:[#allocation51_spill] sm:$0xff] %v6103_v51 }
 0x16c   :  { %9498 = vst [vmem:[#allocation50_spill] sm:$0xff] %v6097_v29 }
 0x16f   :  { %v6111_v17 = vpop.permute.xlu1 %2591 }
 0x170   :  { %9500 = vst [vmem:[#allocation52_spill] sm:$0xff] %v6111_v17 }
 0x185   :  { %v333_v34 = vpop.xlane.xlu0 %332 }
 0x186   :  { %v370_v19 = vmul.f32 0.00390625, %v333_v34 }
 0x188   :  { %v427_v25 = vsub.f32 %v5897_v37, %v370_v19  ;;  %v428_v16 = vsub.f32 %v5902_v40, %v370_v19 }
 0x18a   :  { %v507_v46 = vmul.f32 %v5801_v63, %v427_v25  ;;  %v508_v13 = vmul.f32 %v5801_v63, %v428_v16 }
 0x18c   :  { %v6106_v62 = vadd.f32 %v507_v46, %v5897_v37  ;;  %v6109_v8 = vadd.f32 %v508_v13, %v5902_v40 }
 0x18e   :  { %v5034_v34 = vmul.f32 -1.442695, %v6106_v62  ;;  %v5035_v29 = vmul.f32 -1.442695, %v6109_v8 }
 0x190   :  { %5365 = vpow2.f32 %v5034_v34 }
 0x191   :  { %5367 = vpow2.f32 %v5035_v29 }
 0x1a1   :  { %v343_v19 = vpop.xlane.xlu1 %342 }
 0x1a2   :  { %v372_v25 = vmul.f32 0.00390625, %v343_v19  ;;  %v481_v19 = vpop.permute.xlu0 %480 }
 0x1a4   :  { %v431_v63 = vsub.f32 %v5928_v36, %v372_v25  ;;  %v432_v16 = vsub.f32 %v5923_v21, %v372_v25 }
 0x1a5   :  { %v338_v51 = vpop.xlane.xlu1 %337 }
 0x1a6   :  { %v511_v37 = vmul.f32 %v5805_v4, %v431_v63  ;;  %v512_v40 = vmul.f32 %v5805_v4, %v432_v16  ;;  %v371_v46 = vmul.f32 0.00390625, %v338_v51  ;;  %v5366_v4 = vpop.eup %5365 }
 0x1a7   :  { %v5368_v16 = vpop.eup %5367  ;;  %v587_v11 = vadd.f32 1.0, %v5366_v4 }
 0x1a8   :  { %v6120_v13 = vadd.f32 %v511_v37, %v5928_v36  ;;  %v6123_v17 = vadd.f32 %v512_v40, %v5923_v21  ;;  %v429_v34 = vsub.f32 %v5940_v50, %v371_v46  ;;  %v430_v29 = vsub.f32 %v5944_v59, %v371_v46 }
 0x1a9   :  { %v348_v44 = vpop.xlane.xlu1 %347 }
 0x1aa   :  { %v5038_v25 = vmul.f32 -1.442695, %v6120_v13  ;;  %v5039_v31 = vmul.f32 -1.442695, %v6123_v17  ;;  %v509_v63 = vmul.f32 %v481_v19, %v429_v34  ;;  %v510_v15 = vmul.f32 %v481_v19, %v430_v29 }
 0x1ab   :  { %v373_v51 = vmul.f32 0.00390625, %v348_v44  ;;  %v588_v19 = vadd.f32 1.0, %v5368_v16 }
 0x1ac   :  { %5369 = vpow2.f32 %v5038_v25  ;;  %v6130_v36 = vadd.f32 %v509_v63, %v5940_v50  ;;  %v6133_v21 = vadd.f32 %v510_v15, %v5944_v59 }
 0x1ad   :  { %5371 = vpow2.f32 %v5039_v31  ;;  %v433_v37 = vsub.f32 %v5954_v53, %v373_v51  ;;  %v434_v40 = vsub.f32 %v5958_v42, %v373_v51  ;;  %v353_v46 = vpop.xlane.xlu1 %352 }
 0x1ae   :  { %v5036_v34 = vmul.f32 -1.442695, %v6130_v36  ;;  %v5037_v29 = vmul.f32 -1.442695, %v6133_v21  ;;  %v374_v44 = vmul.f32 0.00390625, %v353_v46 }
 0x1af   :  { %v513_v25 = vmul.f32 %v5809_v5, %v433_v37  ;;  %v514_v50 = vmul.f32 %v5809_v5, %v434_v40 }
 0x1b0   :  { %5373 = vpow2.f32 %v5036_v34  ;;  %v435_v59 = vsub.f32 %v5973_v48, %v374_v44  ;;  %v436_v15 = vsub.f32 %v5966_v56, %v374_v44 }
 0x1b1   :  { %5375 = vpow2.f32 %v5037_v29  ;;  %v6144_v31 = vadd.f32 %v513_v25, %v5954_v53  ;;  %v6147_v63 = vadd.f32 %v514_v50, %v5958_v42  ;;  %v363_v4 = vpop.xlane.xlu1 %362 }
 0x1b2   :  { %5377 = vrcp.f32 %v587_v11  ;;  %v515_v51 = vmul.f32 %v5813_v6, %v435_v59  ;;  %v516_v16 = vmul.f32 %v5813_v6, %v436_v15  ;;  %v376_v37 = vmul.f32 0.00390625, %v363_v4 }
 0x1b3   :  { %5379 = vrcp.f32 %v588_v19  ;;  %v5040_v5 = vmul.f32 -1.442695, %v6144_v31  ;;  %v5041_v40 = vmul.f32 -1.442695, %v6147_v63 }
 0x1b4   :  { %v6154_v46 = vadd.f32 %v515_v51, %v5973_v48  ;;  %v6157_v53 = vadd.f32 %v516_v16, %v5966_v56  ;;  %v439_v42 = vsub.f32 %v5988_v22, %v376_v37  ;;  %v440_v11 = vsub.f32 %v5981_v60, %v376_v37 }
 0x1b5   :  { %5381 = vpow2.f32 %v5040_v5  ;;  %v358_v34 = vpop.xlane.xlu1 %357 }
 0x1b6   :  { %v5370_v29 = vpop.eup %5369  ;;  %5383 = vpow2.f32 %v5041_v40  ;;  %v5042_v6 = vmul.f32 -1.442695, %v6154_v46  ;;  %v519_v44 = vmul.f32 %v5819_v9, %v439_v42  ;;  %v5043_v48 = vmul.f32 -1.442695, %v6157_v53 }
 0x1b7   :  { %v5372_v19 = vpop.eup %5371  ;;  %v591_v25 = vadd.f32 1.0, %v5370_v29  ;;  %v520_v50 = vmul.f32 %v5819_v9, %v440_v11  ;;  %v375_v56 = vmul.f32 0.00390625, %v358_v34 }
 0x1b8   :  { %v592_v59 = vadd.f32 1.0, %v5372_v19  ;;  %5385 = vpow2.f32 %v5042_v6  ;;  %v6166_v15 = vadd.f32 %v519_v44, %v5988_v22 }
 0x1b9   :  { %5387 = vrcp.f32 %v591_v25  ;;  %v6169_v4 = vadd.f32 %v520_v50, %v5981_v60  ;;  %v437_v51 = vsub.f32 %v6000_v38, %v375_v56  ;;  %v438_v16 = vsub.f32 %v6004_v47, %v375_v56  ;;  %v368_v37 = vpop.xlane.xlu1 %367 }
 0x1ba   :  { %v5374_v5 = vpop.eup %5373  ;;  %5389 = vrcp.f32 %v592_v59  ;;  %v5046_v40 = vmul.f32 -1.442695, %v6166_v15  ;;  %v377_v9 = vmul.f32 0.00390625, %v368_v37 }
 0x1bb   :  { %v5376_v42 = vpop.eup %5375  ;;  %v589_v11 = vadd.f32 1.0, %v5374_v5  ;;  %5391 = vpow2.f32 %v5043_v48  ;;  %v5047_v22 = vmul.f32 -1.442695, %v6169_v4  ;;  %v517_v34 = vmul.f32 %v5816_v7, %v437_v51 }
 0x1bc   :  { %v5378_v29 = vpop.eup %5377  ;;  %v590_v60 = vadd.f32 1.0, %v5376_v42  ;;  %5393 = vpow2.f32 %v5046_v40  ;;  %v518_v6 = vmul.f32 %v5816_v7, %v438_v16  ;;  %v441_v44 = vsub.f32 %v6014_v23, %v377_v9 }
 0x1bd   :  { %v5380_v19 = vpop.eup %5379  ;;  %5395 = vrcp.f32 %v589_v11  ;;  %v6179_v25 = vadd.f32 %v517_v34, %v6000_v38  ;;  %v442_v50 = vsub.f32 %v6018_v58, %v377_v9 }
 0x1be   :  { %5397 = vrcp.f32 %v590_v60  ;;  %v6183_v48 = vadd.f32 %v518_v6, %v6004_v47  ;;  %v521_v56 = vmul.f32 %v5823_v10, %v441_v44 }
 0x1bf   :  { %v5382_v59 = vpop.eup %5381  ;;  %5399 = vpow2.f32 %v5047_v22  ;;  %v5044_v51 = vmul.f32 -1.442695, %v6179_v25  ;;  %v522_v7 = vmul.f32 %v5823_v10, %v442_v50 }
 0x1c0   :  { %v5384_v16 = vpop.eup %5383  ;;  %v593_v37 = vadd.f32 1.0, %v5382_v59  ;;  %v5045_v5 = vmul.f32 -1.442695, %v6183_v48  ;;  %v6190_v38 = vadd.f32 %v521_v56, %v6014_v23  ;;  %v6201_v56 = vmul.f32 %v5380_v19, %v6109_v8 }
 0x1c1   :  { %v594_v40 = vadd.f32 1.0, %v5384_v16  ;;  %5401 = vpow2.f32 %v5044_v51  ;;  %v6193_v47 = vadd.f32 %v522_v7, %v6018_v58  ;;  %v6198_v58 = vmul.f32 %v5378_v29, %v6106_v62 }
 0x1c2   :  { %v5386_v9 = vpop.eup %5385  ;;  %5403 = vrcp.f32 %v593_v37  ;;  %v5048_v42 = vmul.f32 -1.442695, %v6190_v38 }
 0x1c3   :  { %v5388_v11 = vpop.eup %5387  ;;  %5405 = vrcp.f32 %v594_v40  ;;  %v5049_v10 = vmul.f32 -1.442695, %v6193_v47  ;;  %v595_v6 = vadd.f32 1.0, %v5386_v9 }
 0x1c4   :  { %v5390_v22 = vpop.eup %5389  ;;  %5407 = vpow2.f32 %v5045_v5  ;;  %v6208_v37 = vmul.f32 %v5388_v11, %v6120_v13 }
 0x1c5   :  { %v5392_v34 = vpop.eup %5391  ;;  %5409 = vpow2.f32 %v5048_v42  ;;  %v6211_v5 = vmul.f32 %v5390_v22, %v6123_v17 }
 0x1c6   :  { %v5394_v60 = vpop.eup %5393  ;;  %v596_v44 = vadd.f32 1.0, %v5392_v34  ;;  %5411 = vpow2.f32 %v5049_v10 }
 0x1c7   :  { %v5396_v23 = vpop.eup %5395  ;;  %v599_v51 = vadd.f32 1.0, %v5394_v60  ;;  %5413 = vrcp.f32 %v595_v6  ;;  %v932_v17 = vcombine.low %v6208_v37, %v6211_v5 }
 0x1c8   :  { %v5398_v50 = vpop.eup %5397  ;;  %v6204_v59 = vmul.f32 %v5396_v23, %v6130_v36  ;;  %5415 = vrcp.f32 %v596_v44  ;;  %v916_v36 = vcombine.low %v6198_v58, %v6201_v56 }
 0x1c9   :  { %v5400_v7 = vpop.eup %5399  ;;  %v638_v16 = vmul.f32 %v5398_v50, %v6133_v21  ;;  %5417 = vrcp.f32 %v599_v51 }
 0x1ca   :  { %v600_v40 = vadd.f32 1.0, %v5400_v7  ;;  %v923_v60 = vrot.slane %v916_v36, %v5870_v32 }
 0x1cb   :  { %v5402_v62 = vpop.eup %5401  ;;  %v924_v29 = vcombine.low %v6204_v59, %v638_v16 }
 0x1cc   :  { %v5404_v8 = vpop.eup %5403  ;;  %v597_v19 = vadd.f32 1.0, %v5402_v62  ;;  %5419 = vrcp.f32 %v600_v40 }
 0x1cd   :  { %v5406_v9 = vpop.eup %5405  ;;  %v641_v21 = vmul.f32 %v5404_v8, %v6144_v31  ;;  %v931_v11 = vrot.slane %v924_v29, %v5870_v32  ;;  %v939_v31 = vrot.slane %v932_v17, %v5870_v32 }
 0x1ce   :  { %v5408_v13 = vpop.eup %5407  ;;  %v642_v42 = vmul.f32 %v5406_v9, %v6147_v63  ;;  %5421 = vrcp.f32 %v597_v19 }
 0x1cf   :  { %v598_v10 = vadd.f32 1.0, %v5408_v13  ;;  %v5410_v22 = vpop.eup %5409  ;;  %v980_v51 = vcombine.low %v923_v60, %v931_v11  ;;  %v659_v13 = vcombine.low %v6204_v59, %v641_v21  ;;  %v701_v59 = vcombine.low %v6201_v56, %v6211_v5 }
 0x1d0   :  { %v940_v34 = vcombine.low %v641_v21, %v642_v42  ;;  %v5412_v6 = vpop.eup %5411  ;;  %v601_v23 = vadd.f32 1.0, %v5410_v22 }
 0x1d1   :  { %5423 = vrcp.f32 %v598_v10  ;;  %v602_v44 = vadd.f32 1.0, %v5412_v6  ;;  %v5414_v7 = vpop.eup %5413  ;;  %v988_v29 = vrot.slane %v980_v51, %v5870_v32  ;;  %v709_v10 = vcombine.low %v638_v16, %v642_v42 }
 0x1d2   :  { %v947_v50 = vrot.slane %v940_v34, %v5870_v32  ;;  %5425 = vrcp.f32 %v601_v23  ;;  %v5416_v40 = vpop.eup %5415  ;;  %v643_v17 = vmul.f32 %v5414_v7, %v6154_v46  ;;  %v651_v23 = vcombine.low %v6198_v58, %v6208_v37 }
 0x1d3   :  { %5427 = vrcp.f32 %v602_v44  ;;  %v5418_v62 = vpop.eup %5417  ;;  %v644_v11 = vmul.f32 %v5416_v40, %v6157_v53  ;;  %v708_v5 = vrot.slane %v701_v59, %v5870_v32 }
 0x1d4   :  { %v981_v63 = vcombine.low %v939_v31, %v947_v50  ;;  %v647_v22 = vmul.f32 %v5418_v62, %v6166_v15  ;;  %v716_v15 = vrot.slane %v709_v10, %v5870_v32 }
 0x1d5   :  { %v948_v21 = vcombine.low %v643_v17, %v644_v11 }
 0x1d6   :  { %v995_v8 = vrot.slane %v981_v63, %v5870_v32  ;;  %v5420_v36 = vpop.eup %5419  ;;  %v667_v42 = vcombine.low %v643_v17, %v647_v22 }
 0x1d7   :  { %v648_v34 = vmul.f32 %v5420_v36, %v6169_v4  ;;  %v666_v4 = vrot.slane %v659_v13, %v5870_v32  ;;  %v955_v40 = vrot.slane %v948_v21, %v5870_v32 }
 0x1d8   :  { %v5422_v19 = vpop.eup %5421  ;;  %v996_v9 = vcombine.low %v988_v29, %v995_v8  ;;  %v997_v16 = vcombine.high %v988_v29, %v995_v8  ;;  %v674_v8 = vrot.slane %v667_v42, %v5870_v32 }
 0x1d9   :  { %v645_v60 = vmul.f32 %v5422_v19, %v6179_v25  ;;  %v717_v44 = vcombine.low %v644_v11, %v648_v34  ;;  %v964_v58 = vcombine.low %v647_v22, %v648_v34 }
 0x1da   :  { %1016 = vrot.lane.b32.xlu1 %v996_v9, %s5552_s15 }
 0x1db   :  { %v5424_v6 = vpop.eup %5423  ;;  %v724_v29 = vrot.slane %v717_v44, %v5870_v32  ;;  %v971_v19 = vrot.slane %v964_v58, %v5870_v32  ;;  %v6272_v44 = vadd.s32 128, %v6057_v1 }
 0x1dc   :  { %v646_v46 = vmul.f32 %v5424_v6, %v6183_v48  ;;  %v5426_v53 = vpop.eup %5425  ;;  %v658_v48 = vrot.slane %v651_v23, %v5870_v32 }
 0x1dd   :  { %v5428_v25 = vpop.eup %5427  ;;  %v649_v50 = vmul.f32 %v5426_v53, %v6190_v38  ;;  %v733_v38 = vcombine.low %v708_v5, %v716_v15  ;;  %9501 = vst [vmem:[#allocation53_spill] sm:$0xff] %v6272_v44 }
 0x1de   :  { %v956_v31 = vcombine.low %v645_v60, %v646_v46  ;;  %1018 = vrot.lane.b32.xlu1 %v997_v16, %s5552_s15  ;;  %v650_v56 = vmul.f32 %v5428_v25, %v6193_v47  ;;  %v683_v62 = vcombine.low %v658_v48, %v666_v4  ;;  %v37_v25 = vld [vmem:[%s9215_s1 + $0x8] sm:$0xff] }
 0x1df   :  { %v675_v37 = vcombine.low %v645_v60, %v649_v50  ;;  %v740_v60 = vrot.slane %v733_v38, %v5876_v24 }
 0x1e0   :  { %v963_v51 = vrot.slane %v956_v31, %v5870_v32  ;;  %v725_v7 = vcombine.low %v646_v46, %v650_v56  ;;  %v972_v63 = vcombine.low %v649_v50, %v650_v56  ;;  %v690_v22 = vrot.slane %v683_v62, %v5876_v24  ;;  %v6275_v31 = vpop.permute.xlu0 %1278 }
 0x1e1   :  { %v682_v36 = vrot.slane %v675_v37, %v5870_v32  ;;  %v6279_v50 = vadd.s32 256, %v6057_v1  ;;  %v1042_v37 = vadd.s32 14, %v6272_v44 }
 0x1e2   :  { %v732_v47 = vrot.slane %v725_v7, %v5870_v32  ;;  %v979_v9 = vrot.slane %v972_v63, %v5870_v32  ;;  %v998_v13 = vcombine.low %v955_v40, %v963_v51 }
 0x1e3   :  { %v691_v10 = vcombine.low %v674_v8, %v682_v36  ;;  %9502 = vst [vmem:[#allocation54_spill] sm:$0xff] %v6279_v50  ;;  %v1043_v7 = vadd.s32 14, %v6279_v50  ;;  %v1045_v36 = vand.u32 15, %v1042_v37 }
 0x1e4   :  { %v741_v17 = vcombine.low %v724_v29, %v732_v47  ;;  %v999_v11 = vcombine.low %v971_v19, %v979_v9  ;;  %v1006_v23 = vrot.slane %v998_v13, %v5870_v32  ;;  %v6298_v40 = vpop.permute.xlu0 %2431 }
 0x1e5   :  { %v698_v34 = vrot.slane %v691_v10, %v5876_v24  ;;  %9503 = vst [vmem:[#allocation55_spill] sm:$0xff] %v6298_v40  ;;  %v6315_v9 = vand.u32 15, %v1043_v7  ;;  %vm1757_vm6 = vcmp.ge.s32.totalorder %v1045_v36, 1  ;;  %vm2009_vm7 = vcmp.ge.s32.totalorder %v1045_v36, 2 }
 0x1e6   :  { %v748_v6 = vrot.slane %v741_v17, %v5876_v24  ;;  %v1013_v59 = vrot.slane %v999_v11, %v5870_v32  ;;  %v1041_v24 = vadd.s32 14, %v6057_v1  ;;  %vm1061_vm9 = vcmp.lt.s32.totalorder %v1045_v36, 14 }
 0x1e7   :  { %v699_v46 = vcombine.low %v690_v22, %v698_v34  ;;  %v700_v16 = vcombine.high %v690_v22, %v698_v34  ;;  %vm2010_vm8 = vcmp.ge.s32.totalorder %v6315_v9, 2  ;;  %vm1062_vm10 = vcmp.lt.s32.totalorder %v6315_v9, 14 }
 0x1e8   :  { %v749_v53 = vcombine.low %v740_v60, %v748_v6  ;;  %v750_v21 = vcombine.high %v740_v60, %v748_v6  ;;  %v1015_v15 = vcombine.high %v1006_v23, %v1013_v59  ;;  %v1014_v4 = vcombine.low %v1006_v23, %v1013_v59  ;;  %v6317_v13 = vpop.permute.xlu0 %1464 }
 0x1e9   :  { %v6269_v42 = vand.u32 15, %v1041_v24  ;;  %v6336_v60 = vsel %vm2009_vm7, 1.0, %v9489_v14  ;;  %v6339_v6 = vsel %vm2010_vm8, 1.0, %v9489_v14  ;;  %vm1257_vm11 = vcmp.lt.s32.totalorder %v6315_v9, 15 }
 0x1ea   :  { %758 = vmatprep.subr.mxu0 %v749_v53  ;;  %829 = vmatprep.subr.mxu1 %v750_v21  ;;  %vm1256_vm12 = vcmp.lt.s32.totalorder %v1045_v36, 15  ;;  %v5054_v24 = vsel %vm1062_vm10, 1.0, %v9489_v14  ;;  %vm1758_vm15 = vcmp.ge.s32.totalorder %v6315_v9, 1  ;;  %vm1809_vm7 = vcmask 1022976  }
 0x1eb   :  { %1022 = vrot.lane.b32.xlu1 %v1015_v15, %s5552_s15  ;;  %1020 = vrot.lane.b32.xlu0 %v1014_v4, %s5552_s15  ;;  %vm2008_vm3 = vcmp.ge.s32.totalorder %v6269_v42, 2  ;;  %vm1756_vm5 = vcmp.ge.s32.totalorder %v6269_v42, 1  ;;  %v5053_v15 = vsel %vm1061_vm9, 1.0, %v9489_v14  ;;  %vm1060_vm13 = vcmp.lt.s32.totalorder %v6269_v42, 14  ;;  %s5600_s15 = smov 58  }
 0x1ec   :  { %759 = vmatpush1.msra.mxu0 %v699_v46  ;;  %830 = vmatpush1.msra.mxu1 %v700_v16  ;;  %v6282_v56 = vsel %vm2008_vm3, 1.0, %v9489_v14  ;;  %v6289_v5 = vsel %vm1756_vm5, 1.0, %v9489_v14  ;;  %v6329_v11 = vpop.permute.xlu0 %2536  ;;  %v5052_v36 = vsel %vm1060_vm13, 1.0, %v9489_v14  ;;  %vm1255_vm14 = vcmp.lt.s32.totalorder %v6269_v42, 15 }
 0x1ed   :  { %5050 = vmatmul.mubr.msk.f32.vlgmr.msra.gmra.mrb[2].mxu0 %vm9449_vm0, %v37_v25  ;;  %5051 = vmatmul.mubr.msk.f32.vlgmr.msra.gmra.mrb[2].mxu1 %vm9449_vm0, %v37_v25  ;;  %9504 = vst [vmem:[#allocation56_spill] sm:$0xff] %v6329_v11  ;;  %vm1305_vm3 = vcmask 1039360   ;;  %vm1557_vm5 = vcmask 1031168   ;;  %vm1902_vm8 = vcmask 760832   ;;  %vm2061_vm9 = vcmask 1014784  }
 0x1ee   :  { %4722 = vmatprep.mubr.f32.mxu0 %v9489_v14  ;;  %4793 = vmatprep.mubr.f32.mxu1 %v9489_v14  ;;  %vm2154_vm10 = vcmask 752640   ;;  %vm2862_vm0 = vcmask 982016  }
 0x24c   :  { %v1017_v58 = vpop.permute.xlu1 %1016 }
 0x24d   :  { %v6285_v48 = vsel %vm1024_vm4, 0.0, %v1017_v58 }
 0x24e   :  { %v1533_v51 = vmul.f32 %v6006_v57, %v6285_v48  ;;  %v6296_v63 = vmul.f32 %v6282_v56, %v6285_v48  ;;  %v6303_v29 = vmul.f32 %v6289_v5, %v6285_v48  ;;  %v1578_v10 = vmul.f32 %v5914_v41, %v6285_v48 }
 0x24f   :  { %v1626_v53 = vmul.f32 %v6030_v12, %v6285_v48 }
 0x250   :  { %1545 = vrot.lane.b32.xlu1 %v1533_v51, %s5551_s14  ;;  %v1019_v62 = vpop.permute.xlu1 %1018 }
 0x251   :  { %v6306_v38 = vsel %vm1024_vm4, %v1017_v58, %v1019_v62  ;;  %v6309_v8 = vsel %vm1024_vm4, %v1019_v62, 0.0  ;;  %v5057_v58 = vsel %vm1257_vm11, 1.0, %v9489_v14  ;;  %v5056_v62 = vsel %vm1256_vm12, 1.0, %v9489_v14 }
 0x252   :  { %v1535_v47 = vmul.f32 %v6006_v57, %v6309_v8  ;;  %v1534_v19 = vmul.f32 %v6006_v57, %v6306_v38  ;;  %v1580_v17 = vmul.f32 %v5914_v41, %v6309_v8  ;;  %v5059_v57 = vsel %vm1757_vm6, 1.0, %v9489_v14 }
 0x253   :  { %v1579_v22 = vmul.f32 %v5914_v41, %v6306_v38  ;;  %v1627_v34 = vmul.f32 %v6030_v12, %v6306_v38  ;;  %v6342_v23 = vmul.f32 %v5059_v57, %v6306_v38  ;;  %v6350_v41 = vmul.f32 %v6336_v60, %v6306_v38 }
 0x254   :  { %1549 = vrot.lane.b32.xlu1 %v1535_v47, %s5551_s14  ;;  %1547 = vrot.lane.b32.xlu0 %v1534_v19, %s5551_s14  ;;  %v6354_v59 = vmul.f32 %v6339_v6, %v6309_v8  ;;  %v1673_v21 = vmul.f32 %v5925_v54, %v6309_v8  ;;  %v1628_v19 = vmul.f32 %v6030_v12, %v6309_v8  ;;  %vm1650_vm6 = vcmask 769024  }
 0x255   :  { %v1671_v12 = vmul.f32 %v5925_v54, %v6285_v48  ;;  %v1672_v42 = vmul.f32 %v5925_v54, %v6306_v38  ;;  %v6428_v54 = vmul.f32 %v5057_v58, %v6309_v8 }
 0x258   :  { %1590 = vrot.lane.b32.xlu1 %v1578_v10, %s5551_s14  ;;  %1594 = vrot.lane.b32.xlu0 %v1580_v17, %s5551_s14  ;;  %v1720_v10 = vmul.f32 %v6038_v28, %v6306_v38  ;;  %v6390_v17 = vmul.f32 %v5053_v15, %v6306_v38 }
 0x25a   :  { %9505 = vst [vmem:[#allocation57_spill] sm:$0xff] %v6390_v17 }
 0x25c   :  { %1592 = vrot.lane.b32.xlu1 %v1579_v22, %s5551_s14  ;;  %1640 = vrot.lane.b32.xlu0 %v1627_v34, %s5553_s18  ;;  %v1123_v34 = vmul.f32 %v5916_v45, %v6390_v17 }
 0x25d   :  { %v1021_v46 = vpop.permute.xlu0 %1020  ;;  %v1023_v16 = vpop.permute.xlu1 %1022 }
 0x25e   :  { %v6362_v4 = vsel %vm1024_vm4, %v1021_v46, %v1023_v16  ;;  %v6365_v25 = vsel %vm1024_vm4, %v1023_v16, 0.0  ;;  %v6394_v22 = vsel %vm1024_vm4, 0.0, %v1021_v46  ;;  %v6405_v16 = vmul.f32 %v5054_v24, %v6309_v8 }
 0x25f   :  { %v6372_v37 = vmul.f32 %v5053_v15, %v6362_v4  ;;  %v6375_v51 = vmul.f32 %v5054_v24, %v6365_v25  ;;  %v6378_v7 = vmul.f32 %v5057_v58, %v6365_v25  ;;  %v6383_v47 = vmul.f32 %v5056_v62, %v6362_v4 }
 0x260   :  { %1638 = vrot.lane.b32.xlu1 %v1626_v53, %s5553_s18  ;;  %1687 = vrot.lane.b32.xlu0 %v1673_v21, %s5553_s18  ;;  %v6408_v46 = vmul.f32 %v5052_v36, %v6394_v22  ;;  %v5055_v53 = vsel %vm1255_vm14, 1.0, %v9489_v14  ;;  %v1169_v21 = vmul.f32 %v5851_v18, %v6405_v16  ;;  %v1719_v24 = vmul.f32 %v6038_v28, %v6285_v48 }
 0x261   :  { %v6418_v15 = vmul.f32 %v5055_v53, %v6394_v22  ;;  %v1721_v58 = vmul.f32 %v6038_v28, %v6309_v8  ;;  %v6468_v28 = vmul.f32 %v6336_v60, %v6362_v4  ;;  %vm1398_vm4 = vcmask 777216  }
 0x262   :  { %9506 = vst [vmem:[#allocation58_spill] sm:$0xff] %v6408_v46  ;;  %vm1239_vm14 = vcmask 523264  }
 0x264   :  { %1642 = vrot.lane.b32.xlu1 %v1628_v19, %s5553_s18  ;;  %1733 = vrot.lane.b32.xlu0 %v1720_v10, %s5554_s19  ;;  %v1216_v19 = vmul.f32 %v5920_v30, %v6390_v17  ;;  %v6431_v10 = vsel %vm1758_vm15, 1.0, %v9489_v14  ;;  %vm1491_vm15 = vcmask 515072  }
 0x265   :  { %v6444_v9 = vmul.f32 %v6431_v10, %v6365_v25 }
 0x268   :  { %1683 = vrot.lane.b32.xlu1 %v1671_v12, %s5553_s18  ;;  %1136 = vrot.lane.b32.xlu0 %v1123_v34, %s5555_s20  ;;  %v6434_v12 = vmul.f32 %v5059_v57, %v6362_v4  ;;  %v6438_v34 = vmul.f32 %v6289_v5, %v6394_v22  ;;  %v1283_v57 = vmul.f32 %v5859_v20, %v6428_v54 }
 0x269   :  { %v6454_v5 = vmul.f32 %v5056_v62, %v6306_v38  ;;  %v1376_v62 = vmul.f32 %v5872_v35, %v6428_v54 }
 0x26c   :  { %1685 = vrot.lane.b32.xlu1 %v1672_v42, %s5553_s18  ;;  %1183 = vrot.lane.b32.xlu0 %v1169_v21, %s5555_s20  ;;  %v6451_v42 = vmul.f32 %v5052_v36, %v6285_v48  ;;  %v6458_v21 = vmul.f32 %v6282_v56, %v6394_v22  ;;  %v1327_v56 = vmul.f32 %v5932_v3, %v6454_v5 }
 0x26d   :  { %v1420_v36 = vmul.f32 %v5978_v61, %v6454_v5 }
 0x26e   :  { %v1122_v38 = vmul.f32 %v5916_v45, %v6451_v42  ;;  %v1167_v60 = vmul.f32 %v5851_v18, %v6451_v42 }
 0x270   :  { %1731 = vrot.lane.b32.xlu1 %v1719_v24, %s5554_s19  ;;  %1229 = vrot.lane.b32.xlu0 %v1216_v19, %s5556_s21  ;;  %v6462_v24 = vmul.f32 %v6339_v6, %v6365_v25  ;;  %v1124_v6 = vmul.f32 %v5916_v45, %v6405_v16  ;;  %v1168_v45 = vmul.f32 %v5851_v18, %v6390_v17 }
 0x271   :  { %v1469_v19 = vmul.f32 %v5904_v26, %v6428_v54  ;;  %v1217_v18 = vmul.f32 %v5920_v30, %v6405_v16 }
 0x274   :  { %1735 = vrot.lane.b32.xlu1 %v1721_v58, %s5554_s19  ;;  %1297 = vrot.lane.b32.xlu0 %v1283_v57, %s5557_s22  ;;  %v1215_v58 = vmul.f32 %v5920_v30, %v6451_v42  ;;  %v1536_v57 = vmul.f32 %v5910_v33, %v6394_v22  ;;  %v1282_v30 = vmul.f32 %v5859_v20, %v6454_v5 }
 0x278   :  { %1134 = vrot.lane.b32.xlu1 %v1122_v38, %s5555_s20  ;;  %1340 = vrot.lane.b32.xlu0 %v1327_v56, %s5557_s22  ;;  %v1538_v38 = vmul.f32 %v5910_v33, %v6365_v25  ;;  %v1267_v56 = vmul.f32 %v5055_v53, %v6285_v48  ;;  %v1631_v53 = vmul.f32 %v5918_v39, %v6365_v25 }
 0x27a   :  { %v1326_v48 = vmul.f32 %v5932_v3, %v1267_v56 }
 0x27c   :  { %1138 = vrot.lane.b32.xlu1 %v1124_v6, %s5555_s20  ;;  %1390 = vrot.lane.b32.xlu0 %v1376_v62, %s5558_s23  ;;  %v1281_v6 = vmul.f32 %v5859_v20, %v1267_v56  ;;  %v1582_v62 = vmul.f32 %v6022_v0, %v6362_v4  ;;  %v1675_v20 = vmul.f32 %v6034_v27, %v6362_v4 }
 0x280   :  { %1179 = vrot.lane.b32.xlu1 %v1167_v60, %s5555_s20  ;;  %1433 = vrot.lane.b32.xlu0 %v1420_v36, %s5558_s23  ;;  %v1629_v60 = vmul.f32 %v5918_v39, %v6394_v22  ;;  %v1328_v36 = vmul.f32 %v5932_v3, %v6428_v54  ;;  %v1724_v3 = vmul.f32 %v5946_v43, %v6365_v25 }
 0x284   :  { %1181 = vrot.lane.b32.xlu1 %v1168_v45, %s5555_s20  ;;  %1483 = vrot.lane.b32.xlu0 %v1469_v19, %s5559_s24  ;;  %v1374_v45 = vmul.f32 %v5872_v35, %v1267_v56  ;;  %v1722_v19 = vmul.f32 %v5946_v43, %v6394_v22 }
 0x288   :  { %1227 = vrot.lane.b32.xlu1 %v1215_v58, %s5556_s21  ;;  %1551 = vrot.lane.b32.xlu0 %v1536_v57, %s5551_s14  ;;  %v1375_v58 = vmul.f32 %v5872_v35, %v6454_v5  ;;  %v6540_v57 = vmul.f32 %v6431_v10, %v6309_v8  ;;  %v1421_v35 = vmul.f32 %v5978_v61, %v6428_v54 }
 0x289   :  { %v1831_v8 = vmul.f32 %v6048_v2, %v6342_v23  ;;  %v1467_v10 = vmul.f32 %v5904_v26, %v1267_v56  ;;  %v1924_v54 = vmul.f32 %v6059_v52, %v6342_v23 }
 0x28c   :  { %1231 = vrot.lane.b32.xlu1 %v1217_v18, %s5556_s21  ;;  %1555 = vrot.lane.b32.xlu0 %v1538_v38, %s5551_s14  ;;  %v1419_v18 = vmul.f32 %v5978_v61, %v1267_v56  ;;  %v1787_v38 = vmul.f32 %v5962_v55, %v6540_v57  ;;  %v1468_v61 = vmul.f32 %v5904_v26, %v6454_v5  ;;  %v9507_v56 = vld [vmem:[#allocation24_spill] sm:$0xff]  ;;  %v9508_v26 = vld [vmem:[#allocation41_spill] sm:$0xff] }
 0x28d   :  { %v2038_v5 = vmul.f32 %v9508_v26, %v6350_v41  ;;  %v1971_v50 = vmul.f32 %v9507_v56, %v6303_v29 }
 0x290   :  { %1293 = vrot.lane.b32.xlu1 %v1281_v6, %s5557_s22  ;;  %1598 = vrot.lane.b32.xlu0 %v1582_v62, %s5551_s14  ;;  %v1880_v6 = vmul.f32 %v5992_v49, %v6540_v57  ;;  %v1973_v62 = vmul.f32 %v9507_v56, %v6540_v57 }
 0x294   :  { %1295 = vrot.lane.b32.xlu1 %v1282_v30, %s5557_s22  ;;  %1644 = vrot.lane.b32.xlu0 %v1629_v60, %s5553_s18  ;;  %v1537_v30 = vmul.f32 %v5910_v33, %v6362_v4  ;;  %v1581_v60 = vmul.f32 %v6022_v0, %v6394_v22  ;;  %v1583_v33 = vmul.f32 %v6022_v0, %v6365_v25 }
 0x298   :  { %1338 = vrot.lane.b32.xlu1 %v1326_v48, %s5557_s22  ;;  %1648 = vrot.lane.b32.xlu0 %v1631_v53, %s5553_s18  ;;  %v9509_v48 = vld [vmem:[#allocation26_spill] sm:$0xff] }
 0x299   :  { %v2084_v53 = vmul.f32 %v9509_v48, %v6354_v59 }
 0x29c   :  { %1342 = vrot.lane.b32.xlu1 %v1328_v36, %s5557_s22  ;;  %1691 = vrot.lane.b32.xlu0 %v1675_v20, %s5553_s18 }
 0x2a0   :  { %1386 = vrot.lane.b32.xlu1 %v1374_v45, %s5558_s23  ;;  %1737 = vrot.lane.b32.xlu0 %v1722_v19, %s5554_s19 }
 0x2a4   :  { %1388 = vrot.lane.b32.xlu1 %v1375_v58, %s5558_s23  ;;  %1741 = vrot.lane.b32.xlu0 %v1724_v3, %s5554_s19  ;;  %v9514_v58 = vld [vmem:[#allocation45_spill] sm:$0xff] }
 0x2a5   :  { %v2131_v3 = vmul.f32 %v9514_v58, %v6350_v41 }
 0x2a8   :  { %1431 = vrot.lane.b32.xlu1 %v1419_v18, %s5558_s23  ;;  %1801 = vrot.lane.b32.xlu0 %v1787_v38, %s5560_s25  ;;  %v1630_v18 = vmul.f32 %v5918_v39, %v6362_v4 }
 0x2ac   :  { %1435 = vrot.lane.b32.xlu1 %v1421_v35, %s5558_s23  ;;  %1844 = vrot.lane.b32.xlu0 %v1831_v8, %s5560_s25  ;;  %v9517_v35 = vld [vmem:[#allocation28_spill] sm:$0xff] }
 0x2ad   :  { %v2175_v8 = vmul.f32 %v9517_v35, %v6296_v63 }
 0x2b0   :  { %1479 = vrot.lane.b32.xlu1 %v1467_v10, %s5559_s24  ;;  %1894 = vrot.lane.b32.xlu0 %v1880_v6, %s5561_s26  ;;  %v1674_v10 = vmul.f32 %v6034_v27, %v6394_v22 }
 0x2b4   :  { %1481 = vrot.lane.b32.xlu1 %v1468_v61, %s5559_s24  ;;  %1937 = vrot.lane.b32.xlu0 %v1924_v54, %s5561_s26  ;;  %v2177_v61 = vmul.f32 %v9517_v35, %v6354_v59  ;;  %v1676_v54 = vmul.f32 %v6034_v27, %v6365_v25  ;;  %v9521_v25 = vld [vmem:[#allocation14_spill] sm:$0xff] }
 0x2b8   :  { %1987 = vrot.lane.b32.xlu0 %v1973_v62, %s5562_s27  ;;  %1553 = vrot.lane.b32.xlu1 %v1537_v30, %s5551_s14  ;;  %v9520_v30 = vld [vmem:[#allocation47_spill] sm:$0xff] }
 0x2bc   :  { %2051 = vrot.lane.b32.xlu0 %v2038_v5, %s5563_s28  ;;  %1596 = vrot.lane.b32.xlu1 %v1581_v60, %s5551_s14  ;;  %v2224_v5 = vmul.f32 %v9520_v30, %v6350_v41  ;;  %v1723_v60 = vmul.f32 %v5946_v43, %v6362_v4  ;;  %v1127_v4 = vmul.f32 %v9521_v25, %v6375_v51 }
 0x2c0   :  { %2098 = vrot.lane.b32.xlu0 %v2084_v53, %s5563_s28  ;;  %1600 = vrot.lane.b32.xlu1 %v1583_v33, %s5551_s14  ;;  %v6584_v36 = vpop.f32.mrb[2].mxu0  ;;  %v6586_v20 = vpop.f32.mrb[2].mxu1  ;;  %v1125_v33 = vmul.f32 %v9521_v25, %v6408_v46 }
 0x2c1   :  { %9510 = vst [vmem:[#allocation24_spill] sm:$0xff] %v6584_v36  ;;  %9511 = vst [vmem:[#allocation41_spill] sm:$0xff] %v6586_v20  ;;  %v6588_v45 = vpop.f32.mrb[3].mxu0  ;;  %v6590_v19 = vpop.f32.mrb[3].mxu1 }
 0x2c2   :  { %9512 = vst [vmem:[#allocation26_spill] sm:$0xff] %v6588_v45  ;;  %9513 = vst [vmem:[#allocation59_spill] sm:$0xff] %v6590_v19  ;;  %v6596_v38 = vpop.permute.xlu1 %1545 }
 0x2c3   :  { %9515 = vst [vmem:[#allocation45_spill] sm:$0xff] %v6596_v38  ;;  %v2130_v38 = vmul.f32 %v9514_v58, %v6296_v63 }
 0x2c4   :  { %2144 = vrot.lane.b32.xlu0 %v2131_v3, %s5564_s3  ;;  %1646 = vrot.lane.b32.xlu1 %v1630_v18, %s5553_s18  ;;  %v1785_v3 = vmul.f32 %v5962_v55, %v6303_v29 }
 0x2c6   :  { %v6600_v0 = vpop.permute.xlu0 %1547  ;;  %v6606_v6 = vpop.permute.xlu1 %1549 }
 0x2c7   :  { %9516 = vst [vmem:[#allocation60_spill] sm:$0xff] %v6600_v0  ;;  %9518 = vst [vmem:[#allocation28_spill] sm:$0xff] %v6606_v6 }
 0x2c8   :  { %2187 = vrot.lane.b32.xlu0 %v2175_v8, %s5564_s3  ;;  %1689 = vrot.lane.b32.xlu1 %v1674_v10, %s5553_s18  ;;  %v1786_v8 = vmul.f32 %v5962_v55, %v6342_v23 }
 0x2ca   :  { %v6610_v39 = vpop.permute.xlu0 %1594  ;;  %v6616_v62 = vpop.permute.xlu1 %1590 }
 0x2cc   :  { %2191 = vrot.lane.b32.xlu0 %v2177_v61, %s5564_s3  ;;  %1693 = vrot.lane.b32.xlu1 %v1676_v54, %s5553_s18  ;;  %v1830_v54 = vmul.f32 %v6048_v2, %v6303_v29  ;;  %s5604_s18 = smov 113  }
 0x2ce   :  { %v6620_v22 = vpop.permute.xlu0 %1640  ;;  %v6626_v53 = vpop.permute.xlu1 %1592 }
 0x2cf   :  { %9519 = vst [vmem:[#allocation61_spill] sm:$0xff] %v6620_v22 }
 0x2d0   :  { %2237 = vrot.lane.b32.xlu0 %v2224_v5, %s5565_s29  ;;  %1739 = vrot.lane.b32.xlu1 %v1723_v60, %s5554_s19  ;;  %v9526_v5 = vld [vmem:[#allocation49_spill] sm:$0xff] }
 0x2d1   :  { %v1171_v60 = vmul.f32 %v9526_v5, %v6372_v37 }
 0x2d2   :  { %v6630_v27 = vpop.permute.xlu0 %1687  ;;  %v6636_v18 = vpop.permute.xlu1 %1638 }
 0x2d3   :  { %9522 = vst [vmem:[#allocation47_spill] sm:$0xff] %v6636_v18  ;;  %v2082_v18 = vmul.f32 %v9509_v48, %v6296_v63 }
 0x2d4   :  { %1140 = vrot.lane.b32.xlu0 %v1125_v33, %s5555_s20  ;;  %1797 = vrot.lane.b32.xlu1 %v1785_v3, %s5560_s25  ;;  %v1832_v3 = vmul.f32 %v6048_v2, %v6540_v57 }
 0x2d6   :  { %v6640_v43 = vpop.permute.xlu0 %1733  ;;  %v6646_v10 = vpop.permute.xlu1 %1642 }
 0x2d7   :  { %9523 = vst [vmem:[#allocation14_spill] sm:$0xff] %v6640_v43  ;;  %9524 = vst [vmem:[#allocation62_spill] sm:$0xff] %v6646_v10 }
 0x2d8   :  { %1144 = vrot.lane.b32.xlu0 %v1127_v4, %s5555_s20  ;;  %1799 = vrot.lane.b32.xlu1 %v1786_v8, %s5560_s25  ;;  %v9527_v4 = vld [vmem:[#allocation15_spill] sm:$0xff] }
 0x2d9   :  { %v1218_v8 = vmul.f32 %v9527_v4, %v6408_v46 }
 0x2da   :  { %v6650_v61 = vpop.permute.xlu0 %1136  ;;  %v6656_v33 = vpop.permute.xlu1 %1683 }
 0x2db   :  { %9525 = vst [vmem:[#allocation63_spill] sm:$0xff] %v6650_v61 }
 0x2dc   :  { %1842 = vrot.lane.b32.xlu1 %v1830_v54, %s5560_s25  ;;  %1187 = vrot.lane.b32.xlu0 %v1171_v60, %s5555_s20  ;;  %v1878_v54 = vmul.f32 %v5992_v49, %v6303_v29  ;;  %v1220_v60 = vmul.f32 %v9527_v4, %v6375_v51 }
 0x2de   :  { %v6660_v55 = vpop.permute.xlu0 %1183  ;;  %v6666_v19 = vpop.permute.xlu1 %1685 }
 0x2e0   :  { %1846 = vrot.lane.b32.xlu1 %v1832_v3, %s5560_s25  ;;  %1233 = vrot.lane.b32.xlu0 %v1218_v8, %s5556_s21  ;;  %v1879_v3 = vmul.f32 %v5992_v49, %v6342_v23  ;;  %v1285_v8 = vmul.f32 %v6275_v31, %v6383_v47 }
 0x2e2   :  { %v6670_v45 = vpop.permute.xlu0 %1229  ;;  %v6676_v20 = vpop.permute.xlu1 %1731 }
 0x2e3   :  { %9528 = vst [vmem:[#allocation49_spill] sm:$0xff] %v6670_v45  ;;  %9529 = vst [vmem:[#allocation15_spill] sm:$0xff] %v6676_v20 }
 0x2e4   :  { %1890 = vrot.lane.b32.xlu1 %v1878_v54, %s5561_s26  ;;  %1237 = vrot.lane.b32.xlu0 %v1220_v60, %s5556_s21  ;;  %v1923_v54 = vmul.f32 %v6059_v52, %v6303_v29  ;;  %v9532_v60 = vld [vmem:[#allocation17_spill] sm:$0xff] }
 0x2e5   :  { %v1329_v11 = vmul.f32 %v9532_v60, %v6418_v15 }
 0x2e6   :  { %v6680_v2 = vpop.permute.xlu0 %1297  ;;  %v6686_v36 = vpop.permute.xlu1 %1735 }
 0x2e7   :  { %9530 = vst [vmem:[#allocation64_spill] sm:$0xff] %v6680_v2  ;;  %9531 = vst [vmem:[#allocation65_spill] sm:$0xff] %v6686_v36  ;;  %v2037_v36 = vmul.f32 %v9508_v26, %v6296_v63 }
 0x2e8   :  { %1892 = vrot.lane.b32.xlu1 %v1879_v3, %s5561_s26  ;;  %1301 = vrot.lane.b32.xlu0 %v1285_v8, %s5557_s22  ;;  %v1925_v3 = vmul.f32 %v6059_v52, %v6540_v57  ;;  %v1331_v8 = vmul.f32 %v9532_v60, %v6378_v7  ;;  %v1972_v52 = vmul.f32 %v9507_v56, %v6342_v23  ;;  %v9537_v57 = vld [vmem:[#allocation19_spill] sm:$0xff] }
 0x2e9   :  { %v2039_v23 = vmul.f32 %v9508_v26, %v6354_v59  ;;  %v1471_v56 = vmul.f32 %v6317_v13, %v6383_v47 }
 0x2ea   :  { %v6690_v32 = vpop.permute.xlu0 %1340  ;;  %v6696_v40 = vpop.permute.xlu1 %1134 }
 0x2eb   :  { %9533 = vst [vmem:[#allocation17_spill] sm:$0xff] %v6696_v40 }
 0x2ec   :  { %1935 = vrot.lane.b32.xlu1 %v1923_v54, %s5561_s26  ;;  %1344 = vrot.lane.b32.xlu0 %v1329_v11, %s5557_s22  ;;  %v9536_v54 = vld [vmem:[#allocation21_spill] sm:$0xff] }
 0x2ed   :  { %v1378_v11 = vmul.f32 %v9536_v54, %v6383_v47 }
 0x2ee   :  { %v6700_v49 = vpop.permute.xlu0 %1390  ;;  %v6706_v44 = vpop.permute.xlu1 %1138 }
 0x2ef   :  { %9534 = vst [vmem:[#allocation66_spill] sm:$0xff] %v6700_v49  ;;  %9535 = vst [vmem:[#allocation67_spill] sm:$0xff] %v6706_v44 }
 0x2f0   :  { %1939 = vrot.lane.b32.xlu1 %v1925_v3, %s5561_s26  ;;  %1348 = vrot.lane.b32.xlu0 %v1331_v8, %s5557_s22  ;;  %v1422_v3 = vmul.f32 %v9537_v57, %v6418_v15 }
 0x2f2   :  { %v6714_v20 = vpop.permute.xlu1 %1179  ;;  %v6716_v43 = vpop.permute.xlu0 %1433 }
 0x2f4   :  { %1983 = vrot.lane.b32.xlu1 %v1971_v50, %s5562_s27  ;;  %1394 = vrot.lane.b32.xlu0 %v1378_v11, %s5558_s23  ;;  %v1424_v50 = vmul.f32 %v9537_v57, %v6378_v7 }
 0x2f6   :  { %v6724_v8 = vpop.permute.xlu1 %1181  ;;  %v6728_v29 = vpop.permute.xlu0 %1483 }
 0x2f7   :  { %9538 = vst [vmem:[#allocation21_spill] sm:$0xff] %v6728_v29  ;;  %v9549_v29 = vld [vmem:[#allocation23_spill] sm:$0xff] }
 0x2f8   :  { %1985 = vrot.lane.b32.xlu1 %v1972_v52, %s5562_s27  ;;  %1437 = vrot.lane.b32.xlu0 %v1422_v3, %s5558_s23 }
 0x2fa   :  { %v6734_v11 = vpop.permute.xlu1 %1227  ;;  %v6744_v3 = vpop.permute.xlu0 %1551 }
 0x2fb   :  { %9539 = vst [vmem:[#allocation19_spill] sm:$0xff] %v6734_v11  ;;  %9541 = vst [vmem:[#allocation69_spill] sm:$0xff] %v6744_v3  ;;  %v2083_v3 = vmul.f32 %v9509_v48, %v6350_v41  ;;  %v2132_v48 = vmul.f32 %v9514_v58, %v6354_v59  ;;  %v1928_v58 = vmul.f32 %v9549_v29, %v6444_v9 }
 0x2fc   :  { %2049 = vrot.lane.b32.xlu1 %v2037_v36, %s5563_s28  ;;  %1441 = vrot.lane.b32.xlu0 %v1424_v50, %s5558_s23  ;;  %v9542_v36 = vld [vmem:[#allocation29_spill] sm:$0xff] }
 0x2fd   :  { %v1789_v50 = vmul.f32 %v9542_v36, %v6434_v12 }
 0x2fe   :  { %v6742_v52 = vpop.permute.xlu1 %1231  ;;  %v6756_v26 = vpop.permute.xlu0 %1555 }
 0x2ff   :  { %9540 = vst [vmem:[#allocation68_spill] sm:$0xff] %v6742_v52  ;;  %9544 = vst [vmem:[#allocation70_spill] sm:$0xff] %v6756_v26  ;;  %v9571_v52 = vmov 9  }
 0x300   :  { %2053 = vrot.lane.b32.xlu1 %v2039_v23, %s5563_s28  ;;  %1487 = vrot.lane.b32.xlu0 %v1471_v56, %s5559_s24  ;;  %v9545_v23 = vld [vmem:[#allocation22_spill] sm:$0xff] }
 0x301   :  { %v1833_v56 = vmul.f32 %v9545_v23, %v6438_v34 }
 0x302   :  { %v6752_v22 = vpop.permute.xlu1 %1293  ;;  %v6772_v26 = vpop.permute.xlu0 %1598 }
 0x303   :  { %9543 = vst [vmem:[#allocation29_spill] sm:$0xff] %v6752_v22  ;;  %v1926_v22 = vmul.f32 %v9549_v29, %v6438_v34 }
 0x304   :  { %2094 = vrot.lane.b32.xlu1 %v2082_v18, %s5563_s28  ;;  %1805 = vrot.lane.b32.xlu0 %v1789_v50, %s5560_s25  ;;  %v1835_v18 = vmul.f32 %v9545_v23, %v6444_v9 }
 0x306   :  { %v6762_v10 = vpop.permute.xlu1 %1295  ;;  %v6784_v6 = vpop.permute.xlu0 %1644 }
 0x307   :  { %9546 = vst [vmem:[#allocation22_spill] sm:$0xff] %v6762_v10 }
 0x308   :  { %2096 = vrot.lane.b32.xlu1 %v2083_v3, %s5563_s28  ;;  %1848 = vrot.lane.b32.xlu0 %v1833_v56, %s5560_s25  ;;  %v9547_v3 = vld [vmem:[#allocation32_spill] sm:$0xff] }
 0x309   :  { %v1882_v56 = vmul.f32 %v9547_v3, %v6434_v12  ;;  %9548 = vst [vmem:[#allocation32_spill] sm:$0xff] %v6784_v6 }
 0x30a   :  { %v6770_v50 = vpop.permute.xlu1 %1338  ;;  %v6800_v6 = vpop.permute.xlu0 %1648 }
 0x30b   :  { %9552 = vst [vmem:[#allocation72_spill] sm:$0xff] %v6800_v6  ;;  %v9554_v6 = vld [vmem:[#allocation25_spill] sm:$0xff] }
 0x30c   :  { %2142 = vrot.lane.b32.xlu1 %v2130_v38, %s5564_s3  ;;  %1852 = vrot.lane.b32.xlu0 %v1835_v18, %s5560_s25  ;;  %v2176_v38 = vmul.f32 %v9517_v35, %v6350_v41  ;;  %v9553_v41 = vld [vmem:[#allocation37_spill] sm:$0xff] }
 0x30d   :  { %v1975_v35 = vmul.f32 %v9553_v41, %v6434_v12 }
 0x30e   :  { %v6780_v0 = vpop.permute.xlu1 %1342 }
 0x310   :  { %2146 = vrot.lane.b32.xlu1 %v2132_v48, %s5564_s3  ;;  %1898 = vrot.lane.b32.xlu0 %v1882_v56, %s5561_s26  ;;  %v2223_v48 = vmul.f32 %v9520_v30, %v6296_v63  ;;  %v6812_v63 = vpop.permute.xlu0 %1691 }
 0x312   :  { %v6790_v18 = vpop.permute.xlu1 %1386 }
 0x313   :  { %9550 = vst [vmem:[#allocation23_spill] sm:$0xff] %v6790_v18  ;;  %v2040_v18 = vmul.f32 %v9554_v6, %v6458_v21 }
 0x314   :  { %1941 = vrot.lane.b32.xlu0 %v1926_v22, %s5561_s26  ;;  %2189 = vrot.lane.b32.xlu1 %v2176_v38, %s5564_s3  ;;  %v2225_v22 = vmul.f32 %v9520_v30, %v6354_v59  ;;  %v2042_v59 = vmul.f32 %v9554_v6, %v6462_v24  ;;  %v1170_v30 = vmul.f32 %v9526_v5, %v6408_v46 }
 0x316   :  { %v6798_v56 = vpop.permute.xlu1 %1388 }
 0x317   :  { %9551 = vst [vmem:[#allocation71_spill] sm:$0xff] %v6798_v56 }
 0x318   :  { %1945 = vrot.lane.b32.xlu0 %v1928_v58, %s5561_s26  ;;  %2235 = vrot.lane.b32.xlu1 %v2223_v48, %s5565_s29  ;;  %v1126_v58 = vmul.f32 %v9521_v25, %v6372_v37  ;;  %v9557_v25 = vld [vmem:[#allocation43_spill] sm:$0xff] }
 0x319   :  { %v2086_v56 = vmul.f32 %v9557_v25, %v6468_v28 }
 0x31a   :  { %v6808_v38 = vpop.permute.xlu1 %1431 }
 0x31c   :  { %1991 = vrot.lane.b32.xlu0 %v1975_v35, %s5562_s27  ;;  %2239 = vrot.lane.b32.xlu1 %v2225_v22, %s5565_s29  ;;  %v6828_v22 = vpop.permute.xlu0 %1737 }
 0x31d   :  { %9556 = vst [vmem:[#allocation25_spill] sm:$0xff] %v6828_v22  ;;  %v9560_v22 = vld [vmem:[#allocation27_spill] sm:$0xff] }
 0x31e   :  { %v6818_v48 = vpop.permute.xlu1 %1435 }
 0x320   :  { %2055 = vrot.lane.b32.xlu0 %v2040_v18, %s5563_s28  ;;  %1142 = vrot.lane.b32.xlu1 %v1126_v58, %s5555_s20  ;;  %v1172_v18 = vmul.f32 %v9526_v5, %v6375_v51  ;;  %v6840_v49 = vpop.permute.xlu0 %1741  ;;  %v9562_v5 = vld [vmem:[#allocation46_spill] sm:$0xff] }
 0x321   :  { %9559 = vst [vmem:[#allocation73_spill] sm:$0xff] %v6840_v49 }
 0x322   :  { %v6826_v35 = vpop.permute.xlu1 %1479 }
 0x323   :  { %9555 = vst [vmem:[#allocation37_spill] sm:$0xff] %v6826_v35  ;;  %v2133_v35 = vmul.f32 %v9560_v22, %v6458_v21 }
 0x324   :  { %2059 = vrot.lane.b32.xlu0 %v2042_v59, %s5563_s28  ;;  %1185 = vrot.lane.b32.xlu1 %v1170_v30, %s5555_s20  ;;  %v1219_v59 = vmul.f32 %v9527_v4, %v6372_v37  ;;  %v6856_v49 = vpop.permute.xlu0 %1801  ;;  %v9564_v4 = vld [vmem:[#allocation30_spill] sm:$0xff] }
 0x325   :  { %9563 = vst [vmem:[#allocation46_spill] sm:$0xff] %v6856_v49  ;;  %v2228_v49 = vmul.f32 %v9564_v4, %v6462_v24 }
 0x326   :  { %v6836_v58 = vpop.permute.xlu1 %1481 }
 0x327   :  { %9558 = vst [vmem:[#allocation43_spill] sm:$0xff] %v6836_v58  ;;  %v2179_v58 = vmul.f32 %v9562_v5, %v6468_v28 }
 0x328   :  { %2102 = vrot.lane.b32.xlu0 %v2086_v56, %s5563_s28  ;;  %1189 = vrot.lane.b32.xlu1 %v1172_v18, %s5555_s20  ;;  %v1284_v56 = vmul.f32 %v6275_v31, %v6418_v15  ;;  %v6868_v11 = vpop.permute.xlu0 %1844 }
 0x32a   :  { %v6846_v30 = vpop.permute.xlu1 %1553 }
 0x32b   :  { %9561 = vst [vmem:[#allocation27_spill] sm:$0xff] %v6846_v30  ;;  %v2226_v30 = vmul.f32 %v9564_v4, %v6458_v21 }
 0x32c   :  { %2148 = vrot.lane.b32.xlu0 %v2133_v35, %s5564_s3  ;;  %1235 = vrot.lane.b32.xlu1 %v1219_v59, %s5556_s21  ;;  %v1286_v35 = vmul.f32 %v6275_v31, %v6378_v7  ;;  %v6878_v31 = vld [vmem:[#allocation2 + $0x18] sm:$0x3f]  ;;  %v6884_v10 = vpop.permute.xlu0 %1894 }
 0x32d   :  { %9566 = vst [vmem:[#allocation74_spill] sm:$0xff] %v6884_v10  ;;  %v1423_v10 = vmul.f32 %v9537_v57, %v6383_v47 }
 0x32e   :  { %v6854_v18 = vpop.permute.xlu1 %1596 }
 0x330   :  { %2195 = vrot.lane.b32.xlu0 %v2179_v58, %s5564_s3  ;;  %1299 = vrot.lane.b32.xlu1 %v1284_v56, %s5557_s22  ;;  %v1330_v58 = vmul.f32 %v9532_v60, %v6383_v47  ;;  %v1379_v60 = vmul.f32 %v9536_v54, %v6378_v7  ;;  %v6897_v2 = vpop.permute.xlu0 %1937  ;;  %v1472_v47 = vmul.f32 %v6317_v13, %v6378_v7 }
 0x332   :  { %v6864_v59 = vpop.permute.xlu1 %1600 }
 0x334   :  { %2241 = vrot.lane.b32.xlu0 %v2226_v30, %s5565_s29  ;;  %1303 = vrot.lane.b32.xlu1 %v1286_v35, %s5557_s22  ;;  %v1377_v30 = vmul.f32 %v9536_v54, %v6418_v15  ;;  %v9316_v54 = vmov 36   ;;  %v6910_v45 = vpop.permute.xlu0 %1987 }
 0x335   :  { %9570 = vst [vmem:[#allocation77_spill] sm:$0xff] %v6910_v45 }
 0x336   :  { %v6874_v56 = vpop.permute.xlu1 %1646 }
 0x337   :  { %9565 = vst [vmem:[#allocation30_spill] sm:$0xff] %v6874_v56 }
 0x338   :  { %2245 = vrot.lane.b32.xlu0 %v2228_v49, %s5565_s29  ;;  %1346 = vrot.lane.b32.xlu1 %v1330_v58, %s5557_s22  ;;  %v9567_v49 = vmov 8   ;;  %v6894_v58 = vld [vmem:[#allocation2 + $0x10] sm:$0xff]  ;;  %v6920_v57 = vpop.permute.xlu0 %2051  ;;  %s5606_s22 = smov 49  }
 0x339   :  { %9573 = vst [vmem:[#allocation79_spill] sm:$0xff] %v6920_v57 }
 0x33a   :  { %v6882_v35 = vpop.permute.xlu1 %1689 }
 0x33c   :  { %3083 = vperm.xlu0 %5278, %v6878_v31   ;;  %1392 = vrot.lane.b32.xlu1 %v1377_v30, %s5558_s23  ;;  %v1470_v30 = vmul.f32 %v6317_v13, %v6418_v15  ;;  %v1788_v15 = vmul.f32 %v9542_v36, %v6438_v34  ;;  %v1790_v13 = vmul.f32 %v9542_v36, %v6444_v9 }
 0x33e   :  { %v6890_v56 = vpop.permute.xlu1 %1693 }
 0x340   :  { %1396 = vrot.lane.b32.xlu1 %v1379_v60, %s5558_s23  ;;  %5289 = vset.pattern.permute.xlu0 %v9567_v49 }
 0x341   :  { %2730 = vperm.xlu0 %5289, %v6894_v58  }
 0x342   :  { %v6901_v40 = vpop.permute.xlu1 %1739 }
 0x343   :  { %9568 = vst [vmem:[#allocation75_spill] sm:$0xff] %v6901_v40  ;;  %v9318_v40 = vmov 37  }
 0x344   :  { %1439 = vrot.lane.b32.xlu1 %v1423_v10, %s5558_s23  ;;  %s5607_s23 = smov 120  }
 0x345   :  { %5292 = vset.pattern.permute.xlu0 %v9316_v54 }
 0x346   :  { %3359 = vperm.xlu0 %5292, %v6894_v58   ;;  %v6908_v60 = vpop.permute.xlu1 %1797 }
 0x347   :  { %9569 = vst [vmem:[#allocation76_spill] sm:$0xff] %v6908_v60  ;;  %v9322_v60 = vmov 25  }
 0x348   :  { %1485 = vrot.lane.b32.xlu1 %v1470_v30, %s5559_s24  ;;  %v6933_v30 = vpop.permute.xlu0 %2098 }
 0x34a   :  { %5295 = vset.pattern.permute.xlu0 %v9571_v52  ;;  %v6916_v10 = vpop.permute.xlu1 %1799 }
 0x34b   :  { %9572 = vst [vmem:[#allocation78_spill] sm:$0xff] %v6916_v10  ;;  %3472 = vperm.xlu0 %5295, %v6878_v31  }
 0x34c   :  { %1489 = vrot.lane.b32.xlu1 %v1472_v47, %s5559_s24  ;;  %v9574_v47 = vmov 24   ;;  %v6944_v36 = vpop.permute.xlu0 %2144  ;;  %s5608_s24 = smov 110  }
 0x34d   :  { %9576 = vst [vmem:[#allocation81_spill] sm:$0xff] %v6944_v36  ;;  %v1927_v36 = vmul.f32 %v9549_v29, %v6434_v12 }
 0x34e   :  { %v6924_v54 = vpop.permute.xlu1 %1842 }
 0x34f   :  { %5297 = vset.pattern.permute.xlu0 %v9318_v40  ;;  %v1834_v40 = vmul.f32 %v9545_v23, %v6434_v12  ;;  %v1976_v12 = vmul.f32 %v9553_v41, %v6444_v9 }
 0x350   :  { %1803 = vrot.lane.b32.xlu1 %v1788_v15, %s5560_s25  ;;  %3580 = vperm.xlu0 %5297, %v6894_v58   ;;  %v9320_v15 = vmov 38  }
 0x352   :  { %v6931_v7 = vpop.permute.xlu1 %1846 }
 0x354   :  { %1807 = vrot.lane.b32.xlu1 %v1790_v13, %s5560_s25  ;;  %5300 = vset.pattern.permute.xlu0 %v9574_v47  ;;  %v1881_v13 = vmul.f32 %v9547_v3, %v6438_v34 }
 0x355   :  { %2941 = vperm.xlu0 %5300, %v6894_v58  }
 0x356   :  { %v6940_v57 = vpop.permute.xlu1 %1890 }
 0x357   :  { %9575 = vst [vmem:[#allocation80_spill] sm:$0xff] %v6940_v57 }
 0x358   :  { %1850 = vrot.lane.b32.xlu1 %v1834_v40, %s5560_s25  ;;  %v1883_v40 = vmul.f32 %v9547_v3, %v6444_v9  ;;  %v1192_v9 = vsel %vm9450_vm2, %v6724_v8, %v6660_v55 }
 0x359   :  { %5303 = vset.pattern.permute.xlu0 %v9320_v15  ;;  %v6958_v15 = vpop.permute.xlu0 %2187 }
 0x35a   :  { %3807 = vperm.xlu0 %5303, %v6878_v31   ;;  %v6949_v45 = vpop.permute.xlu1 %1892  ;;  %9578 = vst [vmem:[#allocation83_spill] sm:$0xff] %v6958_v15  ;;  %v5577_v15 = vmov 39  }
 0x35b   :  { %9577 = vst [vmem:[#allocation82_spill] sm:$0xff] %v6949_v45 }
 0x35c   :  { %1896 = vrot.lane.b32.xlu1 %v1881_v13, %s5561_s26  ;;  %v9579_v13 = vmov 12  }
 0x35d   :  { %v6968_v3 = vpop.permute.xlu0 %2191 }
 0x35e   :  { %5306 = vset.pattern.permute.xlu0 %v9322_v60  ;;  %v6955_v23 = vpop.permute.xlu1 %1935  ;;  %9580 = vst [vmem:[#allocation84_spill] sm:$0xff] %v6968_v3  ;;  %v1974_v60 = vmul.f32 %v9553_v41, %v6438_v34  ;;  %v2041_v34 = vmul.f32 %v9554_v6, %v6468_v28 }
 0x35f   :  { %3975 = vperm.xlu0 %5306, %v6878_v31  }
 0x360   :  { %1900 = vrot.lane.b32.xlu1 %v1883_v40, %s5561_s26  ;;  %v9325_v40 = vmov 40  }
 0x362   :  { %v6963_v57 = vpop.permute.xlu1 %1939 }
 0x363   :  { %5308 = vset.pattern.permute.xlu0 %v9579_v13  ;;  %v9324_v13 = vmov 27  }
 0x364   :  { %1943 = vrot.lane.b32.xlu1 %v1927_v36, %s5561_s26  ;;  %4146 = vperm.xlu0 %5308, %v6878_v31   ;;  %v6981_v36 = vpop.permute.xlu0 %2237 }
 0x365   :  { %9583 = vst [vmem:[#allocation87_spill] sm:$0xff] %v6981_v36 }
 0x366   :  { %v6972_v45 = vpop.permute.xlu1 %1983 }
 0x367   :  { %9581 = vst [vmem:[#allocation85_spill] sm:$0xff] %v6972_v45  ;;  %v2087_v45 = vmul.f32 %v9557_v25, %v6462_v24 }
 0x368   :  { %1989 = vrot.lane.b32.xlu1 %v1974_v60, %s5562_s27  ;;  %5310 = vset.pattern.permute.xlu0 %v9325_v40  ;;  %v6994_v41 = vpop.permute.xlu0 %1140  ;;  %v9586_v40 = vld [vmem:[#allocation12_spill] sm:$0xff] }
 0x369   :  { %4258 = vperm.xlu0 %5310, %v6894_v58   ;;  %9585 = vst [vmem:[#allocation89_spill] sm:$0xff] %v6994_v41  ;;  %v1103_v6 = vmul.f32 %v9586_v40, %v6390_v17  ;;  %v9620_v17 = vmov 38  }
 0x36a   :  { %v6979_v29 = vpop.permute.xlu1 %1985 }
 0x36b   :  { %9582 = vst [vmem:[#allocation86_spill] sm:$0xff] %v6979_v29 }
 0x36c   :  { %1993 = vrot.lane.b32.xlu1 %v1976_v12, %s5562_s27  ;;  %v9327_v12 = vmov 41   ;;  %v7016_v41 = vpop.permute.xlu0 %1144 }
 0x36d   :  { %5314 = vset.pattern.permute.xlu0 %v9324_v13  ;;  %v2085_v13 = vmul.f32 %v9557_v25, %v6458_v21  ;;  %9589 = vst [vmem:[#allocation91_spill] sm:$0xff] %v7016_v41  ;;  %v1603_v25 = vsel %vm1557_vm5, %v6626_v53, %v6610_v39 }
 0x36e   :  { %4429 = vperm.xlu0 %5314, %v6878_v31   ;;  %v6988_v60 = vpop.permute.xlu1 %2049 }
 0x36f   :  { %9584 = vst [vmem:[#allocation88_spill] sm:$0xff] %v6988_v60  ;;  %v1202_v60 = vadd.f32 %v1192_v9, %v1103_v6  ;;  %v2134_v9 = vmul.f32 %v9560_v22, %v6468_v28 }
 0x370   :  { %2057 = vrot.lane.b32.xlu1 %v2041_v34, %s5563_s28  ;;  %v1351_v34 = vsel %vm1305_vm3, %v6690_v32, %v6780_v0 }
 0x371   :  { %v1361_v29 = vadd.f32 %v1351_v34, %v1202_v60  ;;  %v7028_v34 = vpop.permute.xlu0 %1187 }
 0x372   :  { %5317 = vset.pattern.permute.xlu0 %v9327_v12  ;;  %v7001_v36 = vpop.permute.xlu1 %2053  ;;  %v1444_v12 = vsel %vm1398_vm4, %v6716_v43, %v6818_v48 }
 0x373   :  { %9587 = vst [vmem:[#allocation12_spill] sm:$0xff] %v7001_v36  ;;  %4488 = vperm.xlu0 %5317, %v6878_v31   ;;  %v9330_v36 = vmov 28  }
 0x374   :  { %2100 = vrot.lane.b32.xlu1 %v2085_v13, %s5563_s28  ;;  %v1454_v13 = vadd.f32 %v1444_v12, %v1361_v29  ;;  %v1696_v12 = vsel %vm1650_vm6, %v6666_v19, %v6630_v27 }
 0x375   :  { %v7048_v41 = vpop.permute.xlu0 %1233 }
 0x376   :  { %v7013_v10 = vpop.permute.xlu1 %2094  ;;  %v1613_v60 = vadd.f32 %v1603_v25, %v1454_v13  ;;  %9592 = vst [vmem:[#allocation94_spill] sm:$0xff] %v7048_v41 }
 0x377   :  { %9588 = vst [vmem:[#allocation90_spill] sm:$0xff] %v7013_v10  ;;  %5319 = vset.pattern.permute.xlu0 %v9330_v36  ;;  %v1855_v36 = vsel %vm1809_vm7, %v6868_v11, %v6931_v7 }
 0x378   :  { %2104 = vrot.lane.b32.xlu1 %v2087_v45, %s5563_s28  ;;  %3110 = vperm.xlu0 %5319, %v6894_v58   ;;  %v2135_v45 = vmul.f32 %v9560_v22, %v6462_v24  ;;  %v1706_v13 = vadd.f32 %v1696_v12, %v1613_v60  ;;  %v1948_v22 = vsel %vm1902_vm8, %v6897_v2, %v6963_v57  ;;  %v9332_v60 = vmov 42  }
 0x379   :  { %v2180_v12 = vmul.f32 %v9562_v5, %v6462_v24  ;;  %v7063_v41 = vpop.permute.xlu0 %1237 }
 0x37a   :  { %v7022_v6 = vpop.permute.xlu1 %2096  ;;  %v1865_v25 = vadd.f32 %v1855_v36, %v1706_v13  ;;  %9594 = vst [vmem:[#allocation96_spill] sm:$0xff] %v7063_v41 }
 0x37b   :  { %v2107_v61 = vsel %vm2061_vm9, %v7022_v6, %v6933_v30 }
 0x37c   :  { %2150 = vrot.lane.b32.xlu1 %v2134_v9, %s5564_s3  ;;  %v2178_v9 = vmul.f32 %v9562_v5, %v6458_v21  ;;  %5322 = vset.pattern.permute.xlu0 %v9332_v60 }
 0x37d   :  { %v7073_v5 = vpop.permute.xlu0 %1301 }
 0x37e   :  { %v7032_v29 = vpop.permute.xlu1 %2142  ;;  %9597 = vst [vmem:[#allocation99_spill] sm:$0xff] %v7073_v5 }
 0x37f   :  { %9590 = vst [vmem:[#allocation92_spill] sm:$0xff] %v7032_v29 }
 0x380   :  { %2152 = vrot.lane.b32.xlu1 %v2135_v45, %s5564_s3  ;;  %v1958_v45 = vadd.f32 %v1948_v22, %v1865_v25  ;;  %v9599_v25 = vmov 17  }
 0x382   :  { %v7046_v29 = vpop.permute.xlu1 %2146  ;;  %v2117_v21 = vadd.f32 %v2107_v61, %v1958_v45 }
 0x383   :  { %9591 = vst [vmem:[#allocation93_spill] sm:$0xff] %v7046_v29 }
 0x384   :  { %2193 = vrot.lane.b32.xlu1 %v2178_v9, %s5564_s3  ;;  %v2227_v9 = vmul.f32 %v9564_v4, %v6468_v28  ;;  %v7080_v28 = vpop.permute.xlu0 %1344 }
 0x386   :  { %v7057_v36 = vpop.permute.xlu1 %2189 }
 0x387   :  { %9593 = vst [vmem:[#allocation95_spill] sm:$0xff] %v7057_v36  ;;  %v2200_v13 = vsel %vm2154_vm10, %v7057_v36, %v6968_v3 }
 0x388   :  { %2197 = vrot.lane.b32.xlu1 %v2180_v12, %s5564_s3  ;;  %v2210_v29 = vadd.f32 %v2200_v13, %v2117_v21  ;;  %v7088_v12 = vpop.permute.xlu0 %1348  ;;  %v5576_v21 = vmov 35   ;;  %s5609_s3 = smov 56  }
 0x38a   :  { %2268 = vrot.lane.b32.xlu0 %v2210_v29, %s5575_s30  ;;  %v7068_v24 = vpop.permute.xlu1 %2235  ;;  %v9600_v29 = vmov 22  }
 0x38b   :  { %9595 = vst [vmem:[#allocation97_spill] sm:$0xff] %v7068_v24 }
 0x38c   :  { %2243 = vrot.lane.b32.xlu1 %v2227_v9, %s5565_s29  ;;  %v7093_v9 = vpop.permute.xlu0 %1394 }
 0x38d   :  { %9602 = vst [vmem:[#allocation102_spill] sm:$0xff] %v7093_v9 }
 0x38e   :  { %v7071_v61 = vpop.permute.xlu1 %2239 }
 0x38f   :  { %9596 = vst [vmem:[#allocation98_spill] sm:$0xff] %v7071_v61 }
 0x390   :  { %2615 = vperm.xlu1 %5285, %v6894_v58   ;;  %v7101_v61 = vpop.permute.xlu0 %1437 }
 0x392   :  { %v7076_v22 = vpop.permute.xlu1 %1142 }
 0x393   :  { %9598 = vst [vmem:[#allocation100_spill] sm:$0xff] %v7076_v22  ;;  %v9611_v22 = vmov 23  }
 0x394   :  { %5286 = vset.pattern.permute.xlu1 %v9599_v25  ;;  %v9621_v25 = vmov 11  }
 0x395   :  { %2637 = vperm.xlu1 %5286, %v6894_v58  }
 0x396   :  { %v7082_v4 = vpop.permute.xlu1 %1185 }
 0x399   :  { %5287 = vset.pattern.permute.xlu1 %v9600_v29 }
 0x39a   :  { %2661 = vperm.xlu1 %5287, %v6894_v58   ;;  %v7086_v45 = vpop.permute.xlu1 %1189 }
 0x39e   :  { %5288 = vset.pattern.permute.xlu1 %v5576_v21  ;;  %v7090_v13 = vpop.permute.xlu1 %1235  ;;  %v7108_v21 = vpop.permute.xlu0 %1441 }
 0x39f   :  { %9601 = vst [vmem:[#allocation101_spill] sm:$0xff] %v7090_v13  ;;  %3138 = vperm.xlu1 %5288, %v6894_v58  }
 0x3a2   :  { %v7095_v60 = vpop.permute.xlu1 %1299 }
 0x3a3   :  { %9603 = vst [vmem:[#allocation103_spill] sm:$0xff] %v7095_v60  ;;  %3141 = vperm.xlu1 %5288, %v6878_v31   ;;  %v9606_v60 = vmov 36  }
 0x3a6   :  { %v7098_v24 = vpop.permute.xlu1 %1303 }
 0x3a7   :  { %9604 = vst [vmem:[#allocation104_spill] sm:$0xff] %v7098_v24  ;;  %5290 = vset.pattern.permute.xlu1 %v9567_v49  ;;  %v7116_v49 = vpop.permute.xlu0 %1487 }
 0x3a8   :  { %3251 = vperm.xlu1 %5290, %v6878_v31   ;;  %9608 = vst [vmem:[#allocation107_spill] sm:$0xff] %v7116_v49 }
 0x3aa   :  { %v7104_v5 = vpop.permute.xlu1 %1346 }
 0x3ac   :  { %5291 = vset.pattern.permute.xlu1 %v9600_v29  ;;  %v7122_v29 = vpop.permute.xlu0 %1805 }
 0x3ad   :  { %3304 = vperm.xlu1 %5291, %v6878_v31   ;;  %9609 = vst [vmem:[#allocation108_spill] sm:$0xff] %v7122_v29 }
 0x3ae   :  { %v7110_v9 = vpop.permute.xlu1 %1392 }
 0x3af   :  { %9605 = vst [vmem:[#allocation105_spill] sm:$0xff] %v7110_v9 }
 0x3b0   :  { %v7130_v9 = vpop.permute.xlu0 %1848 }
 0x3b1   :  { %5293 = vset.pattern.permute.xlu1 %v9606_v60 }
 0x3b2   :  { %3362 = vperm.xlu1 %5293, %v6878_v31   ;;  %v7114_v24 = vpop.permute.xlu1 %1396 }
 0x3b3   :  { %9607 = vst [vmem:[#allocation106_spill] sm:$0xff] %v7114_v24 }
 0x3b4   :  { %v7137_v24 = vpop.permute.xlu0 %1852 }
 0x3b6   :  { %5294 = vset.pattern.permute.xlu1 %v9571_v52  ;;  %v7119_v41 = vpop.permute.xlu1 %1439  ;;  %v9614_v52 = vmov 37  }
 0x3b7   :  { %2870 = vperm.xlu1 %5294, %v6894_v58  }
 0x3ba   :  { %v7124_v13 = vpop.permute.xlu1 %1485 }
 0x3bb   :  { %9610 = vst [vmem:[#allocation109_spill] sm:$0xff] %v7124_v13  ;;  %5296 = vset.pattern.permute.xlu1 %v9611_v22  ;;  %v9616_v13 = vmov 10  }
 0x3bc   :  { %2801 = vperm.xlu1 %5296, %v6894_v58  }
 0x3be   :  { %v7128_v60 = vpop.permute.xlu1 %1489 }
 0x3bf   :  { %9612 = vst [vmem:[#allocation110_spill] sm:$0xff] %v7128_v60  ;;  %v7145_v60 = vpop.permute.xlu0 %1898 }
 0x3c0   :  { %3525 = vperm.xlu1 %5296, %v6878_v31   ;;  %9617 = vst [vmem:[#allocation113_spill] sm:$0xff] %v7145_v60 }
 0x3c2   :  { %v7133_v49 = vpop.permute.xlu1 %1803 }
 0x3c3   :  { %9613 = vst [vmem:[#allocation111_spill] sm:$0xff] %v7133_v49 }
 0x3c4   :  { %5298 = vset.pattern.permute.xlu1 %v9614_v52  ;;  %v1942_v52 = vpop.permute.xlu0 %1941 }
 0x3c5   :  { %3583 = vperm.xlu1 %5298, %v6878_v31  }
 0x3c6   :  { %v7139_v29 = vpop.permute.xlu1 %1807 }
 0x3c7   :  { %9615 = vst [vmem:[#allocation112_spill] sm:$0xff] %v7139_v29 }
 0x3c8   :  { %v7157_v29 = vpop.permute.xlu0 %1945 }
 0x3c9   :  { %5299 = vset.pattern.permute.xlu1 %v9616_v13 }
 0x3ca   :  { %3695 = vperm.xlu1 %5299, %v6878_v31   ;;  %v7143_v22 = vpop.permute.xlu1 %1850 }
 0x3cc   :  { %v7164_v60 = vpop.permute.xlu0 %1991 }
 0x3cd   :  { %9624 = vst [vmem:[#allocation117_spill] sm:$0xff] %v7164_v60 }
 0x3ce   :  { %5301 = vset.pattern.permute.xlu1 %v9574_v47  ;;  %v7148_v44 = vpop.permute.xlu1 %1896 }
 0x3cf   :  { %9618 = vst [vmem:[#allocation114_spill] sm:$0xff] %v7148_v44  ;;  %3748 = vperm.xlu1 %5301, %v6878_v31   ;;  %v9623_v44 = vmov 25  }
 0x3d2   :  { %v7151_v49 = vpop.permute.xlu1 %1900 }
 0x3d3   :  { %9619 = vst [vmem:[#allocation115_spill] sm:$0xff] %v7151_v49  ;;  %5302 = vset.pattern.permute.xlu1 %v9620_v17  ;;  %v9625_v49 = vld [vmem:[#allocation13_spill] sm:$0xff] }
 0x3d4   :  { %3804 = vperm.xlu1 %5302, %v6894_v58   ;;  %v1107_v14 = vmul.f32 %v9625_v49, %v6375_v51 }
 0x3d6   :  { %v7155_v13 = vpop.permute.xlu1 %1943  ;;  %v1206_v1 = vadd.f32 %v7086_v45, %v1107_v14 }
 0x3d8   :  { %5304 = vset.pattern.permute.xlu1 %v9621_v25 }
 0x3d9   :  { %3919 = vperm.xlu1 %5304, %v6878_v31  }
 0x3da   :  { %v7161_v47 = vpop.permute.xlu1 %1989 }
 0x3db   :  { %9622 = vst [vmem:[#allocation116_spill] sm:$0xff] %v7161_v47  ;;  %v7175_v47 = vpop.permute.xlu0 %2055 }
 0x3dc   :  { %9628 = vst [vmem:[#allocation119_spill] sm:$0xff] %v7175_v47  ;;  %v1352_v47 = vsel %vm1305_vm3, %v7080_v28, %v7104_v5 }
 0x3dd   :  { %5305 = vset.pattern.permute.xlu1 %v9623_v44  ;;  %v1365_v44 = vadd.f32 %v7088_v12, %v1206_v1  ;;  %v5578_v1 = vmov 26  }
 0x3de   :  { %3972 = vperm.xlu1 %5305, %v6894_v58   ;;  %v7169_v17 = vpop.permute.xlu1 %1993 }
 0x3df   :  { %9626 = vst [vmem:[#allocation13_spill] sm:$0xff] %v7169_v17  ;;  %v1458_v51 = vadd.f32 %v7108_v21, %v1365_v44  ;;  %v1193_v17 = vsel %vm9450_vm2, %v7082_v4, %v7028_v34  ;;  %v7183_v14 = vpop.permute.xlu0 %2059  ;;  %v1445_v4 = vsel %vm1398_vm4, %v7101_v61, %v7119_v41  ;;  %v9631_v61 = vmov 40  }
 0x3e0   :  { %9629 = vst [vmem:[#allocation120_spill] sm:$0xff] %v7183_v14 }
 0x3e1   :  { %v1617_v44 = vadd.f32 %v6864_v59, %v1458_v51 }
 0x3e2   :  { %5307 = vset.pattern.permute.xlu1 %v5577_v15  ;;  %v7172_v25 = vpop.permute.xlu1 %2057  ;;  %v1105_v15 = vmul.f32 %v9625_v49, %v6408_v46 }
 0x3e3   :  { %9627 = vst [vmem:[#allocation118_spill] sm:$0xff] %v7172_v25  ;;  %4031 = vperm.xlu1 %5307, %v6894_v58   ;;  %v7199_v46 = vpop.permute.xlu0 %2102  ;;  %v1710_v28 = vadd.f32 %v6890_v56, %v1617_v44 }
 0x3e4   :  { %v1204_v36 = vadd.f32 %v1193_v17, %v1105_v15  ;;  %v1604_v17 = vsel %vm1557_vm5, %v6854_v18, %v6772_v26 }
 0x3e6   :  { %v2101_v60 = vpop.permute.xlu1 %2100  ;;  %v1363_v14 = vadd.f32 %v1352_v47, %v1204_v36  ;;  %v1697_v47 = vsel %vm1650_vm6, %v6882_v35, %v6812_v63 }
 0x3e7   :  { %4034 = vperm.xlu1 %5307, %v6878_v31   ;;  %v7211_v36 = vpop.permute.xlu0 %2148  ;;  %v2108_v35 = vsel %vm2061_vm9, %v2101_v60, %v7199_v46  ;;  %v1104_v60 = vmul.f32 %v9586_v40, %v6405_v16  ;;  %v1102_v16 = vmul.f32 %v9586_v40, %v6451_v42 }
 0x3e8   :  { %v1456_v10 = vadd.f32 %v1445_v4, %v1363_v14  ;;  %v1856_v14 = vsel %vm1809_vm7, %v7130_v9, %v7143_v22  ;;  %v1949_v4 = vsel %vm1902_vm8, %v1942_v52, %v7155_v13 }
 0x3ea   :  { %v7190_v25 = vpop.permute.xlu1 %2104  ;;  %v1615_v15 = vadd.f32 %v1604_v17, %v1456_v10 }
 0x3eb   :  { %5309 = vset.pattern.permute.xlu1 %v5578_v1  ;;  %v1869_v1 = vadd.f32 %v7137_v24, %v1710_v28  ;;  %v9632_v28 = vmov 13   ;;  %v7229_v9 = vpop.permute.xlu0 %2195 }
 0x3ec   :  { %4199 = vperm.xlu1 %5309, %v6894_v58   ;;  %v1708_v44 = vadd.f32 %v1697_v47, %v1615_v15 }
 0x3ed   :  { %v1962_v10 = vadd.f32 %v7157_v29, %v1869_v1 }
 0x3ee   :  { %v7197_v3 = vpop.permute.xlu1 %2150  ;;  %v1867_v17 = vadd.f32 %v1856_v14, %v1708_v44  ;;  %v9633_v44 = vmov 27  }
 0x3f0   :  { %4202 = vperm.xlu1 %5309, %v6878_v31   ;;  %v1960_v15 = vadd.f32 %v1949_v4, %v1867_v17  ;;  %v9634_v4 = vmov 19   ;;  %v1191_v17 = vsel %vm9450_vm2, %v6714_v20, %v6724_v8  ;;  %v1443_v20 = vsel %vm1398_vm4, %v6808_v38, %v6716_v43 }
 0x3f1   :  { %v1194_v8 = vsel %vm9450_vm2, %v7028_v34, %v7086_v45  ;;  %v9636_v34 = vmov 14   ;;  %v1446_v45 = vsel %vm1398_vm4, %v7119_v41, %v7108_v21 }
 0x3f2   :  { %v7206_v51 = vpop.permute.xlu1 %2152  ;;  %v2119_v47 = vadd.f32 %v2108_v35, %v1960_v15  ;;  %v9635_v35 = vmov 41  }
 0x3f3   :  { %9630 = vst [vmem:[#allocation121_spill] sm:$0xff] %v7206_v51 }
 0x3f4   :  { %5311 = vset.pattern.permute.xlu1 %v9631_v61  ;;  %v2121_v61 = vadd.f32 %v7190_v25, %v1962_v10  ;;  %v1203_v10 = vadd.f32 %v6660_v55, %v1104_v60 }
 0x3f5   :  { %4261 = vperm.xlu1 %5311, %v6878_v31  }
 0x3f6   :  { %v2194_v18 = vpop.permute.xlu1 %2193 }
 0x3f7   :  { %v2201_v52 = vsel %vm2154_vm10, %v2194_v18, %v7229_v9  ;;  %v1362_v18 = vadd.f32 %v6780_v0, %v1203_v10  ;;  %v1350_v0 = vsel %vm1305_vm3, %v6770_v50, %v6690_v32  ;;  %v5580_v32 = vmov 43  }
 0x3f8   :  { %v2212_v14 = vadd.f32 %v2201_v52, %v2119_v47 }
 0x3f9   :  { %5312 = vset.pattern.permute.xlu1 %v9632_v28  ;;  %v1455_v28 = vadd.f32 %v6818_v48, %v1362_v18  ;;  %v1201_v48 = vadd.f32 %v1191_v17, %v1102_v16  ;;  %v5581_v18 = vmov 44   ;;  %v9641_v16 = vld [vmem:[#allocation95_spill] sm:$0xff] }
 0x3fa   :  { %2754 = vperm.xlu1 %5312, %v6894_v58   ;;  %v7227_v51 = vpop.permute.xlu1 %2197 }
 0x3fb   :  { %v2214_v1 = vadd.f32 %v7227_v51, %v2121_v61  ;;  %v5579_v61 = vmov 29   ;;  %v1614_v15 = vadd.f32 %v6610_v39, %v1455_v28  ;;  %v1360_v40 = vadd.f32 %v1350_v0, %v1201_v48  ;;  %v9640_v28 = vld [vmem:[#allocation84_spill] sm:$0xff]  ;;  %v9642_v0 = vld [vmem:[#allocation83_spill] sm:$0xff] }
 0x3fc   :  { %v1353_v39 = vsel %vm1305_vm3, %v7104_v5, %v7088_v12  ;;  %v1602_v5 = vsel %vm1557_vm5, %v6616_v62, %v6626_v53  ;;  %v9637_v12 = vmov 16   ;;  %v1605_v62 = vsel %vm1557_vm5, %v6772_v26, %v6864_v59  ;;  %v9639_v59 = vld [vmem:[#allocation90_spill] sm:$0xff] }
 0x3fd   :  { %2276 = vrot.lane.b32.xlu0 %v2214_v1, %s5575_s30  ;;  %v1106_v1 = vmul.f32 %v9625_v49, %v6372_v37  ;;  %v1453_v43 = vadd.f32 %v1443_v20, %v1360_v40  ;;  %v1707_v38 = vadd.f32 %v6630_v27, %v1614_v15  ;;  %v1854_v53 = vsel %vm1809_vm7, %v6924_v54, %v6868_v11 }
 0x3fe   :  { %4373 = vperm.xlu1 %5312, %v6878_v31   ;;  %v7253_v55 = vpop.permute.xlu1 %2243  ;;  %v1698_v11 = vsel %vm1650_vm6, %v6812_v63, %v6890_v56  ;;  %v2106_v54 = vsel %vm2061_vm9, %v9639_v59, %v7022_v6  ;;  %v1950_v63 = vsel %vm1902_vm8, %v7155_v13, %v7157_v29  ;;  %v5582_v48 = vmov 31  }
 0x3ff   :  { %v1205_v52 = vadd.f32 %v1194_v8, %v1106_v1  ;;  %v1866_v49 = vadd.f32 %v6931_v7, %v1707_v38  ;;  %v1612_v27 = vadd.f32 %v1602_v5, %v1453_v43  ;;  %v1695_v7 = vsel %vm1650_vm6, %v6656_v33, %v6666_v19 }
 0x400   :  { %v1947_v19 = vsel %vm1902_vm8, %v6955_v23, %v6897_v2  ;;  %v9638_v33 = vmov 28   ;;  %v2202_v29 = vsel %vm2154_vm10, %v7229_v9, %v7227_v51  ;;  %v5583_v1 = vmov 45  }
 0x401   :  { %2272 = vrot.lane.b32.xlu0 %v2212_v14, %s5575_s30  ;;  %v1364_v47 = vadd.f32 %v1353_v39, %v1205_v52  ;;  %v1705_v41 = vadd.f32 %v1695_v7, %v1612_v27  ;;  %v9645_v9 = vmov 18   ;;  %v9646_v43 = vmov 1   ;;  %v9652_v7 = vld [vmem:[#allocation33_spill] sm:$0xff] }
 0x402   :  { %5313 = vset.pattern.permute.xlu1 %v9633_v44  ;;  %v1959_v44 = vadd.f32 %v6963_v57, %v1866_v49  ;;  %v9647_v52 = vmov 15   ;;  %v9650_v27 = vmov 7  }
 0x403   :  { %4426 = vperm.xlu1 %5313, %v6894_v58   ;;  %v1457_v60 = vadd.f32 %v1446_v45, %v1364_v47  ;;  %v1864_v26 = vadd.f32 %v1854_v53, %v1705_v41  ;;  %v5584_v45 = vmov 32   ;;  %v9351_v47 = vmov 46  }
 0x404   :  { %v2118_v57 = vadd.f32 %v6933_v30, %v1959_v44  ;;  %v1857_v30 = vsel %vm1809_vm7, %v7143_v22, %v7137_v24  ;;  %v2109_v24 = vsel %vm2061_vm9, %v7199_v46, %v7190_v25  ;;  %v9643_v22 = vmov 42   ;;  %v7381_v44 = vpop.permute.xlu0 %2241 }
 0x405   :  { %3171 = vperm.xlu0 %5322, %v6878_v31   ;;  %v1616_v21 = vadd.f32 %v1605_v62, %v1457_v60  ;;  %v1957_v2 = vadd.f32 %v1947_v19, %v1864_v26  ;;  %v9644_v25 = vmov 4   ;;  %v9651_v60 = vmov 2  }
 0x406   :  { %v2211_v17 = vadd.f32 %v9640_v28, %v2118_v57  ;;  %v3697_v62 = vrot.slane %v9652_v7, 6 }
 0x407   :  { %5315 = vset.pattern.permute.xlu1 %v9634_v4  ;;  %v1709_v23 = vadd.f32 %v1698_v11, %v1616_v21  ;;  %v2116_v6 = vadd.f32 %v2106_v54, %v1957_v2  ;;  %v9653_v21 = vld [vmem:[#allocation34_spill] sm:$0xff] }
 0x408   :  { %2917 = vperm.xlu1 %5315, %v6894_v58   ;;  %v7386_v41 = vpop.permute.xlu0 %2245  ;;  %v2991_v19 = vadd.s32 7, %v9653_v21 }
 0x409   :  { %5325 = vset.pattern.permute.xlu0 %v5579_v61  ;;  %v1868_v15 = vadd.f32 %v1857_v30, %v1709_v23  ;;  %v9656_v23 = vmov 0.0  }
 0x40a   :  { %3331 = vperm.xlu0 %5325, %v6894_v58   ;;  %v7399_v54 = vand.u32 15, %v2991_v19 }
 0x40b   :  { %v1961_v8 = vadd.f32 %v1950_v63, %v1868_v15 }
 0x40c   :  { %5316 = vset.pattern.permute.xlu1 %v9635_v35  ;;  %v2199_v35 = vsel %vm2154_vm10, %v9642_v0, %v9641_v16  ;;  %v7397_v59 = vpop.permute.xlu0 %3083  ;;  %9654 = vst [vmem:[#allocation95_spill] sm:$0xff] %v7399_v54  ;;  %vm3862_vm11 = vcmp.ge.s32.totalorder %v7399_v54, 3  ;;  %vm3200_vm12 = vcmp.lt.s32.totalorder %v7399_v54, 10  ;;  %vm3421_vm13 = vcmp.lt.s32.totalorder %v7399_v54, 13  ;;  %v9698_v54 = vld [vmem:[#allocation96_spill] sm:$0xff] }
 0x40d   :  { %4485 = vperm.xlu1 %5316, %v6894_v58   ;;  %v2209_v20 = vadd.f32 %v2199_v35, %v2116_v6  ;;  %v2120_v40 = vadd.f32 %v2109_v24, %v1961_v8  ;;  %v5094_v28 = vsel %vm3862_vm11, 1.0, %v9656_v23  ;;  %v9658_v35 = vld [vmem:[#allocation40_spill] sm:$0xff]  ;;  %vm2278_vm11 = vcmask 916480  }
 0x40e   :  { %5328 = vset.pattern.permute.xlu0 %v5580_v32  ;;  %v7413_v0 = vmul.f32 0.0, %v5094_v28  ;;  %v3921_v63 = vrot.slane %v9658_v35, 6 }
 0x40f   :  { %v7271_v50 = vpop.permute.xlu1 %2615  ;;  %3392 = vperm.xlu0 %5328, %v6878_v31   ;;  %v2213_v39 = vadd.f32 %v2202_v29, %v2120_v40  ;;  %v9660_v29 = vmov 17  }
 0x410   :  { %v7406_v2 = vpop.permute.xlu0 %2730  ;;  %9657 = vst [vmem:[#allocation33_spill] sm:$0xff] %v7413_v0 }
 0x411   :  { %5318 = vset.pattern.permute.xlu1 %v9636_v34  ;;  %9655 = vst [vmem:[#allocation83_spill] sm:$0xff] %v7406_v2 }
 0x412   :  { %2894 = vperm.xlu1 %5318, %v6894_v58  }
 0x413   :  { %5331 = vset.pattern.permute.xlu0 %v9637_v12  ;;  %v9350_v12 = vmov 33  }
 0x414   :  { %v7288_v14 = vpop.permute.xlu1 %2637  ;;  %3499 = vperm.xlu0 %5331, %v6878_v31   ;;  %v7416_v15 = vpop.permute.xlu0 %3359 }
 0x416   :  { %3057 = vperm.xlu1 %5318, %v6878_v31  }
 0x418   :  { %5333 = vset.pattern.permute.xlu0 %v5581_v18  ;;  %v3473_v8 = vpop.permute.xlu0 %3472 }
 0x419   :  { %v7303_v10 = vpop.permute.xlu1 %2661  ;;  %3610 = vperm.xlu0 %5333, %v6894_v58  }
 0x41a   :  { %5320 = vset.pattern.permute.xlu1 %v9638_v33  ;;  %v5587_v33 = vmov 30  }
 0x41b   :  { %3113 = vperm.xlu1 %5320, %v6878_v31  }
 0x41d   :  { %5337 = vset.pattern.permute.xlu0 %v5582_v48 }
 0x41e   :  { %v7328_v56 = vpop.permute.xlu1 %3138  ;;  %3775 = vperm.xlu0 %5337, %v6894_v58  }
 0x41f   :  { %2270 = vrot.lane.b32.xlu1 %v2211_v17, %s5575_s30  ;;  %v9349_v17 = vmov 47  }
 0x420   :  { %5321 = vset.pattern.permute.xlu1 %v9643_v22  ;;  %v9659_v22 = vmov 3  }
 0x422   :  { %v7340_v13 = vpop.permute.xlu1 %3141  ;;  %5339 = vset.pattern.permute.xlu0 %v5583_v1 }
 0x423   :  { %2266 = vrot.lane.b32.xlu1 %v2209_v20, %s5575_s30  ;;  %3834 = vperm.xlu0 %5339, %v6894_v58  }
 0x427   :  { %2274 = vrot.lane.b32.xlu1 %v2213_v39, %s5575_s30  ;;  %v7346_v46 = vpop.permute.xlu1 %3251  ;;  %5341 = vset.pattern.permute.xlu0 %v9644_v25  ;;  %v3253_v39 = vrot.slane %v7406_v2, 6  ;;  %v9693_v2 = vld [vmem:[#allocation91_spill] sm:$0xff]  ;;  %s5611_s30 = smov 46  }
 0x428   :  { %2847 = vperm.xlu0 %5341, %v6894_v58  }
 0x42b   :  { %3168 = vperm.xlu1 %5321, %v6894_v58  }
 0x42c   :  { %v7351_v51 = vpop.permute.xlu1 %3304  ;;  %5342 = vset.pattern.permute.xlu0 %v9645_v9  ;;  %v7435_v9 = vpop.permute.xlu0 %3580 }
 0x42d   :  { %2777 = vperm.xlu0 %5342, %v6894_v58  }
 0x42f   :  { %5323 = vset.pattern.permute.xlu1 %v9646_v43  ;;  %v3254_v43 = vrot.slane %v7346_v46, 6 }
 0x430   :  { %3226 = vperm.xlu1 %5323, %v6878_v31  }
 0x431   :  { %v7357_v38 = vpop.permute.xlu1 %3362  ;;  %3946 = vperm.xlu0 %5342, %v6878_v31  }
 0x434   :  { %5324 = vset.pattern.permute.xlu1 %v9647_v52 }
 0x435   :  { %3278 = vperm.xlu1 %5324, %v6878_v31   ;;  %5345 = vset.pattern.permute.xlu0 %v5584_v45 }
 0x436   :  { %v7362_v34 = vpop.permute.xlu1 %2870  ;;  %4005 = vperm.xlu0 %5345, %v6878_v31  }
 0x437   :  { %9648 = vst [vmem:[#allocation90_spill] sm:$0xff] %v7362_v34 }
 0x439   :  { %5326 = vset.pattern.permute.xlu1 %v5579_v61 }
 0x43a   :  { %3334 = vperm.xlu1 %5326, %v6878_v31   ;;  %5347 = vset.pattern.permute.xlu0 %v9351_v47 }
 0x43b   :  { %v7368_v49 = vpop.permute.xlu1 %2801  ;;  %4064 = vperm.xlu0 %5347, %v6878_v31  }
 0x43c   :  { %9649 = vst [vmem:[#allocation84_spill] sm:$0xff] %v7368_v49 }
 0x43e   :  { %5327 = vset.pattern.permute.xlu1 %v5580_v32 }
 0x43f   :  { %3389 = vperm.xlu1 %5327, %v6894_v58   ;;  %v7374_v5 = vpop.permute.xlu1 %3525  ;;  %5351 = vset.pattern.permute.xlu0 %v9350_v12 }
 0x443   :  { %5329 = vset.pattern.permute.xlu1 %v9650_v27  ;;  %v5084_v27 = vsel %vm3200_vm12, 1.0, %v9656_v23  ;;  %vm2299_vm12 = vcmask 556032  }
 0x444   :  { %3044 = vperm.xlu1 %5329, %v6878_v31   ;;  %v7379_v61 = vpop.permute.xlu1 %3583 }
 0x448   :  { %5330 = vset.pattern.permute.xlu1 %v9651_v60  ;;  %v7442_v60 = vmul.f32 0.0, %v5084_v27  ;;  %v9670_v27 = vld [vmem:[#allocation67_spill] sm:$0xff] }
 0x449   :  { %3447 = vperm.xlu1 %5330, %v6878_v31   ;;  %v3696_v32 = vpop.permute.xlu1 %3695 }
 0x44a   :  { %v3698_v53 = vrot.slane %v3696_v32, 6  ;;  %9661 = vst [vmem:[#allocation34_spill] sm:$0xff] %v7442_v60  ;;  %v7445_v32 = vsel %vm9452_vm1, %v3253_v39, %v3254_v43 }
 0x44b   :  { %v3257_v46 = vmul.f32 %v7445_v32, %v7442_v60  ;;  %v9677_v60 = vld [vmem:[#allocation58_spill] sm:$0xff] }
 0x44c   :  { %v7389_v57 = vsel %vm9452_vm1, %v3697_v62, %v3698_v53  ;;  %v7451_v62 = vpop.permute.xlu0 %2941 }
 0x44d   :  { %5332 = vset.pattern.permute.xlu1 %v5587_v33  ;;  %v3701_v26 = vmul.f32 0.0, %v7389_v57  ;;  %9663 = vst [vmem:[#allocation122_spill] sm:$0xff] %v7451_v62  ;;  %v3474_v33 = vrot.slane %v7362_v34, 6 }
 0x44e   :  { %3552 = vperm.xlu1 %5332, %v6894_v58   ;;  %v7394_v11 = vpop.permute.xlu1 %3748 }
 0x44f   :  { %3707 = vrot.lane.b32.xlu0 %v3701_v26, %s5588_s5  ;;  %v5089_v26 = vsel %vm3421_vm13, 1.0, %v9656_v23 }
 0x450   :  { %v7460_v19 = vpop.permute.xlu0 %3807 }
 0x452   :  { %3555 = vperm.xlu1 %5332, %v6878_v31  }
 0x453   :  { %4232 = vperm.xlu0 %5351, %v6878_v31   ;;  %v7404_v30 = vpop.permute.xlu1 %3804 }
 0x454   :  { %v7475_v39 = vpop.permute.xlu0 %3975 }
 0x456   :  { %5334 = vset.pattern.permute.xlu1 %v5581_v18 }
 0x457   :  { %3613 = vperm.xlu1 %5334, %v6878_v31   ;;  %5353 = vset.pattern.permute.xlu0 %v9349_v17  ;;  %v9674_v17 = vld [vmem:[#allocation49_spill] sm:$0xff] }
 0x458   :  { %4291 = vperm.xlu0 %5353, %v6878_v31   ;;  %v3920_v16 = vpop.permute.xlu1 %3919 }
 0x459   :  { %v3922_v6 = vrot.slane %v3920_v16, 6  ;;  %v7467_v16 = vmul.f32 0.0, %v5089_v26 }
 0x45b   :  { %v7419_v24 = vsel %vm9452_vm1, %v3921_v63, %v3922_v6  ;;  %5335 = vset.pattern.permute.xlu1 %v9659_v22  ;;  %9666 = vst [vmem:[#allocation125_spill] sm:$0xff] %v7467_v16  ;;  %v9667_v6 = vld [vmem:[#allocation57_spill] sm:$0xff] }
 0x45c   :  { %2707 = vperm.xlu1 %5335, %v6894_v58   ;;  %v3925_v18 = vmul.f32 %v7419_v24, %v7413_v0  ;;  %v9676_v0 = vmov 46  }
 0x45d   :  { %v7425_v20 = vpop.permute.xlu1 %3972 }
 0x45e   :  { %3931 = vrot.lane.b32.xlu0 %v3925_v18, %s5590_s6  ;;  %v9668_v18 = vld [vmem:[#allocation11_spill] sm:$0xff] }
 0x460   :  { %5336 = vset.pattern.permute.xlu1 %v9660_v29  ;;  %v1087_v29 = vmul.f32 %v9668_v18, %v9667_v6  ;;  %v9673_v6 = vld [vmem:[#allocation68_spill] sm:$0xff] }
 0x461   :  { %3722 = vperm.xlu1 %5336, %v6878_v31   ;;  %v1241_v12 = vsel %vm1239_vm14, %v9674_v17, %v9673_v6 }
 0x462   :  { %v7430_v40 = vpop.permute.xlu1 %4031 }
 0x465   :  { %5338 = vset.pattern.permute.xlu1 %v5582_v48 }
 0x466   :  { %3778 = vperm.xlu1 %5338, %v6878_v31   ;;  %v7439_v52 = vpop.permute.xlu1 %4034 }
 0x46a   :  { %5340 = vset.pattern.permute.xlu1 %v5583_v1  ;;  %v3475_v1 = vrot.slane %v3473_v8, 6 }
 0x46b   :  { %3837 = vperm.xlu1 %5340, %v6878_v31   ;;  %v7449_v48 = vpop.permute.xlu1 %4199 }
 0x46c   :  { %9662 = vst [vmem:[#allocation40_spill] sm:$0xff] %v7449_v48  ;;  %v7471_v63 = vsel %vm9452_vm1, %v3474_v33, %v3475_v1  ;;  %v9672_v1 = vld [vmem:[#allocation16_spill] sm:$0xff] }
 0x46d   :  { %v3478_v43 = vmul.f32 %v7471_v63, %v7467_v16  ;;  %v1091_v33 = vadd.f32 %v1087_v29, %v9672_v1  ;;  %v9681_v29 = vld [vmem:[#allocation64_spill] sm:$0xff] }
 0x46f   :  { %3263 = vrot.lane.b32.xlu1 %v3257_v46, %s5560_s25  ;;  %v7456_v53 = vpop.permute.xlu1 %4202  ;;  %v9671_v46 = vld [vmem:[#allocation63_spill] sm:$0xff] }
 0x470   :  { %9664 = vst [vmem:[#allocation123_spill] sm:$0xff] %v7456_v53  ;;  %5343 = vset.pattern.permute.xlu1 %v9644_v25  ;;  %v1148_v26 = vsel %vm9450_vm2, %v9671_v46, %v9670_v27  ;;  %v9678_v27 = vld [vmem:[#allocation20_spill] sm:$0xff]  ;;  %v9687_v25 = vld [vmem:[#allocation89_spill] sm:$0xff] }
 0x471   :  { %v1156_v16 = vadd.f32 %v1148_v26, %v1091_v33  ;;  %v1088_v22 = vmul.f32 %v9678_v27, %v9677_v60  ;;  %v9683_v60 = vld [vmem:[#allocation19_spill] sm:$0xff]  ;;  %v9684_v33 = vld [vmem:[#allocation66_spill] sm:$0xff]  ;;  %v9694_v53 = vld [vmem:[#allocation101_spill] sm:$0xff] }
 0x472   :  { %v1240_v26 = vsel %vm1239_vm14, %v9683_v60, %v9674_v17  ;;  %v9692_v17 = vld [vmem:[#allocation43_spill] sm:$0xff] }
 0x473   :  { %3893 = vperm.xlu1 %5343, %v6878_v31  }
 0x474   :  { %v7465_v28 = vpop.permute.xlu1 %4261 }
 0x475   :  { %9665 = vst [vmem:[#allocation124_spill] sm:$0xff] %v7465_v28  ;;  %v1249_v28 = vadd.f32 %v1241_v12, %v1156_v16  ;;  %v9688_v16 = vld [vmem:[#allocation10_spill] sm:$0xff] }
 0x477   :  { %5344 = vset.pattern.permute.xlu1 %v5584_v45  ;;  %v1086_v45 = vmul.f32 %v9668_v18, %v6451_v42  ;;  %v9680_v42 = vld [vmem:[#allocation17_spill] sm:$0xff] }
 0x478   :  { %4002 = vperm.xlu1 %5344, %v6894_v58   ;;  %v1147_v18 = vsel %vm9450_vm2, %v9680_v42, %v9671_v46  ;;  %v9686_v42 = vld [vmem:[#allocation100_spill] sm:$0xff] }
 0x479   :  { %v7478_v8 = vpop.permute.xlu1 %2754  ;;  %v1090_v6 = vadd.f32 %v1086_v45, %v9672_v1  ;;  %v1092_v1 = vadd.f32 %v1088_v22, %v9688_v16 }
 0x47a   :  { %9669 = vst [vmem:[#allocation57_spill] sm:$0xff] %v7478_v8  ;;  %v7497_v8 = vpop.permute.xlu0 %4146 }
 0x47b   :  { %9679 = vst [vmem:[#allocation67_spill] sm:$0xff] %v7497_v8  ;;  %v1155_v45 = vadd.f32 %v1147_v18, %v1090_v6  ;;  %v9700_v8 = vld [vmem:[#allocation103_spill] sm:$0xff] }
 0x47c   :  { %3484 = vrot.lane.b32.xlu1 %v3478_v43, %s5591_s7  ;;  %v9682_v43 = vld [vmem:[#allocation22_spill] sm:$0xff] }
 0x47d   :  { %v7492_v47 = vpop.permute.xlu1 %4373  ;;  %5346 = vset.pattern.permute.xlu1 %v9676_v0  ;;  %v1307_v34 = vsel %vm1305_vm3, %v9682_v43, %v9681_v29  ;;  %v1089_v0 = vmul.f32 %v9678_v27, %v6372_v37  ;;  %v1149_v29 = vsel %vm9450_vm2, %v9687_v25, %v9686_v42  ;;  %v9690_v37 = vld [vmem:[#allocation29_spill] sm:$0xff]  ;;  %v9695_v25 = vld [vmem:[#allocation94_spill] sm:$0xff] }
 0x47e   :  { %9675 = vst [vmem:[#allocation11_spill] sm:$0xff] %v7492_v47  ;;  %v9685_v47 = vld [vmem:[#allocation71_spill] sm:$0xff]  ;;  %v1315_v12 = vadd.f32 %v1307_v34, %v1249_v28  ;;  %v9691_v27 = vld [vmem:[#allocation21_spill] sm:$0xff]  ;;  %v1242_v34 = vsel %vm1239_vm14, %v9695_v25, %v9694_v53  ;;  %v1248_v28 = vadd.f32 %v1240_v26, %v1155_v45  ;;  %v1157_v6 = vadd.f32 %v1149_v29, %v1092_v1  ;;  %v9702_v1 = vld [vmem:[#allocation104_spill] sm:$0xff] }
 0x47f   :  { %v1400_v46 = vsel %vm1398_vm4, %v9685_v47, %v9684_v33  ;;  %v1493_v60 = vsel %vm1491_vm15, %v9692_v17, %v9691_v27  ;;  %v1150_v33 = vsel %vm9450_vm2, %v9686_v42, %v9693_v2  ;;  %v1093_v18 = vadd.f32 %v1089_v0, %v9688_v16  ;;  %v9699_v42 = vld [vmem:[#allocation99_spill] sm:$0xff]  ;;  %v9703_v25 = vld [vmem:[#allocation102_spill] sm:$0xff] }
 0x480   :  { %4061 = vperm.xlu1 %5346, %v6894_v58   ;;  %v1306_v58 = vsel %vm1305_vm3, %v9690_v37, %v9682_v43  ;;  %v1408_v22 = vadd.f32 %v1400_v46, %v1315_v12  ;;  %v9696_v43 = vmov 5   ;;  %v9697_v37 = vld [vmem:[#allocation23_spill] sm:$0xff]  ;;  %v1243_v2 = vsel %vm1239_vm14, %v9694_v53, %v9698_v54  ;;  %v9701_v12 = vld [vmem:[#allocation37_spill] sm:$0xff] }
 0x481   :  { %v1399_v27 = vsel %vm1398_vm4, %v9697_v37, %v9685_v47  ;;  %v1308_v26 = vsel %vm1305_vm3, %v9700_v8, %v9699_v42  ;;  %v1314_v0 = vadd.f32 %v1306_v58, %v1248_v28  ;;  %v1158_v29 = vadd.f32 %v1150_v33, %v1093_v18  ;;  %v9704_v54 = vld [vmem:[#allocation105_spill] sm:$0xff]  ;;  %v9707_v33 = vld [vmem:[#allocation60_spill] sm:$0xff]  ;;  %v9708_v28 = vld [vmem:[#allocation106_spill] sm:$0xff] }
 0x482   :  { %v7519_v48 = vpop.permute.xlu1 %4426  ;;  %v1501_v46 = vadd.f32 %v1493_v60, %v1408_v22  ;;  %v1250_v45 = vadd.f32 %v1242_v34, %v1157_v6  ;;  %v1492_v16 = vsel %vm1491_vm15, %v9701_v12, %v9692_v17  ;;  %v1309_v47 = vsel %vm1305_vm3, %v9699_v42, %v9702_v1  ;;  %v9706_v60 = vld [vmem:[#allocation28_spill] sm:$0xff]  ;;  %v9709_v22 = vld [vmem:[#allocation107_spill] sm:$0xff]  ;;  %v9710_v18 = vld [vmem:[#allocation109_spill] sm:$0xff] }
 0x483   :  { %9689 = vst [vmem:[#allocation63_spill] sm:$0xff] %v7519_v48  ;;  %v7534_v48 = vpop.permute.xlu0 %4258  ;;  %v1401_v53 = vsel %vm1398_vm4, %v9704_v54, %v9703_v25  ;;  %v1407_v8 = vadd.f32 %v1399_v27, %v1314_v0  ;;  %v1559_v34 = vsel %vm1557_vm5, %v9707_v33, %v9706_v60  ;;  %v1402_v17 = vsel %vm1398_vm4, %v9703_v25, %v9708_v28  ;;  %v9712_v0 = vld [vmem:[#allocation110_spill] sm:$0xff]  ;;  %v9718_v60 = vld [vmem:[#allocation27_spill] sm:$0xff] }
 0x484   :  { %5348 = vset.pattern.permute.xlu1 %v9696_v43  ;;  %v1316_v58 = vadd.f32 %v1308_v26, %v1250_v45  ;;  %v1494_v6 = vsel %vm1491_vm15, %v9710_v18, %v9709_v22  ;;  %v1567_v42 = vadd.f32 %v1559_v34, %v1501_v46  ;;  %v7570_v26 = vld [vmem:[#allocation2 + $0x18] sm:$0x3f]  ;;  %v9719_v34 = vld [vmem:[#allocation69_spill] sm:$0xff]  ;;  %vm1743_vm3 = vcmask 506880  }
 0x485   :  { %4120 = vperm.xlu1 %5348, %v6878_v31   ;;  %v1251_v31 = vadd.f32 %v1243_v2, %v1158_v29  ;;  %v1500_v37 = vadd.f32 %v1492_v16, %v1407_v8  ;;  %v1495_v29 = vsel %vm1491_vm15, %v9709_v22, %v9712_v0  ;;  %v9715_v16 = vld [vmem:[#allocation62_spill] sm:$0xff]  ;;  %v1560_v28 = vsel %vm1557_vm5, %v9719_v34, %v9718_v60  ;;  %v9721_v18 = vld [vmem:[#allocation47_spill] sm:$0xff] }
 0x486   :  { %v1409_v27 = vadd.f32 %v1401_v53, %v1316_v58  ;;  %v9717_v58 = vmov 33   ;;  %vm1995_vm4 = vcmask 498688  }
 0x487   :  { %v7556_v43 = vpop.permute.xlu1 %2917  ;;  %v1317_v12 = vadd.f32 %v1309_v47, %v1251_v31  ;;  %v7568_v2 = vpop.permute.xlu0 %4429  ;;  %v9716_v47 = vld [vmem:[#allocation61_spill] sm:$0xff] }
 0x488   :  { %9705 = vst [vmem:[#allocation16_spill] sm:$0xff] %v7556_v43  ;;  %9711 = vst [vmem:[#allocation68_spill] sm:$0xff] %v7568_v2  ;;  %v1502_v1 = vadd.f32 %v1494_v6, %v1409_v27  ;;  %v1652_v54 = vsel %vm1650_vm6, %v9716_v47, %v9715_v16  ;;  %v1651_v6 = vsel %vm1650_vm6, %v9721_v18, %v9716_v47  ;;  %v9724_v27 = vld [vmem:[#allocation70_spill] sm:$0xff]  ;;  %v9729_v47 = vld [vmem:[#allocation32_spill] sm:$0xff] }
 0x489   :  { %5349 = vset.pattern.permute.xlu1 %v9634_v4  ;;  %v1410_v45 = vadd.f32 %v1402_v17, %v1317_v12  ;;  %v9714_v4 = vld [vmem:[#allocation45_spill] sm:$0xff]  ;;  %v1660_v8 = vadd.f32 %v1652_v54, %v1567_v42  ;;  %v7588_v17 = vld [vmem:[#allocation2 + $0x10] sm:$0xff]  ;;  %v1561_v0 = vsel %vm1557_vm5, %v9718_v60, %v9724_v27  ;;  %v9762_v2 = vld [vmem:[#allocation116_spill] sm:$0xff] }
 0x48a   :  { %4173 = vperm.xlu1 %5349, %v7570_v26   ;;  %v1558_v46 = vsel %vm1557_vm5, %v9714_v4, %v9707_v33  ;;  %v1568_v22 = vadd.f32 %v1560_v28, %v1502_v1  ;;  %v9723_v42 = vld [vmem:[#allocation14_spill] sm:$0xff] }
 0x48b   :  { %v1566_v53 = vadd.f32 %v1558_v46, %v1500_v37  ;;  %v1503_v31 = vadd.f32 %v1495_v29, %v1410_v45  ;;  %v7591_v33 = vpop.permute.xlu0 %4488  ;;  %v9722_v37 = vld [vmem:[#allocation65_spill] sm:$0xff]  ;;  %v9725_v29 = vld [vmem:[#allocation46_spill] sm:$0xff] }
 0x48c   :  { %v7576_v25 = vpop.permute.xlu1 %4485  ;;  %9720 = vst [vmem:[#allocation58_spill] sm:$0xff] %v7591_v33  ;;  %v1745_v12 = vsel %vm1743_vm3, %v9723_v42, %v9722_v37  ;;  %v9726_v45 = vld [vmem:[#allocation78_spill] sm:$0xff] }
 0x48d   :  { %9713 = vst [vmem:[#allocation49_spill] sm:$0xff] %v7576_v25  ;;  %v1811_v4 = vsel %vm1809_vm7, %v9726_v45, %v9725_v29  ;;  %v1659_v1 = vadd.f32 %v1651_v6, %v1566_v53  ;;  %v1753_v16 = vadd.f32 %v1745_v12, %v1660_v8  ;;  %v1569_v54 = vadd.f32 %v1561_v0, %v1503_v31  ;;  %v9730_v28 = vld [vmem:[#allocation74_spill] sm:$0xff]  ;;  %v9733_v29 = vld [vmem:[#allocation15_spill] sm:$0xff]  ;;  %v9734_v8 = vld [vmem:[#allocation72_spill] sm:$0xff] }
 0x48e   :  { %5350 = vset.pattern.permute.xlu1 %v9717_v58  ;;  %v9728_v58 = vld [vmem:[#allocation30_spill] sm:$0xff]  ;;  %v9732_v25 = vmov 47   ;;  %v1744_v53 = vsel %vm1743_vm3, %v9733_v29, %v9723_v42  ;;  %v9735_v6 = vld [vmem:[#allocation76_spill] sm:$0xff]  ;;  %v9736_v0 = vld [vmem:[#allocation77_spill] sm:$0xff] }
 0x48f   :  { %4229 = vperm.xlu1 %5350, %v7588_v17   ;;  %v1653_v34 = vsel %vm1650_vm6, %v9729_v47, %v9728_v58  ;;  %v9731_v18 = vld [vmem:[#allocation82_spill] sm:$0xff]  ;;  %v1819_v60 = vadd.f32 %v1811_v4, %v1753_v16  ;;  %v1654_v31 = vsel %vm1650_vm6, %v9728_v58, %v9734_v8  ;;  %v1810_v12 = vsel %vm1809_vm7, %v9735_v6, %v9726_v45  ;;  %v9740_v42 = vld [vmem:[#allocation75_spill] sm:$0xff]  ;;  %v9741_v29 = vld [vmem:[#allocation25_spill] sm:$0xff] }
 0x490   :  { %v1904_v37 = vsel %vm1902_vm8, %v9731_v18, %v9730_v28  ;;  %v1661_v27 = vadd.f32 %v1653_v34, %v1568_v22  ;;  %v9737_v47 = vld [vmem:[#allocation86_spill] sm:$0xff]  ;;  %v1752_v22 = vadd.f32 %v1744_v53, %v1659_v1  ;;  %v1662_v34 = vadd.f32 %v1654_v31, %v1569_v54  ;;  %v7629_v28 = vpop.permute.xlu0 %3110  ;;  %v9742_v58 = vld [vmem:[#allocation80_spill] sm:$0xff]  ;;  %v9744_v6 = vld [vmem:[#allocation79_spill] sm:$0xff] }
 0x491   :  { %v7605_v46 = vpop.permute.xlu1 %2894  ;;  %v1912_v16 = vadd.f32 %v1904_v37, %v1819_v60  ;;  %9739 = vst [vmem:[#allocation64_spill] sm:$0xff] %v7629_v28  ;;  %v1903_v8 = vsel %vm1902_vm8, %v9742_v58, %v9731_v18  ;;  %v9743_v45 = vld [vmem:[#allocation12_spill] sm:$0xff]  ;;  %v9745_v1 = vmov 6   ;;  %v9746_v54 = vld [vmem:[#allocation73_spill] sm:$0xff]  ;;  %v9751_v28 = vld [vmem:[#allocation111_spill] sm:$0xff]  ;;  %vm9451_vm6 = vcmask 490496  }
 0x492   :  { %9727 = vst [vmem:[#allocation20_spill] sm:$0xff] %v7605_v46  ;;  %v1746_v46 = vsel %vm1743_vm3, %v9741_v29, %v9740_v42  ;;  %v2063_v33 = vsel %vm2061_vm9, %v9744_v6, %v9743_v45  ;;  %v1747_v37 = vsel %vm1743_vm3, %v9740_v42, %v9746_v54  ;;  %v9747_v60 = vld [vmem:[#allocation85_spill] sm:$0xff]  ;;  %v9750_v58 = vld [vmem:[#allocation108_spill] sm:$0xff]  ;;  %v9754_v42 = vld [vmem:[#allocation98_spill] sm:$0xff] }
 0x493   :  { %5352 = vset.pattern.permute.xlu1 %v9732_v25  ;;  %v1997_v25 = vsel %vm1995_vm4, %v9737_v47, %v9736_v0  ;;  %v1818_v0 = vadd.f32 %v1810_v12, %v1752_v22  ;;  %v1996_v53 = vsel %vm1995_vm4, %v9747_v60, %v9737_v47  ;;  %v9748_v31 = vld [vmem:[#allocation93_spill] sm:$0xff]  ;;  %v1812_v12 = vsel %vm1809_vm7, %v9751_v28, %v9750_v58  ;;  %v9755_v45 = vld [vmem:[#allocation87_spill] sm:$0xff]  ;;  %v9756_v54 = vld [vmem:[#allocation112_spill] sm:$0xff] }
 0x494   :  { %4288 = vperm.xlu1 %5352, %v7588_v17   ;;  %v2005_v43 = vadd.f32 %v1997_v25, %v1912_v16  ;;  %v9749_v29 = vld [vmem:[#allocation81_spill] sm:$0xff]  ;;  %v1755_v25 = vadd.f32 %v1747_v37, %v1662_v34  ;;  %v9753_v16 = vld [vmem:[#allocation88_spill] sm:$0xff]  ;;  %v1813_v28 = vsel %vm1809_vm7, %v9750_v58, %v9756_v54  ;;  %v9763_v54 = vmov 20  }
 0x495   :  { %v7627_v4 = vpop.permute.xlu1 %3057  ;;  %v2156_v18 = vsel %vm2154_vm10, %v9749_v29, %v9748_v31  ;;  %v2062_v47 = vsel %vm2061_vm9, %v9753_v16, %v9744_v6  ;;  %v9757_v60 = vld [vmem:[#allocation113_spill] sm:$0xff]  ;;  %v9758_v31 = vld [vmem:[#allocation114_spill] sm:$0xff]  ;;  %v9759_v37 = vld [vmem:[#allocation92_spill] sm:$0xff] }
 0x496   :  { %9738 = vst [vmem:[#allocation17_spill] sm:$0xff] %v7627_v4  ;;  %v1754_v4 = vadd.f32 %v1746_v46, %v1661_v27  ;;  %v1911_v46 = vadd.f32 %v1903_v8, %v1818_v0  ;;  %v2071_v27 = vadd.f32 %v2063_v33, %v2005_v43  ;;  %v1905_v43 = vsel %vm1902_vm8, %v9758_v31, %v9757_v60  ;;  %v2269_v0 = vpop.permute.xlu0 %2268  ;;  %v9760_v16 = vld [vmem:[#allocation115_spill] sm:$0xff] }
 0x497   :  { %v2155_v6 = vsel %vm2154_vm10, %v9759_v37, %v9749_v29  ;;  %v9766_v37 = vld [vmem:[#allocation118_spill] sm:$0xff] }
 0x498   :  { %5354 = vset.pattern.permute.xlu1 %v9745_v1  ;;  %v2249_v1 = vsel %vm9451_vm6, %v9755_v45, %v9754_v42  ;;  %v2004_v33 = vadd.f32 %v1996_v53, %v1911_v46  ;;  %v2164_v34 = vadd.f32 %v2156_v18, %v2071_v27  ;;  %v1820_v8 = vadd.f32 %v1812_v12, %v1754_v4  ;;  %v9764_v46 = vld [vmem:[#allocation97_spill] sm:$0xff] }
 0x499   :  { %4347 = vperm.xlu1 %5354, %v7570_v26   ;;  %v1906_v42 = vsel %vm1902_vm8, %v9757_v60, %v9760_v16  ;;  %v1821_v18 = vadd.f32 %v1813_v28, %v1755_v25  ;;  %v2248_v29 = vsel %vm9451_vm6, %v9764_v46, %v9755_v45  ;;  %v9765_v27 = vld [vmem:[#allocation13_spill] sm:$0xff]  ;;  %v9767_v16 = vld [vmem:[#allocation119_spill] sm:$0xff] }
 0x49a   :  { %v7654_v22 = vpop.permute.xlu1 %3113  ;;  %v2070_v31 = vadd.f32 %v2062_v47, %v2004_v33  ;;  %v2257_v53 = vadd.f32 %v2249_v1, %v2164_v34  ;;  %v1913_v4 = vadd.f32 %v1905_v43, %v1820_v8  ;;  %v2277_v43 = vpop.permute.xlu0 %2276  ;;  %v9769_v34 = vld [vmem:[#allocation120_spill] sm:$0xff] }
 0x49b   :  { %9752 = vst [vmem:[#allocation22_spill] sm:$0xff] %v7654_v22  ;;  %v9761_v22 = vld [vmem:[#allocation117_spill] sm:$0xff]  ;;  %v1914_v25 = vadd.f32 %v1906_v42, %v1821_v18  ;;  %v2065_v45 = vsel %vm2061_vm9, %v9766_v37, %v9769_v34 }
 0x49c   :  { %v1998_v58 = vsel %vm1995_vm4, %v9762_v2, %v9761_v22  ;;  %v1999_v60 = vsel %vm1995_vm4, %v9761_v22, %v9765_v27  ;;  %v2064_v2 = vsel %vm2061_vm9, %v9767_v16, %v9766_v37  ;;  %v2163_v1 = vadd.f32 %v2155_v6, %v2070_v31  ;;  %v9770_v6 = vld [vmem:[#allocation121_spill] sm:$0xff] }
 0x49d   :  { %5355 = vset.pattern.permute.xlu1 %v9763_v54  ;;  %v2006_v28 = vadd.f32 %v1998_v58, %v1913_v4  ;;  %v2157_v22 = vsel %vm2154_vm10, %v7211_v36, %v7197_v3  ;;  %v2007_v54 = vadd.f32 %v1999_v60, %v1914_v25  ;;  %v2158_v42 = vsel %vm2154_vm10, %v7197_v3, %v9770_v6 }
 0x49e   :  { %4400 = vperm.xlu1 %5355, %v7570_v26   ;;  %v2271_v12 = vpop.permute.xlu1 %2270  ;;  %v2256_v8 = vadd.f32 %v2248_v29, %v2163_v1  ;;  %v2250_v58 = vsel %vm9451_vm6, %v7381_v44, %v7253_v55  ;;  %v2251_v36 = vsel %vm9451_vm6, %v7253_v55, %v7386_v41  ;;  %v2273_v37 = vpop.permute.xlu0 %2272 }
 0x49f   :  { %v2280_v47 = vsel %vm2278_vm11, %v2269_v0, %v2271_v12  ;;  %v2072_v46 = vadd.f32 %v2064_v2, %v2006_v28 }
 0x4a0   :  { %v7689_v33 = vadd.f32 %v2280_v47, %v2257_v53  ;;  %v2073_v53 = vadd.f32 %v2065_v45, %v2007_v54 }
 0x4a1   :  { %v2165_v18 = vadd.f32 %v2157_v22, %v2072_v46 }
 0x4a2   :  { %9768 = vst [vmem:[#allocation19_spill] sm:$0xff] %v7689_v33  ;;  %v2294_v27 = vrot.slane %v7689_v33, 2  ;;  %v2267_v12 = vpop.permute.xlu1 %2266  ;;  %v2166_v29 = vadd.f32 %v2158_v42, %v2073_v53  ;;  %v7721_v34 = vpop.permute.xlu0 %3171 }
 0x4a3   :  { %v2279_v31 = vsel %vm2278_vm11, %v2267_v12, %v2269_v0  ;;  %v2258_v60 = vadd.f32 %v2250_v58, %v2165_v18 }
 0x4a4   :  { %v7705_v4 = vadd.f32 %v2279_v31, %v2256_v8  ;;  %2297 = vrot.lane.b32.xlu0 %v2294_v27, %s5592_s8  ;;  %v2259_v2 = vadd.f32 %v2251_v36, %v2166_v29 }
 0x4a6   :  { %9771 = vst [vmem:[#allocation66_spill] sm:$0xff] %v7705_v4  ;;  %v2293_v3 = vrot.slane %v7705_v4, 2  ;;  %v2275_v16 = vpop.permute.xlu1 %2274 }
 0x4a7   :  { %v2281_v44 = vsel %vm2278_vm11, %v2273_v37, %v2275_v16  ;;  %v2282_v0 = vsel %vm2278_vm11, %v2275_v16, %v2277_v43  ;;  %v7725_v43 = vpop.permute.xlu0 %3331  ;;  %vm2983_vm11 = vcmask 203776  }
 0x4a8   :  { %v2289_v47 = vadd.f32 %v2281_v44, %v2258_v60  ;;  %2295 = vrot.lane.b32.xlu1 %v2293_v3, %s5592_s8  ;;  %v2290_v1 = vadd.f32 %v2282_v0, %v2259_v2  ;;  %9776 = vst [vmem:[#allocation29_spill] sm:$0xff] %v7725_v43 }
 0x4aa   :  { %2979 = vrot.lane.b32.xlu0 %v2289_v47, %s5593_s9  ;;  %v7713_v25 = vpop.permute.xlu1 %3168 }
 0x4ab   :  { %v7729_v8 = vpop.permute.xlu0 %3392 }
 0x4ac   :  { %2981 = vrot.lane.b32.xlu1 %v2290_v1, %s5593_s9  ;;  %9778 = vst [vmem:[#allocation43_spill] sm:$0xff] %v7729_v8 }
 0x4af   :  { %v7715_v55 = vpop.permute.xlu1 %3226  ;;  %v7735_v27 = vpop.permute.xlu0 %3499 }
 0x4b0   :  { %9772 = vst [vmem:[#allocation71_spill] sm:$0xff] %v7715_v55  ;;  %9781 = vst [vmem:[#allocation94_spill] sm:$0xff] %v7735_v27 }
 0x4b3   :  { %v7739_v6 = vpop.permute.xlu0 %3610 }
 0x4b4   :  { %v7717_v41 = vpop.permute.xlu1 %3278  ;;  %9783 = vst [vmem:[#allocation96_spill] sm:$0xff] %v7739_v6 }
 0x4b5   :  { %9773 = vst [vmem:[#allocation100_spill] sm:$0xff] %v7717_v41 }
 0x4b7   :  { %v7743_v58 = vpop.permute.xlu0 %3775 }
 0x4b8   :  { %9785 = vst [vmem:[#allocation103_spill] sm:$0xff] %v7743_v58 }
 0x4b9   :  { %v7719_v28 = vpop.permute.xlu1 %3334 }
 0x4ba   :  { %9774 = vst [vmem:[#allocation89_spill] sm:$0xff] %v7719_v28 }
 0x4bb   :  { %v7747_v53 = vpop.permute.xlu0 %3834 }
 0x4bc   :  { %9787 = vst [vmem:[#allocation104_spill] sm:$0xff] %v7747_v53 }
 0x4be   :  { %v7723_v45 = vpop.permute.xlu1 %3389 }
 0x4bf   :  { %9775 = vst [vmem:[#allocation10_spill] sm:$0xff] %v7723_v45  ;;  %v7751_v36 = vpop.permute.xlu0 %2847 }
 0x4c0   :  { %9789 = vst [vmem:[#allocation105_spill] sm:$0xff] %v7751_v36 }
 0x4c3   :  { %v7727_v22 = vpop.permute.xlu1 %3044  ;;  %v7755_v60 = vpop.permute.xlu0 %2777 }
 0x4c4   :  { %9777 = vst [vmem:[#allocation21_spill] sm:$0xff] %v7727_v22 }
 0x4c7   :  { %v7761_v16 = vpop.permute.xlu0 %3946 }
 0x4c8   :  { %v7731_v54 = vpop.permute.xlu1 %3447  ;;  %9793 = vst [vmem:[#allocation107_spill] sm:$0xff] %v7761_v16  ;;  %v9804_v16 = vld [vmem:[#allocation54_spill] sm:$0xff] }
 0x4c9   :  { %9779 = vst [vmem:[#allocation91_spill] sm:$0xff] %v7731_v54 }
 0x4cb   :  { %v7765_v0 = vpop.permute.xlu0 %4005 }
 0x4cc   :  { %9795 = vst [vmem:[#allocation110_spill] sm:$0xff] %v7765_v0 }
 0x4cd   :  { %v7733_v46 = vpop.permute.xlu1 %3552 }
 0x4ce   :  { %9780 = vst [vmem:[#allocation101_spill] sm:$0xff] %v7733_v46 }
 0x4cf   :  { %v7771_v1 = vpop.permute.xlu0 %4064 }
 0x4d0   :  { %9798 = vst [vmem:[#allocation61_spill] sm:$0xff] %v7771_v1 }
 0x4d1   :  { %v7737_v12 = vpop.permute.xlu1 %3555 }
 0x4d2   :  { %9782 = vst [vmem:[#allocation23_spill] sm:$0xff] %v7737_v12 }
 0x4d3   :  { %v7775_v4 = vpop.permute.xlu0 %3707 }
 0x4d4   :  { %9800 = vst [vmem:[#allocation69_spill] sm:$0xff] %v7775_v4 }
 0x4d6   :  { %v7741_v42 = vpop.permute.xlu1 %3613 }
 0x4d7   :  { %9784 = vst [vmem:[#allocation99_spill] sm:$0xff] %v7741_v42  ;;  %v7779_v36 = vpop.permute.xlu0 %4232  ;;  %v2307_v42 = vadd.s32 12, %v9653_v21 }
 0x4d8   :  { %9802 = vst [vmem:[#allocation65_spill] sm:$0xff] %v7779_v36 }
 0x4d9   :  { %v7842_v27 = vand.u32 15, %v2307_v42 }
 0x4db   :  { %v7745_v31 = vpop.permute.xlu1 %2707 }
 0x4dc   :  { %9786 = vst [vmem:[#allocation37_spill] sm:$0xff] %v7745_v31  ;;  %v9814_v31 = vld [vmem:[#allocation51_spill] sm:$0xff] }
 0x4e0   :  { %v7749_v18 = vpop.permute.xlu1 %3722 }
 0x4e1   :  { %9788 = vst [vmem:[#allocation102_spill] sm:$0xff] %v7749_v18 }
 0x4e5   :  { %v7753_v29 = vpop.permute.xlu1 %3778 }
 0x4e6   :  { %9790 = vst [vmem:[#allocation28_spill] sm:$0xff] %v7753_v29 }
 0x4ea   :  { %v7757_v37 = vpop.permute.xlu1 %3837 }
 0x4eb   :  { %9791 = vst [vmem:[#allocation60_spill] sm:$0xff] %v7757_v37  ;;  %v7784_v37 = vpop.permute.xlu0 %4291 }
 0x4ec   :  { %9805 = vst [vmem:[#allocation70_spill] sm:$0xff] %v7784_v37 }
 0x4ee   :  { %v7759_v3 = vpop.permute.xlu1 %3263 }
 0x4ef   :  { %9792 = vst [vmem:[#allocation106_spill] sm:$0xff] %v7759_v3 }
 0x4f2   :  { %v7763_v44 = vpop.permute.xlu1 %3893 }
 0x4f3   :  { %9794 = vst [vmem:[#allocation109_spill] sm:$0xff] %v7763_v44  ;;  %v2309_v44 = vadd.s32 12, %v9804_v16 }
 0x4f7   :  { %v7767_v2 = vpop.permute.xlu1 %4002 }
 0x4f8   :  { %9796 = vst [vmem:[#allocation45_spill] sm:$0xff] %v7767_v2  ;;  %v7788_v2 = vand.u32 15, %v2309_v44 }
 0x4fa   :  { %vm2684_vm10 = vcmp.ge.s32.totalorder %v7788_v2, 2  ;;  %vm2824_vm13 = vcmp.ge.s32.totalorder %v7788_v2, 4 }
 0x4fb   :  { %v7769_v47 = vpop.permute.xlu1 %3484  ;;  %v5073_v36 = vsel %vm2684_vm10, 1.0, %v9656_v23  ;;  %v5077_v37 = vsel %vm2824_vm13, 1.0, %v9656_v23 }
 0x4fc   :  { %9797 = vst [vmem:[#allocation62_spill] sm:$0xff] %v7769_v47  ;;  %v7790_v47 = vpop.permute.xlu0 %3931 }
 0x4fd   :  { %9807 = vst [vmem:[#allocation78_spill] sm:$0xff] %v7790_v47 }
 0x4ff   :  { %v7773_v33 = vpop.permute.xlu1 %4061 }
 0x500   :  { %9799 = vst [vmem:[#allocation27_spill] sm:$0xff] %v7773_v33 }
 0x504   :  { %v7777_v22 = vpop.permute.xlu1 %4120 }
 0x505   :  { %9801 = vst [vmem:[#allocation47_spill] sm:$0xff] %v7777_v22 }
 0x509   :  { %v7781_v3 = vpop.permute.xlu1 %4173 }
 0x50a   :  { %9803 = vst [vmem:[#allocation14_spill] sm:$0xff] %v7781_v3 }
 0x50e   :  { %v7786_v0 = vpop.permute.xlu1 %4229 }
 0x50f   :  { %9806 = vst [vmem:[#allocation46_spill] sm:$0xff] %v7786_v0  ;;  %v9813_v0 = vld [vmem:[#allocation35_spill] sm:$0xff] }
 0x510   :  { %v2994_v33 = vadd.s32 7, %v9813_v0 }
 0x512   :  { %v7815_v18 = vand.u32 15, %v2994_v33 }
 0x513   :  { %v7792_v1 = vpop.permute.xlu1 %4288 }
 0x514   :  { %9808 = vst [vmem:[#allocation30_spill] sm:$0xff] %v7792_v1  ;;  %vm3424_vm15 = vcmp.lt.s32.totalorder %v7815_v18, 13  ;;  %vm3865_vm10 = vcmp.ge.s32.totalorder %v7815_v18, 3  ;;  %vm4092_vm13 = vcmp.ge.s32.totalorder %v7815_v18, 6 }
 0x515   :  { %v5092_v6 = vsel %vm3424_vm15, 1.0, %v9656_v23  ;;  %v5097_v54 = vsel %vm3865_vm10, 1.0, %v9656_v23  ;;  %vm2682_vm15 = vcmp.ge.s32.totalorder %v7842_v27, 2 }
 0x516   :  { %v2298_v4 = vpop.permute.xlu0 %2297 }
 0x517   :  { %v7797_v3 = vsel %vm2299_vm12, %v2298_v4, 0.0 }
 0x518   :  { %9809 = vst [vmem:[#allocation32_spill] sm:$0xff] %v7797_v3  ;;  %v7800_v22 = vpop.permute.xlu1 %4347  ;;  %v7803_v44 = vmul.f32 %v5073_v36, %v7797_v3  ;;  %v7806_v47 = vmul.f32 %v5077_v37, %v7797_v3  ;;  %v9815_v37 = vld [vmem:[#allocation53_spill] sm:$0xff] }
 0x519   :  { %9810 = vst [vmem:[#allocation74_spill] sm:$0xff] %v7800_v22 }
 0x51a   :  { %9811 = vst [vmem:[#allocation82_spill] sm:$0xff] %v7806_v47 }
 0x51d   :  { %v7808_v1 = vpop.permute.xlu1 %4400 }
 0x51e   :  { %9812 = vst [vmem:[#allocation15_spill] sm:$0xff] %v7808_v1  ;;  %v2308_v1 = vadd.s32 12, %v9815_v37 }
 0x521   :  { %v2296_v53 = vpop.permute.xlu1 %2295 }
 0x522   :  { %v7811_v29 = vsel %vm2299_vm12, %v2296_v53, %v2298_v4  ;;  %v7813_v58 = vsel %vm2299_vm12, 0.0, %v2296_v53  ;;  %v2574_v4 = vmul.f32 %v9814_v31, %v7797_v3  ;;  %v9816_v53 = vld [vmem:[#allocation52_spill] sm:$0xff] }
 0x523   :  { %v2572_v22 = vmul.f32 %v9814_v31, %v7813_v58  ;;  %v2573_v36 = vmul.f32 %v9814_v31, %v7811_v29  ;;  %v2595_v33 = vmul.f32 %v9816_v53, %v7811_v29  ;;  %v2594_v46 = vmul.f32 %v9816_v53, %v7813_v58 }
 0x524   :  { %v2619_v12 = vmul.f32 %v7271_v50, %v7811_v29  ;;  %v2596_v31 = vmul.f32 %v9816_v53, %v7797_v3  ;;  %v2641_v42 = vmul.f32 %v7288_v14, %v7811_v29  ;;  %v3751_v53 = vrot.slane %v7394_v11, 6 }
 0x525   :  { %2578 = vrot.lane.b32.xlu0 %v2572_v22, %s5563_s28  ;;  %2580 = vrot.lane.b32.xlu1 %v2573_v36, %s5563_s28  ;;  %v2982_v0 = vpop.permute.xlu1 %2981  ;;  %v7835_v36 = vand.u32 15, %v2308_v1  ;;  %v2618_v8 = vmul.f32 %v7271_v50, %v7813_v58 }
 0x526   :  { %v7833_v22 = vsel %vm2983_vm11, %v2982_v0, 0.0 }
 0x527   :  { %v7848_v1 = vmul.f32 %v5092_v6, %v7833_v22  ;;  %vm2683_vm12 = vcmp.ge.s32.totalorder %v7835_v36, 2  ;;  %v3750_v6 = vrot.slane %v7451_v62, 6  ;;  %v7867_v45 = vmul.f32 %v5097_v54, %v7833_v22 }
 0x528   :  { %vm2823_vm10 = vcmp.ge.s32.totalorder %v7835_v36, 4 }
 0x529   :  { %2582 = vrot.lane.b32.xlu0 %v2574_v4, %s5563_s28  ;;  %2602 = vrot.lane.b32.xlu1 %v2595_v33, %s5563_s28  ;;  %v2980_v4 = vpop.permute.xlu0 %2979  ;;  %v5594_v33 = vmov 34   ;;  %v3752_v54 = vsel %vm9452_vm1, %v3750_v6, %v3751_v53  ;;  %v5076_v41 = vsel %vm2823_vm10, 1.0, %v9656_v23  ;;  %v3810_v53 = vrot.slane %v7460_v19, 6 }
 0x52a   :  { %5357 = vset.pattern.permute.xlu0 %v5594_v33  ;;  %5356 = vset.pattern.permute.xlu1 %v5594_v33  ;;  %v5102_v33 = vsel %vm4092_vm13, 1.0, %v9656_v23  ;;  %vm4319_vm13 = vcmp.ge.s32.totalorder %v7815_v18, 9  ;;  %v3809_v6 = vrot.slane %v7404_v30, 6  ;;  %v2642_v19 = vmul.f32 %v7288_v14, %v7797_v3 }
 0x52b   :  { %v7883_v11 = vmul.f32 %v5102_v33, %v7833_v22  ;;  %v5107_v33 = vsel %vm4319_vm13, 1.0, %v9656_v23  ;;  %vm2319_vm10 = vcmp.lt.s32.totalorder %v7835_v36, 12  ;;  %vm2412_vm13 = vcmp.lt.s32.totalorder %v7788_v2, 14 }
 0x52c   :  { %v3811_v30 = vsel %vm9452_vm1, %v3809_v6, %v3810_v53 }
 0x52d   :  { %2600 = vrot.lane.b32.xlu0 %v2594_v46, %s5563_s28  ;;  %2626 = vrot.lane.b32.xlu1 %v2619_v12, %s5565_s29  ;;  %v7858_v46 = vsel %vm2983_vm11, 0.0, %v2980_v4  ;;  %v5072_v12 = vsel %vm2683_vm12, 1.0, %v9656_v23  ;;  %vm2822_vm12 = vcmp.ge.s32.totalorder %v7842_v27, 4 }
 0x52e   :  { %v3702_v28 = vmul.f32 %v7389_v57, %v7858_v46  ;;  %v3754_v43 = vmul.f32 %v3752_v54, %v7858_v46 }
 0x531   :  { %2604 = vrot.lane.b32.xlu0 %v2596_v31, %s5563_s28  ;;  %2648 = vrot.lane.b32.xlu1 %v2641_v42, %s5565_s29  ;;  %v5071_v31 = vsel %vm2682_vm15, 1.0, %v9656_v23  ;;  %v7876_v42 = vmul.f32 %v5072_v12, %v7811_v29  ;;  %v2620_v12 = vmul.f32 %v7271_v50, %v7797_v3  ;;  %vm2320_vm15 = vcmp.lt.s32.totalorder %v7788_v2, 12 }
 0x532   :  { %v7888_v62 = vmul.f32 %v5071_v31, %v7813_v58  ;;  %v7904_v31 = vmul.f32 %v5076_v41, %v7811_v29  ;;  %v3813_v41 = vmul.f32 %v3811_v30, %v7858_v46  ;;  %v5066_v6 = vsel %vm2320_vm15, 1.0, %v9656_v23 }
 0x534   :  { %9817 = vst [vmem:[#allocation72_spill] sm:$0xff] %v7904_v31 }
 0x535   :  { %2624 = vrot.lane.b32.xlu0 %v2618_v8, %s5565_s29  ;;  %3709 = vrot.lane.b32.xlu1 %v3702_v28, %s5588_s5  ;;  %v5075_v8 = vsel %vm2822_vm12, 1.0, %v9656_v23  ;;  %v7896_v28 = vsel %vm2983_vm11, %v2980_v4, %v2982_v0  ;;  %v2640_v0 = vmul.f32 %v7288_v14, %v7813_v58  ;;  %vm2318_vm11 = vcmp.lt.s32.totalorder %v7842_v27, 12 }
 0x536   :  { %v7907_v55 = vmul.f32 %v5075_v8, %v7813_v58  ;;  %v3755_v4 = vmul.f32 %v3752_v54, %v7896_v28  ;;  %v3814_v8 = vmul.f32 %v3811_v30, %v7896_v28  ;;  %vm2410_vm12 = vcmp.lt.s32.totalorder %v7842_v27, 14 }
 0x538   :  { %9818 = vst [vmem:[#allocation76_spill] sm:$0xff] %v7907_v55 }
 0x539   :  { %2628 = vrot.lane.b32.xlu0 %v2620_v12, %s5565_s29  ;;  %3760 = vrot.lane.b32.xlu1 %v3754_v43, %s5595_s10  ;;  %v7913_v12 = vmul.f32 %v5107_v33, %v7833_v22  ;;  %v5064_v43 = vsel %vm2318_vm11, 1.0, %v9656_v23  ;;  %v3703_v33 = vmul.f32 %v7389_v57, %v7896_v28  ;;  %v5065_v57 = vsel %vm2319_vm10, 1.0, %v9656_v23 }
 0x53a   :  { %v7930_v53 = vmul.f32 %v5064_v43, %v7813_v58  ;;  %v3815_v43 = vmul.f32 %v3811_v30, %v7833_v22  ;;  %v5069_v30 = vsel %vm2412_vm13, 1.0, %v9656_v23  ;;  %vm2411_vm11 = vcmp.lt.s32.totalorder %v7835_v36, 14 }
 0x53b   :  { %9819 = vst [vmem:[#allocation77_spill] sm:$0xff] %v7913_v12  ;;  %vm3009_vm10 = vcmp.lt.s32.totalorder %v7815_v18, 7 }
 0x53c   :  { %9820 = vst [vmem:[#allocation86_spill] sm:$0xff] %v7930_v53 }
 0x53d   :  { %2646 = vrot.lane.b32.xlu0 %v2640_v0, %s5565_s29  ;;  %3762 = vrot.lane.b32.xlu1 %v3755_v4, %s5595_s10  ;;  %v2356_v0 = vmul.f32 %v9652_v7, %v7930_v53  ;;  %v3756_v4 = vmul.f32 %v3752_v54, %v7833_v22  ;;  %v9823_v54 = vld [vmem:[#allocation50_spill] sm:$0xff] }
 0x541   :  { %2650 = vrot.lane.b32.xlu0 %v2642_v19, %s5565_s29  ;;  %3819 = vrot.lane.b32.xlu1 %v3813_v41, %s5596_s11  ;;  %v7940_v19 = vmul.f32 %v5066_v6, %v7797_v3  ;;  %s5610_s29 = smov 14  }
 0x543   :  { %9821 = vst [vmem:[#allocation75_spill] sm:$0xff] %v7940_v19  ;;  %v2358_v41 = vmul.f32 %v9652_v7, %v7940_v19  ;;  %v2380_v2 = vmul.f32 %v9823_v54, %v7940_v19 }
 0x545   :  { %3821 = vrot.lane.b32.xlu1 %v3814_v8, %s5596_s11  ;;  %3711 = vrot.lane.b32.xlu0 %v3703_v33, %s5588_s5  ;;  %v7949_v8 = vmul.f32 %v5065_v57, %v7811_v29  ;;  %v2378_v33 = vmul.f32 %v9823_v54, %v7930_v53  ;;  %v5068_v57 = vsel %vm2411_vm11, 1.0, %v9656_v23 }
 0x547   :  { %9822 = vst [vmem:[#allocation25_spill] sm:$0xff] %v7949_v8  ;;  %v2357_v6 = vmul.f32 %v9652_v7, %v7949_v8  ;;  %v2379_v27 = vmul.f32 %v9823_v54, %v7949_v8  ;;  %v2428_v7 = vmul.f32 %v5069_v30, %v7797_v3  ;;  %v2992_v30 = vadd.s32 7, %v9815_v37 }
 0x548   :  { %v2993_v37 = vadd.s32 7, %v9804_v16  ;;  %v3086_v16 = vrot.slane %v7397_v59, 6 }
 0x549   :  { %2362 = vrot.lane.b32.xlu1 %v2356_v0, %s5556_s21  ;;  %3764 = vrot.lane.b32.xlu0 %v3756_v4, %s5595_s10  ;;  %v5067_v0 = vsel %vm2410_vm12, 1.0, %v9656_v23  ;;  %v7985_v3 = vand.u32 15, %v2992_v30 }
 0x54a   :  { %v2426_v4 = vmul.f32 %v5067_v0, %v7813_v58 }
 0x54b   :  { %vm3007_vm15 = vcmp.lt.s32.totalorder %v7985_v3, 7  ;;  %vm3201_vm11 = vcmp.lt.s32.totalorder %v7985_v3, 10 }
 0x54c   :  { %v5080_v30 = vsel %vm3007_vm15, 1.0, %v9656_v23  ;;  %vm3203_vm15 = vcmp.lt.s32.totalorder %v7815_v18, 10  ;;  %v3364_v18 = vrot.slane %v7416_v15, 6 }
 0x54d   :  { %2366 = vrot.lane.b32.xlu1 %v2358_v41, %s5556_s21  ;;  %3823 = vrot.lane.b32.xlu0 %v3815_v43, %s5596_s11  ;;  %v9824_v41 = vld [vmem:[#allocation55_spill] sm:$0xff] }
 0x54e   :  { %v2434_v43 = vmul.f32 %v9824_v41, %v2426_v4  ;;  %v2436_v36 = vmul.f32 %v9824_v41, %v2428_v7 }
 0x551   :  { %2384 = vrot.lane.b32.xlu1 %v2378_v33, %s5556_s21  ;;  %2364 = vrot.lane.b32.xlu0 %v2357_v6, %s5556_s21  ;;  %v2427_v33 = vmul.f32 %v5068_v57, %v7811_v29  ;;  %v9825_v6 = vld [vmem:[#allocation38_spill] sm:$0xff] }
 0x552   :  { %v2456_v0 = vmul.f32 %v9825_v6, %v2426_v4 }
 0x553   :  { %v2435_v58 = vmul.f32 %v9824_v41, %v2427_v33  ;;  %v2481_v57 = vmul.f32 %v9658_v35, %v2427_v33 }
 0x555   :  { %2386 = vrot.lane.b32.xlu1 %v2379_v27, %s5556_s21  ;;  %2388 = vrot.lane.b32.xlu0 %v2380_v2, %s5556_s21  ;;  %v2457_v27 = vmul.f32 %v9825_v6, %v2427_v33  ;;  %v2458_v2 = vmul.f32 %v9825_v6, %v2428_v7  ;;  %v8007_v6 = vmul.f32 %v5080_v30, %v7858_v46 }
 0x559   :  { %2440 = vrot.lane.b32.xlu1 %v2434_v43, %s5551_s14  ;;  %2444 = vrot.lane.b32.xlu0 %v2436_v36, %s5551_s14  ;;  %v2480_v43 = vmul.f32 %v9658_v35, %v2426_v4  ;;  %v9826_v36 = vld [vmem:[#allocation42_spill] sm:$0xff] }
 0x55d   :  { %2442 = vrot.lane.b32.xlu1 %v2435_v58, %s5551_s14  ;;  %2462 = vrot.lane.b32.xlu0 %v2456_v0, %s5551_s14  ;;  %v2503_v58 = vmul.f32 %v9826_v36, %v2427_v33  ;;  %v2482_v0 = vmul.f32 %v9658_v35, %v2428_v7 }
 0x561   :  { %2464 = vrot.lane.b32.xlu1 %v2457_v27, %s5551_s14  ;;  %2466 = vrot.lane.b32.xlu0 %v2458_v2, %s5551_s14  ;;  %v7998_v27 = vand.u32 15, %v2993_v37  ;;  %v9827_v2 = vld [vmem:[#allocation44_spill] sm:$0xff]  ;;  %v5082_v37 = vsel %vm3009_vm10, 1.0, %v9656_v23 }
 0x562   :  { %v3085_v35 = vrot.slane %v9827_v2, 6 }
 0x563   :  { %vm3008_vm12 = vcmp.lt.s32.totalorder %v7998_v27, 7  ;;  %vm3202_vm13 = vcmp.lt.s32.totalorder %v7998_v27, 10  ;;  %vm3423_vm10 = vcmp.lt.s32.totalorder %v7998_v27, 13 }
 0x564   :  { %v5081_v30 = vsel %vm3008_vm12, 1.0, %v9656_v23  ;;  %vm3422_vm12 = vcmp.lt.s32.totalorder %v7985_v3, 13 }
 0x565   :  { %2488 = vrot.lane.b32.xlu1 %v2481_v57, %s5554_s19  ;;  %2486 = vrot.lane.b32.xlu0 %v2480_v43, %s5554_s19  ;;  %v2527_v57 = vmul.f32 %v9827_v2, %v2428_v7  ;;  %v2502_v43 = vmul.f32 %v9826_v36, %v2426_v4  ;;  %v8018_v4 = vmul.f32 %v5082_v37, %v7833_v22 }
 0x569   :  { %2510 = vrot.lane.b32.xlu1 %v2503_v58, %s5554_s19  ;;  %2490 = vrot.lane.b32.xlu0 %v2482_v0, %s5554_s19  ;;  %v3087_v58 = vsel %vm9452_vm1, %v3085_v35, %v3086_v16  ;;  %v2504_v0 = vmul.f32 %v9826_v36, %v2428_v7  ;;  %v2526_v16 = vmul.f32 %v9827_v2, %v2427_v33  ;;  %v3143_v7 = vrot.slane %v7328_v56, 6 }
 0x56a   :  { %v3089_v59 = vmul.f32 %v3087_v58, %v8007_v6  ;;  %v8027_v35 = vmul.f32 %v5081_v30, %v7896_v28  ;;  %v5086_v33 = vsel %vm3202_vm13, 1.0, %v9656_v23  ;;  %v5085_v2 = vsel %vm3201_vm11, 1.0, %v9656_v23 }
 0x56b   :  { %v8044_v30 = vmul.f32 %v5086_v33, %v7896_v28  ;;  %vm3864_vm13 = vcmp.ge.s32.totalorder %v7998_v27, 3  ;;  %vm3863_vm11 = vcmp.ge.s32.totalorder %v7985_v3, 3 }
 0x56d   :  { %2534 = vrot.lane.b32.xlu1 %v2527_v57, %s5551_s14  ;;  %2508 = vrot.lane.b32.xlu0 %v2502_v43, %s5554_s19  ;;  %v3144_v57 = vrot.slane %v7340_v13, 6  ;;  %v3091_v43 = vmul.f32 %v3087_v58, %v8018_v4 }
 0x56f   :  { %v3145_v37 = vsel %vm9452_vm1, %v3143_v7, %v3144_v57  ;;  %v8047_v57 = vmul.f32 %v5085_v2, %v7858_v46  ;;  %v3306_v7 = vrot.slane %v7303_v10, 6  ;;  %v5091_v2 = vsel %vm3423_vm10, 1.0, %v9656_v23 }
 0x570   :  { %v3147_v13 = vmul.f32 %v3145_v37, %v8007_v6  ;;  %v3149_v56 = vmul.f32 %v3145_v37, %v8018_v4 }
 0x571   :  { %3095 = vrot.lane.b32.xlu1 %v3089_v59, %s5597_s12  ;;  %2512 = vrot.lane.b32.xlu0 %v2504_v0, %s5554_s19  ;;  %v3090_v59 = vmul.f32 %v3087_v58, %v8027_v35  ;;  %v3148_v0 = vmul.f32 %v3145_v37, %v8027_v35  ;;  %v3307_v58 = vrot.slane %v7351_v51, 6  ;;  %v5087_v37 = vsel %vm3203_vm15, 1.0, %v9656_v23  ;;  %s5605_s19 = smov 17  }
 0x572   :  { %v8068_v33 = vmul.f32 %v5087_v37, %v7833_v22  ;;  %v5090_v37 = vsel %vm3422_vm12, 1.0, %v9656_v23  ;;  %vm4091_vm15 = vcmp.ge.s32.totalorder %v7998_v27, 6  ;;  %vm4090_vm12 = vcmp.ge.s32.totalorder %v7985_v3, 6 }
 0x573   :  { %v3308_v51 = vsel %vm9452_vm1, %v3306_v7, %v3307_v58  ;;  %v3528_v58 = vrot.slane %v7374_v5, 6  ;;  %v3527_v7 = vrot.slane %v7368_v49, 6 }
 0x575   :  { %3099 = vrot.lane.b32.xlu1 %v3091_v43, %s5597_s12  ;;  %2532 = vrot.lane.b32.xlu0 %v2526_v16, %s5551_s14  ;;  %v3259_v43 = vmul.f32 %v7445_v32, %v8044_v30  ;;  %v3258_v16 = vmul.f32 %v7445_v32, %v8047_v57  ;;  %v3311_v32 = vmul.f32 %v3308_v51, %v8044_v30  ;;  %s5599_s14 = smov 26  }
 0x579   :  { %3153 = vrot.lane.b32.xlu1 %v3147_v13, %s5556_s21  ;;  %3097 = vrot.lane.b32.xlu0 %v3090_v59, %s5597_s12  ;;  %v3365_v13 = vrot.slane %v7357_v38, 6  ;;  %v3310_v59 = vmul.f32 %v3308_v51, %v8047_v57 }
 0x57b   :  { %v3366_v15 = vsel %vm9452_vm1, %v3364_v18, %v3365_v13  ;;  %v3585_v18 = vrot.slane %v7435_v9, 6  ;;  %v3586_v13 = vrot.slane %v7379_v61, 6 }
 0x57c   :  { %v3370_v38 = vmul.f32 %v3366_v15, %v8068_v33  ;;  %v3369_v5 = vmul.f32 %v3366_v15, %v8044_v30 }
 0x57d   :  { %3157 = vrot.lane.b32.xlu1 %v3149_v56, %s5556_s21  ;;  %3155 = vrot.lane.b32.xlu0 %v3148_v0, %s5556_s21  ;;  %v3312_v56 = vmul.f32 %v3308_v51, %v8068_v33  ;;  %v8077_v0 = vmul.f32 %v5091_v2, %v7896_v28  ;;  %v3529_v51 = vsel %vm9452_vm1, %v3527_v7, %v3528_v58  ;;  %v3978_v7 = vrot.slane %v7475_v39, 6 }
 0x57e   :  { %v3587_v9 = vsel %vm9452_vm1, %v3585_v18, %v3586_v13 }
 0x581   :  { %3267 = vrot.lane.b32.xlu1 %v3259_v43, %s5560_s25  ;;  %3265 = vrot.lane.b32.xlu0 %v3258_v16, %s5560_s25  ;;  %v3368_v43 = vmul.f32 %v3366_v15, %v8047_v57  ;;  %v3480_v16 = vmul.f32 %v7471_v63, %v8077_v0  ;;  %v5096_v15 = vsel %vm3864_vm13, 1.0, %v9656_v23  ;;  %vm4318_vm13 = vcmp.ge.s32.totalorder %v7998_v27, 9 }
 0x585   :  { %3316 = vrot.lane.b32.xlu1 %v3310_v59, %s5598_s13  ;;  %3318 = vrot.lane.b32.xlu0 %v3311_v32, %s5598_s13  ;;  %v3533_v59 = vmul.f32 %v3529_v51, %v7848_v1  ;;  %v8096_v32 = vmul.f32 %v5090_v37, %v7858_v46  ;;  %v3977_v37 = vrot.slane %v7425_v20, 6 }
 0x587   :  { %v3479_v2 = vmul.f32 %v7471_v63, %v8096_v32  ;;  %v3589_v61 = vmul.f32 %v3587_v9, %v8096_v32  ;;  %v3531_v58 = vmul.f32 %v3529_v51, %v8096_v32  ;;  %v8116_v63 = vmul.f32 %v5096_v15, %v7896_v28 }
 0x588   :  { %v3979_v39 = vsel %vm9452_vm1, %v3977_v37, %v3978_v7  ;;  %v3590_v15 = vmul.f32 %v3587_v9, %v8077_v0 }
 0x589   :  { %3320 = vrot.lane.b32.xlu1 %v3312_v56, %s5598_s13  ;;  %3378 = vrot.lane.b32.xlu0 %v3370_v38, %s5562_s27  ;;  %v3983_v7 = vmul.f32 %v3979_v39, %v7867_v45 }
 0x58d   :  { %3374 = vrot.lane.b32.xlu1 %v3368_v43, %s5562_s27  ;;  %3488 = vrot.lane.b32.xlu0 %v3480_v16, %s5591_s7  ;;  %v3591_v43 = vmul.f32 %v3587_v9, %v7848_v1  ;;  %v5095_v16 = vsel %vm3863_vm11, 1.0, %v9656_v23  ;;  %v4037_v9 = vrot.slane %v7439_v52, 6 }
 0x591   :  { %3376 = vrot.lane.b32.xlu1 %v3369_v5, %s5562_s27  ;;  %3541 = vrot.lane.b32.xlu0 %v3533_v59, %s5599_s14  ;;  %v3532_v5 = vmul.f32 %v3529_v51, %v8077_v0  ;;  %v3927_v59 = vmul.f32 %v7419_v24, %v8116_v63 }
 0x595   :  { %3486 = vrot.lane.b32.xlu1 %v3479_v2, %s5591_s7  ;;  %3595 = vrot.lane.b32.xlu0 %v3589_v61, %s5600_s15  ;;  %v8131_v2 = vmul.f32 %v5095_v16, %v7858_v46 }
 0x597   :  { %v8109_v56 = vpop.permute.xlu0 %2578  ;;  %v8111_v38 = vpop.permute.xlu1 %2580  ;;  %v3981_v51 = vmul.f32 %v3979_v39, %v8131_v2  ;;  %v3926_v16 = vmul.f32 %v7419_v24, %v8131_v2 }
 0x598   :  { %9828 = vst [vmem:[#allocation80_spill] sm:$0xff] %v8109_v56  ;;  %9829 = vst [vmem:[#allocation12_spill] sm:$0xff] %v8111_v38 }
 0x599   :  { %3537 = vrot.lane.b32.xlu1 %v3531_v58, %s5599_s14  ;;  %3599 = vrot.lane.b32.xlu0 %v3591_v43, %s5600_s15 }
 0x59b   :  { %v8123_v18 = vpop.permute.xlu0 %2582  ;;  %v8125_v13 = vpop.permute.xlu1 %2602 }
 0x59c   :  { %9830 = vst [vmem:[#allocation79_spill] sm:$0xff] %v8123_v18  ;;  %9831 = vst [vmem:[#allocation73_spill] sm:$0xff] %v8125_v13 }
 0x59d   :  { %3539 = vrot.lane.b32.xlu1 %v3532_v5, %s5599_s14  ;;  %3935 = vrot.lane.b32.xlu0 %v3927_v59, %s5590_s6  ;;  %v3982_v59 = vmul.f32 %v3979_v39, %v8116_v63 }
 0x59f   :  { %v8136_v61 = vpop.permute.xlu0 %2600  ;;  %v8138_v20 = vpop.permute.xlu1 %2626 }
 0x5a0   :  { %9832 = vst [vmem:[#allocation85_spill] sm:$0xff] %v8136_v61  ;;  %9833 = vst [vmem:[#allocation93_spill] sm:$0xff] %v8138_v20 }
 0x5a1   :  { %3597 = vrot.lane.b32.xlu1 %v3590_v15, %s5600_s15  ;;  %3987 = vrot.lane.b32.xlu0 %v3981_v51, %s5601_s16  ;;  %v4036_v15 = vrot.slane %v7430_v40, 6  ;;  %v9840_v40 = vld [vmem:[#allocation67_spill] sm:$0xff] }
 0x5a2   :  { %v4149_v39 = vrot.slane %v9840_v40, 6 }
 0x5a3   :  { %v8144_v58 = vpop.permute.xlu0 %2604  ;;  %v8146_v43 = vpop.permute.xlu1 %2648  ;;  %v4038_v24 = vsel %vm9452_vm1, %v4036_v15, %v4037_v9 }
 0x5a4   :  { %9834 = vst [vmem:[#allocation81_spill] sm:$0xff] %v8144_v58  ;;  %9835 = vst [vmem:[#allocation108_spill] sm:$0xff] %v8146_v43  ;;  %v4042_v52 = vmul.f32 %v4038_v24, %v7867_v45  ;;  %v4041_v56 = vmul.f32 %v4038_v24, %v8116_v63 }
 0x5a5   :  { %3933 = vrot.lane.b32.xlu1 %v3926_v16, %s5590_s6  ;;  %3991 = vrot.lane.b32.xlu0 %v3983_v7, %s5601_s16  ;;  %v5101_v7 = vsel %vm4091_vm15, 1.0, %v9656_v23  ;;  %vm4317_vm15 = vcmp.ge.s32.totalorder %v7985_v3, 9  ;;  %v9878_v3 = vld [vmem:[#allocation68_spill] sm:$0xff] }
 0x5a6   :  { %v8180_v20 = vmul.f32 %v5101_v7, %v7896_v28 }
 0x5a7   :  { %v8154_v37 = vpop.permute.xlu0 %2624  ;;  %v8156_v5 = vpop.permute.xlu1 %3709 }
 0x5a8   :  { %9836 = vst [vmem:[#allocation111_spill] sm:$0xff] %v8154_v37  ;;  %9837 = vst [vmem:[#allocation88_spill] sm:$0xff] %v8156_v5  ;;  %v5603_v37 = vmov 48  }
 0x5a9   :  { %3989 = vrot.lane.b32.xlu1 %v3982_v59, %s5601_s16  ;;  %4459 = vperm.xlu0 %5357, %v7570_v26   ;;  %v4148_v59 = vrot.slane %v7271_v50, 6 }
 0x5ab   :  { %v8164_v51 = vpop.permute.xlu0 %2628  ;;  %v8166_v16 = vpop.permute.xlu1 %3760  ;;  %v4150_v50 = vsel %vm9452_vm1, %v4148_v59, %v4149_v39 }
 0x5ac   :  { %9838 = vst [vmem:[#allocation98_spill] sm:$0xff] %v8164_v51  ;;  %9839 = vst [vmem:[#allocation87_spill] sm:$0xff] %v8166_v16  ;;  %v4040_v51 = vmul.f32 %v4038_v24, %v8131_v2  ;;  %v4154_v7 = vmul.f32 %v4150_v50, %v8180_v20  ;;  %v9850_v24 = vld [vmem:[#allocation83_spill] sm:$0xff] }
 0x5ad   :  { %4456 = vperm.xlu1 %5356, %v7588_v17   ;;  %4050 = vrot.lane.b32.xlu0 %v4042_v52, %s5602_s17  ;;  %v9843_v52 = vld [vmem:[#allocation95_spill] sm:$0xff] }
 0x5ae   :  { %5359 = vset.pattern.permute.xlu0 %v5603_v37  ;;  %vm4089_vm10 = vcmp.ge.s32.totalorder %v9843_v52, 6  ;;  %vm4316_vm11 = vcmp.ge.s32.totalorder %v9843_v52, 9 }
 0x5af   :  { %v8174_v9 = vpop.permute.xlu0 %2646  ;;  %v8176_v15 = vpop.permute.xlu1 %3762  ;;  %v5099_v38 = vsel %vm4089_vm10, 1.0, %v9656_v23  ;;  %vm3006_vm10 = vcmp.lt.s32.totalorder %v9843_v52, 7 }
 0x5b0   :  { %9841 = vst [vmem:[#allocation112_spill] sm:$0xff] %v8174_v9  ;;  %9842 = vst [vmem:[#allocation113_spill] sm:$0xff] %v8176_v15  ;;  %v2734_v9 = vmul.f32 %v9850_v24, %v7876_v42  ;;  %v8205_v43 = vmul.f32 0.0, %v5099_v38  ;;  %v9853_v38 = vmov 4   ;;  %v5079_v52 = vsel %vm3006_vm10, 1.0, %v9656_v23 }
 0x5b1   :  { %4046 = vrot.lane.b32.xlu1 %v4040_v51, %s5602_s17  ;;  %4518 = vperm.xlu0 %5359, %v7570_v26   ;;  %v5100_v51 = vsel %vm4090_vm12, 1.0, %v9656_v23  ;;  %v9846_v26 = vld [vmem:[#allocation123_spill] sm:$0xff] }
 0x5b2   :  { %5358 = vset.pattern.permute.xlu1 %v5603_v37  ;;  %v4205_v39 = vrot.slane %v9846_v26, 6  ;;  %v9847_v37 = vmov 0   ;;  %v8208_v58 = vmul.f32 %v5100_v51, %v7858_v46  ;;  %v4152_v13 = vmul.f32 %v4150_v50, %v8205_v43 }
 0x5b3   :  { %v8187_v40 = vpop.permute.xlu0 %2650  ;;  %v8189_v18 = vpop.permute.xlu1 %3819 }
 0x5b4   :  { %9844 = vst [vmem:[#allocation114_spill] sm:$0xff] %v8187_v40  ;;  %9845 = vst [vmem:[#allocation92_spill] sm:$0xff] %v8189_v18 }
 0x5b5   :  { %4048 = vrot.lane.b32.xlu1 %v4041_v56, %s5602_s17  ;;  %4162 = vrot.lane.b32.xlu0 %v4154_v7, %s5604_s18  ;;  %v9851_v56 = vld [vmem:[#allocation40_spill] sm:$0xff] }
 0x5b6   :  { %5360 = vset.pattern.permute.xlu0 %v9847_v37  ;;  %v4204_v61 = vrot.slane %v9851_v56, 6  ;;  %v9855_v56 = vld [vmem:[#allocation124_spill] sm:$0xff] }
 0x5b7   :  { %v8199_v59 = vpop.permute.xlu0 %3711  ;;  %v8201_v40 = vpop.permute.xlu1 %3821 }
 0x5b8   :  { %9848 = vst [vmem:[#allocation115_spill] sm:$0xff] %v8199_v59  ;;  %9849 = vst [vmem:[#allocation117_spill] sm:$0xff] %v8201_v40  ;;  %v4206_v7 = vsel %vm9452_vm1, %v4204_v61, %v4205_v39  ;;  %v4263_v39 = vrot.slane %v7534_v48, 6  ;;  %v9856_v40 = vld [vmem:[#allocation31_spill] sm:$0xff] }
 0x5b9   :  { %4515 = vperm.xlu1 %5358, %v7588_v17   ;;  %2741 = vrot.lane.b32.xlu0 %v2734_v9, %s5591_s7  ;;  %v4208_v18 = vmul.f32 %v4206_v7, %v8208_v58  ;;  %v4153_v9 = vmul.f32 %v4150_v50, %v8208_v58  ;;  %v4210_v61 = vmul.f32 %v4206_v7, %v7883_v11 }
 0x5ba   :  { %v2733_v50 = vmul.f32 %v9850_v24, %v7888_v62 }
 0x5bb   :  { %v8214_v26 = vpop.permute.xlu0 %3764  ;;  %v2363_v37 = vpop.permute.xlu1 %2362 }
 0x5bc   :  { %9852 = vst [vmem:[#allocation116_spill] sm:$0xff] %v8214_v26 }
 0x5bd   :  { %4158 = vrot.lane.b32.xlu1 %v4152_v13, %s5604_s18  ;;  %4214 = vrot.lane.b32.xlu0 %v4208_v18, %s5605_s19  ;;  %v4264_v13 = vrot.slane %v9855_v56, 6  ;;  %v2338_v18 = vmul.f32 %v9856_v40, %v7930_v53  ;;  %v9858_v56 = vld [vmem:[#allocation36_spill] sm:$0xff] }
 0x5be   :  { %5362 = vset.pattern.permute.xlu1 %v9853_v38  ;;  %v2339_v38 = vmul.f32 %v9856_v40, %v7949_v8  ;;  %v2403_v15 = vmul.f32 %v9858_v56, %v7940_v19 }
 0x5bf   :  { %v8221_v51 = vpop.permute.xlu0 %3823  ;;  %v2367_v17 = vpop.permute.xlu1 %2366  ;;  %v4265_v59 = vsel %vm9452_vm1, %v4263_v39, %v4264_v13  ;;  %v4209_v13 = vmul.f32 %v4206_v7, %v8180_v20 }
 0x5c0   :  { %9854 = vst [vmem:[#allocation97_spill] sm:$0xff] %v8221_v51  ;;  %v4268_v27 = vmul.f32 %v4265_v59, %v8180_v20 }
 0x5c1   :  { %4160 = vrot.lane.b32.xlu1 %v4153_v9, %s5604_s18  ;;  %4218 = vrot.lane.b32.xlu0 %v4210_v61, %s5605_s19  ;;  %v2781_v9 = vmul.f32 %v7755_v60, %v7876_v42 }
 0x5c3   :  { %v2365_v51 = vpop.permute.xlu0 %2364  ;;  %v8233_v16 = vpop.permute.xlu1 %2384 }
 0x5c4   :  { %9857 = vst [vmem:[#allocation13_spill] sm:$0xff] %v8233_v16  ;;  %v2368_v61 = vsel %vm1239_vm14, %v2363_v37, %v2365_v51  ;;  %v2369_v48 = vsel %vm1239_vm14, %v2365_v51, %v2367_v17  ;;  %v2402_v16 = vmul.f32 %v9858_v56, %v7949_v8  ;;  %v2735_v37 = vmul.f32 %v9850_v24, %v7803_v44  ;;  %v9867_v24 = vld [vmem:[#allocation90_spill] sm:$0xff] }
 0x5c5   :  { %v2372_v26 = vadd.f32 %v2368_v61, %v2338_v18  ;;  %v2373_v5 = vadd.f32 %v2369_v48, %v2339_v38  ;;  %2739 = vrot.lane.b32.xlu1 %v2733_v50, %s5591_s7  ;;  %2788 = vrot.lane.b32.xlu0 %v2781_v9, %s5600_s15  ;;  %v4267_v51 = vmul.f32 %v4265_v59, %v8208_v58  ;;  %v5464_v48 = vld [vmem:[#allocation2 + $0x18] sm:$0x3f] }
 0x5c6   :  { %v4269_v50 = vmul.f32 %v4265_v59, %v7883_v11  ;;  %v2782_v61 = vmul.f32 %v7755_v60, %v7803_v44  ;;  %v2873_v59 = vmul.f32 %v9867_v24, %v7907_v55 }
 0x5c7   :  { %v8248_v53 = vpop.permute.xlu0 %2388  ;;  %v8250_v49 = vpop.permute.xlu1 %2386  ;;  %v8255_v17 = vadd.f32 %v2402_v16, %v2372_v26  ;;  %v8257_v38 = vadd.f32 %v2403_v15, %v2373_v5  ;;  %v2780_v15 = vmul.f32 %v7755_v60, %v7888_v62  ;;  %v2874_v26 = vmul.f32 %v9867_v24, %v7904_v31 }
 0x5c8   :  { %9859 = vst [vmem:[#allocation118_spill] sm:$0xff] %v8248_v53  ;;  %9860 = vst [vmem:[#allocation119_spill] sm:$0xff] %v8250_v49 }
 0x5c9   :  { %9861 = vst [vmem:[#allocation120_spill] sm:$0xff] %v8255_v17  ;;  %9862 = vst [vmem:[#allocation121_spill] sm:$0xff] %v8257_v38  ;;  %2743 = vrot.lane.b32.xlu1 %v2735_v37, %s5591_s7  ;;  %4273 = vrot.lane.b32.xlu0 %v4267_v51, %s5606_s22  ;;  %v5106_v37 = vsel %vm4318_vm13, 1.0, %v9656_v23  ;;  %v9870_v51 = vld [vmem:[#allocation11_spill] sm:$0xff]  ;;  %v9874_v38 = vld [vmem:[#allocation57_spill] sm:$0xff] }
 0x5cb   :  { %v8261_v18 = vpop.permute.xlu0 %2444  ;;  %v8263_v39 = vpop.permute.xlu1 %2440 }
 0x5cc   :  { %9863 = vst [vmem:[#allocation54_spill] sm:$0xff] %v8261_v18  ;;  %9864 = vst [vmem:[#allocation35_spill] sm:$0xff] %v8263_v39  ;;  %v4375_v18 = vrot.slane %v9874_v38, 6  ;;  %v2875_v39 = vmul.f32 %v9867_v24, %v7806_v47 }
 0x5cd   :  { %4216 = vrot.lane.b32.xlu1 %v4209_v13, %s5605_s19  ;;  %4277 = vrot.lane.b32.xlu0 %v4269_v50, %s5606_s22  ;;  %v4376_v13 = vrot.slane %v9870_v51, 6 }
 0x5cf   :  { %v8269_v16 = vpop.permute.xlu0 %2462  ;;  %v8271_v5 = vpop.permute.xlu1 %2442  ;;  %v4377_v51 = vsel %vm9452_vm1, %v4375_v18, %v4376_v13  ;;  %v4432_v18 = vrot.slane %v9878_v3, 6 }
 0x5d0   :  { %9865 = vst [vmem:[#allocation53_spill] sm:$0xff] %v8269_v16  ;;  %9866 = vst [vmem:[#allocation50_spill] sm:$0xff] %v8271_v5 }
 0x5d1   :  { %2786 = vrot.lane.b32.xlu1 %v2780_v15, %s5600_s15  ;;  %2881 = vrot.lane.b32.xlu0 %v2874_v26, %s5607_s23  ;;  %v8295_v26 = vmul.f32 %v5106_v37, %v7896_v28 }
 0x5d3   :  { %v8280_v7 = vpop.permute.xlu0 %2466  ;;  %v8282_v9 = vpop.permute.xlu1 %2464  ;;  %9873 = vst [vmem:[#allocation95_spill] sm:$0xff] %v8295_v26  ;;  %v4381_v37 = vmul.f32 %v4377_v51, %v8295_v26 }
 0x5d4   :  { %9868 = vst [vmem:[#allocation55_spill] sm:$0xff] %v8280_v7  ;;  %9869 = vst [vmem:[#allocation42_spill] sm:$0xff] %v8282_v9  ;;  %v9889_v9 = vld [vmem:[#allocation17_spill] sm:$0xff] }
 0x5d5   :  { %2790 = vrot.lane.b32.xlu1 %v2782_v61, %s5600_s15  ;;  %3033 = vperm.xlu0 %5360, %v5464_v48   ;;  %v9875_v61 = vmov 3  }
 0x5d7   :  { %v8289_v50 = vpop.permute.xlu0 %2486  ;;  %v8291_v15 = vpop.permute.xlu1 %2488 }
 0x5d8   :  { %9871 = vst [vmem:[#allocation44_spill] sm:$0xff] %v8289_v50  ;;  %9872 = vst [vmem:[#allocation67_spill] sm:$0xff] %v8291_v15 }
 0x5d9   :  { %4275 = vrot.lane.b32.xlu1 %v4268_v27, %s5606_s22  ;;  %5361 = vset.pattern.permute.xlu0 %v9875_v61  ;;  %v5104_v27 = vsel %vm4316_vm11, 1.0, %v9656_v23  ;;  %v5105_v61 = vsel %vm4317_vm15, 1.0, %v9656_v23 }
 0x5da   :  { %3669 = vperm.xlu0 %5361, %v5464_v48   ;;  %v9879_v48 = vld [vmem:[#allocation63_spill] sm:$0xff]  ;;  %v8322_v5 = vmul.f32 0.0, %v5104_v27  ;;  %v8327_v7 = vmul.f32 %v5105_v61, %v7858_v46  ;;  %v9887_v61 = vld [vmem:[#allocation49_spill] sm:$0xff] }
 0x5db   :  { %v8303_v17 = vpop.permute.xlu0 %2490  ;;  %v8305_v50 = vpop.permute.xlu1 %2510  ;;  %v4431_v13 = vrot.slane %v9879_v48, 6 }
 0x5dc   :  { %9876 = vst [vmem:[#allocation123_spill] sm:$0xff] %v8303_v17  ;;  %9877 = vst [vmem:[#allocation83_spill] sm:$0xff] %v8305_v50  ;;  %v4379_v24 = vmul.f32 %v4377_v51, %v8322_v5 }
 0x5dd   :  { %2879 = vrot.lane.b32.xlu1 %v2873_v59, %s5607_s23  ;;  %9882 = vst [vmem:[#allocation31_spill] sm:$0xff] %v8322_v5  ;;  %v9883_v59 = vld [vmem:[#allocation16_spill] sm:$0xff]  ;;  %9884 = vst [vmem:[#allocation90_spill] sm:$0xff] %v8327_v7 }
 0x5de   :  { %4389 = vrot.lane.b32.xlu0 %v4381_v37, %s5608_s24  ;;  %v2921_v50 = vmul.f32 %v9883_v59, %v7904_v31  ;;  %v4433_v37 = vsel %vm9452_vm1, %v4431_v13, %v4432_v18  ;;  %v4490_v18 = vrot.slane %v9887_v61, 6  ;;  %v9896_v31 = vld [vmem:[#allocation100_spill] sm:$0xff] }
 0x5df   :  { %v8316_v17 = vpop.permute.xlu0 %2508  ;;  %v8318_v15 = vpop.permute.xlu1 %2534  ;;  %v4435_v27 = vmul.f32 %v4433_v37, %v8327_v7  ;;  %v4437_v16 = vmul.f32 %v4433_v37, %v7913_v12 }
 0x5e0   :  { %9880 = vst [vmem:[#allocation40_spill] sm:$0xff] %v8316_v17  ;;  %9881 = vst [vmem:[#allocation124_spill] sm:$0xff] %v8318_v15  ;;  %v2990_v15 = vadd.s32 512, %v9653_v21  ;;  %v4380_v17 = vmul.f32 %v4377_v51, %v8327_v7  ;;  %v2920_v51 = vmul.f32 %v9883_v59, %v7907_v55  ;;  %v3228_v55 = vrot.slane %v9824_v41, 6 }
 0x5e1   :  { %2883 = vrot.lane.b32.xlu1 %v2875_v39, %s5607_s23  ;;  %v9886_v39 = vld [vmem:[#allocation58_spill] sm:$0xff] }
 0x5e2   :  { %2928 = vrot.lane.b32.xlu0 %v2921_v50, %s5609_s3  ;;  %v4491_v50 = vrot.slane %v9886_v39, 6  ;;  %v2995_v21 = vadd.s32 7, %v2990_v15  ;;  %v9890_v39 = vld [vmem:[#allocation20_spill] sm:$0xff]  ;;  %v8362_v15 = vmul.f32 0.0, %v5079_v52 }
 0x5e3   :  { %v8332_v3 = vpop.permute.xlu0 %2512  ;;  %v8334_v48 = vpop.permute.xlu1 %3095  ;;  %v3059_v61 = vrot.slane %v9890_v39, 6  ;;  %v4436_v39 = vmul.f32 %v4433_v37, %v8295_v26 }
 0x5e4   :  { %9885 = vst [vmem:[#allocation11_spill] sm:$0xff] %v8332_v3  ;;  %v8365_v49 = vand.u32 15, %v2995_v21  ;;  %v9891_v21 = vld [vmem:[#allocation64_spill] sm:$0xff] }
 0x5e5   :  { %4385 = vrot.lane.b32.xlu1 %v4379_v24, %s5608_s24  ;;  %v3060_v24 = vrot.slane %v9889_v9, 6 }
 0x5e6   :  { %4441 = vrot.lane.b32.xlu0 %v4435_v27, %s5610_s29  ;;  %v4492_v27 = vsel %vm9452_vm1, %v4490_v18, %v4491_v50  ;;  %v2922_v18 = vmul.f32 %v9883_v59, %v7806_v47  ;;  %vm4320_vm12 = vcmp.ge.s32.totalorder %v8365_v49, 9  ;;  %vm3010_vm13 = vcmp.lt.s32.totalorder %v8365_v49, 7 }
 0x5e7   :  { %v8344_v13 = vpop.permute.xlu0 %2532  ;;  %v8346_v3 = vpop.permute.xlu1 %3099  ;;  %v4495_v9 = vmul.f32 %v4492_v27, %v7913_v12  ;;  %v5108_v7 = vsel %vm4320_vm12, 1.0, %v9656_v23  ;;  %v4494_v47 = vmul.f32 %v4492_v27, %v8295_v26  ;;  %vm3204_vm11 = vcmp.lt.s32.totalorder %v8365_v49, 10 }
 0x5e8   :  { %9888 = vst [vmem:[#allocation57_spill] sm:$0xff] %v8344_v13  ;;  %vm3425_vm15 = vcmp.lt.s32.totalorder %v8365_v49, 13  ;;  %vm3866_vm10 = vcmp.ge.s32.totalorder %v8365_v49, 3  ;;  %vm3075_vm12 = vcmask 261120  }
 0x5e9   :  { %4387 = vrot.lane.b32.xlu1 %v4380_v17, %s5608_s24  ;;  %v3061_v17 = vsel %vm9452_vm1, %v3059_v61, %v3060_v24  ;;  %v3115_v24 = vrot.slane %v9891_v21, 6  ;;  %v9892_v61 = vld [vmem:[#allocation22_spill] sm:$0xff] }
 0x5ea   :  { %4445 = vrot.lane.b32.xlu0 %v4437_v16, %s5610_s29  ;;  %v3063_v52 = vmul.f32 %v3061_v17, %v8362_v15  ;;  %v3065_v8 = vmul.f32 %v3061_v17, %v8027_v35 }
 0x5eb   :  { %v8356_v13 = vpop.permute.xlu0 %3097  ;;  %v8358_v53 = vpop.permute.xlu1 %3153 }
 0x5ed   :  { %2926 = vrot.lane.b32.xlu1 %v2920_v51, %s5609_s3  ;;  %v3116_v51 = vrot.slane %v9892_v61, 6  ;;  %v3173_v61 = vrot.slane %v7713_v25, 6 }
 0x5ee   :  { %4502 = vrot.lane.b32.xlu0 %v4495_v9, %s5611_s30 }
 0x5ef   :  { %v8370_v16 = vpop.permute.xlu0 %3155  ;;  %v8372_v50 = vpop.permute.xlu1 %3157  ;;  %v3117_v21 = vsel %vm9452_vm1, %v3115_v24, %v3116_v51 }
 0x5f1   :  { %2930 = vrot.lane.b32.xlu1 %v2922_v18, %s5609_s3  ;;  %v8391_v18 = vmul.f32 0.0, %v5108_v7 }
 0x5f2   :  { %3069 = vrot.lane.b32.xlu0 %v3063_v52, %s5597_s12  ;;  %v3174_v52 = vrot.slane %v7721_v34, 6 }
 0x5f3   :  { %v8382_v9 = vpop.permute.xlu0 %3265  ;;  %v8384_v12 = vpop.permute.xlu1 %3267  ;;  %9893 = vst [vmem:[#allocation68_spill] sm:$0xff] %v8391_v18  ;;  %v4496_v25 = vmul.f32 %v4492_v27, %v8391_v18  ;;  %v3281_v27 = vrot.slane %v9896_v31, 6  ;;  %v3121_v31 = vmul.f32 %v3117_v21, %v8018_v4  ;;  %v9900_v18 = vld [vmem:[#allocation89_spill] sm:$0xff] }
 0x5f4   :  { %v3175_v34 = vsel %vm9452_vm1, %v3173_v61, %v3174_v52 }
 0x5f5   :  { %4443 = vrot.lane.b32.xlu1 %v4436_v39, %s5610_s29  ;;  %v3120_v39 = vmul.f32 %v3117_v21, %v8027_v35  ;;  %v3177_v51 = vmul.f32 %v3175_v34, %v8027_v35 }
 0x5f6   :  { %3073 = vrot.lane.b32.xlu0 %v3065_v8, %s5597_s12  ;;  %v5083_v8 = vsel %vm3010_vm13, 1.0, %v9656_v23  ;;  %vm3296_vm13 = vcmask 236544  }
 0x5f7   :  { %v8397_v19 = vpop.permute.xlu0 %3318  ;;  %v8399_v37 = vpop.permute.xlu1 %3316  ;;  %v3030_v5 = vmul.f32 0.0, %v5083_v8  ;;  %v3280_v8 = vrot.slane %v9823_v54, 6 }
 0x5f9   :  { %4500 = vrot.lane.b32.xlu1 %v4494_v47, %s5611_s30  ;;  %v9894_v47 = vld [vmem:[#allocation71_spill] sm:$0xff]  ;;  %v3179_v61 = vmul.f32 %v3175_v34, %v3030_v5  ;;  %v3282_v5 = vsel %vm9452_vm1, %v3280_v8, %v3281_v27  ;;  %v3337_v27 = vrot.slane %v9900_v18, 6  ;;  %v3178_v8 = vmul.f32 %v3175_v34, %v8018_v4 }
 0x5fa   :  { %3127 = vrot.lane.b32.xlu0 %v3120_v39, %s5556_s21  ;;  %v3229_v26 = vrot.slane %v9894_v47, 6  ;;  %v3064_v39 = vmul.f32 %v3061_v17, %v8007_v6  ;;  %v5088_v34 = vsel %vm3204_vm11, 1.0, %v9656_v23 }
 0x5fb   :  { %v8407_v7 = vpop.permute.xlu0 %3378  ;;  %v8409_v24 = vpop.permute.xlu1 %3320 }
 0x5fd   :  { %4504 = vrot.lane.b32.xlu1 %v4496_v25, %s5611_s30  ;;  %v3230_v25 = vsel %vm9452_vm1, %v3228_v55, %v3229_v26  ;;  %v9899_v26 = vld [vmem:[#allocation29_spill] sm:$0xff] }
 0x5fe   :  { %3183 = vrot.lane.b32.xlu0 %v3177_v51, %s5555_s20  ;;  %v3119_v51 = vmul.f32 %v3117_v21, %v8007_v6  ;;  %v3233_v17 = vmul.f32 %v3230_v25, %v8047_v57  ;;  %v9902_v21 = vld [vmem:[#allocation43_spill] sm:$0xff] }
 0x5ff   :  { %v8416_v56 = vpop.permute.xlu1 %3374  ;;  %v8419_v52 = vpop.permute.xlu0 %3488 }
 0x600   :  { %9895 = vst [vmem:[#allocation63_spill] sm:$0xff] %v8419_v52  ;;  %v9903_v52 = vld [vmem:[#allocation10_spill] sm:$0xff] }
 0x601   :  { %3071 = vrot.lane.b32.xlu1 %v3064_v39, %s5597_s12  ;;  %v9898_v39 = vld [vmem:[#allocation34_spill] sm:$0xff] }
 0x602   :  { %3187 = vrot.lane.b32.xlu0 %v3179_v61, %s5555_s20  ;;  %v3284_v54 = vmul.f32 %v3282_v5, %v9898_v39  ;;  %v3336_v61 = vrot.slane %v9899_v26, 6  ;;  %v3394_v26 = vrot.slane %v9903_v52, 6  ;;  %v3232_v18 = vmul.f32 %v3230_v25, %v9898_v39 }
 0x603   :  { %v8428_v47 = vpop.permute.xlu1 %3376  ;;  %v8433_v41 = vpop.permute.xlu0 %3541 }
 0x604   :  { %9897 = vst [vmem:[#allocation16_spill] sm:$0xff] %v8433_v41 }
 0x605   :  { %3125 = vrot.lane.b32.xlu1 %v3119_v51, %s5556_s21 }
 0x606   :  { %3240 = vrot.lane.b32.xlu0 %v3233_v17, %s5560_s25  ;;  %v3286_v17 = vmul.f32 %v3282_v5, %v8044_v30 }
 0x607   :  { %v8439_v55 = vpop.permute.xlu1 %3486  ;;  %v8445_v51 = vpop.permute.xlu0 %3595 }
 0x608   :  { %9901 = vst [vmem:[#allocation58_spill] sm:$0xff] %v8445_v51  ;;  %v3285_v51 = vmul.f32 %v3282_v5, %v8047_v57 }
 0x609   :  { %3129 = vrot.lane.b32.xlu1 %v3121_v31, %s5556_s21  ;;  %v3395_v31 = vrot.slane %v9902_v21, 6  ;;  %v9906_v21 = vld [vmem:[#allocation91_spill] sm:$0xff]  ;;  %s5612_s21 = smov 90  }
 0x60a   :  { %3290 = vrot.lane.b32.xlu0 %v3284_v54, %s5598_s13  ;;  %v3338_v54 = vsel %vm9452_vm1, %v3336_v61, %v3337_v27  ;;  %v3234_v61 = vmul.f32 %v3230_v25, %v8044_v30  ;;  %v3224_v27 = vmul.f32 0.0, %v5088_v34 }
 0x60b   :  { %v8455_v41 = vpop.permute.xlu1 %3537  ;;  %v3341_v4 = vmul.f32 %v3338_v54, %v8044_v30 }
 0x60c   :  { %9904 = vst [vmem:[#allocation49_spill] sm:$0xff] %v8455_v41  ;;  %v9908_v41 = vld [vmem:[#allocation51_spill] sm:$0xff] }
 0x60d   :  { %3185 = vrot.lane.b32.xlu1 %v3178_v8, %s5555_s20  ;;  %v8460_v8 = vpop.permute.xlu0 %3599 }
 0x60e   :  { %3294 = vrot.lane.b32.xlu0 %v3286_v17, %s5598_s13  ;;  %9905 = vst [vmem:[#allocation17_spill] sm:$0xff] %v8460_v8  ;;  %v3396_v17 = vsel %vm9452_vm1, %v3394_v26, %v3395_v31  ;;  %v3449_v31 = vrot.slane %v9908_v41, 6  ;;  %v9909_v26 = vld [vmem:[#allocation94_spill] sm:$0xff] }
 0x60f   :  { %v3398_v52 = vmul.f32 %v3396_v17, %v8044_v30  ;;  %v8467_v39 = vpop.permute.xlu1 %3539  ;;  %v3502_v25 = vrot.slane %v9909_v26, 6  ;;  %v3501_v30 = vrot.slane %v9826_v36, 6 }
 0x611   :  { %3238 = vrot.lane.b32.xlu1 %v3232_v18, %s5560_s25  ;;  %v3450_v18 = vrot.slane %v9906_v21, 6  ;;  %v8472_v8 = vpop.permute.xlu0 %3935  ;;  %v9911_v21 = vld [vmem:[#allocation125_spill] sm:$0xff] }
 0x612   :  { %3348 = vrot.lane.b32.xlu0 %v3341_v4, %s5562_s27  ;;  %9907 = vst [vmem:[#allocation64_spill] sm:$0xff] %v8472_v8  ;;  %v3400_v4 = vmul.f32 %v3396_v17, %v3224_v27  ;;  %v3503_v27 = vsel %vm9452_vm1, %v3501_v30, %v3502_v25  ;;  %v9915_v30 = vld [vmem:[#allocation101_spill] sm:$0xff] }
 0x613   :  { %v3451_v34 = vsel %vm9452_vm1, %v3449_v31, %v3450_v18  ;;  %v3505_v36 = vmul.f32 %v3503_v27, %v9911_v21  ;;  %v3399_v31 = vmul.f32 %v3396_v17, %v8068_v33  ;;  %v3507_v25 = vmul.f32 %v3503_v27, %v8077_v0 }
 0x614   :  { %v3454_v5 = vmul.f32 %v3451_v34, %v8096_v32 }
 0x615   :  { %3242 = vrot.lane.b32.xlu1 %v3234_v61, %s5560_s25  ;;  %v3340_v61 = vmul.f32 %v3338_v54, %v8047_v57  ;;  %v8486_v41 = vpop.permute.xlu0 %3987  ;;  %v9913_v57 = vld [vmem:[#allocation23_spill] sm:$0xff]  ;;  %s5613_s25 = smov 87  }
 0x616   :  { %3404 = vrot.lane.b32.xlu0 %v3398_v52, %s5561_s26  ;;  %v8481_v52 = vpop.permute.xlu1 %3597  ;;  %9910 = vst [vmem:[#allocation22_spill] sm:$0xff] %v8486_v41 }
 0x619   :  { %3292 = vrot.lane.b32.xlu1 %v3285_v51, %s5598_s13  ;;  %v3342_v51 = vmul.f32 %v3338_v54, %v8068_v33  ;;  %v8497_v26 = vpop.permute.xlu0 %3991  ;;  %v9916_v54 = vld [vmem:[#allocation96_spill] sm:$0xff]  ;;  %v3453_v33 = vmul.f32 %v3451_v34, %v9911_v21 }
 0x61a   :  { %3408 = vrot.lane.b32.xlu0 %v3400_v4, %s5561_s26  ;;  %v8492_v18 = vpop.permute.xlu1 %3933  ;;  %v3558_v4 = vrot.slane %v9913_v57, 6  ;;  %9914 = vst [vmem:[#allocation100_spill] sm:$0xff] %v8497_v26 }
 0x61b   :  { %9912 = vst [vmem:[#allocation71_spill] sm:$0xff] %v8492_v18 }
 0x61d   :  { %3346 = vrot.lane.b32.xlu1 %v3340_v61, %s5562_s27  ;;  %v3557_v61 = vrot.slane %v9915_v30, 6 }
 0x61e   :  { %3461 = vrot.lane.b32.xlu0 %v3454_v5, %s5591_s7  ;;  %v3615_v5 = vrot.slane %v9916_v54, 6  ;;  %v8508_v17 = vpop.permute.xlu1 %3989 }
 0x61f   :  { %9918 = vst [vmem:[#allocation34_spill] sm:$0xff] %v8508_v17 }
 0x621   :  { %3350 = vrot.lane.b32.xlu1 %v3342_v51, %s5562_s27  ;;  %v3559_v51 = vsel %vm9452_vm1, %v3557_v61, %v3558_v4  ;;  %v3455_v4 = vmul.f32 %v3451_v34, %v8077_v0  ;;  %s5615_s27 = smov 81  }
 0x622   :  { %3511 = vrot.lane.b32.xlu0 %v3505_v36, %s5599_s14  ;;  %v9917_v36 = vld [vmem:[#allocation99_spill] sm:$0xff]  ;;  %v3562_v30 = vmul.f32 %v3559_v51, %v8077_v0  ;;  %v3561_v34 = vmul.f32 %v3559_v51, %v8096_v32 }
 0x623   :  { %v3616_v57 = vrot.slane %v9917_v36, 6 }
 0x625   :  { %3406 = vrot.lane.b32.xlu1 %v3399_v31, %s5561_s26  ;;  %v5093_v31 = vsel %vm3425_vm15, 1.0, %v9656_v23  ;;  %s5614_s26 = smov 84   ;;  %vm4093_vm15 = vcmp.ge.s32.totalorder %v8365_v49, 6 }
 0x626   :  { %3515 = vrot.lane.b32.xlu0 %v3507_v25, %s5599_s14  ;;  %v3617_v25 = vsel %vm9452_vm1, %v3615_v5, %v3616_v57  ;;  %v3445_v36 = vmul.f32 0.0, %v5093_v31  ;;  %v3563_v31 = vmul.f32 %v3559_v51, %v7848_v1 }
 0x627   :  { %v3619_v21 = vmul.f32 %v3617_v25, %v8077_v0 }
 0x628   :  { %v8510_v41 = vpop.permute.xlu0 %4459  ;;  %v3621_v5 = vmul.f32 %v3617_v25, %v3445_v36 }
 0x629   :  { %9919 = vst [vmem:[#allocation29_spill] sm:$0xff] %v8510_v41  ;;  %3459 = vrot.lane.b32.xlu1 %v3453_v33, %s5591_s7  ;;  %v3506_v33 = vmul.f32 %v3503_v27, %v8096_v32 }
 0x62a   :  { %3569 = vrot.lane.b32.xlu0 %v3562_v30, %s5600_s15 }
 0x62c   :  { %v8518_v61 = vpop.permute.xlu0 %4050  ;;  %v8520_v54 = vpop.permute.xlu1 %4456 }
 0x62d   :  { %9920 = vst [vmem:[#allocation89_spill] sm:$0xff] %v8518_v61  ;;  %9921 = vst [vmem:[#allocation43_spill] sm:$0xff] %v8520_v54  ;;  %3463 = vrot.lane.b32.xlu1 %v3455_v4, %s5591_s7 }
 0x62e   :  { %3625 = vrot.lane.b32.xlu0 %v3619_v21, %s5612_s21  ;;  %v3620_v21 = vmul.f32 %v3617_v25, %v7848_v1 }
 0x630   :  { %v8525_v41 = vpop.permute.xlu0 %4518  ;;  %v8527_v30 = vpop.permute.xlu1 %4046 }
 0x631   :  { %9922 = vst [vmem:[#allocation10_spill] sm:$0xff] %v8525_v41  ;;  %9923 = vst [vmem:[#allocation91_spill] sm:$0xff] %v8527_v30  ;;  %3513 = vrot.lane.b32.xlu1 %v3506_v33, %s5599_s14 }
 0x632   :  { %3629 = vrot.lane.b32.xlu0 %v3621_v5, %s5612_s21 }
 0x634   :  { %v8531_v57 = vpop.permute.xlu0 %4162  ;;  %v8533_v0 = vpop.permute.xlu1 %4048 }
 0x635   :  { %9924 = vst [vmem:[#allocation51_spill] sm:$0xff] %v8531_v57  ;;  %9925 = vst [vmem:[#allocation94_spill] sm:$0xff] %v8533_v0  ;;  %3567 = vrot.lane.b32.xlu1 %v3561_v34, %s5600_s15 }
 0x638   :  { %v8537_v4 = vpop.permute.xlu0 %2741  ;;  %v8539_v27 = vpop.permute.xlu1 %4515 }
 0x639   :  { %9926 = vst [vmem:[#allocation125_spill] sm:$0xff] %v8537_v4  ;;  %9927 = vst [vmem:[#allocation23_spill] sm:$0xff] %v8539_v27  ;;  %3571 = vrot.lane.b32.xlu1 %v3563_v31, %s5600_s15 }
 0x63c   :  { %v8543_v36 = vpop.permute.xlu0 %4214  ;;  %v8545_v33 = vpop.permute.xlu1 %4158 }
 0x63d   :  { %9928 = vst [vmem:[#allocation101_spill] sm:$0xff] %v8543_v36  ;;  %9929 = vst [vmem:[#allocation96_spill] sm:$0xff] %v8545_v33  ;;  %3627 = vrot.lane.b32.xlu1 %v3620_v21, %s5612_s21  ;;  %v9942_v33 = vld [vmem:[#allocation37_spill] sm:$0xff] }
 0x640   :  { %v8547_v32 = vpop.permute.xlu0 %4218  ;;  %v8549_v5 = vpop.permute.xlu1 %4160 }
 0x641   :  { %9930 = vst [vmem:[#allocation99_spill] sm:$0xff] %v8547_v32  ;;  %9931 = vst [vmem:[#allocation126_spill] sm:$0xff] %v8549_v5  ;;  %v3671_v5 = vrot.slane %v9942_v33, 6 }
 0x644   :  { %v8551_v34 = vpop.permute.xlu0 %2788  ;;  %v8553_v51 = vpop.permute.xlu1 %2739 }
 0x645   :  { %9932 = vst [vmem:[#allocation127_spill] sm:$0xff] %v8551_v34  ;;  %9933 = vst [vmem:[#allocation128_spill] sm:$0xff] %v8553_v51 }
 0x648   :  { %v8555_v57 = vpop.permute.xlu0 %4273  ;;  %v8557_v27 = vpop.permute.xlu1 %2743 }
 0x649   :  { %9934 = vst [vmem:[#allocation129_spill] sm:$0xff] %v8555_v57  ;;  %9935 = vst [vmem:[#allocation130_spill] sm:$0xff] %v8557_v27  ;;  %v9943_v57 = vld [vmem:[#allocation102_spill] sm:$0xff] }
 0x64a   :  { %v3725_v61 = vrot.slane %v9943_v57, 6 }
 0x64c   :  { %v8559_v31 = vpop.permute.xlu0 %4277  ;;  %v8561_v1 = vpop.permute.xlu1 %4216 }
 0x64d   :  { %9936 = vst [vmem:[#allocation131_spill] sm:$0xff] %v8559_v31  ;;  %9937 = vst [vmem:[#allocation132_spill] sm:$0xff] %v8561_v1  ;;  %v3724_v31 = vrot.slane %v7288_v14, 6 }
 0x650   :  { %v8563_v25 = vpop.permute.xlu0 %2881  ;;  %v8565_v36 = vpop.permute.xlu1 %2786 }
 0x651   :  { %9938 = vst [vmem:[#allocation133_spill] sm:$0xff] %v8563_v25  ;;  %9939 = vst [vmem:[#allocation134_spill] sm:$0xff] %v8565_v36 }
 0x654   :  { %v8567_v21 = vpop.permute.xlu0 %3033  ;;  %v8569_v32 = vpop.permute.xlu1 %2790 }
 0x655   :  { %9940 = vst [vmem:[#allocation135_spill] sm:$0xff] %v8569_v32  ;;  %v3726_v32 = vsel %vm9452_vm1, %v3724_v31, %v3725_v61 }
 0x656   :  { %v3728_v14 = vmul.f32 0.0, %v3726_v32  ;;  %v3729_v31 = vmul.f32 %v3726_v32, %v7858_v46 }
 0x658   :  { %v8571_v41 = vpop.permute.xlu1 %4275 }
 0x659   :  { %9941 = vst [vmem:[#allocation136_spill] sm:$0xff] %v8571_v41  ;;  %v3670_v34 = vpop.permute.xlu0 %3669 }
 0x65a   :  { %v3672_v27 = vrot.slane %v3670_v34, 6 }
 0x65c   :  { %v3673_v1 = vsel %vm9452_vm1, %v3671_v5, %v3672_v27  ;;  %v8577_v51 = vpop.permute.xlu1 %2879  ;;  %v9948_v5 = vld [vmem:[#allocation103_spill] sm:$0xff] }
 0x65d   :  { %9944 = vst [vmem:[#allocation37_spill] sm:$0xff] %v8577_v51  ;;  %v8579_v25 = vpop.permute.xlu0 %4389  ;;  %v3676_v36 = vmul.f32 %v3673_v1, %v7858_v46  ;;  %v3675_v4 = vmul.f32 0.0, %v3673_v1  ;;  %v3677_v27 = vmul.f32 %v3673_v1, %v7896_v28  ;;  %v3780_v34 = vrot.slane %v9948_v5, 6  ;;  %v9952_v1 = vld [vmem:[#allocation104_spill] sm:$0xff] }
 0x65e   :  { %9945 = vst [vmem:[#allocation102_spill] sm:$0xff] %v8579_v25  ;;  %v9949_v25 = vld [vmem:[#allocation28_spill] sm:$0xff] }
 0x65f   :  { %3683 = vrot.lane.b32.xlu0 %v3676_v36, %s5588_s5  ;;  %3681 = vrot.lane.b32.xlu1 %v3675_v4, %s5588_s5  ;;  %v3781_v51 = vrot.slane %v9949_v25, 6  ;;  %v3730_v4 = vmul.f32 %v3726_v32, %v7896_v28 }
 0x660   :  { %v8585_v41 = vpop.permute.xlu1 %2883 }
 0x661   :  { %9946 = vst [vmem:[#allocation137_spill] sm:$0xff] %v8585_v41  ;;  %v8587_v57 = vpop.permute.xlu0 %2928 }
 0x662   :  { %9947 = vst [vmem:[#allocation138_spill] sm:$0xff] %v8587_v57  ;;  %v9953_v57 = vld [vmem:[#allocation60_spill] sm:$0xff] }
 0x663   :  { %3734 = vrot.lane.b32.xlu0 %v3728_v14, %s5595_s10  ;;  %3685 = vrot.lane.b32.xlu1 %v3677_v27, %s5588_s5  ;;  %v3839_v14 = vrot.slane %v9952_v1, 6  ;;  %v3782_v27 = vsel %vm9452_vm1, %v3780_v34, %v3781_v51  ;;  %v3840_v5 = vrot.slane %v9953_v57, 6  ;;  %v9958_v34 = vld [vmem:[#allocation105_spill] sm:$0xff] }
 0x664   :  { %v8594_v61 = vpop.permute.xlu1 %4385  ;;  %v3786_v57 = vmul.f32 %v3782_v27, %v7833_v22  ;;  %v3895_v1 = vrot.slane %v9958_v34, 6 }
 0x665   :  { %9950 = vst [vmem:[#allocation103_spill] sm:$0xff] %v8594_v61  ;;  %v8596_v36 = vpop.permute.xlu0 %4441  ;;  %v3784_v61 = vmul.f32 %v3782_v27, %v7858_v46  ;;  %v3841_v32 = vsel %vm9452_vm1, %v3839_v14, %v3840_v5  ;;  %v3948_v5 = vrot.slane %v7755_v60, 6 }
 0x666   :  { %9951 = vst [vmem:[#allocation28_spill] sm:$0xff] %v8596_v36  ;;  %v3785_v36 = vmul.f32 %v3782_v27, %v7896_v28  ;;  %v3843_v51 = vmul.f32 %v3841_v32, %v7896_v28  ;;  %v3844_v14 = vmul.f32 %v3841_v32, %v7833_v22  ;;  %v9961_v28 = vld [vmem:[#allocation107_spill] sm:$0xff] }
 0x667   :  { %3738 = vrot.lane.b32.xlu0 %v3730_v4, %s5595_s10  ;;  %3736 = vrot.lane.b32.xlu1 %v3729_v31, %s5595_s10  ;;  %s5618_s10 = smov [#allocation5]  }
 0x668   :  { %v8605_v41 = vpop.permute.xlu1 %4387 }
 0x669   :  { %9954 = vst [vmem:[#allocation104_spill] sm:$0xff] %v8605_v41  ;;  %v8607_v25 = vpop.permute.xlu0 %4445 }
 0x66a   :  { %9955 = vst [vmem:[#allocation60_spill] sm:$0xff] %v8607_v25  ;;  %v9959_v25 = vld [vmem:[#allocation109_spill] sm:$0xff] }
 0x66b   :  { %3792 = vrot.lane.b32.xlu0 %v3785_v36, %s5596_s11  ;;  %3790 = vrot.lane.b32.xlu1 %v3784_v61, %s5596_s11  ;;  %v3896_v41 = vrot.slane %v9959_v25, 6  ;;  %v3845_v36 = vmul.f32 0.0, %v3841_v32 }
 0x66c   :  { %v8614_v4 = vpop.permute.xlu1 %2926 }
 0x66d   :  { %9956 = vst [vmem:[#allocation139_spill] sm:$0xff] %v8614_v4  ;;  %v8616_v31 = vpop.permute.xlu0 %4502  ;;  %v3897_v27 = vsel %vm9452_vm1, %v3895_v1, %v3896_v41  ;;  %v9965_v1 = vld [vmem:[#allocation110_spill] sm:$0xff] }
 0x66e   :  { %9957 = vst [vmem:[#allocation140_spill] sm:$0xff] %v8616_v31  ;;  %v3949_v31 = vrot.slane %v9961_v28, 6  ;;  %v3901_v32 = vmul.f32 %v3897_v27, %v8116_v63 }
 0x66f   :  { %3849 = vrot.lane.b32.xlu0 %v3843_v51, %s5613_s25  ;;  %3794 = vrot.lane.b32.xlu1 %v3786_v57, %s5596_s11  ;;  %v3900_v57 = vmul.f32 %v3897_v27, %v8131_v2  ;;  %s5023_s11 = sshll.u32 %s5618_s10, 4  ;;  %s5024_s11 = int_to_ptr.vmem [resolvable:$true] %s5023_s11 }
 0x670   :  { %v8623_v46 = vpop.permute.xlu1 %2930  ;;  %v3950_v30 = vsel %vm9452_vm1, %v3948_v5, %v3949_v31  ;;  %p5497_p9 = scmp.lt.s32.totalorder %s5024_s11, %s5024_s11 }
 0x671   :  { %9960 = vst [vmem:[#allocation105_spill] sm:$0xff] %v8623_v46  ;;  %v8625_v61 = vpop.permute.xlu0 %3069  ;;  %v9963_v46 = vld [vmem:[#allocation33_spill] sm:$0xff] }
 0x672   :  { %v3899_v4 = vmul.f32 %v3897_v27, %v9963_v46  ;;  %v3952_v41 = vmul.f32 %v3950_v30, %v9963_v46  ;;  %v9968_v46 = vld [vmem:[#allocation61_spill] sm:$0xff] }
 0x673   :  { %3853 = vrot.lane.b32.xlu0 %v3845_v36, %s5613_s25  ;;  %3851 = vrot.lane.b32.xlu1 %v3844_v14, %s5613_s25  ;;  %v4008_v36 = vrot.slane %v9965_v1, 6  ;;  %v9966_v14 = vld [vmem:[#allocation45_spill] sm:$0xff]  ;;  %v4067_v27 = vrot.slane %v9968_v46, 6 }
 0x674   :  { %v8631_v25 = vpop.permute.xlu1 %4443  ;;  %v4007_v31 = vrot.slane %v9966_v14, 6 }
 0x675   :  { %9962 = vst [vmem:[#allocation109_spill] sm:$0xff] %v8631_v25  ;;  %v8633_v51 = vpop.permute.xlu0 %3073 }
 0x677   :  { %3907 = vrot.lane.b32.xlu0 %v3900_v57, %s5590_s6  ;;  %3905 = vrot.lane.b32.xlu1 %v3899_v4, %s5590_s6  ;;  %v3954_v4 = vmul.f32 %v3950_v30, %v8116_v63  ;;  %v3953_v57 = vmul.f32 %v3950_v30, %v8131_v2  ;;  %v5098_v30 = vsel %vm3866_vm10, 1.0, %v9656_v23  ;;  %vm3517_vm10 = vcmask 211968  }
 0x678   :  { %v8640_v60 = vpop.permute.xlu1 %4500 }
 0x679   :  { %9964 = vst [vmem:[#allocation107_spill] sm:$0xff] %v8640_v60  ;;  %v8642_v22 = vpop.permute.xlu0 %3127 }
 0x67b   :  { %3958 = vrot.lane.b32.xlu0 %v3952_v41, %s5601_s16  ;;  %3909 = vrot.lane.b32.xlu1 %v3901_v32, %s5590_s6  ;;  %v4009_v41 = vsel %vm9452_vm1, %v4007_v31, %v4008_v36  ;;  %v9969_v32 = vld [vmem:[#allocation27_spill] sm:$0xff] }
 0x67c   :  { %v8650_v5 = vpop.permute.xlu1 %4504  ;;  %v4066_v1 = vrot.slane %v9969_v32, 6  ;;  %v4011_v25 = vmul.f32 %v4009_v41, %v8131_v2  ;;  %v4013_v31 = vmul.f32 %v4009_v41, %v7867_v45  ;;  %v3891_v32 = vmul.f32 0.0, %v5098_v30 }
 0x67d   :  { %9967 = vst [vmem:[#allocation33_spill] sm:$0xff] %v8650_v5  ;;  %v3184_v28 = vpop.permute.xlu0 %3183  ;;  %v4012_v5 = vmul.f32 %v4009_v41, %v8116_v63  ;;  %v3035_v41 = vrot.slane %v9856_v40, 6 }
 0x67f   :  { %3962 = vrot.lane.b32.xlu0 %v3954_v4, %s5601_s16  ;;  %3960 = vrot.lane.b32.xlu1 %v3953_v57, %s5601_s16  ;;  %v4068_v4 = vsel %vm9452_vm1, %v4066_v1, %v4067_v27  ;;  %v3036_v27 = vrot.slane %v8567_v21, 6  ;;  %v9971_v1 = vld [vmem:[#allocation48_spill] sm:$0xff] }
 0x680   :  { %v3072_v14 = vpop.permute.xlu1 %3071  ;;  %v4070_v36 = vmul.f32 %v4068_v4, %v8116_v63  ;;  %v4072_v17 = vmul.f32 %v4068_v4, %v3891_v32  ;;  %v4122_v63 = vrot.slane %v9971_v1, 6  ;;  %v2664_v32 = vmul.f32 %v7303_v10, %v7811_v29 }
 0x681   :  { %v8660_v60 = vpop.permute.xlu0 %3187  ;;  %v3076_v40 = vsel %vm3075_vm12, %v8625_v61, %v3072_v14 }
 0x683   :  { %4019 = vrot.lane.b32.xlu0 %v4012_v5, %s5602_s17  ;;  %4017 = vrot.lane.b32.xlu1 %v4011_v25, %s5602_s17  ;;  %v4071_v5 = vmul.f32 %v4068_v4, %v7867_v45  ;;  %v9970_v25 = vld [vmem:[#allocation47_spill] sm:$0xff]  ;;  %v3037_v4 = vsel %vm9452_vm1, %v3035_v41, %v3036_v27  ;;  %v3077_v41 = vsel %vm3075_vm12, %v3072_v14, %v8633_v51 }
 0x684   :  { %v3126_v57 = vpop.permute.xlu1 %3125  ;;  %v4123_v26 = vrot.slane %v9970_v25, 6  ;;  %v2666_v25 = vmul.f32 0.0, %v7303_v10  ;;  %v3039_v29 = vmul.f32 %v3037_v4, %v8362_v15 }
 0x685   :  { %v8668_v46 = vpop.permute.xlu0 %3240 }
 0x686   :  { %v4124_v45 = vsel %vm9452_vm1, %v4122_v63, %v4123_v26  ;;  %v3131_v26 = vsel %vm1239_vm14, %v3126_v57, %v8642_v22  ;;  %v3080_v27 = vadd.f32 %v3076_v40, %v3039_v29  ;;  %v3040_v57 = vmul.f32 %v3037_v4, %v8007_v6 }
 0x687   :  { %4076 = vrot.lane.b32.xlu0 %v4070_v36, %s5614_s26  ;;  %4021 = vrot.lane.b32.xlu1 %v4013_v31, %s5602_s17  ;;  %v9972_v36 = vld [vmem:[#allocation32_spill] sm:$0xff]  ;;  %v2711_v4 = vmul.f32 %v9942_v33, %v7876_v42 }
 0x688   :  { %v3130_v2 = vpop.permute.xlu1 %3129  ;;  %v2665_v31 = vmul.f32 %v7303_v10, %v9972_v36  ;;  %v4127_v10 = vmul.f32 %v4124_v45, %v8208_v58  ;;  %v3135_v8 = vadd.f32 %v3131_v26, %v3080_v27 }
 0x689   :  { %v3291_v0 = vpop.permute.xlu0 %3290  ;;  %v3132_v40 = vsel %vm1239_vm14, %v8642_v22, %v3130_v2 }
 0x68b   :  { %4080 = vrot.lane.b32.xlu0 %v4072_v17, %s5614_s26  ;;  %4078 = vrot.lane.b32.xlu1 %v4071_v5, %s5614_s26  ;;  %v4126_v5 = vmul.f32 %v4124_v45, %v8205_v43 }
 0x68c   :  { %v3186_v54 = vpop.permute.xlu1 %3185 }
 0x68d   :  { %v3295_v30 = vpop.permute.xlu0 %3294  ;;  %v3189_v61 = vsel %vm9450_vm2, %v3184_v28, %v3186_v54  ;;  %v3081_v28 = vadd.f32 %v3077_v41, %v3040_v57 }
 0x68e   :  { %v3193_v14 = vadd.f32 %v3189_v61, %v3135_v8  ;;  %v2712_v61 = vmul.f32 %v9942_v33, %v7803_v44 }
 0x68f   :  { %2672 = vrot.lane.b32.xlu0 %v2665_v31, %s5563_s28  ;;  %2670 = vrot.lane.b32.xlu1 %v2664_v32, %s5563_s28  ;;  %v4128_v31 = vmul.f32 %v4124_v45, %v8180_v20  ;;  %v9973_v32 = vld [vmem:[#allocation14_spill] sm:$0xff]  ;;  %v3136_v26 = vadd.f32 %v3132_v40, %v3081_v28 }
 0x690   :  { %v3239_v17 = vpop.permute.xlu1 %3238  ;;  %v4176_v18 = vrot.slane %v9973_v32, 6 }
 0x691   :  { %v3349_v21 = vpop.permute.xlu0 %3348  ;;  %v3244_v51 = vsel %vm1809_vm7, %v3239_v17, %v8668_v46  ;;  %v2710_v17 = vmul.f32 %v9942_v33, %v7888_v62 }
 0x692   :  { %v3248_v27 = vadd.f32 %v3244_v51, %v3193_v14  ;;  %v9975_v51 = vld [vmem:[#allocation65_spill] sm:$0xff]  ;;  %v9976_v14 = vld [vmem:[#allocation46_spill] sm:$0xff] }
 0x693   :  { %4132 = vrot.lane.b32.xlu0 %v4126_v5, %s5604_s18  ;;  %2674 = vrot.lane.b32.xlu1 %v2666_v25, %s5563_s28  ;;  %v4175_v5 = vrot.slane %v9883_v59, 6  ;;  %v3190_v59 = vsel %vm9450_vm2, %v3186_v54, %v8660_v60  ;;  %v4235_v28 = vrot.slane %v9975_v51, 6  ;;  %v9980_v51 = vld [vmem:[#allocation84_spill] sm:$0xff]  ;;  %vm4191_vm2 = vcmask 138240   ;;  %s5616_s28 = smov 78  }
 0x694   :  { %v3243_v63 = vpop.permute.xlu1 %3242  ;;  %v3194_v54 = vadd.f32 %v3190_v59, %v3136_v26  ;;  %v9978_v26 = vld [vmem:[#allocation52_spill] sm:$0xff] }
 0x695   :  { %v3405_v36 = vpop.permute.xlu0 %3404  ;;  %v4177_v29 = vsel %vm9452_vm1, %v4175_v5, %v4176_v18  ;;  %v3245_v8 = vsel %vm1809_vm7, %v8668_v46, %v3243_v63 }
 0x696   :  { %v4179_v41 = vmul.f32 %v4177_v29, %v8205_v43  ;;  %v3249_v18 = vadd.f32 %v3245_v8, %v3194_v54  ;;  %v4181_v57 = vmul.f32 %v4177_v29, %v8180_v20  ;;  %v4180_v5 = vmul.f32 %v4177_v29, %v8208_v58  ;;  %v9974_v43 = vld [vmem:[#allocation21_spill] sm:$0xff] }
 0x697   :  { %4136 = vrot.lane.b32.xlu0 %v4128_v31, %s5604_s18  ;;  %4134 = vrot.lane.b32.xlu1 %v4127_v10, %s5604_s18  ;;  %v3047_v33 = vrot.slane %v9974_v43, 6  ;;  %v2757_v29 = vmul.f32 %v9874_v38, %v7888_v62 }
 0x698   :  { %v3293_v45 = vpop.permute.xlu1 %3292 }
 0x699   :  { %v3297_v25 = vsel %vm3296_vm13, %v3291_v0, %v3293_v45  ;;  %v3298_v22 = vsel %vm3296_vm13, %v3293_v45, %v3295_v30  ;;  %v3409_v2 = vpop.permute.xlu0 %3408  ;;  %v4234_v45 = vrot.slane %v9976_v14, 6  ;;  %v9981_v14 = vld [vmem:[#allocation30_spill] sm:$0xff] }
 0x69a   :  { %v3301_v60 = vadd.f32 %v3297_v25, %v3248_v27  ;;  %v3302_v46 = vadd.f32 %v3298_v22, %v3249_v18  ;;  %v9977_v25 = vld [vmem:[#allocation39_spill] sm:$0xff]  ;;  %v3046_v27 = vrot.slane %v9978_v26, 6  ;;  %v2759_v18 = vmul.f32 %v9874_v38, %v7803_v44 }
 0x69b   :  { %2718 = vrot.lane.b32.xlu0 %v2711_v4, %s5591_s7  ;;  %2716 = vrot.lane.b32.xlu1 %v2710_v17, %s5591_s7  ;;  %vm2685_vm11 = vcmp.ge.s32.totalorder %v9977_v25, 2  ;;  %v2758_v17 = vmul.f32 %v9874_v38, %v7876_v42  ;;  %v5103_v38 = vsel %vm4093_vm15, 1.0, %v9656_v23  ;;  %vm3911_vm15 = vcmask 949248  }
 0x69c   :  { %v3347_v0 = vpop.permute.xlu1 %3346 }
 0x69d   :  { %v3352_v30 = vsel %vm1995_vm4, %v3347_v0, %v3349_v21  ;;  %v3462_v10 = vpop.permute.xlu0 %3461  ;;  %v3102_v0 = vsel %vm3075_vm12, %v8356_v13, %v8346_v3 }
 0x69e   :  { %v3356_v31 = vadd.f32 %v3352_v30, %v3301_v60  ;;  %v5074_v60 = vsel %vm2685_vm11, 1.0, %v9656_v23  ;;  %vm2769_vm11 = vcmask 474112  }
 0x69f   :  { %4185 = vrot.lane.b32.xlu0 %v4179_v41, %s5605_s19  ;;  %2720 = vrot.lane.b32.xlu1 %v2712_v61, %s5591_s7 }
 0x6a0   :  { %v3351_v63 = vpop.permute.xlu1 %3350 }
 0x6a1   :  { %v3353_v32 = vsel %vm1995_vm4, %v3349_v21, %v3351_v63  ;;  %v3512_v4 = vpop.permute.xlu0 %3511 }
 0x6a2   :  { %v3357_v40 = vadd.f32 %v3353_v32, %v3302_v46 }
 0x6a3   :  { %4189 = vrot.lane.b32.xlu0 %v4181_v57, %s5605_s19  ;;  %4187 = vrot.lane.b32.xlu1 %v4180_v5, %s5605_s19  ;;  %s5492_s19 = scalar_lea.vmem %s5024_s11, 512 }
 0x6a4   :  { %v3407_v59 = vpop.permute.xlu1 %3406  ;;  %p5493_p8 = scmp.ne.s32.totalorder %s5024_s11, %s5492_s19  ;;  %p5498_p10 = scmp.lt.s32.totalorder %s5492_s19, %s5492_s19 }
 0x6a5   :  { %v3410_v21 = vsel %vm1902_vm8, %v3405_v36, %v3407_v59  ;;  %v3411_v22 = vsel %vm1902_vm8, %v3407_v59, %v3409_v2  ;;  %v3048_v36 = vsel %vm9452_vm1, %v3046_v27, %v3047_v33  ;;  %v4236_v2 = vsel %vm9452_vm1, %v4234_v45, %v4235_v28 }
 0x6a6   :  { %v3414_v8 = vadd.f32 %v3410_v21, %v3356_v31  ;;  %v3415_v54 = vadd.f32 %v3411_v22, %v3357_v40  ;;  %vm2722_vm8 = vcmask 998400   ;;  %v3052_v30 = vmul.f32 %v3048_v36, %v8027_v35  ;;  %v3516_v31 = vpop.permute.xlu0 %3515  ;;  %v9979_v40 = vld [vmem:[#allocation70_spill] sm:$0xff]  ;;  %p5499_p11 = por %p5498_p10, %p5497_p9 }
 0x6a7   :  { %2765 = vrot.lane.b32.xlu0 %v2758_v17, %s5600_s15  ;;  %2763 = vrot.lane.b32.xlu1 %v2757_v29, %s5600_s15  ;;  %v4238_v61 = vmul.f32 %v4236_v2, %v8208_v58  ;;  %v3050_v3 = vmul.f32 %v3048_v36, %v8362_v15  ;;  %v2705_v35 = vmul.f32 0.0, %v5074_v60  ;;  %v4240_v58 = vmul.f32 %v4236_v2, %v7883_v11  ;;  %v9982_v17 = vld [vmem:[#allocation106_spill] sm:$0xff] }
 0x6a8   :  { %v3460_v62 = vpop.permute.xlu1 %3459  ;;  %v3108_v63 = vadd.f32 %v3102_v0, %v3052_v30  ;;  %v4239_v5 = vmul.f32 %v4236_v2, %v8180_v20  ;;  %v4294_v43 = vrot.slane %v9979_v40, 6  ;;  %v3051_v49 = vmul.f32 %v3048_v36, %v8007_v6  ;;  %p5500_p12 = pnand %p5499_p11, %p5493_p8 }
 0x6a9   :  { %v3465_v41 = vsel %vm2722_vm8, %v3460_v62, %v3462_v10  ;;  %v2805_v28 = vmul.f32 %v9980_v51, %v7803_v44  ;;  %v4293_v15 = vrot.slane %v9981_v14, 6  ;;  %v2804_v59 = vmul.f32 %v9980_v51, %v7876_v42 }
 0x6aa   :  { %v3469_v46 = vadd.f32 %v3465_v41, %v3414_v8  ;;  %v3166_v45 = vadd.f32 %v8372_v50, %v3108_v63  ;;  %v3106_v6 = vadd.f32 %v8334_v48, %v3050_v3  ;;  %v3101_v44 = vsel %vm3075_vm12, %v8334_v48, %v8356_v13 }
 0x6ab   :  { %4244 = vrot.lane.b32.xlu0 %v4238_v61, %s5606_s22  ;;  %2767 = vrot.lane.b32.xlu1 %v2759_v18, %s5600_s15  ;;  %v3323_v21 = vsel %vm3296_vm13, %v8397_v19, %v8409_v24  ;;  %v3269_v29 = vsel %vm1809_vm7, %v9982_v17, %v8382_v9  ;;  %v3160_v48 = vsel %vm1239_vm14, %v8370_v16, %v8372_v50  ;;  %v4118_v36 = vmul.f32 0.0, %v5103_v38 }
 0x6ac   :  { %v3464_v32 = vpop.permute.xlu1 %3463  ;;  %v3276_v26 = vadd.f32 %v8384_v12, %v3166_v45  ;;  %vm2825_vm12 = vcmp.ge.s32.totalorder %v9977_v25, 4  ;;  %v3270_v0 = vsel %vm1809_vm7, %v8382_v9, %v8384_v12  ;;  %v2806_v41 = vmul.f32 %v9980_v51, %v2705_v35  ;;  %v9983_v9 = vld [vmem:[#allocation74_spill] sm:$0xff]  ;;  %v9987_v51 = vld [vmem:[#allocation63_spill] sm:$0xff] }
 0x6ad   :  { %v3466_v57 = vsel %vm2722_vm8, %v3462_v10, %v3464_v32  ;;  %v3159_v10 = vsel %vm1239_vm14, %v8358_v53, %v8370_v16  ;;  %v3570_v53 = vpop.permute.xlu0 %3569  ;;  %v3322_v61 = vsel %vm3296_vm13, %v8399_v37, %v8397_v19  ;;  %v3380_v12 = vsel %vm1995_vm4, %v8416_v56, %v8428_v47 }
 0x6ae   :  { %v3470_v33 = vadd.f32 %v3466_v57, %v3415_v54  ;;  %v3164_v8 = vadd.f32 %v3159_v10, %v3106_v6  ;;  %v3107_v54 = vadd.f32 %v3101_v44, %v3051_v49  ;;  %v3329_v60 = vadd.f32 %v3323_v21, %v3276_v26  ;;  %v9989_v44 = vld [vmem:[#allocation76_spill] sm:$0xff] }
 0x6af   :  { %4248 = vrot.lane.b32.xlu0 %v4240_v58, %s5606_s22  ;;  %4246 = vrot.lane.b32.xlu1 %v4239_v5, %s5606_s22  ;;  %v4350_v3 = vrot.slane %v9983_v9, 6  ;;  %v3381_v56 = vsel %vm1995_vm4, %v8428_v47, %v8407_v7  ;;  %v9984_v5 = vld [vmem:[#allocation62_spill] sm:$0xff]  ;;  %vm3631_vm7 = vcmask 736256   ;;  %v2850_v21 = vmul.f32 %v9958_v34, %v9989_v44 }
 0x6b0   :  { %v3514_v22 = vpop.permute.xlu1 %3513  ;;  %v3274_v2 = vadd.f32 %v3269_v29, %v3164_v8  ;;  %v3165_v50 = vadd.f32 %v3160_v48, %v3107_v54  ;;  %v3387_v63 = vadd.f32 %v8407_v7, %v3329_v60  ;;  %v3490_v38 = vsel %vm2722_vm8, %v9984_v5, %v8439_v55  ;;  %v9991_v48 = vld [vmem:[#allocation15_spill] sm:$0xff] }
 0x6b1   :  { %v3518_v42 = vsel %vm3517_vm10, %v3512_v4, %v3514_v22  ;;  %v3519_v27 = vsel %vm3517_vm10, %v3514_v22, %v3516_v31  ;;  %v4295_v4 = vsel %vm9452_vm1, %v4293_v15, %v4294_v43  ;;  %v3626_v18 = vpop.permute.xlu0 %3625  ;;  %v9985_v43 = vld [vmem:[#allocation16_spill] sm:$0xff]  ;;  %v3491_v7 = vsel %vm2722_vm8, %v8439_v55, %v9987_v51 }
 0x6b2   :  { %v3522_v13 = vadd.f32 %v3518_v42, %v3469_v46  ;;  %v3523_v24 = vadd.f32 %v3519_v27, %v3470_v33  ;;  %v4297_v30 = vmul.f32 %v4295_v4, %v8180_v20  ;;  %v3275_v46 = vadd.f32 %v3270_v0, %v3165_v50  ;;  %v9986_v33 = vld [vmem:[#allocation38_spill] sm:$0xff]  ;;  %v9995_v50 = vld [vmem:[#allocation31_spill] sm:$0xff] }
 0x6b3   :  { %2812 = vrot.lane.b32.xlu0 %v2805_v28, %s5591_s7  ;;  %2810 = vrot.lane.b32.xlu1 %v2804_v59, %s5591_s7  ;;  %v5078_v20 = vsel %vm2825_vm12, 1.0, %v9656_v23  ;;  %v3327_v19 = vadd.f32 %v8399_v37, %v3274_v2  ;;  %v4299_v35 = vmul.f32 %v4295_v4, %v4118_v36  ;;  %v4298_v57 = vmul.f32 %v4295_v4, %v7883_v11  ;;  %v9988_v59 = vld [vmem:[#allocation72_spill] sm:$0xff]  ;;  %v9994_v4 = vld [vmem:[#allocation58_spill] sm:$0xff] }
 0x6b4   :  { %v3568_v16 = vpop.permute.xlu1 %3567  ;;  %v3328_v58 = vadd.f32 %v3322_v61, %v3275_v46  ;;  %v3544_v37 = vsel %vm3517_vm10, %v8467_v39, %v9985_v43  ;;  %v4349_v11 = vrot.slane %v9986_v33, 6  ;;  %v3497_v28 = vadd.f32 %v9987_v51, %v3387_v63  ;;  %v9997_v61 = vld [vmem:[#allocation75_spill] sm:$0xff]  ;;  %v9998_v46 = vld [vmem:[#allocation122_spill] sm:$0xff]  ;;  %v10008_v33 = vld [vmem:[#allocation69_spill] sm:$0xff] }
 0x6b5   :  { %v3573_v62 = vsel %vm2769_vm11, %v3568_v16, %v3570_v53  ;;  %v3385_v40 = vadd.f32 %v3380_v12, %v3327_v19  ;;  %v2845_v47 = vmul.f32 0.0, %v5078_v20  ;;  %v3630_v10 = vpop.permute.xlu0 %3629  ;;  %v2851_v6 = vmul.f32 %v9958_v34, %v9988_v59  ;;  %v9999_v20 = vld [vmem:[#allocation86_spill] sm:$0xff]  ;;  %v10001_v19 = vld [vmem:[#allocation95_spill] sm:$0xff] }
 0x6b6   :  { %v3577_v31 = vadd.f32 %v3573_v62, %v3522_v13  ;;  %v3386_v14 = vadd.f32 %v3381_v56, %v3328_v58  ;;  %v3550_v17 = vadd.f32 %v3544_v37, %v3497_v28  ;;  %v4351_v26 = vsel %vm9452_vm1, %v4349_v11, %v4350_v3  ;;  %v10003_v58 = vld [vmem:[#allocation115_spill] sm:$0xff]  ;;  %v10004_v56 = vld [vmem:[#allocation88_spill] sm:$0xff]  ;;  %v10009_v11 = vld [vmem:[#allocation118_spill] sm:$0xff] }
 0x6b7   :  { %4303 = vrot.lane.b32.xlu0 %v4297_v30, %s5615_s27  ;;  %2814 = vrot.lane.b32.xlu1 %v2806_v41, %s5591_s7  ;;  %v3495_v15 = vadd.f32 %v3490_v38, %v3385_v40  ;;  %v4403_v13 = vrot.slane %v9991_v48, 6  ;;  %v3601_v2 = vsel %vm2769_vm11, %v9994_v4, %v8481_v52  ;;  %v4353_v62 = vmul.f32 %v4351_v26, %v9995_v50  ;;  %v9996_v30 = vld [vmem:[#allocation82_spill] sm:$0xff]  ;;  %v10005_v38 = vld [vmem:[#allocation119_spill] sm:$0xff]  ;;  %v10007_v37 = vld [vmem:[#allocation20_spill] sm:$0xff] }
 0x6b8   :  { %v3572_v32 = vpop.permute.xlu1 %3571  ;;  %v3496_v42 = vadd.f32 %v3491_v7, %v3386_v14  ;;  %v2852_v41 = vmul.f32 %v9958_v34, %v9996_v30  ;;  %v8865_v63 = vmul.f32 %v9998_v46, %v2845_v47  ;;  %vm3687_vm4 = vcmask 973824   ;;  %v10000_v34 = vld [vmem:[#allocation25_spill] sm:$0xff]  ;;  %v10010_v47 = vld [vmem:[#allocation42_spill] sm:$0xff]  ;;  %v10016_v48 = vld [vmem:[#allocation83_spill] sm:$0xff] }
 0x6b9   :  { %v3574_v25 = vsel %vm2769_vm11, %v3570_v53, %v3572_v32  ;;  %v9990_v53 = vld [vmem:[#allocation49_spill] sm:$0xff]  ;;  %vm3740_vm13 = vcmask 187392   ;;  %v2346_v9 = vmul.f32 %v9971_v1, %v9999_v20  ;;  %v2347_v3 = vmul.f32 %v9971_v1, %v10000_v34 }
 0x6ba   :  { %v3578_v49 = vadd.f32 %v3574_v25, %v3523_v24  ;;  %v3543_v22 = vsel %vm3517_vm10, %v9990_v53, %v8467_v39  ;;  %v9992_v24 = vld [vmem:[#allocation17_spill] sm:$0xff]  ;;  %v9993_v39 = vld [vmem:[#allocation36_spill] sm:$0xff]  ;;  %v3548_v0 = vadd.f32 %v9990_v53, %v3495_v15  ;;  %v4355_v32 = vmul.f32 %v4351_v26, %v10001_v19 }
 0x6bb   :  { %4307 = vrot.lane.b32.xlu0 %v4299_v35, %s5615_s27  ;;  %4305 = vrot.lane.b32.xlu1 %v4298_v57, %s5615_s27  ;;  %v3602_v54 = vsel %vm2769_vm11, %v8481_v52, %v9992_v24  ;;  %v4402_v60 = vrot.slane %v9993_v39, 6  ;;  %v3549_v36 = vadd.f32 %v3543_v22, %v3496_v42  ;;  %v3608_v16 = vadd.f32 %v9992_v24, %v3550_v17  ;;  %v10002_v35 = vld [vmem:[#allocation90_spill] sm:$0xff]  ;;  %v10006_v25 = vld [vmem:[#allocation13_spill] sm:$0xff] }
 0x6bc   :  { %v3628_v45 = vpop.permute.xlu1 %3627  ;;  %v3606_v52 = vadd.f32 %v3601_v2, %v3548_v0  ;;  %v4354_v57 = vmul.f32 %v4351_v26, %v10002_v35  ;;  %v3714_v5 = vsel %vm3687_vm4, %v10004_v56, %v10003_v58  ;;  %v2390_v40 = vsel %vm1239_vm14, %v10006_v25, %v10005_v38  ;;  %v10011_v14 = vld [vmem:[#allocation53_spill] sm:$0xff] }
 0x6bd   :  { %v3632_v55 = vsel %vm3631_vm7, %v3626_v18, %v3628_v45  ;;  %v3633_v29 = vsel %vm3631_vm7, %v3628_v45, %v3630_v10  ;;  %v2348_v18 = vmul.f32 %v9971_v1, %v9997_v61  ;;  %v4404_v12 = vsel %vm9452_vm1, %v4402_v60, %v4403_v13  ;;  %v10017_v13 = vld [vmem:[#allocation40_spill] sm:$0xff]  ;;  %v10024_v25 = vld [vmem:[#allocation81_spill] sm:$0xff] }
 0x6be   :  { %v8843_v27 = vadd.f32 %v3632_v55, %v3577_v31  ;;  %v8845_v8 = vadd.f32 %v3633_v29, %v3578_v49  ;;  %v3607_v31 = vadd.f32 %v3602_v54, %v3549_v36  ;;  %v3720_v43 = vadd.f32 %v10003_v58, %v3608_v16  ;;  %v10014_v55 = vld [vmem:[#allocation55_spill] sm:$0xff] }
 0x6bf   :  { %2858 = vrot.lane.b32.xlu0 %v2851_v6, %s5607_s23  ;;  %2856 = vrot.lane.b32.xlu1 %v2850_v21, %s5607_s23  ;;  %v2898_v49 = vmul.f32 %v10007_v37, %v9988_v59  ;;  %v3713_v1 = vsel %vm3687_vm4, %v10008_v33, %v10004_v56  ;;  %v2391_v51 = vsel %vm1239_vm14, %v10005_v38, %v10009_v11  ;;  %v10012_v6 = vld [vmem:[#allocation116_spill] sm:$0xff]  ;;  %v10013_v21 = vld [vmem:[#allocation113_spill] sm:$0xff]  ;;  %v10015_v29 = vld [vmem:[#allocation87_spill] sm:$0xff]  ;;  %vm3796_vm14 = vcmask 449536  }
 0x6c0   :  { %v3719_v28 = vadd.f32 %v3714_v5, %v3607_v31  ;;  %v2897_v7 = vmul.f32 %v10007_v37, %v9989_v44  ;;  %v2468_v15 = vsel %vm1557_vm5, %v10011_v14, %v10010_v47  ;;  %v3718_v10 = vadd.f32 %v3713_v1, %v3606_v52  ;;  %v10018_v36 = vld [vmem:[#allocation11_spill] sm:$0xff]  ;;  %v10019_v31 = vld [vmem:[#allocation97_spill] sm:$0xff]  ;;  %v10027_v33 = vld [vmem:[#allocation114_spill] sm:$0xff] }
 0x6c1   :  { %v4406_v45 = vmul.f32 %v4404_v12, %v9995_v50  ;;  %v3767_v53 = vsel %vm3740_vm13, %v10013_v21, %v10012_v6  ;;  %v2397_v22 = vadd.f32 %v10009_v11, %v2348_v18  ;;  %v2395_v17 = vadd.f32 %v2390_v40, %v2346_v9  ;;  %v10020_v52 = vld [vmem:[#allocation117_spill] sm:$0xff]  ;;  %v10030_v14 = vld [vmem:[#allocation43_spill] sm:$0xff]  ;;  %v10031_v6 = vld [vmem:[#allocation78_spill] sm:$0xff] }
 0x6c2   :  { %v2469_v44 = vsel %vm1557_vm5, %v10010_v47, %v10014_v55  ;;  %v3766_v26 = vsel %vm3740_vm13, %v10015_v29, %v10013_v21  ;;  %v2396_v42 = vadd.f32 %v2391_v51, %v2347_v3  ;;  %v2514_v24 = vsel %vm1743_vm3, %v10017_v13, %v10016_v48  ;;  %v10023_v5 = vld [vmem:[#allocation85_spill] sm:$0xff]  ;;  %v10028_v51 = vld [vmem:[#allocation64_spill] sm:$0xff] }
 0x6c3   :  { %4359 = vrot.lane.b32.xlu0 %v4353_v62, %s5608_s24  ;;  %2860 = vrot.lane.b32.xlu1 %v2852_v41, %s5607_s23  ;;  %v3773_v54 = vadd.f32 %v3767_v53, %v3720_v43  ;;  %v2475_v39 = vadd.f32 %v10014_v55, %v2397_v22  ;;  %v2473_v60 = vadd.f32 %v2468_v15, %v2395_v17  ;;  %vm3964_vm10 = vcmask 162816   ;;  %v10032_v22 = vld [vmem:[#allocation100_spill] sm:$0xff]  ;;  %v10033_v17 = vld [vmem:[#allocation34_spill] sm:$0xff] }
 0x6c4   :  { %v2515_v4 = vsel %vm1743_vm3, %v10016_v48, %v10018_v36  ;;  %v3772_v2 = vadd.f32 %v3766_v26, %v3719_v28  ;;  %v2474_v0 = vadd.f32 %v2469_v44, %v2396_v42  ;;  %v3771_v16 = vadd.f32 %v10015_v29, %v3718_v10  ;;  %v10029_v28 = vld [vmem:[#allocation71_spill] sm:$0xff]  ;;  %v10034_v26 = vld [vmem:[#allocation29_spill] sm:$0xff] }
 0x6c5   :  { %v2899_v50 = vmul.f32 %v10007_v37, %v9996_v30  ;;  %v2519_v62 = vadd.f32 %v2514_v24, %v2473_v60  ;;  %v2521_v41 = vadd.f32 %v10018_v36, %v2475_v39  ;;  %v4408_v61 = vmul.f32 %v4404_v12, %v10001_v19  ;;  %v10026_v37 = vld [vmem:[#allocation112_spill] sm:$0xff] }
 0x6c6   :  { %v4407_v18 = vmul.f32 %v4404_v12, %v10002_v35  ;;  %v3826_v20 = vsel %vm3796_vm14, %v10020_v52, %v10019_v31  ;;  %v2520_v9 = vadd.f32 %v2515_v4, %v2474_v0  ;;  %v3832_v34 = vadd.f32 %v10019_v31, %v3773_v54  ;;  %v10022_v12 = vld [vmem:[#allocation73_spill] sm:$0xff]  ;;  %v10035_v54 = vld [vmem:[#allocation22_spill] sm:$0xff] }
 0x6c7   :  { %4363 = vrot.lane.b32.xlu0 %v4355_v32, %s5608_s24  ;;  %4361 = vrot.lane.b32.xlu1 %v4354_v57, %s5608_s24  ;;  %v2945_v3 = vmul.f32 %v9998_v46, %v9996_v30  ;;  %v10021_v32 = vld [vmem:[#allocation92_spill] sm:$0xff]  ;;  %v3831_v58 = vadd.f32 %v3826_v20, %v3772_v2  ;;  %v2944_v56 = vmul.f32 %v9998_v46, %v9988_v59  ;;  %v4461_v15 = vrot.slane %v10030_v14, 6 }
 0x6c8   :  { %v3825_v57 = vsel %vm3796_vm14, %v10021_v32, %v10020_v52  ;;  %v2606_v38 = vsel %vm2061_vm9, %v10023_v5, %v10022_v12  ;;  %v2607_v40 = vsel %vm2061_vm9, %v10022_v12, %v10024_v25  ;;  %v10025_v30 = vld [vmem:[#allocation108_spill] sm:$0xff]  ;;  %v2613_v1 = vadd.f32 %v10024_v25, %v2521_v41  ;;  %v10038_v41 = vld [vmem:[#allocation125_spill] sm:$0xff]  ;;  %v10041_v32 = vld [vmem:[#allocation130_spill] sm:$0xff] }
 0x6c9   :  { %v3830_v43 = vadd.f32 %v3825_v57, %v3771_v16  ;;  %v2653_v59 = vsel %vm9451_vm6, %v10025_v30, %v10027_v33  ;;  %v2611_v46 = vadd.f32 %v2606_v38, %v2519_v62  ;;  %v2612_v11 = vadd.f32 %v2607_v40, %v2520_v9  ;;  %v10036_v16 = vld [vmem:[#allocation94_spill] sm:$0xff]  ;;  %v10040_v52 = vld [vmem:[#allocation89_spill] sm:$0xff] }
 0x6ca   :  { %v3944_v47 = vadd.f32 %v10028_v51, %v3832_v34  ;;  %v3937_v21 = vsel %vm3911_vm15, %v10031_v6, %v10029_v28  ;;  %v3994_v55 = vsel %vm3964_vm10, %v10033_v17, %v10032_v22  ;;  %v4462_v42 = vrot.slane %v10034_v26, 6  ;;  %v10042_v12 = vld [vmem:[#allocation77_spill] sm:$0xff] }
 0x6cb   :  { %2905 = vrot.lane.b32.xlu0 %v2898_v49, %s5609_s3  ;;  %2903 = vrot.lane.b32.xlu1 %v2897_v7, %s5609_s3  ;;  %v2652_v49 = vsel %vm9451_vm6, %v10026_v37, %v10025_v30  ;;  %v3938_v7 = vsel %vm3911_vm15, %v10029_v28, %v10028_v51  ;;  %v3942_v29 = vadd.f32 %v3937_v21, %v3830_v43  ;;  %vm4023_vm12 = vcmask 424960   ;;  %v10044_v43 = vld [vmem:[#allocation96_spill] sm:$0xff]  ;;  %v10048_v51 = vld [vmem:[#allocation10_spill] sm:$0xff]  ;;  %v10050_v6 = vld [vmem:[#allocation133_spill] sm:$0xff] }
 0x6cc   :  { %v3943_v53 = vadd.f32 %v3938_v7, %v3831_v58  ;;  %vm4138_vm7 = vcmask 924672   ;;  %v2657_v13 = vadd.f32 %v2652_v49, %v2611_v46  ;;  %v2659_v24 = vadd.f32 %v10027_v33, %v2613_v1  ;;  %v10045_v49 = vld [vmem:[#allocation127_spill] sm:$0xff]  ;;  %v10046_v33 = vld [vmem:[#allocation134_spill] sm:$0xff]  ;;  %v10051_v21 = vld [vmem:[#allocation37_spill] sm:$0xff] }
 0x6cd   :  { %v3993_v39 = vsel %vm3964_vm10, %v10035_v54, %v10033_v17  ;;  %v4000_v60 = vadd.f32 %v3994_v55, %v3944_v47  ;;  %v4463_v36 = vsel %vm9452_vm1, %v4461_v15, %v4462_v42  ;;  %v2658_v4 = vadd.f32 %v2653_v59, %v2612_v11  ;;  %v10047_v59 = vld [vmem:[#allocation135_spill] sm:$0xff]  ;;  %v10052_v22 = vld [vmem:[#allocation137_spill] sm:$0xff] }
 0x6ce   :  { %v3998_v9 = vadd.f32 %v10035_v54, %v3942_v29  ;;  %vm9453_vm6 = vcmask 457728   ;;  %v2746_v57 = vsel %vm2722_vm8, %v10038_v41, %v10041_v32  ;;  %v4465_v58 = vmul.f32 %v4463_v36, %v10002_v35  ;;  %v10053_v55 = vld [vmem:[#allocation51_spill] sm:$0xff]  ;;  %v10054_v54 = vld [vmem:[#allocation138_spill] sm:$0xff] }
 0x6cf   :  { %4412 = vrot.lane.b32.xlu0 %v4406_v45, %s5610_s29  ;;  %2907 = vrot.lane.b32.xlu1 %v2899_v50, %s5609_s3  ;;  %v10037_v50 = vld [vmem:[#allocation91_spill] sm:$0xff]  ;;  %v4059_v20 = vadd.f32 %v10040_v52, %v4000_v60  ;;  %v4467_v5 = vmul.f32 %v4463_v36, %v10042_v12  ;;  %v4466_v38 = vmul.f32 %v4463_v36, %v10001_v19  ;;  %v4521_v28 = vrot.slane %v10048_v51, 6  ;;  %v10056_v36 = vld [vmem:[#allocation105_spill] sm:$0xff] }
 0x6d0   :  { %v4052_v62 = vsel %vm4023_vm12, %v10037_v50, %v10036_v16  ;;  %v4053_v25 = vsel %vm4023_vm12, %v10036_v16, %v10040_v52  ;;  %v2792_v35 = vsel %vm2769_vm11, %v10046_v33, %v10045_v49  ;;  %v2793_v46 = vsel %vm2769_vm11, %v10045_v49, %v10047_v59  ;;  %v10064_v49 = vld [vmem:[#allocation103_spill] sm:$0xff] }
 0x6d1   :  { %v3684_v10 = vpop.permute.xlu0 %3683  ;;  %v3682_v45 = vpop.permute.xlu1 %3681  ;;  %v4057_v40 = vadd.f32 %v4052_v62, %v3998_v9  ;;  %v2751_v7 = vadd.f32 %v2746_v57, %v2658_v4  ;;  %v2886_v17 = vsel %vm2862_vm0, %v10050_v6, %v10052_v22  ;;  %v2933_v4 = vsel %vm9453_vm6, %v10054_v54, %v10056_v36  ;;  %v10059_v57 = vld [vmem:[#allocation99_spill] sm:$0xff] }
 0x6d2   :  { %v3688_v44 = vsel %vm3687_vm4, %v3682_v45, %v3684_v10 }
 0x6d3   :  { %v3692_v48 = vadd.f32 %v3688_v44, %v8843_v27  ;;  %4416 = vrot.lane.b32.xlu0 %v4408_v61, %s5610_s29  ;;  %4414 = vrot.lane.b32.xlu1 %v4407_v18, %s5610_s29  ;;  %v3999_v27 = vadd.f32 %v3993_v39, %v3943_v53  ;;  %v10039_v61 = vld [vmem:[#allocation128_spill] sm:$0xff]  ;;  %v2885_v53 = vsel %vm2862_vm0, %v10051_v21, %v10050_v6  ;;  %v10055_v39 = vld [vmem:[#allocation139_spill] sm:$0xff]  ;;  %v10066_v21 = vld [vmem:[#allocation109_spill] sm:$0xff] }
 0x6d4   :  { %v2745_v18 = vsel %vm2722_vm8, %v10039_v61, %v10038_v41  ;;  %v2798_v42 = vadd.f32 %v2793_v46, %v2751_v7  ;;  %v2932_v60 = vsel %vm9453_vm6, %v10055_v39, %v10054_v54  ;;  %v10057_v41 = vld [vmem:[#allocation132_spill] sm:$0xff]  ;;  %v10058_v61 = vld [vmem:[#allocation101_spill] sm:$0xff]  ;;  %vm4418_vm6 = vcmask 113664   ;;  %v10065_v7 = vld [vmem:[#allocation102_spill] sm:$0xff] }
 0x6d5   :  { %v3735_v2 = vpop.permute.xlu0 %3734  ;;  %v3686_v0 = vpop.permute.xlu1 %3685  ;;  %v4058_v15 = vadd.f32 %v4053_v25, %v3999_v27 }
 0x6d6   :  { %v3689_v31 = vsel %vm3687_vm4, %v3684_v10, %v3686_v0  ;;  %v10049_v10 = vld [vmem:[#allocation23_spill] sm:$0xff]  ;;  %vm4250_vm4 = vcmask 400384   ;;  %v2891_v27 = vadd.f32 %v2886_v17, %v2798_v42 }
 0x6d7   :  { %v3693_v34 = vadd.f32 %v3689_v31, %v8845_v8  ;;  %2952 = vrot.lane.b32.xlu0 %v2945_v3, %s5607_s23  ;;  %2950 = vrot.lane.b32.xlu1 %v2944_v56, %s5607_s23  ;;  %v10043_v8 = vld [vmem:[#allocation126_spill] sm:$0xff]  ;;  %v2750_v56 = vadd.f32 %v2745_v18, %v2657_v13  ;;  %v4520_v45 = vrot.slane %v10049_v10, 6  ;;  %v2752_v13 = vadd.f32 %v10041_v32, %v2659_v24 }
 0x6d8   :  { %v4164_v3 = vsel %vm4138_vm7, %v10044_v43, %v10043_v8  ;;  %v4165_v44 = vsel %vm4138_vm7, %v10043_v8, %v10053_v55  ;;  %v4171_v24 = vadd.f32 %v10053_v55, %v4059_v20  ;;  %v4220_v18 = vsel %vm4191_vm2, %v10058_v61, %v10057_v41  ;;  %v10062_v8 = vld [vmem:[#allocation131_spill] sm:$0xff] }
 0x6d9   :  { %v3739_v30 = vpop.permute.xlu0 %3738  ;;  %v3737_v37 = vpop.permute.xlu1 %3736  ;;  %v4169_v29 = vadd.f32 %v4164_v3, %v4057_v40  ;;  %v2797_v26 = vadd.f32 %v2792_v35, %v2750_v56  ;;  %v4522_v50 = vsel %vm9452_vm1, %v4520_v45, %v4521_v28  ;;  %v4170_v62 = vadd.f32 %v4165_v44, %v4058_v15  ;;  %v10068_v44 = vld [vmem:[#allocation68_spill] sm:$0xff] }
 0x6da   :  { %v3741_v1 = vsel %vm3740_vm13, %v3735_v2, %v3737_v37  ;;  %v3742_v11 = vsel %vm3740_vm13, %v3737_v37, %v3739_v30  ;;  %vm4365_vm13 = vcmask 900096   ;;  %v2799_v31 = vadd.f32 %v10047_v59, %v2752_v13  ;;  %v10063_v37 = vld [vmem:[#allocation104_spill] sm:$0xff] }
 0x6db   :  { %v3745_v47 = vadd.f32 %v3741_v1, %v3692_v48  ;;  %v3746_v14 = vadd.f32 %v3742_v11, %v3693_v34  ;;  %4471 = vrot.lane.b32.xlu0 %v4465_v58, %s5611_s30  ;;  %2954 = vrot.lane.b32.xlu1 %v8865_v63, %s5607_s23  ;;  %v2890_v0 = vadd.f32 %v2885_v53, %v2797_v26  ;;  %vm3855_vm1 = vcmask 711680   ;;  %v10067_v53 = vld [vmem:[#allocation28_spill] sm:$0xff] }
 0x6dc   :  { %v2938_v9 = vadd.f32 %v2933_v4, %v2891_v27  ;;  %v4221_v58 = vsel %vm4191_vm2, %v10057_v41, %v10059_v57  ;;  %v4225_v20 = vadd.f32 %v10058_v61, %v4169_v29  ;;  %v2892_v3 = vadd.f32 %v10052_v22, %v2799_v31  ;;  %v10071_v4 = vld [vmem:[#allocation60_spill] sm:$0xff] }
 0x6dd   :  { %v3793_v48 = vpop.permute.xlu0 %3792  ;;  %v3791_v63 = vpop.permute.xlu1 %3790  ;;  %v2937_v52 = vadd.f32 %v2932_v60, %v2890_v0  ;;  %v4226_v30 = vadd.f32 %v4220_v18, %v4170_v62  ;;  %v4391_v33 = vsel %vm4365_vm13, %v10064_v49, %v10063_v37  ;;  %v4227_v35 = vadd.f32 %v4221_v58, %v4171_v24  ;;  %v10078_v49 = vld [vmem:[#allocation54_spill] sm:$0xff] }
 0x6de   :  { %v3797_v2 = vsel %vm3796_vm14, %v3791_v63, %v3793_v48  ;;  %v2939_v46 = vadd.f32 %v10056_v36, %v2892_v3  ;;  %v4524_v51 = vmul.f32 %v4522_v50, %v10001_v19  ;;  %v4447_v22 = vsel %vm4418_vm6, %v10067_v53, %v10066_v21  ;;  %v10070_v63 = vld [vmem:[#allocation107_spill] sm:$0xff]  ;;  %v10077_v3 = vld [vmem:[#allocation120_spill] sm:$0xff] }
 0x6df   :  { %v3801_v16 = vadd.f32 %v3797_v2, %v3745_v47  ;;  %4475 = vrot.lane.b32.xlu0 %v4467_v5, %s5611_s30  ;;  %4473 = vrot.lane.b32.xlu1 %v4466_v38, %s5611_s30  ;;  %v10060_v5 = vld [vmem:[#allocation136_spill] sm:$0xff]  ;;  %v10061_v38 = vld [vmem:[#allocation129_spill] sm:$0xff]  ;;  %v4392_v47 = vsel %vm4365_vm13, %v10063_v37, %v10065_v7  ;;  %v4526_v29 = vmul.f32 %v4522_v50, %v10068_v44 }
 0x6e0   :  { %v4279_v25 = vsel %vm4250_vm4, %v10061_v38, %v10060_v5  ;;  %v4280_v43 = vsel %vm4250_vm4, %v10060_v5, %v10062_v8  ;;  %v4525_v26 = vmul.f32 %v4522_v50, %v10042_v12  ;;  %v4286_v42 = vadd.f32 %v10062_v8, %v4227_v35  ;;  %v10072_v50 = vld [vmem:[#allocation33_spill] sm:$0xff]  ;;  %v10076_v8 = vld [vmem:[#allocation44_spill] sm:$0xff] }
 0x6e1   :  { %v3850_v34 = vpop.permute.xlu0 %3849  ;;  %v3795_v32 = vpop.permute.xlu1 %3794  ;;  %v4284_v59 = vadd.f32 %v4279_v25, %v4225_v20  ;;  %v4285_v28 = vadd.f32 %v4280_v43, %v4226_v30  ;;  %v4448_v2 = vsel %vm4418_vm6, %v10066_v21, %v10071_v4  ;;  %v5465_v25 = vld [vmem:[%s9216_s2] sm:$0xff] }
 0x6e2   :  { %v3798_v40 = vsel %vm3796_vm14, %v3793_v48, %v3795_v32  ;;  %vm4477_vm14 = vcmask 375808   ;;  %v10069_v48 = vld [vmem:[#allocation140_spill] sm:$0xff]  ;;  %v4398_v12 = vadd.f32 %v10065_v7, %v4286_v42  ;;  %v10074_v32 = vld [vmem:[#allocation35_spill] sm:$0xff] }
 0x6e3   :  { %v3802_v56 = vadd.f32 %v3798_v40, %v3746_v14  ;;  %2967 = vrot.lane.b32.xlu0 %v2938_v9, %s5555_s20  ;;  %2965 = vrot.lane.b32.xlu1 %v2937_v52, %s5555_s20  ;;  %v4396_v10 = vadd.f32 %v4391_v33, %v4284_v59  ;;  %v4397_v19 = vadd.f32 %v4392_v47, %v4285_v28  ;;  %v10075_v40 = vld [vmem:[#allocation67_spill] sm:$0xff]  ;;  %v10079_v35 = vld [vmem:[#allocation124_spill] sm:$0xff]  ;;  %v10080_v59 = vld [vmem:[#allocation57_spill] sm:$0xff]  ;;  %v10081_v28 = vmov 4  }
 0x6e4   :  { %v4506_v13 = vsel %vm4477_vm14, %v10070_v63, %v10069_v48  ;;  %v4507_v62 = vsel %vm4477_vm14, %v10069_v48, %v10072_v50  ;;  %v4454_v61 = vadd.f32 %v4448_v2, %v4398_v12  ;;  %v2492_v43 = vsel %vm1743_vm3, %v10076_v8, %v10075_v40  ;;  %v10082_v7 = vld [vmem:[#allocation123_spill] sm:$0xff]  ;;  %v10084_v21 = vld [vmem:[#allocation56_spill] sm:$0xff]  ;;  %v10088_v2 = vld [vmem:[#allocation93_spill] sm:$0xff] }
 0x6e5   :  { %v3854_v1 = vpop.permute.xlu0 %3853  ;;  %v3852_v11 = vpop.permute.xlu1 %3851  ;;  %v4453_v39 = vadd.f32 %v4447_v22, %v4397_v19  ;;  %v4452_v60 = vadd.f32 %v10067_v53, %v4396_v10  ;;  %v2493_v47 = vsel %vm1743_vm3, %v10075_v40, %v10082_v7  ;;  %v2539_v53 = vsel %vm1557_vm5, %v10079_v35, %v10084_v21  ;;  %v10086_v44 = vld [vmem:[#allocation80_spill] sm:$0xff]  ;;  %v10089_v12 = vld [vmem:[#allocation111_spill] sm:$0xff] }
 0x6e6   :  { %v3856_v14 = vsel %vm3855_vm1, %v3850_v34, %v3852_v11  ;;  %v3857_v15 = vsel %vm3855_vm1, %v3852_v11, %v3854_v1  ;;  %v4513_v31 = vadd.f32 %v4507_v62, %v4454_v61  ;;  %v10073_v34 = vld [vmem:[#allocation50_spill] sm:$0xff]  ;;  %vm4082_vm1 = vcmask 687104  }
 0x6e7   :  { %v3860_v45 = vadd.f32 %v3856_v14, %v3801_v16  ;;  %v3861_v6 = vadd.f32 %v3857_v15, %v3802_v56  ;;  %4530 = vrot.lane.b32.xlu0 %v4524_v51, %s5616_s28  ;;  %2969 = vrot.lane.b32.xlu1 %v2939_v46, %s5555_s20  ;;  %v4511_v0 = vadd.f32 %v10070_v63, %v4452_v60  ;;  %s5617_s20 = smov 80   ;;  %v10083_v14 = vld [vmem:[#allocation121_spill] sm:$0xff]  ;;  %v10091_v61 = vld [vmem:[#allocation98_spill] sm:$0xff] }
 0x6e8   :  { %v4512_v27 = vadd.f32 %v4506_v13, %v4453_v39  ;;  %v2446_v57 = vsel %vm1557_vm5, %v10074_v32, %v10073_v34  ;;  %v2447_v33 = vsel %vm1557_vm5, %v10073_v34, %v10078_v49  ;;  %v2538_v46 = vsel %vm1557_vm5, %v10080_v59, %v10079_v35 }
 0x6e9   :  { %v3908_v17 = vpop.permute.xlu0 %3907  ;;  %v3906_v55 = vpop.permute.xlu1 %3905  ;;  %v2450_v56 = vadd.f32 %v2446_v57, %v10077_v3  ;;  %v2451_v15 = vadd.f32 %v2447_v33, %v10083_v14  ;;  %vm10090_vm5 = vcmask 490496  }
 0x6ea   :  { %v3912_v54 = vsel %vm3911_vm15, %v3906_v55, %v3908_v17  ;;  %v10085_v55 = vld [vmem:[#allocation12_spill] sm:$0xff]  ;;  %vm10092_vm3 = vmmov %vm10090_vm5 }
 0x6eb   :  { %v3916_v36 = vadd.f32 %v3912_v54, %v3860_v45  ;;  %4534 = vrot.lane.b32.xlu0 %v4526_v29, %s5616_s28  ;;  %4532 = vrot.lane.b32.xlu1 %v4525_v26, %s5616_s28  ;;  %v2496_v11 = vadd.f32 %v2492_v43, %v2450_v56  ;;  %v2497_v19 = vadd.f32 %v2493_v47, %v2451_v15 }
 0x6ec   :  { %v2584_v29 = vsel %vm2061_vm9, %v10086_v44, %v10085_v55 }
 0x6ed   :  { %v3959_v16 = vpop.permute.xlu0 %3958  ;;  %v3910_v24 = vpop.permute.xlu1 %3909  ;;  %v2542_v10 = vadd.f32 %v2538_v46, %v2496_v11  ;;  %v2543_v26 = vadd.f32 %v2539_v53, %v2497_v19 }
 0x6ee   :  { %v3913_v41 = vsel %vm3911_vm15, %v3908_v17, %v3910_v24 }
 0x6ef   :  { %v3917_v18 = vadd.f32 %v3913_v41, %v3861_v6  ;;  %4548 = vrot.lane.b32.xlu0 %v4512_v27, %s5617_s20  ;;  %4546 = vrot.lane.b32.xlu1 %v4511_v0, %s5617_s20  ;;  %v2588_v42 = vadd.f32 %v2584_v29, %v2542_v10  ;;  %v2630_v0 = vsel %vm10090_vm5, %v10089_v12, %v10088_v2 }
 0x6f1   :  { %v3963_v52 = vpop.permute.xlu0 %3962  ;;  %v3961_v9 = vpop.permute.xlu1 %3960  ;;  %v2634_v24 = vadd.f32 %v2630_v0, %v2588_v42 }
 0x6f2   :  { %v3965_v58 = vsel %vm3964_vm10, %v3959_v16, %v3961_v9  ;;  %v3966_v20 = vsel %vm3964_vm10, %v3961_v9, %v3963_v52  ;;  %vm10098_vm10 = vcmask 1041408  }
 0x6f3   :  { %v3969_v5 = vadd.f32 %v3965_v58, %v3916_v36  ;;  %v3970_v38 = vadd.f32 %v3966_v20, %v3917_v18  ;;  %4608 = vperm.xlu0 %5361, %v5465_v25   ;;  %4550 = vrot.lane.b32.xlu1 %v4513_v31, %s5617_s20  ;;  %v10087_v36 = vld [vmem:[#allocation79_spill] sm:$0xff]  ;;  %v2631_v18 = vsel %vm10092_vm3, %v10088_v2, %v10091_v61 }
 0x6f4   :  { %v2585_v4 = vsel %vm2061_vm9, %v10085_v55, %v10087_v36 }
 0x6f5   :  { %v4020_v30 = vpop.permute.xlu0 %4019  ;;  %v4018_v37 = vpop.permute.xlu1 %4017  ;;  %v2589_v27 = vadd.f32 %v2585_v4, %v2543_v26 }
 0x6f6   :  { %v4024_v1 = vsel %vm4023_vm12, %v4018_v37, %v4020_v30 }
 0x6f7   :  { %v4028_v51 = vadd.f32 %v4024_v1, %v3969_v5  ;;  %4861 = vperm.xlu1 %5362, %v5465_v25   ;;  %5363 = vset.pattern.permute.xlu0 %v10081_v28  ;;  %v2635_v52 = vadd.f32 %v2631_v18, %v2589_v27 }
 0x6f9   :  { %v4077_v45 = vpop.permute.xlu0 %4076  ;;  %v4022_v6 = vpop.permute.xlu1 %4021 }
 0x6fa   :  { %v4025_v22 = vsel %vm4023_vm12, %v4020_v30, %v4022_v6  ;;  %vm10100_vm12 = vmmov %vm10098_vm10 }
 0x6fb   :  { %v4029_v17 = vadd.f32 %v4025_v22, %v3970_v38 }
 0x6fd   :  { %v4081_v48 = vpop.permute.xlu0 %4080  ;;  %v4079_v63 = vpop.permute.xlu1 %4078 }
 0x6fe   :  { %v4083_v13 = vsel %vm4082_vm1, %v4077_v45, %v4079_v63  ;;  %v4084_v54 = vsel %vm4082_vm1, %v4079_v63, %v4081_v48 }
 0x6ff   :  { %v4087_v39 = vadd.f32 %v4083_v13, %v4028_v51  ;;  %v4088_v60 = vadd.f32 %v4084_v54, %v4029_v17 }
 0x701   :  { %v2673_v16 = vpop.permute.xlu0 %2672  ;;  %v2671_v50 = vpop.permute.xlu1 %2670 }
 0x702   :  { %v2676_v62 = vsel %vm2061_vm9, %v2671_v50, %v2673_v16 }
 0x703   :  { %v2680_v41 = vadd.f32 %v2676_v62, %v2634_v24 }
 0x705   :  { %v4133_v31 = vpop.permute.xlu0 %4132  ;;  %v2675_v9 = vpop.permute.xlu1 %2674 }
 0x706   :  { %v2677_v34 = vsel %vm2061_vm9, %v2673_v16, %v2675_v9 }
 0x707   :  { %v2681_v32 = vadd.f32 %v2677_v34, %v2635_v52 }
 0x709   :  { %v4137_v57 = vpop.permute.xlu0 %4136  ;;  %v4135_v58 = vpop.permute.xlu1 %4134 }
 0x70a   :  { %v4139_v20 = vsel %vm4138_vm7, %v4133_v31, %v4135_v58  ;;  %v4140_v5 = vsel %vm4138_vm7, %v4135_v58, %v4137_v57  ;;  %vm4552_vm7 = vcmask 654336  }
 0x70b   :  { %v4143_v38 = vadd.f32 %v4139_v20, %v4087_v39  ;;  %v4144_v25 = vadd.f32 %v4140_v5, %v4088_v60 }
 0x70d   :  { %v2719_v40 = vpop.permute.xlu0 %2718  ;;  %v2717_v8 = vpop.permute.xlu1 %2716 }
 0x70e   :  { %v2723_v43 = vsel %vm2722_vm8, %v2717_v8, %v2719_v40 }
 0x70f   :  { %v2727_v3 = vadd.f32 %v2723_v43, %v2680_v41 }
 0x711   :  { %v4186_v56 = vpop.permute.xlu0 %4185  ;;  %v2721_v30 = vpop.permute.xlu1 %2720 }
 0x712   :  { %v2724_v37 = vsel %vm2722_vm8, %v2719_v40, %v2721_v30 }
 0x713   :  { %v2728_v49 = vadd.f32 %v2724_v37, %v2681_v32 }
 0x715   :  { %v4190_v33 = vpop.permute.xlu0 %4189  ;;  %v4188_v35 = vpop.permute.xlu1 %4187 }
 0x716   :  { %v4192_v59 = vsel %vm4191_vm2, %v4186_v56, %v4188_v35  ;;  %v4193_v46 = vsel %vm4191_vm2, %v4188_v35, %v4190_v33  ;;  %vm10093_vm2 = vcmask 457728  }
 0x717   :  { %v9124_v1 = vadd.f32 %v4192_v59, %v4143_v38  ;;  %v9126_v11 = vadd.f32 %v4193_v46, %v4144_v25  ;;  %vm10094_vm9 = vmmov %vm10093_vm2 }
 0x719   :  { %v2766_v51 = vpop.permute.xlu0 %2765  ;;  %v2764_v28 = vpop.permute.xlu1 %2763 }
 0x71a   :  { %v2770_v4 = vsel %vm2769_vm11, %v2764_v28, %v2766_v51 }
 0x71b   :  { %v2774_v12 = vadd.f32 %v2770_v4, %v2727_v3 }
 0x71d   :  { %v4245_v7 = vpop.permute.xlu0 %4244  ;;  %v2768_v47 = vpop.permute.xlu1 %2767 }
 0x71e   :  { %v2771_v16 = vsel %vm2769_vm11, %v2766_v51, %v2768_v47  ;;  %vm4309_vm11 = vcmask 662528  }
 0x71f   :  { %v2775_v61 = vadd.f32 %v2771_v16, %v2728_v49 }
 0x721   :  { %v4249_v14 = vpop.permute.xlu0 %4248  ;;  %v4247_v15 = vpop.permute.xlu1 %4246 }
 0x722   :  { %v4251_v56 = vsel %vm4250_vm4, %v4245_v7, %v4247_v15  ;;  %v4252_v30 = vsel %vm4250_vm4, %v4247_v15, %v4249_v14 }
 0x723   :  { %v4255_v51 = vadd.f32 %v4251_v56, %v9124_v1  ;;  %v4256_v28 = vadd.f32 %v4252_v30, %v9126_v11 }
 0x725   :  { %v2813_v10 = vpop.permute.xlu0 %2812  ;;  %v2811_v45 = vpop.permute.xlu1 %2810 }
 0x726   :  { %v2816_v2 = vsel %vm2722_vm8, %v2811_v45, %v2813_v10 }
 0x727   :  { %v2820_v50 = vadd.f32 %v2816_v2, %v2774_v12  ;;  %v10101_v2 = vld [vmem:[#allocation8_spill] sm:$0xff] }
 0x729   :  { %v4304_v6 = vpop.permute.xlu0 %4303  ;;  %v2815_v21 = vpop.permute.xlu1 %2814 }
 0x72a   :  { %v2817_v62 = vsel %vm2722_vm8, %v2813_v10, %v2815_v21  ;;  %vm10095_vm8 = vcmask 785408  }
 0x72b   :  { %v2821_v32 = vadd.f32 %v2817_v62, %v2775_v61  ;;  %vm10096_vm15 = vmmov %vm10095_vm8 }
 0x72d   :  { %v4308_v53 = vpop.permute.xlu0 %4307  ;;  %v4306_v22 = vpop.permute.xlu1 %4305 }
 0x72e   :  { %v4310_v35 = vsel %vm4309_vm11, %v4304_v6, %v4306_v22  ;;  %v4311_v59 = vsel %vm4309_vm11, %v4306_v22, %v4308_v53 }
 0x72f   :  { %v4314_v7 = vadd.f32 %v4310_v35, %v4255_v51  ;;  %v10106_v35 = vld [vmem:[#allocation24_spill] sm:$0xff] }
 0x731   :  { %v2859_v19 = vpop.permute.xlu0 %2858  ;;  %v2857_v17 = vpop.permute.xlu1 %2856 }
 0x732   :  { %v2863_v24 = vsel %vm2862_vm0, %v2857_v17, %v2859_v19 }
 0x733   :  { %v2867_v18 = vadd.f32 %v2863_v24, %v2820_v50 }
 0x735   :  { %v4360_v55 = vpop.permute.xlu0 %4359  ;;  %v2861_v44 = vpop.permute.xlu1 %2860 }
 0x736   :  { %v2864_v9 = vsel %vm2862_vm0, %v2859_v19, %v2861_v44  ;;  %v4315_v19 = vadd.f32 %v4311_v59, %v4256_v28  ;;  %v10097_v44 = vld [vmem:[#allocation66_spill] sm:$0xff] }
 0x737   :  { %v2868_v20 = vadd.f32 %v2864_v9, %v2821_v32  ;;  %v10108_v28 = vld [vmem:[#allocation26_spill] sm:$0xff] }
 0x739   :  { %v4364_v29 = vpop.permute.xlu0 %4363  ;;  %v4362_v26 = vpop.permute.xlu1 %4361 }
 0x73a   :  { %v4366_v45 = vsel %vm4365_vm13, %v4360_v55, %v4362_v26  ;;  %v4367_v21 = vsel %vm4365_vm13, %v4362_v26, %v4364_v29 }
 0x73b   :  { %v4370_v22 = vadd.f32 %v4366_v45, %v4314_v7  ;;  %v4371_v1 = vadd.f32 %v4367_v21, %v4315_v19 }
 0x73d   :  { %v2906_v42 = vpop.permute.xlu0 %2905  ;;  %v2904_v48 = vpop.permute.xlu1 %2903 }
 0x73e   :  { %v2910_v41 = vsel %vm10093_vm2, %v2904_v48, %v2906_v42 }
 0x73f   :  { %v2914_v57 = vadd.f32 %v2910_v41, %v2867_v18 }
 0x741   :  { %v4413_v63 = vpop.permute.xlu0 %4412  ;;  %v2908_v13 = vpop.permute.xlu1 %2907 }
 0x742   :  { %v2911_v58 = vsel %vm10094_vm9, %v2906_v42, %v2908_v13  ;;  %v10099_v42 = vld [vmem:[#allocation19_spill] sm:$0xff] }
 0x743   :  { %v2915_v43 = vadd.f32 %v2911_v58, %v2868_v20 }
 0x745   :  { %v4417_v54 = vpop.permute.xlu0 %4416  ;;  %v4415_v39 = vpop.permute.xlu1 %4414 }
 0x746   :  { %v4419_v6 = vsel %vm4418_vm6, %v4413_v63, %v4415_v39  ;;  %v4420_v53 = vsel %vm4418_vm6, %v4415_v39, %v4417_v54  ;;  %vm10103_vm6 = vcmask 64512  }
 0x747   :  { %vm10104_vm4 = vmmov %vm10103_vm6 }
 0x748   :  { %vm10110_vm13 = vmmov %vm10104_vm4 }
 0x749   :  { %v2953_v60 = vpop.permute.xlu0 %2952  ;;  %v2951_v36 = vpop.permute.xlu1 %2950 }
 0x74a   :  { %v2956_v34 = vsel %vm2862_vm0, %v2951_v36, %v2953_v60  ;;  %v4424_v36 = vadd.f32 %v4420_v53, %v4371_v1 }
 0x74b   :  { %v2960_v5 = vadd.f32 %v2956_v34, %v2914_v57 }
 0x74d   :  { %v4472_v0 = vpop.permute.xlu0 %4471  ;;  %v2955_v27 = vpop.permute.xlu1 %2954 }
 0x74e   :  { %v2957_v40 = vsel %vm2862_vm0, %v2953_v60, %v2955_v27  ;;  %vm4536_vm0 = vcmask 637952   ;;  %v4423_v60 = vadd.f32 %v4419_v6, %v4370_v22 }
 0x74f   :  { %v2961_v37 = vadd.f32 %v2957_v40, %v2915_v43 }
 0x751   :  { %v4476_v31 = vpop.permute.xlu0 %4475  ;;  %v4474_v52 = vpop.permute.xlu1 %4473 }
 0x752   :  { %v4478_v29 = vsel %vm4477_vm14, %v4472_v0, %v4474_v52  ;;  %v4479_v26 = vsel %vm4477_vm14, %v4474_v52, %v4476_v31  ;;  %vm10111_vm14 = vmmov %vm10104_vm4 }
 0x753   :  { %v4482_v16 = vadd.f32 %v4478_v29, %v4423_v60  ;;  %v4483_v24 = vadd.f32 %v4479_v26, %v4424_v36 }
 0x755   :  { %v2968_v38 = vpop.permute.xlu0 %2967  ;;  %v2966_v25 = vpop.permute.xlu1 %2965 }
 0x756   :  { %v2971_v8 = vsel %vm10095_vm8, %v2966_v25, %v2968_v38 }
 0x757   :  { %v2975_v3 = vadd.f32 %v2971_v8, %v2960_v5 }
 0x759   :  { %v4531_v49 = vpop.permute.xlu0 %4530  ;;  %v2970_v33 = vpop.permute.xlu1 %2969  ;;  %v4561_v47 = vrot.slane %v2975_v3, 6 }
 0x75a   :  { %v2972_v46 = vsel %vm10096_vm15, %v2968_v38, %v2970_v33  ;;  %v10102_v38 = vld [vmem:[#allocation18_spill] sm:$0xff]  ;;  %v10105_v33 = vld [vmem:[#allocation9_spill] sm:$0xff] }
 0x75b   :  { %v2976_v10 = vadd.f32 %v2972_v46, %v2961_v37  ;;  %v4565_v11 = vsel %vm10098_vm10, %v10097_v44, %v4561_v47  ;;  %v825_v59 = vadd.f32 %v10106_v35, %v10105_v33  ;;  %v10107_v46 = vld [vmem:[#allocation41_spill] sm:$0xff]  ;;  %v9175_v47 = vadd.f32 %v10108_v28, %v10105_v33 }
 0x75c   :  { %v896_v51 = vadd.f32 %v10107_v46, %v10105_v33 }
 0x75d   :  { %v4562_v14 = vrot.slane %v2976_v10, 6  ;;  %v4535_v15 = vpop.permute.xlu0 %4534  ;;  %v4533_v17 = vpop.permute.xlu1 %4532  ;;  %v10109_v10 = vld [vmem:[#allocation59_spill] sm:$0xff]  ;;  %v5111_v21 = vmul.f32 -1.442695, %v825_v59  ;;  %v5112_v19 = vmul.f32 -1.442695, %v9175_v47 }
 0x75e   :  { %v4537_v39 = vsel %vm4536_vm0, %v4531_v49, %v4533_v17  ;;  %v4538_v4 = vsel %vm4536_vm0, %v4533_v17, %v4535_v15  ;;  %v38_v49 = vld [vmem:[%s9215_s1 + $0x10] sm:$0xff]  ;;  %v9179_v45 = vadd.f32 %v10109_v10, %v10105_v33  ;;  %v5113_v7 = vmul.f32 -1.442695, %v896_v51 }
 0x75f   :  { %v4566_v55 = vsel %vm10100_vm12, %v10099_v42, %v4562_v14  ;;  %v4541_v41 = vadd.f32 %v4537_v39, %v4482_v16  ;;  %v4542_v61 = vadd.f32 %v4538_v4, %v4483_v24  ;;  %5429 = vpow2.f32 %v5111_v21 }
 0x760   :  { %v4571_v48 = vcombine.low %v4565_v11, %v4566_v55  ;;  %v4572_v13 = vcombine.high %v4565_v11, %v4566_v55  ;;  %5431 = vpow2.f32 %v5113_v7  ;;  %v5467_v7 = vld [vmem:[%s9214_s0 + $0x8] sm:$0xff] }
 0x761   :  { %v4549_v63 = vpop.permute.xlu0 %4548  ;;  %v4547_v54 = vpop.permute.xlu1 %4546  ;;  %5433 = vpow2.f32 %v5112_v19 }
 0x762   :  { %v4585_v12 = vrot.slane %v4571_v48, %v10101_v2  ;;  %v4592_v27 = vrot.slane %v4572_v13, %v10101_v2  ;;  %v4553_v50 = vsel %vm4552_vm7, %v4547_v54, %v4549_v63 }
 0x763   :  { %v4557_v52 = vadd.f32 %v4553_v50, %v4541_v41 }
 0x764   :  { %v4615_v62 = vcombine.low %v4585_v12, %v4592_v27  ;;  %v4616_v0 = vcombine.high %v4585_v12, %v4592_v27 }
 0x765   :  { %v4551_v18 = vpop.permute.xlu1 %4550 }
 0x766   :  { %v4554_v31 = vsel %vm4552_vm7, %v4549_v63, %v4551_v18  ;;  %v4625_v25 = vrot.slane %v4615_v62, %v10102_v38  ;;  %v4632_v8 = vrot.slane %v4616_v0, %v10102_v38 }
 0x767   :  { %v4558_v9 = vadd.f32 %v4554_v31, %v4542_v61 }
 0x769   :  { %v4573_v34 = vcombine.low %v4557_v52, %v4558_v9  ;;  %v4574_v32 = vcombine.high %v4557_v52, %v4558_v9  ;;  %v5430_v48 = vpop.eup %5429 }
 0x76a   :  { %v5432_v13 = vpop.eup %5431  ;;  %v4812_v63 = vadd.f32 1.0, %v5430_v48 }
 0x76b   :  { %v4599_v57 = vrot.slane %v4573_v34, %v10101_v2  ;;  %v4606_v58 = vrot.slane %v4574_v32, %v10101_v2  ;;  %v5434_v60 = vpop.eup %5433  ;;  %v4814_v54 = vadd.f32 1.0, %v5432_v13 }
 0x76c   :  { %v4813_v39 = vadd.f32 1.0, %v5434_v60 }
 0x76d   :  { %v4617_v20 = vcombine.low %v4599_v57, %v4606_v58  ;;  %v4618_v5 = vcombine.high %v4599_v57, %v4606_v58 }
 0x76f   :  { %v4639_v40 = vrot.slane %v4617_v20, %v10102_v38  ;;  %v4646_v43 = vrot.slane %v4618_v5, %v10102_v38 }
 0x771   :  { %v4648_v3 = vcombine.high %v4625_v25, %v4639_v40  ;;  %v4650_v56 = vcombine.high %v4632_v8, %v4646_v43  ;;  %v4647_v30 = vcombine.low %v4625_v25, %v4639_v40  ;;  %v4649_v37 = vcombine.low %v4632_v8, %v4646_v43 }
 0x772   :  { %v4609_v14 = vpop.permute.xlu0 %4608 }
 0x773   :  { %4658 = vmatprep.subr.mxu0 %v4648_v3  ;;  %4729 = vmatprep.subr.mxu1 %v4650_v56 }
 0x774   :  { %4659 = vmatpush1.msra.mxu0 %v4647_v30  ;;  %4730 = vmatpush1.msra.mxu1 %v4649_v37  ;;  %v39_v37 = vld [vmem:[%s9215_s1 + $0x18] sm:$0xff] }
 0x775   :  { %5109 = vmatmul.mubr.msk.f32.vlgmr.msra.gmra.mrb[4].mxu0 %vm10103_vm6, %v38_v49  ;;  %5110 = vmatmul.mubr.msk.f32.vlgmr.msra.gmra.mrb[4].mxu1 %vm10104_vm4, %v38_v49 }
 0x776   :  { %4931 = vmatprep.mubr.f32.mxu0 %v9656_v23  ;;  %5002 = vmatprep.mubr.f32.mxu1 %v9656_v23  ;;  %v5114_v23 = vmul.f32 -1.442695, %v9179_v45  ;;  %v4862_v49 = vpop.permute.xlu1 %4861 }
 0x778   :  { %5435 = vpow2.f32 %v5114_v23  ;;  %v5468_v23 = vld [vmem:[%s9214_s0 + $0x10] sm:$0xff] }
 0x782   :  { %v5436_v36 = vpop.eup %5435 }
 0x783   :  { %v4815_v4 = vadd.f32 1.0, %v5436_v36 }
 0x848   :  { %v4724_v15 = vpop.f32.mrb[4].mxu0  ;;  %v4795_v17 = vpop.f32.mrb[4].mxu1 }
 0x849   :  { %v4725_v6 = vadd.f32 %v4724_v15, %v4609_v14  ;;  %v4796_v53 = vadd.f32 %v4795_v17, %v4609_v14  ;;  %v4726_v22 = vpop.f32.mrb[5].mxu0  ;;  %v4797_v1 = vpop.f32.mrb[5].mxu1  ;;  %v5469_v15 = vld [vmem:[%s9214_s0 + $0x18] sm:$0xff] }
 0x84a   :  { %v4727_v44 = vadd.f32 %v4726_v22, %v4609_v14  ;;  %v4798_v11 = vadd.f32 %v4797_v1, %v4609_v14 }
 0x84b   :  { %v5115_v42 = vmul.f32 -1.442695, %v4725_v6  ;;  %v5117_v55 = vmul.f32 -1.442695, %v4796_v53 }
 0x84c   :  { %v5116_v29 = vmul.f32 -1.442695, %v4727_v44  ;;  %v5118_v26 = vmul.f32 -1.442695, %v4798_v11 }
 0x84d   :  { %5437 = vpow2.f32 %v5115_v42 }
 0x84e   :  { %5439 = vpow2.f32 %v5117_v55 }
 0x84f   :  { %5441 = vpow2.f32 %v5116_v29 }
 0x850   :  { %5443 = vpow2.f32 %v5118_v26 }
 0x851   :  { %5445 = vrcp.f32 %v4812_v63 }
 0x852   :  { %5447 = vrcp.f32 %v4814_v54 }
 0x853   :  { %5449 = vrcp.f32 %v4813_v39 }
 0x854   :  { %5451 = vrcp.f32 %v4815_v4 }
 0x857   :  { %v5438_v2 = vpop.eup %5437 }
 0x858   :  { %v5440_v12 = vpop.eup %5439  ;;  %v4840_v27 = vadd.f32 1.0, %v5438_v2 }
 0x859   :  { %v5442_v16 = vpop.eup %5441  ;;  %v4842_v24 = vadd.f32 1.0, %v5440_v12 }
 0x85a   :  { %v5444_v50 = vpop.eup %5443  ;;  %5453 = vrcp.f32 %v4840_v27  ;;  %v4841_v62 = vadd.f32 1.0, %v5442_v16 }
 0x85b   :  { %5455 = vrcp.f32 %v4842_v24  ;;  %v4843_v0 = vadd.f32 1.0, %v5444_v50  ;;  %v5446_v41 = vpop.eup %5445 }
 0x85c   :  { %5457 = vrcp.f32 %v4841_v62  ;;  %v5448_v61 = vpop.eup %5447  ;;  %v4824_v34 = vmul.f32 %v5446_v41, %v825_v59 }
 0x85d   :  { %5459 = vrcp.f32 %v4843_v0  ;;  %v5450_v18 = vpop.eup %5449  ;;  %v4826_v58 = vmul.f32 %v5448_v61, %v896_v51 }
 0x85e   :  { %v5452_v31 = vpop.eup %5451  ;;  %v4825_v38 = vmul.f32 %v5450_v18, %v9175_v47 }
 0x85f   :  { %v4827_v8 = vmul.f32 %v5452_v31, %v9179_v45  ;;  %v5466_v45 = vld [vmem:[%s9214_s0] sm:$0xff] }
 0x864   :  { %v5454_v52 = vpop.eup %5453 }
 0x865   :  { %v5456_v9 = vpop.eup %5455  ;;  %v4852_v32 = vmul.f32 %v5454_v52, %v4725_v6 }
 0x866   :  { %v5458_v57 = vpop.eup %5457  ;;  %v4854_v20 = vmul.f32 %v5456_v9, %v4796_v53 }
 0x867   :  { %v5460_v5 = vpop.eup %5459  ;;  %v4856_v25 = vmul.f32 %v4852_v32, %v4824_v34  ;;  %v4853_v40 = vmul.f32 %v5458_v57, %v4727_v44 }
 0x868   :  { %v4858_v43 = vmul.f32 %v4854_v20, %v4826_v58  ;;  %v4855_v3 = vmul.f32 %v5460_v5, %v4798_v11 }
 0x869   :  { %v4857_v56 = vmul.f32 %v4853_v40, %v4825_v38 }
 0x86a   :  { %v4859_v30 = vmul.f32 %v4855_v3, %v4827_v8 }
 0x86b   :  { %4867 = vmatprep.subr.mxu0 %v4857_v56 }
 0x86c   :  { %4938 = vmatprep.subr.mxu1 %v4859_v30  ;;  %4868 = vmatpush1.msra.mxu0 %v4856_v25 }
 0x86d   :  { %4939 = vmatpush1.msra.mxu1 %v4858_v43  ;;  %5119 = vmatmul.mubr.msk.f32.vlgmr.msra.gmra.mrb[6].mxu0 %vm10110_vm13, %v39_v37 }
 0x86e   :  { %5120 = vmatmul.mubr.msk.f32.vlgmr.msra.gmra.mrb[6].mxu1 %vm10111_vm14, %v39_v37 }
 0x940   :  { %v4933_v33 = vpop.f32.mrb[6].mxu0 }
 0x941   :  { %v5004_v35 = vpop.f32.mrb[6].mxu1  ;;  %v4935_v59 = vpop.f32.mrb[7].mxu0  ;;  %v4934_v46 = vadd.f32 %v4933_v33, %v4862_v49 }
 0x942   :  { %v5006_v51 = vpop.f32.mrb[7].mxu1  ;;  %v4936_v28 = vadd.f32 %v4935_v59, %v4862_v49  ;;  %v5005_v47 = vadd.f32 %v5004_v35, %v4862_v49 }
 0x943   :  { %v5007_v10 = vadd.f32 %v5006_v51, %v4862_v49  ;;  %v5009_v21 = vadd.f32 %v5466_v45, %v4934_v46 }
 0x944   :  { %v5010_v19 = vadd.f32 %v5467_v7, %v4936_v28  ;;  %v5011_v14 = vadd.f32 %v5468_v23, %v5005_v47 }
 0x945   :  { %v5012_v17 = vadd.f32 %v5469_v15, %v5007_v10  ;;  %5013 = vst [vmem:[#allocation5] sm:$0xff] %v5009_v21 }
 0x946   :  { %5014 = vst [vmem:[#allocation5 + $0x8] sm:$0xff] %v5010_v19  ;;  %5015 = vst [vmem:[#allocation5 + $0x10] sm:$0xff] %v5011_v14 }
 0x947   :  { %5016 = vst [vmem:[#allocation5 + $0x18] sm:$0xff] %v5012_v17 }
 0x948   :  { %5503 = shalt.err (!%p5500_p12)
}
 0x949   :  { %s5504_s24 = scalar_lea.hbm %s9218_s4, 512 }
 0x94a   :  { %p5505_p13 = scmp.ne.s32.totalorder %s9218_s4, %s5504_s24  ;;  %p5508_p0 = scmp.lt.u32.totalorder %s5504_s24, %s9218_s4 }
 0x94c   :  { %p5510_p1 = pnand %p5508_p0, %p5505_p13 }
 0x94e   :  { %5513 = shalt.err (!%p5510_p1)
}
 0x94f   :  { %5026 = dma.vmem_to_hbm [thread:$0]  %s5024_s11, 512, %s9218_s4, [#allocation4]  }
 0x950   :  { %5516 = dma.done.wait [#allocation4], 512  }
 0x951   :  { %5517 = vsyncadd [#allocation4], 4294966784 }
 0x952   :  { %5030 = vsyncpa [#allocation3], 1 }
 0x953   :  { %5031 = vsyncpa [#allocation4], 1 }

</bundles_post_ra>
